<compile_context>
chip_gen: v6e
topology: v6e:2x2x1
jax: 0.10.0
libtpu: 0.0.40
codegen_flags: <defaults>
</compile_context>

<pallas_src>
import functools

import jax
import jax.numpy as jnp
from jax import lax
from jax.experimental import pallas as pl
from jax.experimental.pallas import tpu as pltpu


def _round_up(x, m):
    return (x + m - 1) // m * m


# ----------------------------------------------------------------------------------
# Pallas kernel: fused (im2col'd conv) matmul + folded-BN shift + ReLU
# ----------------------------------------------------------------------------------
@functools.lru_cache(maxsize=None)
def _build_matmul_bn_relu(R_pad, K, Cout, TM):
    """rows (R_pad, K) bf16 @ w (K, Cout) bf16 -> relu(acc + shift) -> (R_pad, Cout) bf16.
    One grid step = one TM-row slab; the whole K = kD*kH*kW*Cin contraction is a single
    MXU dot, so the systolic array stays fed and there is no tap loop / accumulator."""

    def kernel(x_ref, w_ref, shift_ref, o_ref):
        acc = jnp.dot(x_ref[...], w_ref[...], preferred_element_type=jnp.float32)
        o_ref[...] = jnp.maximum(acc + shift_ref[...], 0.0).astype(o_ref.dtype)

    flops = 2 * R_pad * K * Cout
    bytes_accessed = R_pad * K * 2 + K * Cout * 2 + R_pad * Cout * 2 + Cout * 4

    return pl.pallas_call(
        kernel,
        out_shape=jax.ShapeDtypeStruct((R_pad, Cout), jnp.bfloat16),
        grid_spec=pltpu.PrefetchScalarGridSpec(
            num_scalar_prefetch=0,
            grid=(R_pad // TM,),
            in_specs=[
                pl.BlockSpec((TM, K), lambda i: (i, 0)),      # row slab (auto-pipelined)
                pl.BlockSpec((K, Cout), lambda i: (0, 0)),    # folded (BN-scaled) weights
                pl.BlockSpec((1, Cout), lambda i: (0, 0)),    # folded-BN shift
            ],
            out_specs=pl.BlockSpec((TM, Cout), lambda i: (i, 0)),
        ),
        compiler_params=pltpu.CompilerParams(
            dimension_semantics=("parallel",)),
        cost_estimate=pl.CostEstimate(flops=int(flops), transcendentals=0,
                                      bytes_accessed=int(bytes_accessed)),
    )


# ----------------------------------------------------------------------------------
# Glue: im2col (handles stride directly), flatten rows, output-site mask
# ----------------------------------------------------------------------------------
def _im2col(x, ksize, stride, padding):
    """(B, D, H, W, C) -> (B, Do, Ho, Wo, kD*kH*kW*C): taps packed into channels."""
    B, D, H, W, C = x.shape
    kD, kH, kW = ksize
    sD, sH, sW = stride
    pD, pH, pW = padding
    Do = (D + 2 * pD - kD) // sD + 1
    Ho = (H + 2 * pH - kH) // sH + 1
    Wo = (W + 2 * pW - kW) // sW + 1
    xp = jnp.pad(x, ((0, 0), (pD, pD), (pH, pH), (pW, pW), (0, 0)))
    cols = []
    for kz in range(kD):
        for ky in range(kH):
            for kx in range(kW):
                cols.append(xp[:,
                               kz:kz + sD * (Do - 1) + 1:sD,
                               ky:ky + sH * (Ho - 1) + 1:sH,
                               kx:kx + sW * (Wo - 1) + 1:sW, :])
    return jnp.concatenate(cols, axis=-1), (Do, Ho, Wo)


def _sparse_conv_bn_relu(x, mask, params, row_tile=512):
    """x: (B, D, H, W, Cin) bf16 dense voxels (zeros at inactive sites);
    mask: (B, D, H, W) f32 {0,1} active-site mask.
    (SubM/Sparse)Conv3d + folded BN(eval) + ReLU + output-site mask -> (y, out_mask)."""
    ksize, stride, padding = params["ksize"], params["stride"], params["padding"]
    Cout = params["w"].shape[-1]
    B = x.shape[0]

    patches, (Do, Ho, Wo) = _im2col(x, ksize, stride, padding)
    K = patches.shape[-1]
    R = B * Do * Ho * Wo
    TM = row_tile if R >= row_tile else _round_up(R, 8)
    R_pad = _round_up(R, TM)

    rows = patches.reshape(R, K)
    if R_pad != R:
        rows = jnp.pad(rows, ((0, R_pad - R), (0, 0)))

    fn = _build_matmul_bn_relu(R_pad, K, Cout, TM)
    y = fn(rows, params["w"], params["shift"])                     # (R_pad, Cout) bf16
    y = y[:R].reshape(B, Do, Ho, Wo, Cout)

    # spconv output index set
    if all(s == 1 for s in stride):
        out_mask = mask                                            # SubMConv3d: unchanged
    else:                                                          # SparseConv3d: window max
        out_mask = (lax.reduce_window(
            mask, 0.0, lax.max, (1,) + tuple(ksize), (1,) + tuple(stride),
            ((0, 0),) + tuple((p, p) for p in padding)) > 0).astype(jnp.float32)

    # Zero inactive output sites (BN shift would otherwise un-zero them).  Applied here in
    # glue, always before the next layer's im2col consumes the activations.
    y = y * out_mask[..., None].astype(y.dtype)
    return y, out_mask


# ----------------------------------------------------------------------------------
# Model
# ----------------------------------------------------------------------------------
class VoxelBackBone8xPallas:
    def __init__(self, input_channels, grid_size, key, last_pad=0):
        gx, gy, gz = grid_size                          # grid_size is [nx, ny, nz]
        self.sparse_shape = (gz + 1, gy, gx)            # (D, H, W) = (z, y, x)
        eps = 1e-3
        keys = iter(jax.random.split(key, 32))

        def conv_p(cin, cout, ksize, stride=(1, 1, 1), padding=(0, 0, 0)):
            kD, kH, kW = ksize
            k1, k2, k3 = jax.random.split(next(keys), 3)
            w = jax.random.normal(k1, (kD * kH * kW, cin, cout), jnp.float32) * 0.05
            gamma = 1.0 + 0.1 * jax.random.normal(k2, (cout,), jnp.float32)
            beta = 0.1 * jax.random.normal(k3, (cout,), jnp.float32)
            rmean = jnp.zeros((cout,), jnp.float32)
            rvar = jnp.ones((cout,), jnp.float32)
            scale = gamma * lax.rsqrt(rvar + eps)       # BN(eval) folded to per-channel affine
            shift = beta - rmean * scale                # all convs are bias=False
            w_folded = (w * scale[None, None, :]).reshape(kD * kH * kW * cin, cout)
            return dict(w=w_folded.astype(jnp.bfloat16),
                        shift=shift.reshape(1, cout),
                        ksize=tuple(ksize), stride=tuple(stride), padding=tuple(padding))

        self.conv_input = conv_p(input_channels, 16, (3, 3, 3), padding=(1, 1, 1))
        self.conv1 = [conv_p(16, 16, (3, 3, 3), padding=(1, 1, 1))]
        self.conv2 = [conv_p(16, 32, (3, 3, 3), stride=(2, 2, 2), padding=(1, 1, 1)),
                      conv_p(32, 32, (3, 3, 3), padding=(1, 1, 1)),
                      conv_p(32, 32, (3, 3, 3), padding=(1, 1, 1))]
        self.conv3 = [conv_p(32, 64, (3, 3, 3), stride=(2, 2, 2), padding=(1, 1, 1)),
                      conv_p(64, 64, (3, 3, 3), padding=(1, 1, 1)),
                      conv_p(64, 64, (3, 3, 3), padding=(1, 1, 1))]
        self.conv4 = [conv_p(64, 64, (3, 3, 3), stride=(2, 2, 2), padding=(0, 1, 1)),
                      conv_p(64, 64, (3, 3, 3), padding=(1, 1, 1)),
                      conv_p(64, 64, (3, 3, 3), padding=(1, 1, 1))]
        self.conv_out = conv_p(64, 128, (3, 1, 1), stride=(2, 1, 1),
                               padding=(last_pad, last_pad, last_pad))
        self.num_point_features = 128
        self.backbone_channels = {"x_conv1": 16, "x_conv2": 32, "x_conv3": 64, "x_conv4": 64}

    @staticmethod
    def _seq(x, mask, params_list):
        for p in params_list:
            x, mask = _sparse_conv_bn_relu(x, mask, p)
        return x, mask

    def __call__(self, voxel_features, voxel_coords, batch_size):
        # NOTE: duplicate voxel coords resolve by "one write wins" (spconv assumes unique voxels).
        D, H, W = self.sparse_shape
        C = voxel_features.shape[1]
        b = voxel_coords[:, 0]
        z = voxel_coords[:, 1]
        y = voxel_coords[:, 2]
        xx = voxel_coords[:, 3]
        dense = jnp.zeros((batch_size, D, H, W, C), jnp.bfloat16)
        dense = dense.at[b, z, y, xx].set(voxel_features.astype(jnp.bfloat16))
        mask = jnp.zeros((batch_size, D, H, W), jnp.float32).at[b, z, y, xx].set(1.0)

        x, m = _sparse_conv_bn_relu(dense, mask, self.conv_input)   # SubMConv3d(C,16)+BN+ReLU
        x_conv1, m1 = self._seq(x, m, self.conv1)
        x_conv2, m2 = self._seq(x_conv1, m1, self.conv2)
        x_conv3, m3 = self._seq(x_conv2, m2, self.conv3)
        x_conv4, m4 = self._seq(x_conv3, m3, self.conv4)
        out, m_out = _sparse_conv_bn_relu(x_conv4, m4, self.conv_out)

        return {
            "encoded_spconv_tensor": out,
            "encoded_spconv_tensor_mask": m_out,
            "encoded_spconv_tensor_stride": 8,
            "multi_scale_3d_features": {
                "x_conv1": x_conv1, "x_conv2": x_conv2,
                "x_conv3": x_conv3, "x_conv4": x_conv4,
            },
            "multi_scale_3d_masks": {"x_conv1": m1, "x_conv2": m2,
                                     "x_conv3": m3, "x_conv4": m4},
            "multi_scale_3d_strides": {"x_conv1": 1, "x_conv2": 2,
                                       "x_conv3": 4, "x_conv4": 8},
        }


# ----------------------------------------------------------------------------------
if __name__ == "__main__":
    key = jax.random.PRNGKey(0)
    k_model, k_b, k_z, k_y, k_x, k_f = jax.random.split(key, 6)

    input_channels = 4
    batch_size = 2
    grid_size = [16, 16, 24]            # (nx, ny, nz) -> sparse_shape (25, 16, 16)
    num_voxels = 128

    model = VoxelBackBone8xPallas(input_channels, grid_size, k_model)

    voxel_coords = jnp.stack([
        jax.random.randint(k_b, (num_voxels,), 0, batch_size),
        jax.random.randint(k_z, (num_voxels,), 0, grid_size[2]),
        jax.random.randint(k_y, (num_voxels,), 0, grid_size[1]),
        jax.random.randint(k_x, (num_voxels,), 0, grid_size[0]),
    ], axis=1).astype(jnp.int32)
    voxel_features = jax.random.normal(k_f, (num_voxels, input_channels), jnp.float32)

    fwd = jax.jit(lambda vf, vc: model(vf, vc, batch_size))
    out = fwd(voxel_features, voxel_coords)
    jax.block_until_ready(out)

    assert out["encoded_spconv_tensor"].shape == (batch_size, 1, 2, 2, 128)
    assert out["multi_scale_3d_features"]["x_conv1"].shape == (batch_size, 25, 16, 16, 16)
    assert out["multi_scale_3d_features"]["x_conv2"].shape == (batch_size, 13, 8, 8, 32)
    assert out["multi_scale_3d_features"]["x_conv3"].shape == (batch_size, 7, 4, 4, 64)
    assert out["multi_scale_3d_features"]["x_conv4"].shape == (batch_size, 3, 2, 2, 64)
    assert bool(jnp.all(jnp.isfinite(out["encoded_spconv_tensor"].astype(jnp.float32))))

    print("KERNEL_OK")
</pallas_src>

<mosaic_0001>
module attributes {stable_mosaic.version = 11 : i64} {
  func.func @kernel(%arg0: i32, %arg1: memref<512x108xbf16, #tpu.memory_space<vmem>>, %arg2: memref<108x16xbf16, #tpu.memory_space<vmem>>, %arg3: memref<1x16xf32, #tpu.memory_space<vmem>>, %arg4: memref<512x16xbf16, #tpu.memory_space<vmem>>) attributes {dimension_semantics = [#tpu.dimension_semantics<parallel>], iteration_bounds = array<i64: 25>, scalar_prefetch = 0 : i64, scratch_operands = 0 : i64, tpu.core_type = #tpu.core_type<tc>, window_params = [{transform_indices = @transform_0, window_bounds = array<i64: 512, 108>}, {pipeline_mode = #tpu.pipeline_mode<synchronous>, transform_indices = @transform_1, window_bounds = array<i64: 108, 16>}, {pipeline_mode = #tpu.pipeline_mode<synchronous>, transform_indices = @transform_2, window_bounds = array<i64: 1, 16>}, {transform_indices = @transform_3, window_bounds = array<i64: 512, 16>}]} {
    %c0 = arith.constant 0 : index
    %c0_0 = arith.constant 0 : index
    %0 = vector.load %arg1[%c0, %c0_0] : memref<512x108xbf16, #tpu.memory_space<vmem>>, vector<512x108xbf16>
    %c0_1 = arith.constant 0 : index
    %c0_2 = arith.constant 0 : index
    %1 = vector.load %arg2[%c0_1, %c0_2] : memref<108x16xbf16, #tpu.memory_space<vmem>>, vector<108x16xbf16>
    %cst = arith.constant dense<0.000000e+00> : vector<512x16xf32>
    %2 = tpu.matmul %0, %1, %cst {dimension_numbers = #tpu.dot_dimension_numbers<[1], [0], [0], [1], [0, 0, 1, 1], [], []>} : vector<512x108xbf16>, vector<108x16xbf16>, vector<512x16xf32> -> vector<512x16xf32>
    %c0_3 = arith.constant 0 : index
    %c0_4 = arith.constant 0 : index
    %3 = vector.load %arg3[%c0_3, %c0_4] : memref<1x16xf32, #tpu.memory_space<vmem>>, vector<1x16xf32>
    %4 = vector.broadcast %3 : vector<1x16xf32> to vector<512x16xf32>
    %5 = arith.addf %2, %4 : vector<512x16xf32>
    %cst_5 = arith.constant 0.000000e+00 : f32
    %6 = vector.broadcast %cst_5 : f32 to vector<512x16xf32>
    %7 = arith.maximumf %5, %6 : vector<512x16xf32>
    %8 = arith.truncf %7 : vector<512x16xf32> to vector<512x16xbf16>
    %c0_6 = arith.constant 0 : index
    %c0_7 = arith.constant 0 : index
    %9 = vector.load %arg4[%c0_6, %c0_7] : memref<512x16xbf16, #tpu.memory_space<vmem>>, vector<512x16xbf16>
    tpu.vector_store %arg4[%c0_6, %c0_7], %8 {strides = array<i32>} : memref<512x16xbf16, #tpu.memory_space<vmem>>, vector<512x16xbf16>,
    return
  }
  func.func @transform_0(%arg0: i32) -> (i32, i32) {
    %c0_i32 = arith.constant 0 : i32
    %c0_i32_0 = arith.constant 0 : i32
    return %arg0, %c0_i32 : i32, i32
  }
  func.func @transform_1(%arg0: i32) -> (i32, i32) {
    %c0_i32 = arith.constant 0 : i32
    %c0_i32_0 = arith.constant 0 : i32
    %c0_i32_1 = arith.constant 0 : i32
    return %c0_i32, %c0_i32_0 : i32, i32
  }
  func.func @transform_2(%arg0: i32) -> (i32, i32) {
    %c0_i32 = arith.constant 0 : i32
    %c0_i32_0 = arith.constant 0 : i32
    %c0_i32_1 = arith.constant 0 : i32
    return %c0_i32, %c0_i32_0 : i32, i32
  }
  func.func @transform_3(%arg0: i32) -> (i32, i32) {
    %c0_i32 = arith.constant 0 : i32
    %c0_i32_0 = arith.constant 0 : i32
    return %arg0, %c0_i32 : i32, i32
  }
}

module attributes {stable_mosaic.version = 11 : i64} {
  func.func @kernel(%arg0: i32, %arg1: memref<512x432xbf16, #tpu.memory_space<vmem>>, %arg2: memref<432x16xbf16, #tpu.memory_space<vmem>>, %arg3: memref<1x16xf32, #tpu.memory_space<vmem>>, %arg4: memref<512x16xbf16, #tpu.memory_space<vmem>>) attributes {dimension_semantics = [#tpu.dimension_semantics<parallel>], iteration_bounds = array<i64: 25>, scalar_prefetch = 0 : i64, scratch_operands = 0 : i64, tpu.core_type = #tpu.core_type<tc>, window_params = [{transform_indices = @transform_0, window_bounds = array<i64: 512, 432>}, {pipeline_mode = #tpu.pipeline_mode<synchronous>, transform_indices = @transform_1, window_bounds = array<i64: 432, 16>}, {pipeline_mode = #tpu.pipeline_mode<synchronous>, transform_indices = @transform_2, window_bounds = array<i64: 1, 16>}, {transform_indices = @transform_3, window_bounds = array<i64: 512, 16>}]} {
    %c0 = arith.constant 0 : index
    %c0_0 = arith.constant 0 : index
    %0 = vector.load %arg1[%c0, %c0_0] : memref<512x432xbf16, #tpu.memory_space<vmem>>, vector<512x432xbf16>
    %c0_1 = arith.constant 0 : index
    %c0_2 = arith.constant 0 : index
    %1 = vector.load %arg2[%c0_1, %c0_2] : memref<432x16xbf16, #tpu.memory_space<vmem>>, vector<432x16xbf16>
    %cst = arith.constant dense<0.000000e+00> : vector<512x16xf32>
    %2 = tpu.matmul %0, %1, %cst {dimension_numbers = #tpu.dot_dimension_numbers<[1], [0], [0], [1], [0, 0, 1, 1], [], []>} : vector<512x432xbf16>, vector<432x16xbf16>, vector<512x16xf32> -> vector<512x16xf32>
    %c0_3 = arith.constant 0 : index
    %c0_4 = arith.constant 0 : index
    %3 = vector.load %arg3[%c0_3, %c0_4] : memref<1x16xf32, #tpu.memory_space<vmem>>, vector<1x16xf32>
    %4 = vector.broadcast %3 : vector<1x16xf32> to vector<512x16xf32>
    %5 = arith.addf %2, %4 : vector<512x16xf32>
    %cst_5 = arith.constant 0.000000e+00 : f32
    %6 = vector.broadcast %cst_5 : f32 to vector<512x16xf32>
    %7 = arith.maximumf %5, %6 : vector<512x16xf32>
    %8 = arith.truncf %7 : vector<512x16xf32> to vector<512x16xbf16>
    %c0_6 = arith.constant 0 : index
    %c0_7 = arith.constant 0 : index
    %9 = vector.load %arg4[%c0_6, %c0_7] : memref<512x16xbf16, #tpu.memory_space<vmem>>, vector<512x16xbf16>
    tpu.vector_store %arg4[%c0_6, %c0_7], %8 {strides = array<i32>} : memref<512x16xbf16, #tpu.memory_space<vmem>>, vector<512x16xbf16>,
    return
  }
  func.func @transform_0(%arg0: i32) -> (i32, i32) {
    %c0_i32 = arith.constant 0 : i32
    %c0_i32_0 = arith.constant 0 : i32
    return %arg0, %c0_i32 : i32, i32
  }
  func.func @transform_1(%arg0: i32) -> (i32, i32) {
    %c0_i32 = arith.constant 0 : i32
    %c0_i32_0 = arith.constant 0 : i32
    %c0_i32_1 = arith.constant 0 : i32
    return %c0_i32, %c0_i32_0 : i32, i32
  }
  func.func @transform_2(%arg0: i32) -> (i32, i32) {
    %c0_i32 = arith.constant 0 : i32
    %c0_i32_0 = arith.constant 0 : i32
    %c0_i32_1 = arith.constant 0 : i32
    return %c0_i32, %c0_i32_0 : i32, i32
  }
  func.func @transform_3(%arg0: i32) -> (i32, i32) {
    %c0_i32 = arith.constant 0 : i32
    %c0_i32_0 = arith.constant 0 : i32
    return %arg0, %c0_i32 : i32, i32
  }
}

module attributes {stable_mosaic.version = 11 : i64} {
  func.func @kernel(%arg0: i32, %arg1: memref<512x432xbf16, #tpu.memory_space<vmem>>, %arg2: memref<432x32xbf16, #tpu.memory_space<vmem>>, %arg3: memref<1x32xf32, #tpu.memory_space<vmem>>, %arg4: memref<512x32xbf16, #tpu.memory_space<vmem>>) attributes {dimension_semantics = [#tpu.dimension_semantics<parallel>], iteration_bounds = array<i64: 4>, scalar_prefetch = 0 : i64, scratch_operands = 0 : i64, tpu.core_type = #tpu.core_type<tc>, window_params = [{transform_indices = @transform_0, window_bounds = array<i64: 512, 432>}, {pipeline_mode = #tpu.pipeline_mode<synchronous>, transform_indices = @transform_1, window_bounds = array<i64: 432, 32>}, {pipeline_mode = #tpu.pipeline_mode<synchronous>, transform_indices = @transform_2, window_bounds = array<i64: 1, 32>}, {transform_indices = @transform_3, window_bounds = array<i64: 512, 32>}]} {
    %c0 = arith.constant 0 : index
    %c0_0 = arith.constant 0 : index
    %0 = vector.load %arg1[%c0, %c0_0] : memref<512x432xbf16, #tpu.memory_space<vmem>>, vector<512x432xbf16>
    %c0_1 = arith.constant 0 : index
    %c0_2 = arith.constant 0 : index
    %1 = vector.load %arg2[%c0_1, %c0_2] : memref<432x32xbf16, #tpu.memory_space<vmem>>, vector<432x32xbf16>
    %cst = arith.constant dense<0.000000e+00> : vector<512x32xf32>
    %2 = tpu.matmul %0, %1, %cst {dimension_numbers = #tpu.dot_dimension_numbers<[1], [0], [0], [1], [0, 0, 1, 1], [], []>} : vector<512x432xbf16>, vector<432x32xbf16>, vector<512x32xf32> -> vector<512x32xf32>
    %c0_3 = arith.constant 0 : index
    %c0_4 = arith.constant 0 : index
    %3 = vector.load %arg3[%c0_3, %c0_4] : memref<1x32xf32, #tpu.memory_space<vmem>>, vector<1x32xf32>
    %4 = vector.broadcast %3 : vector<1x32xf32> to vector<512x32xf32>
    %5 = arith.addf %2, %4 : vector<512x32xf32>
    %cst_5 = arith.constant 0.000000e+00 : f32
    %6 = vector.broadcast %cst_5 : f32 to vector<512x32xf32>
    %7 = arith.maximumf %5, %6 : vector<512x32xf32>
    %8 = arith.truncf %7 : vector<512x32xf32> to vector<512x32xbf16>
    %c0_6 = arith.constant 0 : index
    %c0_7 = arith.constant 0 : index
    %9 = vector.load %arg4[%c0_6, %c0_7] : memref<512x32xbf16, #tpu.memory_space<vmem>>, vector<512x32xbf16>
    tpu.vector_store %arg4[%c0_6, %c0_7], %8 {strides = array<i32>} : memref<512x32xbf16, #tpu.memory_space<vmem>>, vector<512x32xbf16>,
    return
  }
  func.func @transform_0(%arg0: i32) -> (i32, i32) {
    %c0_i32 = arith.constant 0 : i32
    %c0_i32_0 = arith.constant 0 : i32
    return %arg0, %c0_i32 : i32, i32
  }
  func.func @transform_1(%arg0: i32) -> (i32, i32) {
    %c0_i32 = arith.constant 0 : i32
    %c0_i32_0 = arith.constant 0 : i32
    %c0_i32_1 = arith.constant 0 : i32
    return %c0_i32, %c0_i32_0 : i32, i32
  }
  func.func @transform_2(%arg0: i32) -> (i32, i32) {
    %c0_i32 = arith.constant 0 : i32
    %c0_i32_0 = arith.constant 0 : i32
    %c0_i32_1 = arith.constant 0 : i32
    return %c0_i32, %c0_i32_0 : i32, i32
  }
  func.func @transform_3(%arg0: i32) -> (i32, i32) {
    %c0_i32 = arith.constant 0 : i32
    %c0_i32_0 = arith.constant 0 : i32
    return %arg0, %c0_i32 : i32, i32
  }
}

module attributes {stable_mosaic.version = 11 : i64} {
  func.func @kernel(%arg0: i32, %arg1: memref<512x864xbf16, #tpu.memory_space<vmem>>, %arg2: memref<864x32xbf16, #tpu.memory_space<vmem>>, %arg3: memref<1x32xf32, #tpu.memory_space<vmem>>, %arg4: memref<512x32xbf16, #tpu.memory_space<vmem>>) attributes {dimension_semantics = [#tpu.dimension_semantics<parallel>], iteration_bounds = array<i64: 4>, scalar_prefetch = 0 : i64, scratch_operands = 0 : i64, tpu.core_type = #tpu.core_type<tc>, window_params = [{transform_indices = @transform_0, window_bounds = array<i64: 512, 864>}, {pipeline_mode = #tpu.pipeline_mode<synchronous>, transform_indices = @transform_1, window_bounds = array<i64: 864, 32>}, {pipeline_mode = #tpu.pipeline_mode<synchronous>, transform_indices = @transform_2, window_bounds = array<i64: 1, 32>}, {transform_indices = @transform_3, window_bounds = array<i64: 512, 32>}]} {
    %c0 = arith.constant 0 : index
    %c0_0 = arith.constant 0 : index
    %0 = vector.load %arg1[%c0, %c0_0] : memref<512x864xbf16, #tpu.memory_space<vmem>>, vector<512x864xbf16>
    %c0_1 = arith.constant 0 : index
    %c0_2 = arith.constant 0 : index
    %1 = vector.load %arg2[%c0_1, %c0_2] : memref<864x32xbf16, #tpu.memory_space<vmem>>, vector<864x32xbf16>
    %cst = arith.constant dense<0.000000e+00> : vector<512x32xf32>
    %2 = tpu.matmul %0, %1, %cst {dimension_numbers = #tpu.dot_dimension_numbers<[1], [0], [0], [1], [0, 0, 1, 1], [], []>} : vector<512x864xbf16>, vector<864x32xbf16>, vector<512x32xf32> -> vector<512x32xf32>
    %c0_3 = arith.constant 0 : index
    %c0_4 = arith.constant 0 : index
    %3 = vector.load %arg3[%c0_3, %c0_4] : memref<1x32xf32, #tpu.memory_space<vmem>>, vector<1x32xf32>
    %4 = vector.broadcast %3 : vector<1x32xf32> to vector<512x32xf32>
    %5 = arith.addf %2, %4 : vector<512x32xf32>
    %cst_5 = arith.constant 0.000000e+00 : f32
    %6 = vector.broadcast %cst_5 : f32 to vector<512x32xf32>
    %7 = arith.maximumf %5, %6 : vector<512x32xf32>
    %8 = arith.truncf %7 : vector<512x32xf32> to vector<512x32xbf16>
    %c0_6 = arith.constant 0 : index
    %c0_7 = arith.constant 0 : index
    %9 = vector.load %arg4[%c0_6, %c0_7] : memref<512x32xbf16, #tpu.memory_space<vmem>>, vector<512x32xbf16>
    tpu.vector_store %arg4[%c0_6, %c0_7], %8 {strides = array<i32>} : memref<512x32xbf16, #tpu.memory_space<vmem>>, vector<512x32xbf16>,
    return
  }
  func.func @transform_0(%arg0: i32) -> (i32, i32) {
    %c0_i32 = arith.constant 0 : i32
    %c0_i32_0 = arith.constant 0 : i32
    return %arg0, %c0_i32 : i32, i32
  }
  func.func @transform_1(%arg0: i32) -> (i32, i32) {
    %c0_i32 = arith.constant 0 : i32
    %c0_i32_0 = arith.constant 0 : i32
    %c0_i32_1 = arith.constant 0 : i32
    return %c0_i32, %c0_i32_0 : i32, i32
  }
  func.func @transform_2(%arg0: i32) -> (i32, i32) {
    %c0_i32 = arith.constant 0 : i32
    %c0_i32_0 = arith.constant 0 : i32
    %c0_i32_1 = arith.constant 0 : i32
    return %c0_i32, %c0_i32_0 : i32, i32
  }
  func.func @transform_3(%arg0: i32) -> (i32, i32) {
    %c0_i32 = arith.constant 0 : i32
    %c0_i32_0 = arith.constant 0 : i32
    return %arg0, %c0_i32 : i32, i32
  }
}

module attributes {stable_mosaic.version = 11 : i64} {
  func.func @kernel(%arg0: i32, %arg1: memref<224x864xbf16, #tpu.memory_space<vmem>>, %arg2: memref<864x64xbf16, #tpu.memory_space<vmem>>, %arg3: memref<1x64xf32, #tpu.memory_space<vmem>>, %arg4: memref<224x64xbf16, #tpu.memory_space<vmem>>) attributes {dimension_semantics = [#tpu.dimension_semantics<parallel>], iteration_bounds = array<i64: 1>, scalar_prefetch = 0 : i64, scratch_operands = 0 : i64, tpu.core_type = #tpu.core_type<tc>, window_params = [{transform_indices = @transform_0, window_bounds = array<i64: 224, 864>}, {pipeline_mode = #tpu.pipeline_mode<synchronous>, transform_indices = @transform_1, window_bounds = array<i64: 864, 64>}, {pipeline_mode = #tpu.pipeline_mode<synchronous>, transform_indices = @transform_2, window_bounds = array<i64: 1, 64>}, {transform_indices = @transform_3, window_bounds = array<i64: 224, 64>}]} {
    %c0 = arith.constant 0 : index
    %c0_0 = arith.constant 0 : index
    %0 = vector.load %arg1[%c0, %c0_0] : memref<224x864xbf16, #tpu.memory_space<vmem>>, vector<224x864xbf16>
    %c0_1 = arith.constant 0 : index
    %c0_2 = arith.constant 0 : index
    %1 = vector.load %arg2[%c0_1, %c0_2] : memref<864x64xbf16, #tpu.memory_space<vmem>>, vector<864x64xbf16>
    %cst = arith.constant dense<0.000000e+00> : vector<224x64xf32>
    %2 = tpu.matmul %0, %1, %cst {dimension_numbers = #tpu.dot_dimension_numbers<[1], [0], [0], [1], [0, 0, 1, 1], [], []>} : vector<224x864xbf16>, vector<864x64xbf16>, vector<224x64xf32> -> vector<224x64xf32>
    %c0_3 = arith.constant 0 : index
    %c0_4 = arith.constant 0 : index
    %3 = vector.load %arg3[%c0_3, %c0_4] : memref<1x64xf32, #tpu.memory_space<vmem>>, vector<1x64xf32>
    %4 = vector.broadcast %3 : vector<1x64xf32> to vector<224x64xf32>
    %5 = arith.addf %2, %4 : vector<224x64xf32>
    %cst_5 = arith.constant 0.000000e+00 : f32
    %6 = vector.broadcast %cst_5 : f32 to vector<224x64xf32>
    %7 = arith.maximumf %5, %6 : vector<224x64xf32>
    %8 = arith.truncf %7 : vector<224x64xf32> to vector<224x64xbf16>
    %c0_6 = arith.constant 0 : index
    %c0_7 = arith.constant 0 : index
    %9 = vector.load %arg4[%c0_6, %c0_7] : memref<224x64xbf16, #tpu.memory_space<vmem>>, vector<224x64xbf16>
    tpu.vector_store %arg4[%c0_6, %c0_7], %8 {strides = array<i32>} : memref<224x64xbf16, #tpu.memory_space<vmem>>, vector<224x64xbf16>,
    return
  }
  func.func @transform_0(%arg0: i32) -> (i32, i32) {
    %c0_i32 = arith.constant 0 : i32
    %c0_i32_0 = arith.constant 0 : i32
    return %arg0, %c0_i32 : i32, i32
  }
  func.func @transform_1(%arg0: i32) -> (i32, i32) {
    %c0_i32 = arith.constant 0 : i32
    %c0_i32_0 = arith.constant 0 : i32
    %c0_i32_1 = arith.constant 0 : i32
    return %c0_i32, %c0_i32_0 : i32, i32
  }
  func.func @transform_2(%arg0: i32) -> (i32, i32) {
    %c0_i32 = arith.constant 0 : i32
    %c0_i32_0 = arith.constant 0 : i32
    %c0_i32_1 = arith.constant 0 : i32
    return %c0_i32, %c0_i32_0 : i32, i32
  }
  func.func @transform_3(%arg0: i32) -> (i32, i32) {
    %c0_i32 = arith.constant 0 : i32
    %c0_i32_0 = arith.constant 0 : i32
    return %arg0, %c0_i32 : i32, i32
  }
}

module attributes {stable_mosaic.version = 11 : i64} {
  func.func @kernel(%arg0: i32, %arg1: memref<224x1728xbf16, #tpu.memory_space<vmem>>, %arg2: memref<1728x64xbf16, #tpu.memory_space<vmem>>, %arg3: memref<1x64xf32, #tpu.memory_space<vmem>>, %arg4: memref<224x64xbf16, #tpu.memory_space<vmem>>) attributes {dimension_semantics = [#tpu.dimension_semantics<parallel>], iteration_bounds = array<i64: 1>, scalar_prefetch = 0 : i64, scratch_operands = 0 : i64, tpu.core_type = #tpu.core_type<tc>, window_params = [{transform_indices = @transform_0, window_bounds = array<i64: 224, 1728>}, {pipeline_mode = #tpu.pipeline_mode<synchronous>, transform_indices = @transform_1, window_bounds = array<i64: 1728, 64>}, {pipeline_mode = #tpu.pipeline_mode<synchronous>, transform_indices = @transform_2, window_bounds = array<i64: 1, 64>}, {transform_indices = @transform_3, window_bounds = array<i64: 224, 64>}]} {
    %c0 = arith.constant 0 : index
    %c0_0 = arith.constant 0 : index
    %0 = vector.load %arg1[%c0, %c0_0] : memref<224x1728xbf16, #tpu.memory_space<vmem>>, vector<224x1728xbf16>
    %c0_1 = arith.constant 0 : index
    %c0_2 = arith.constant 0 : index
    %1 = vector.load %arg2[%c0_1, %c0_2] : memref<1728x64xbf16, #tpu.memory_space<vmem>>, vector<1728x64xbf16>
    %cst = arith.constant dense<0.000000e+00> : vector<224x64xf32>
    %2 = tpu.matmul %0, %1, %cst {dimension_numbers = #tpu.dot_dimension_numbers<[1], [0], [0], [1], [0, 0, 1, 1], [], []>} : vector<224x1728xbf16>, vector<1728x64xbf16>, vector<224x64xf32> -> vector<224x64xf32>
    %c0_3 = arith.constant 0 : index
    %c0_4 = arith.constant 0 : index
    %3 = vector.load %arg3[%c0_3, %c0_4] : memref<1x64xf32, #tpu.memory_space<vmem>>, vector<1x64xf32>
    %4 = vector.broadcast %3 : vector<1x64xf32> to vector<224x64xf32>
    %5 = arith.addf %2, %4 : vector<224x64xf32>
    %cst_5 = arith.constant 0.000000e+00 : f32
    %6 = vector.broadcast %cst_5 : f32 to vector<224x64xf32>
    %7 = arith.maximumf %5, %6 : vector<224x64xf32>
    %8 = arith.truncf %7 : vector<224x64xf32> to vector<224x64xbf16>
    %c0_6 = arith.constant 0 : index
    %c0_7 = arith.constant 0 : index
    %9 = vector.load %arg4[%c0_6, %c0_7] : memref<224x64xbf16, #tpu.memory_space<vmem>>, vector<224x64xbf16>
    tpu.vector_store %arg4[%c0_6, %c0_7], %8 {strides = array<i32>} : memref<224x64xbf16, #tpu.memory_space<vmem>>, vector<224x64xbf16>,
    return
  }
  func.func @transform_0(%arg0: i32) -> (i32, i32) {
    %c0_i32 = arith.constant 0 : i32
    %c0_i32_0 = arith.constant 0 : i32
    return %arg0, %c0_i32 : i32, i32
  }
  func.func @transform_1(%arg0: i32) -> (i32, i32) {
    %c0_i32 = arith.constant 0 : i32
    %c0_i32_0 = arith.constant 0 : i32
    %c0_i32_1 = arith.constant 0 : i32
    return %c0_i32, %c0_i32_0 : i32, i32
  }
  func.func @transform_2(%arg0: i32) -> (i32, i32) {
    %c0_i32 = arith.constant 0 : i32
    %c0_i32_0 = arith.constant 0 : i32
    %c0_i32_1 = arith.constant 0 : i32
    return %c0_i32, %c0_i32_0 : i32, i32
  }
  func.func @transform_3(%arg0: i32) -> (i32, i32) {
    %c0_i32 = arith.constant 0 : i32
    %c0_i32_0 = arith.constant 0 : i32
    return %arg0, %c0_i32 : i32, i32
  }
}

module attributes {stable_mosaic.version = 11 : i64} {
  func.func @kernel(%arg0: i32, %arg1: memref<24x1728xbf16, #tpu.memory_space<vmem>>, %arg2: memref<1728x64xbf16, #tpu.memory_space<vmem>>, %arg3: memref<1x64xf32, #tpu.memory_space<vmem>>, %arg4: memref<24x64xbf16, #tpu.memory_space<vmem>>) attributes {dimension_semantics = [#tpu.dimension_semantics<parallel>], iteration_bounds = array<i64: 1>, scalar_prefetch = 0 : i64, scratch_operands = 0 : i64, tpu.core_type = #tpu.core_type<tc>, window_params = [{transform_indices = @transform_0, window_bounds = array<i64: 24, 1728>}, {pipeline_mode = #tpu.pipeline_mode<synchronous>, transform_indices = @transform_1, window_bounds = array<i64: 1728, 64>}, {pipeline_mode = #tpu.pipeline_mode<synchronous>, transform_indices = @transform_2, window_bounds = array<i64: 1, 64>}, {transform_indices = @transform_3, window_bounds = array<i64: 24, 64>}]} {
    %c0 = arith.constant 0 : index
    %c0_0 = arith.constant 0 : index
    %0 = vector.load %arg1[%c0, %c0_0] : memref<24x1728xbf16, #tpu.memory_space<vmem>>, vector<24x1728xbf16>
    %c0_1 = arith.constant 0 : index
    %c0_2 = arith.constant 0 : index
    %1 = vector.load %arg2[%c0_1, %c0_2] : memref<1728x64xbf16, #tpu.memory_space<vmem>>, vector<1728x64xbf16>
    %cst = arith.constant dense<0.000000e+00> : vector<24x64xf32>
    %2 = tpu.matmul %0, %1, %cst {dimension_numbers = #tpu.dot_dimension_numbers<[1], [0], [0], [1], [0, 0, 1, 1], [], []>} : vector<24x1728xbf16>, vector<1728x64xbf16>, vector<24x64xf32> -> vector<24x64xf32>
    %c0_3 = arith.constant 0 : index
    %c0_4 = arith.constant 0 : index
    %3 = vector.load %arg3[%c0_3, %c0_4] : memref<1x64xf32, #tpu.memory_space<vmem>>, vector<1x64xf32>
    %4 = vector.broadcast %3 : vector<1x64xf32> to vector<24x64xf32>
    %5 = arith.addf %2, %4 : vector<24x64xf32>
    %cst_5 = arith.constant 0.000000e+00 : f32
    %6 = vector.broadcast %cst_5 : f32 to vector<24x64xf32>
    %7 = arith.maximumf %5, %6 : vector<24x64xf32>
    %8 = arith.truncf %7 : vector<24x64xf32> to vector<24x64xbf16>
    %c0_6 = arith.constant 0 : index
    %c0_7 = arith.constant 0 : index
    %9 = vector.load %arg4[%c0_6, %c0_7] : memref<24x64xbf16, #tpu.memory_space<vmem>>, vector<24x64xbf16>
    tpu.vector_store %arg4[%c0_6, %c0_7], %8 {strides = array<i32>} : memref<24x64xbf16, #tpu.memory_space<vmem>>, vector<24x64xbf16>,
    return
  }
  func.func @transform_0(%arg0: i32) -> (i32, i32) {
    %c0_i32 = arith.constant 0 : i32
    %c0_i32_0 = arith.constant 0 : i32
    return %arg0, %c0_i32 : i32, i32
  }
  func.func @transform_1(%arg0: i32) -> (i32, i32) {
    %c0_i32 = arith.constant 0 : i32
    %c0_i32_0 = arith.constant 0 : i32
    %c0_i32_1 = arith.constant 0 : i32
    return %c0_i32, %c0_i32_0 : i32, i32
  }
  func.func @transform_2(%arg0: i32) -> (i32, i32) {
    %c0_i32 = arith.constant 0 : i32
    %c0_i32_0 = arith.constant 0 : i32
    %c0_i32_1 = arith.constant 0 : i32
    return %c0_i32, %c0_i32_0 : i32, i32
  }
  func.func @transform_3(%arg0: i32) -> (i32, i32) {
    %c0_i32 = arith.constant 0 : i32
    %c0_i32_0 = arith.constant 0 : i32
    return %arg0, %c0_i32 : i32, i32
  }
}

module attributes {stable_mosaic.version = 11 : i64} {
  func.func @kernel(%arg0: i32, %arg1: memref<8x192xbf16, #tpu.memory_space<vmem>>, %arg2: memref<192x128xbf16, #tpu.memory_space<vmem>>, %arg3: memref<1x128xf32, #tpu.memory_space<vmem>>, %arg4: memref<8x128xbf16, #tpu.memory_space<vmem>>) attributes {dimension_semantics = [#tpu.dimension_semantics<parallel>], iteration_bounds = array<i64: 1>, scalar_prefetch = 0 : i64, scratch_operands = 0 : i64, tpu.core_type = #tpu.core_type<tc>, window_params = [{transform_indices = @transform_0, window_bounds = array<i64: 8, 192>}, {pipeline_mode = #tpu.pipeline_mode<synchronous>, transform_indices = @transform_1, window_bounds = array<i64: 192, 128>}, {pipeline_mode = #tpu.pipeline_mode<synchronous>, transform_indices = @transform_2, window_bounds = array<i64: 1, 128>}, {transform_indices = @transform_3, window_bounds = array<i64: 8, 128>}]} {
    %c0 = arith.constant 0 : index
    %c0_0 = arith.constant 0 : index
    %0 = vector.load %arg1[%c0, %c0_0] : memref<8x192xbf16, #tpu.memory_space<vmem>>, vector<8x192xbf16>
    %c0_1 = arith.constant 0 : index
    %c0_2 = arith.constant 0 : index
    %1 = vector.load %arg2[%c0_1, %c0_2] : memref<192x128xbf16, #tpu.memory_space<vmem>>, vector<192x128xbf16>
    %cst = arith.constant dense<0.000000e+00> : vector<8x128xf32>
    %2 = tpu.matmul %0, %1, %cst {dimension_numbers = #tpu.dot_dimension_numbers<[1], [0], [0], [1], [0, 0, 1, 1], [], []>} : vector<8x192xbf16>, vector<192x128xbf16>, vector<8x128xf32> -> vector<8x128xf32>
    %c0_3 = arith.constant 0 : index
    %c0_4 = arith.constant 0 : index
    %3 = vector.load %arg3[%c0_3, %c0_4] : memref<1x128xf32, #tpu.memory_space<vmem>>, vector<1x128xf32>
    %4 = vector.broadcast %3 : vector<1x128xf32> to vector<8x128xf32>
    %5 = arith.addf %2, %4 : vector<8x128xf32>
    %cst_5 = arith.constant 0.000000e+00 : f32
    %6 = vector.broadcast %cst_5 : f32 to vector<8x128xf32>
    %7 = arith.maximumf %5, %6 : vector<8x128xf32>
    %8 = arith.truncf %7 : vector<8x128xf32> to vector<8x128xbf16>
    %c0_6 = arith.constant 0 : index
    %c0_7 = arith.constant 0 : index
    %9 = vector.load %arg4[%c0_6, %c0_7] : memref<8x128xbf16, #tpu.memory_space<vmem>>, vector<8x128xbf16>
    tpu.vector_store %arg4[%c0_6, %c0_7], %8 {strides = array<i32>} : memref<8x128xbf16, #tpu.memory_space<vmem>>, vector<8x128xbf16>,
    return
  }
  func.func @transform_0(%arg0: i32) -> (i32, i32) {
    %c0_i32 = arith.constant 0 : i32
    %c0_i32_0 = arith.constant 0 : i32
    return %arg0, %c0_i32 : i32, i32
  }
  func.func @transform_1(%arg0: i32) -> (i32, i32) {
    %c0_i32 = arith.constant 0 : i32
    %c0_i32_0 = arith.constant 0 : i32
    %c0_i32_1 = arith.constant 0 : i32
    return %c0_i32, %c0_i32_0 : i32, i32
  }
  func.func @transform_2(%arg0: i32) -> (i32, i32) {
    %c0_i32 = arith.constant 0 : i32
    %c0_i32_0 = arith.constant 0 : i32
    %c0_i32_1 = arith.constant 0 : i32
    return %c0_i32, %c0_i32_0 : i32, i32
  }
  func.func @transform_3(%arg0: i32) -> (i32, i32) {
    %c0_i32 = arith.constant 0 : i32
    %c0_i32_0 = arith.constant 0 : i32
    return %arg0, %c0_i32 : i32, i32
  }
}

</mosaic_0001>

<bundles_post_ra>
// kernel: _lambda_.12
= control target key start
LH: loop header
LB: loop body
LE: loop exit
PB: predicated region body
PF: predicated region fallthrough
CT: control target
= control target key end

     0   :  { %s1711_s12 = smov 0   ;;  %s2021_s0 = inlined_call_operand.vmem [shape: bf16[12800,108], index: 0, kind: input, shape index: {}]   ;;  %s2022_s1 = inlined_call_operand.vmem [shape: bf16[108,16], index: 1, kind: input, shape index: {}]   ;;  %s2023_s2 = inlined_call_operand.vmem [shape: f32[1,16], index: 2, kind: input, shape index: {}]   ;;  %s2024_s3 = inlined_call_operand.vmem [shape: bf16[12800,16], index: 3, kind: output, shape index: {}]  }
   0x1 LB: > { %s1292_s13 = sadd.s32 4294967295, %s1689_s12   ;;  %p1296_p0 = scmp.ge.s32.totalorder %s1689_s12, 1  ;;  %s1689_s12 = sphi %s1711_s12, %s13_s12  }
   0x2   : > { %p138_p1 = scmp.lt.s32.totalorder %s1689_s12, 26 }
   0x4   : > { %p139_p2 = pnand %p1296_p0, %p138_p1 }
   0x5   : > { %s1297_s18 = sshll.u32 (!%p139_p2), %s1292_s13, 6 }
   0x6   : > { %142 = sbr.rel (%p139_p2) target bundleno = 302 (0x12e), region = 32  ;;  %p163_p3 = scmp.lt.s32.totalorder (!%p139_p2), %s1297_s18, 1599 }
   0xb   : > { %v1644_v0 = vld [vmem:[%s2022_s1 + $0x30] sm:$0x3f]   ;;  %vm558_vm0 = vcmask 1045504   ;;  %v1645_v1 = vld [vmem:[%s2022_s1 + $0x28] sm:$0xff]   ;;  %v1646_v3 = vld [vmem:[%s2022_s1 + $0x20] sm:$0xff]   ;;  %s2026_s18 = smov (!%p163_p3, %s1297_s18), 1599 }
   0xc   : > { %1634 = vmatprep.subr.msk.bf16.mxu0 %vm558_vm0, %v1644_v0  ;;  %1635 = vmatprep.subr.msk.bf16.mxu1 %vm558_vm0, %v1644_v0  ;;  %v560_v2 = vsel %vm558_vm0, %v1644_v0, 0  ;;  %v1647_v4 = vld [vmem:[%s2022_s1 + $0x18] sm:$0xff]   ;;  %s1298_s23 = sshll.u32 %s2026_s18, 2  ;;  %vm461_vm1 = vcmask 883712   ;;  %v1648_v7 = vld [vmem:[%s2022_s1 + $0x10] sm:$0xff]   ;;  %v1649_v8 = vld [vmem:[%s2022_s1 + $0x8] sm:$0xff]  }
   0xd   : > { %1543 = vmatpush3.bf16.msra.mxu0 %v560_v2  ;;  %1627 = vmatpush3.bf16.msra.mxu1 %v560_v2  ;;  %s1739_s26 = scalar_lea.vmem %s2021_s0, %s1298_s23  ;;  %v1650_v9 = vld [vmem:[%s2022_s1] sm:$0xff]   ;;  %s1828_s10 = scalar_lea.vmem %s2024_s3, %s1298_s23  ;;  %vm1171_vm2 = vcmask 125952  }
   0xe   : > { %1544 = vmatprep.subr.bf16.mxu0 %v1645_v1  ;;  %1621 = vmatprep.subr.bf16.mxu1 %v1645_v1  ;;  %v1651_v5 = vld [vmem:[%s1739_s26] sm:$0xff]   ;;  %v1653_v10 = vld [vmem:[%s1739_s26 + $0x8] sm:$0xff]   ;;  %v1655_v12 = vld [vmem:[%s1739_s26 + $0x10] sm:$0xff]  }
   0xf   : > { %v1652_v6 = vld [vmem:[%s1739_s26 + $0x80] sm:$0xff]   ;;  %1556 = vmatprep.mubr.msk.bf16.mxu0 %vm461_vm1, %v1651_v5  ;;  %v1654_v11 = vld [vmem:[%s1739_s26 + $0x88] sm:$0xff]   ;;  %v1656_v13 = vld [vmem:[%s1739_s26 + $0x90] sm:$0xff]  }
  0x10   : > { %1588 = vmatprep.mubr.msk.bf16.mxu1 %vm461_vm1, %v1652_v6  ;;  %v1657_v14 = vld [vmem:[%s1739_s26 + $0x18] sm:$0xff]   ;;  %v1659_v16 = vld [vmem:[%s1739_s26 + $0x20] sm:$0xff]   ;;  %v1661_v18 = vld [vmem:[%s1739_s26 + $0x28] sm:$0xff]  }
  0x11   : > { %1545 = vmatpush3.bf16.msra.mxu0 %v1645_v1  ;;  %1628 = vmatpush3.bf16.msra.mxu1 %v1645_v1  ;;  %v1658_v15 = vld [vmem:[%s1739_s26 + $0x98] sm:$0xff]   ;;  %v1660_v17 = vld [vmem:[%s1739_s26 + $0xa0] sm:$0xff]   ;;  %v1662_v19 = vld [vmem:[%s1739_s26 + $0xa8] sm:$0xff]  }
  0x12   : > { %1546 = vmatprep.subr.bf16.mxu0 %v1646_v3  ;;  %1622 = vmatprep.subr.bf16.mxu1 %v1646_v3  ;;  %v1663_v20 = vld [vmem:[%s1739_s26 + $0x30] sm:$0xff]   ;;  %v1665_v22 = vld [vmem:[%s1739_s26 + $0x38] sm:$0xff]   ;;  %v1667_v24 = vld [vmem:[%s1739_s26 + $0x40] sm:$0xff]  }
  0x13   : > { %v1664_v21 = vld [vmem:[%s1739_s26 + $0xb0] sm:$0xff]   ;;  %v1666_v23 = vld [vmem:[%s1739_s26 + $0xb8] sm:$0xff]   ;;  %v1668_v25 = vld [vmem:[%s1739_s26 + $0xc0] sm:$0xff]  }
  0x14   : > { %v1669_v26 = vld [vmem:[%s1739_s26 + $0x48] sm:$0xff]   ;;  %v1671_v28 = vld [vmem:[%s1739_s26 + $0x50] sm:$0xff]   ;;  %v1673_v30 = vld [vmem:[%s1739_s26 + $0x58] sm:$0xff]  }
  0x15   : > { %1547 = vmatpush3.bf16.msra.mxu0 %v1646_v3  ;;  %1629 = vmatpush3.bf16.msra.mxu1 %v1646_v3  ;;  %v1670_v27 = vld [vmem:[%s1739_s26 + $0xc8] sm:$0xff]   ;;  %v1672_v29 = vld [vmem:[%s1739_s26 + $0xd0] sm:$0xff]   ;;  %v1674_v31 = vld [vmem:[%s1739_s26 + $0xd8] sm:$0xff]  }
  0x16   : > { %1548 = vmatprep.subr.bf16.mxu0 %v1647_v4  ;;  %1623 = vmatprep.subr.bf16.mxu1 %v1647_v4  ;;  %v1675_v32 = vld [vmem:[%s1739_s26 + $0x60] sm:$0xff]   ;;  %v1677_v34 = vld [vmem:[%s1739_s26 + $0x68] sm:$0xff]   ;;  %v1679_v36 = vld [vmem:[%s1739_s26 + $0x70] sm:$0xff]  }
  0x17   : > { %v1676_v33 = vld [vmem:[%s1739_s26 + $0xe0] sm:$0xff]   ;;  %v1678_v35 = vld [vmem:[%s1739_s26 + $0xe8] sm:$0xff]   ;;  %v1680_v37 = vld [vmem:[%s1739_s26 + $0xf0] sm:$0xff]  }
  0x18   : > { %v1681_v38 = vld [vmem:[%s1739_s26 + $0x78] sm:$0xff]   ;;  %v1817_v40 = vld [vmem:[%s2023_s2] ss:$0 sm:$0xff] }
  0x19   : > { %1549 = vmatpush3.bf16.msra.mxu0 %v1647_v4  ;;  %1630 = vmatpush3.bf16.msra.mxu1 %v1647_v4  ;;  %v1682_v39 = vld [vmem:[%s1739_s26 + $0xf8] sm:$0xff]  }
  0x1a   : > { %1550 = vmatprep.subr.bf16.mxu0 %v1648_v7  ;;  %1624 = vmatprep.subr.bf16.mxu1 %v1648_v7 }
  0x1d   : > { %1551 = vmatpush3.bf16.msra.mxu0 %v1648_v7  ;;  %1631 = vmatpush3.bf16.msra.mxu1 %v1648_v7 }
  0x1e   : > { %1552 = vmatprep.subr.bf16.mxu0 %v1649_v8  ;;  %1625 = vmatprep.subr.bf16.mxu1 %v1649_v8 }
  0x21   : > { %1553 = vmatpush3.bf16.msra.mxu0 %v1649_v8  ;;  %1632 = vmatpush3.bf16.msra.mxu1 %v1649_v8 }
  0x22   : > { %1554 = vmatprep.subr.bf16.mxu0 %v1650_v9  ;;  %1626 = vmatprep.subr.bf16.mxu1 %v1650_v9 }
  0x25   : > { %1555 = vmatpush3.bf16.msra.mxu0 %v1650_v9  ;;  %1633 = vmatpush3.bf16.msra.mxu1 %v1650_v9 }
  0x28   : > { %1557 = vmatmul.mubr.msk.bf16.vlgmr.msra.gmra.mxu0 %vm461_vm1, %v1653_v10  ;;  %1589 = vmatmul.mubr.msk.bf16.vlgmr.msra.gmra.mxu1 %vm461_vm1, %v1654_v11 }
  0x29   : > { %1560 = vmatprep.mubr.msk.bf16.mxu0 %vm461_vm1, %v1655_v12  ;;  %1592 = vmatprep.mubr.msk.bf16.mxu1 %vm461_vm1, %v1656_v13 }
  0x30   : > { %1561 = vmatmul.mubr.msk.bf16.gmra.mxu0 %vm461_vm1, %v1657_v14  ;;  %1593 = vmatmul.mubr.msk.bf16.gmra.mxu1 %vm461_vm1, %v1658_v15 }
  0x31   : > { %1564 = vmatprep.mubr.msk.bf16.mxu0 %vm461_vm1, %v1659_v16  ;;  %1596 = vmatprep.mubr.msk.bf16.mxu1 %vm461_vm1, %v1660_v17 }
  0x38   : > { %1565 = vmatmul.mubr.msk.bf16.gmra.mxu0 %vm461_vm1, %v1661_v18  ;;  %1597 = vmatmul.mubr.msk.bf16.gmra.mxu1 %vm461_vm1, %v1662_v19 }
  0x39   : > { %1568 = vmatprep.mubr.msk.bf16.mxu0 %vm461_vm1, %v1663_v20  ;;  %1600 = vmatprep.mubr.msk.bf16.mxu1 %vm461_vm1, %v1664_v21 }
  0x40   : > { %1569 = vmatmul.mubr.msk.bf16.gmra.mxu0 %vm461_vm1, %v1665_v22  ;;  %1601 = vmatmul.mubr.msk.bf16.gmra.mxu1 %vm461_vm1, %v1666_v23 }
  0x41   : > { %1572 = vmatprep.mubr.msk.bf16.mxu0 %vm461_vm1, %v1667_v24  ;;  %1604 = vmatprep.mubr.msk.bf16.mxu1 %vm461_vm1, %v1668_v25 }
  0x48   : > { %1573 = vmatmul.mubr.msk.bf16.gmra.mxu0 %vm461_vm1, %v1669_v26  ;;  %1605 = vmatmul.mubr.msk.bf16.gmra.mxu1 %vm461_vm1, %v1670_v27 }
  0x49   : > { %1576 = vmatprep.mubr.msk.bf16.mxu0 %vm461_vm1, %v1671_v28  ;;  %1608 = vmatprep.mubr.msk.bf16.mxu1 %vm461_vm1, %v1672_v29 }
  0x50   : > { %1577 = vmatmul.mubr.msk.bf16.gmra.mxu0 %vm461_vm1, %v1673_v30  ;;  %1609 = vmatmul.mubr.msk.bf16.gmra.mxu1 %vm461_vm1, %v1674_v31 }
  0x51   : > { %1580 = vmatprep.mubr.msk.bf16.mxu0 %vm461_vm1, %v1675_v32  ;;  %1612 = vmatprep.mubr.msk.bf16.mxu1 %vm461_vm1, %v1676_v33 }
  0x58   : > { %1581 = vmatmul.mubr.msk.bf16.gmra.mxu0 %vm461_vm1, %v1677_v34  ;;  %1613 = vmatmul.mubr.msk.bf16.gmra.mxu1 %vm461_vm1, %v1678_v35 }
  0x59   : > { %1584 = vmatprep.mubr.msk.bf16.mxu0 %vm461_vm1, %v1679_v36  ;;  %1616 = vmatprep.mubr.msk.bf16.mxu1 %vm461_vm1, %v1680_v37 }
  0x60   : > { %1585 = vmatmul.mubr.msk.bf16.gmra.mxu0 %vm461_vm1, %v1681_v38  ;;  %1617 = vmatmul.mubr.msk.bf16.gmra.mxu1 %vm461_vm1, %v1682_v39 }
  0xe8   : > { %v1558_v41 = vpop.f32.mrf.mxu0  ;;  %v1590_v42 = vpop.f32.mrf.mxu1 }
  0xe9   : > { %v605_v43 = vadd.f32 %v1558_v41, %v1817_v40  ;;  %v733_v44 = vadd.f32 %v1590_v42, %v1817_v40 }
  0xea   : > { %v596_v45 = vpop.f32.mrf.mxu0  ;;  %v724_v46 = vpop.f32.mrf.mxu1 }
  0xeb   : > { %v853_v47 = vmax.f32 %v605_v43, 0.0  ;;  %v885_v48 = vmax.f32 %v733_v44, 0.0  ;;  %v597_v49 = vadd.f32 %v1817_v40, %v596_v45  ;;  %v725_v50 = vadd.f32 %v1817_v40, %v724_v46 }
  0xec   : > { %v1559_v51 = vpop.f32.mrf.mxu0  ;;  %v1591_v52 = vpop.f32.mrf.mxu1 }
  0xed   : > { %v1441_v53 = vpack.c.bf16 %v853_v47, %v853_v47  ;;  %v1473_v54 = vpack.c.bf16 %v885_v48, %v885_v48  ;;  %v851_v55 = vmax.f32 %v597_v49, 0.0  ;;  %v883_v56 = vmax.f32 %v725_v50, 0.0 }
  0xee   : > { %v608_v57 = vadd.f32 %v1559_v51, %v1817_v40  ;;  %v736_v58 = vadd.f32 %v1591_v52, %v1817_v40  ;;  %v599_v59 = vpop.f32.mrf.mxu0  ;;  %v727_v60 = vpop.f32.mrf.mxu1 }
  0xef   : > { %1174 = vst.msk [vmem:[%s1828_s10 + $0x8] sm:$0xf] %vm1171_vm2, %v1441_v53  ;;  %1206 = vst.msk [vmem:[%s1828_s10 + $0x88] sm:$0xf] %vm1171_vm2, %v1473_v54  ;;  %v1439_v61 = vpack.c.bf16 %v851_v55, %v851_v55  ;;  %v1471_v62 = vpack.c.bf16 %v883_v56, %v883_v56  ;;  %v600_v63 = vadd.f32 %v1817_v40, %v599_v59 }
  0xf0   : > { %v728_v0 = vadd.f32 %v1817_v40, %v727_v60  ;;  %v854_v1 = vmax.f32 %v608_v57, 0.0  ;;  %v886_v2 = vmax.f32 %v736_v58, 0.0  ;;  %v1562_v3 = vpop.f32.mrf.mxu0  ;;  %v1594_v4 = vpop.f32.mrf.mxu1 }
  0xf1   : > { %1172 = vst.msk [vmem:[%s1828_s10] sm:$0xf] %vm1171_vm2, %v1439_v61  ;;  %1204 = vst.msk [vmem:[%s1828_s10 + $0x80] sm:$0xf] %vm1171_vm2, %v1471_v62  ;;  %v852_v5 = vmax.f32 %v600_v63, 0.0  ;;  %v621_v7 = vadd.f32 %v1562_v3, %v1817_v40  ;;  %v749_v8 = vadd.f32 %v1594_v4, %v1817_v40 }
  0xf2   : > { %v884_v6 = vmax.f32 %v728_v0, 0.0  ;;  %v1442_v9 = vpack.c.bf16 %v854_v1, %v854_v1  ;;  %v1474_v10 = vpack.c.bf16 %v886_v2, %v886_v2  ;;  %v612_v11 = vpop.f32.mrf.mxu0  ;;  %v740_v12 = vpop.f32.mrf.mxu1 }
  0xf3   : > { %v1440_v13 = vpack.c.bf16 %v852_v5, %v852_v5  ;;  %v857_v15 = vmax.f32 %v621_v7, 0.0  ;;  %v889_v16 = vmax.f32 %v749_v8, 0.0  ;;  %v613_v17 = vadd.f32 %v1817_v40, %v612_v11 }
  0xf4   : > { %v1472_v14 = vpack.c.bf16 %v884_v6, %v884_v6  ;;  %1175 = vst.msk [vmem:[%s1828_s10 + $0xc] sm:$0xf] %vm1171_vm2, %v1442_v9  ;;  %1207 = vst.msk [vmem:[%s1828_s10 + $0x8c] sm:$0xf] %vm1171_vm2, %v1474_v10  ;;  %v741_v18 = vadd.f32 %v1817_v40, %v740_v12  ;;  %v1563_v19 = vpop.f32.mrf.mxu0  ;;  %v1595_v20 = vpop.f32.mrf.mxu1 }
  0xf5   : > { %1173 = vst.msk [vmem:[%s1828_s10 + $0x4] sm:$0xf] %vm1171_vm2, %v1440_v13  ;;  %v1445_v21 = vpack.c.bf16 %v857_v15, %v857_v15  ;;  %v1477_v22 = vpack.c.bf16 %v889_v16, %v889_v16  ;;  %v624_v23 = vadd.f32 %v1563_v19, %v1817_v40  ;;  %v752_v24 = vadd.f32 %v1595_v20, %v1817_v40 }
  0xf6   : > { %1205 = vst.msk [vmem:[%s1828_s10 + $0x84] sm:$0xf] %vm1171_vm2, %v1472_v14  ;;  %v855_v25 = vmax.f32 %v613_v17, 0.0  ;;  %v887_v26 = vmax.f32 %v741_v18, 0.0  ;;  %v615_v27 = vpop.f32.mrf.mxu0  ;;  %v743_v28 = vpop.f32.mrf.mxu1 }
  0xf7   : > { %1178 = vst.msk [vmem:[%s1828_s10 + $0x18] sm:$0xf] %vm1171_vm2, %v1445_v21  ;;  %1210 = vst.msk [vmem:[%s1828_s10 + $0x98] sm:$0xf] %vm1171_vm2, %v1477_v22  ;;  %v858_v29 = vmax.f32 %v624_v23, 0.0  ;;  %v890_v30 = vmax.f32 %v752_v24, 0.0  ;;  %v616_v31 = vadd.f32 %v1817_v40, %v615_v27  ;;  %v744_v32 = vadd.f32 %v1817_v40, %v743_v28 }
  0xf8   : > { %v1443_v33 = vpack.c.bf16 %v855_v25, %v855_v25  ;;  %v1475_v34 = vpack.c.bf16 %v887_v26, %v887_v26  ;;  %v1566_v35 = vpop.f32.mrf.mxu0  ;;  %v1598_v36 = vpop.f32.mrf.mxu1 }
  0xf9   : > { %v1446_v37 = vpack.c.bf16 %v858_v29, %v858_v29  ;;  %v1478_v38 = vpack.c.bf16 %v890_v30, %v890_v30  ;;  %v856_v39 = vmax.f32 %v616_v31, 0.0  ;;  %v888_v41 = vmax.f32 %v744_v32, 0.0 }
  0xfa   : > { %1176 = vst.msk [vmem:[%s1828_s10 + $0x10] sm:$0xf] %vm1171_vm2, %v1443_v33  ;;  %1208 = vst.msk [vmem:[%s1828_s10 + $0x90] sm:$0xf] %vm1171_vm2, %v1475_v34  ;;  %v637_v42 = vadd.f32 %v1566_v35, %v1817_v40  ;;  %v765_v43 = vadd.f32 %v1598_v36, %v1817_v40  ;;  %v628_v44 = vpop.f32.mrf.mxu0  ;;  %v756_v45 = vpop.f32.mrf.mxu1 }
  0xfb   : > { %1179 = vst.msk [vmem:[%s1828_s10 + $0x1c] sm:$0xf] %vm1171_vm2, %v1446_v37  ;;  %1211 = vst.msk [vmem:[%s1828_s10 + $0x9c] sm:$0xf] %vm1171_vm2, %v1478_v38  ;;  %v1444_v46 = vpack.c.bf16 %v856_v39, %v856_v39  ;;  %v1476_v47 = vpack.c.bf16 %v888_v41, %v888_v41  ;;  %v629_v48 = vadd.f32 %v1817_v40, %v628_v44 }
  0xfc   : > { %v757_v49 = vadd.f32 %v1817_v40, %v756_v45  ;;  %v861_v50 = vmax.f32 %v637_v42, 0.0  ;;  %v893_v51 = vmax.f32 %v765_v43, 0.0  ;;  %v1567_v52 = vpop.f32.mrf.mxu0  ;;  %v1599_v53 = vpop.f32.mrf.mxu1 }
  0xfd   : > { %1177 = vst.msk [vmem:[%s1828_s10 + $0x14] sm:$0xf] %vm1171_vm2, %v1444_v46  ;;  %1209 = vst.msk [vmem:[%s1828_s10 + $0x94] sm:$0xf] %vm1171_vm2, %v1476_v47  ;;  %v859_v54 = vmax.f32 %v629_v48, 0.0  ;;  %v640_v56 = vadd.f32 %v1567_v52, %v1817_v40  ;;  %v768_v57 = vadd.f32 %v1599_v53, %v1817_v40 }
  0xfe   : > { %v891_v55 = vmax.f32 %v757_v49, 0.0  ;;  %v1449_v58 = vpack.c.bf16 %v861_v50, %v861_v50  ;;  %v1481_v59 = vpack.c.bf16 %v893_v51, %v893_v51  ;;  %v631_v60 = vpop.f32.mrf.mxu0  ;;  %v759_v61 = vpop.f32.mrf.mxu1 }
  0xff   : > { %v1447_v62 = vpack.c.bf16 %v859_v54, %v859_v54  ;;  %v862_v0 = vmax.f32 %v640_v56, 0.0  ;;  %v894_v1 = vmax.f32 %v768_v57, 0.0  ;;  %v632_v2 = vadd.f32 %v1817_v40, %v631_v60 }
 0x100   : > { %v1479_v63 = vpack.c.bf16 %v891_v55, %v891_v55  ;;  %1182 = vst.msk [vmem:[%s1828_s10 + $0x28] sm:$0xf] %vm1171_vm2, %v1449_v58  ;;  %1214 = vst.msk [vmem:[%s1828_s10 + $0xa8] sm:$0xf] %vm1171_vm2, %v1481_v59  ;;  %v760_v3 = vadd.f32 %v1817_v40, %v759_v61  ;;  %v1570_v4 = vpop.f32.mrf.mxu0  ;;  %v1602_v5 = vpop.f32.mrf.mxu1 }
 0x101   : > { %1180 = vst.msk [vmem:[%s1828_s10 + $0x20] sm:$0xf] %vm1171_vm2, %v1447_v62  ;;  %v1450_v6 = vpack.c.bf16 %v862_v0, %v862_v0  ;;  %v1482_v7 = vpack.c.bf16 %v894_v1, %v894_v1  ;;  %v653_v8 = vadd.f32 %v1570_v4, %v1817_v40  ;;  %v781_v9 = vadd.f32 %v1602_v5, %v1817_v40 }
 0x102   : > { %1212 = vst.msk [vmem:[%s1828_s10 + $0xa0] sm:$0xf] %vm1171_vm2, %v1479_v63  ;;  %v860_v10 = vmax.f32 %v632_v2, 0.0  ;;  %v892_v11 = vmax.f32 %v760_v3, 0.0  ;;  %v644_v12 = vpop.f32.mrf.mxu0  ;;  %v772_v13 = vpop.f32.mrf.mxu1 }
 0x103   : > { %1183 = vst.msk [vmem:[%s1828_s10 + $0x2c] sm:$0xf] %vm1171_vm2, %v1450_v6  ;;  %1215 = vst.msk [vmem:[%s1828_s10 + $0xac] sm:$0xf] %vm1171_vm2, %v1482_v7  ;;  %v865_v14 = vmax.f32 %v653_v8, 0.0  ;;  %v897_v15 = vmax.f32 %v781_v9, 0.0  ;;  %v645_v16 = vadd.f32 %v1817_v40, %v644_v12  ;;  %v773_v17 = vadd.f32 %v1817_v40, %v772_v13 }
 0x104   : > { %v1448_v18 = vpack.c.bf16 %v860_v10, %v860_v10  ;;  %v1480_v19 = vpack.c.bf16 %v892_v11, %v892_v11  ;;  %v1571_v20 = vpop.f32.mrf.mxu0  ;;  %v1603_v21 = vpop.f32.mrf.mxu1 }
 0x105   : > { %v1453_v22 = vpack.c.bf16 %v865_v14, %v865_v14  ;;  %v1485_v23 = vpack.c.bf16 %v897_v15, %v897_v15  ;;  %v863_v24 = vmax.f32 %v645_v16, 0.0  ;;  %v895_v25 = vmax.f32 %v773_v17, 0.0 }
 0x106   : > { %1181 = vst.msk [vmem:[%s1828_s10 + $0x24] sm:$0xf] %vm1171_vm2, %v1448_v18  ;;  %1213 = vst.msk [vmem:[%s1828_s10 + $0xa4] sm:$0xf] %vm1171_vm2, %v1480_v19  ;;  %v656_v26 = vadd.f32 %v1571_v20, %v1817_v40  ;;  %v784_v27 = vadd.f32 %v1603_v21, %v1817_v40  ;;  %v647_v28 = vpop.f32.mrf.mxu0  ;;  %v775_v29 = vpop.f32.mrf.mxu1 }
 0x107   : > { %1186 = vst.msk [vmem:[%s1828_s10 + $0x38] sm:$0xf] %vm1171_vm2, %v1453_v22  ;;  %1218 = vst.msk [vmem:[%s1828_s10 + $0xb8] sm:$0xf] %vm1171_vm2, %v1485_v23  ;;  %v1451_v30 = vpack.c.bf16 %v863_v24, %v863_v24  ;;  %v1483_v31 = vpack.c.bf16 %v895_v25, %v895_v25  ;;  %v648_v32 = vadd.f32 %v1817_v40, %v647_v28 }
 0x108   : > { %v776_v33 = vadd.f32 %v1817_v40, %v775_v29  ;;  %v866_v34 = vmax.f32 %v656_v26, 0.0  ;;  %v898_v35 = vmax.f32 %v784_v27, 0.0  ;;  %v1574_v36 = vpop.f32.mrf.mxu0  ;;  %v1606_v37 = vpop.f32.mrf.mxu1 }
 0x109   : > { %1184 = vst.msk [vmem:[%s1828_s10 + $0x30] sm:$0xf] %vm1171_vm2, %v1451_v30  ;;  %1216 = vst.msk [vmem:[%s1828_s10 + $0xb0] sm:$0xf] %vm1171_vm2, %v1483_v31  ;;  %v864_v38 = vmax.f32 %v648_v32, 0.0  ;;  %v669_v41 = vadd.f32 %v1574_v36, %v1817_v40  ;;  %v797_v42 = vadd.f32 %v1606_v37, %v1817_v40 }
 0x10a   : > { %v896_v39 = vmax.f32 %v776_v33, 0.0  ;;  %v1454_v43 = vpack.c.bf16 %v866_v34, %v866_v34  ;;  %v1486_v44 = vpack.c.bf16 %v898_v35, %v898_v35  ;;  %v660_v45 = vpop.f32.mrf.mxu0  ;;  %v788_v46 = vpop.f32.mrf.mxu1 }
 0x10b   : > { %v1452_v47 = vpack.c.bf16 %v864_v38, %v864_v38  ;;  %v869_v49 = vmax.f32 %v669_v41, 0.0  ;;  %v901_v50 = vmax.f32 %v797_v42, 0.0  ;;  %v661_v51 = vadd.f32 %v1817_v40, %v660_v45 }
 0x10c   : > { %v1484_v48 = vpack.c.bf16 %v896_v39, %v896_v39  ;;  %1187 = vst.msk [vmem:[%s1828_s10 + $0x3c] sm:$0xf] %vm1171_vm2, %v1454_v43  ;;  %1219 = vst.msk [vmem:[%s1828_s10 + $0xbc] sm:$0xf] %vm1171_vm2, %v1486_v44  ;;  %v789_v52 = vadd.f32 %v1817_v40, %v788_v46  ;;  %v1575_v53 = vpop.f32.mrf.mxu0  ;;  %v1607_v54 = vpop.f32.mrf.mxu1 }
 0x10d   : > { %1185 = vst.msk [vmem:[%s1828_s10 + $0x34] sm:$0xf] %vm1171_vm2, %v1452_v47  ;;  %v1457_v55 = vpack.c.bf16 %v869_v49, %v869_v49  ;;  %v1489_v56 = vpack.c.bf16 %v901_v50, %v901_v50  ;;  %v672_v57 = vadd.f32 %v1575_v53, %v1817_v40  ;;  %v800_v58 = vadd.f32 %v1607_v54, %v1817_v40 }
 0x10e   : > { %1217 = vst.msk [vmem:[%s1828_s10 + $0xb4] sm:$0xf] %vm1171_vm2, %v1484_v48  ;;  %v867_v59 = vmax.f32 %v661_v51, 0.0  ;;  %v899_v60 = vmax.f32 %v789_v52, 0.0  ;;  %v663_v61 = vpop.f32.mrf.mxu0  ;;  %v791_v62 = vpop.f32.mrf.mxu1 }
 0x10f   : > { %1190 = vst.msk [vmem:[%s1828_s10 + $0x48] sm:$0xf] %vm1171_vm2, %v1457_v55  ;;  %1222 = vst.msk [vmem:[%s1828_s10 + $0xc8] sm:$0xf] %vm1171_vm2, %v1489_v56  ;;  %v870_v63 = vmax.f32 %v672_v57, 0.0  ;;  %v902_v0 = vmax.f32 %v800_v58, 0.0  ;;  %v664_v1 = vadd.f32 %v1817_v40, %v663_v61  ;;  %v792_v2 = vadd.f32 %v1817_v40, %v791_v62 }
 0x110   : > { %v1455_v3 = vpack.c.bf16 %v867_v59, %v867_v59  ;;  %v1487_v4 = vpack.c.bf16 %v899_v60, %v899_v60  ;;  %v1578_v5 = vpop.f32.mrf.mxu0  ;;  %v1610_v6 = vpop.f32.mrf.mxu1 }
 0x111   : > { %v1458_v7 = vpack.c.bf16 %v870_v63, %v870_v63  ;;  %v1490_v8 = vpack.c.bf16 %v902_v0, %v902_v0  ;;  %v868_v9 = vmax.f32 %v664_v1, 0.0  ;;  %v900_v10 = vmax.f32 %v792_v2, 0.0 }
 0x112   : > { %1188 = vst.msk [vmem:[%s1828_s10 + $0x40] sm:$0xf] %vm1171_vm2, %v1455_v3  ;;  %1220 = vst.msk [vmem:[%s1828_s10 + $0xc0] sm:$0xf] %vm1171_vm2, %v1487_v4  ;;  %v685_v11 = vadd.f32 %v1578_v5, %v1817_v40  ;;  %v813_v12 = vadd.f32 %v1610_v6, %v1817_v40  ;;  %v676_v13 = vpop.f32.mrf.mxu0  ;;  %v804_v14 = vpop.f32.mrf.mxu1 }
 0x113   : > { %1191 = vst.msk [vmem:[%s1828_s10 + $0x4c] sm:$0xf] %vm1171_vm2, %v1458_v7  ;;  %1223 = vst.msk [vmem:[%s1828_s10 + $0xcc] sm:$0xf] %vm1171_vm2, %v1490_v8  ;;  %v1456_v15 = vpack.c.bf16 %v868_v9, %v868_v9  ;;  %v1488_v16 = vpack.c.bf16 %v900_v10, %v900_v10  ;;  %v677_v17 = vadd.f32 %v1817_v40, %v676_v13 }
 0x114   : > { %v805_v18 = vadd.f32 %v1817_v40, %v804_v14  ;;  %v873_v19 = vmax.f32 %v685_v11, 0.0  ;;  %v905_v20 = vmax.f32 %v813_v12, 0.0  ;;  %v1579_v21 = vpop.f32.mrf.mxu0  ;;  %v1611_v22 = vpop.f32.mrf.mxu1 }
 0x115   : > { %1189 = vst.msk [vmem:[%s1828_s10 + $0x44] sm:$0xf] %vm1171_vm2, %v1456_v15  ;;  %1221 = vst.msk [vmem:[%s1828_s10 + $0xc4] sm:$0xf] %vm1171_vm2, %v1488_v16  ;;  %v871_v23 = vmax.f32 %v677_v17, 0.0  ;;  %v688_v25 = vadd.f32 %v1579_v21, %v1817_v40  ;;  %v816_v26 = vadd.f32 %v1611_v22, %v1817_v40 }
 0x116   : > { %v903_v24 = vmax.f32 %v805_v18, 0.0  ;;  %v1461_v27 = vpack.c.bf16 %v873_v19, %v873_v19  ;;  %v1493_v28 = vpack.c.bf16 %v905_v20, %v905_v20  ;;  %v679_v29 = vpop.f32.mrf.mxu0  ;;  %v807_v30 = vpop.f32.mrf.mxu1 }
 0x117   : > { %v1459_v31 = vpack.c.bf16 %v871_v23, %v871_v23  ;;  %v874_v33 = vmax.f32 %v688_v25, 0.0  ;;  %v906_v34 = vmax.f32 %v816_v26, 0.0  ;;  %v680_v35 = vadd.f32 %v1817_v40, %v679_v29 }
 0x118   : > { %v1491_v32 = vpack.c.bf16 %v903_v24, %v903_v24  ;;  %1194 = vst.msk [vmem:[%s1828_s10 + $0x58] sm:$0xf] %vm1171_vm2, %v1461_v27  ;;  %1226 = vst.msk [vmem:[%s1828_s10 + $0xd8] sm:$0xf] %vm1171_vm2, %v1493_v28  ;;  %v808_v36 = vadd.f32 %v1817_v40, %v807_v30  ;;  %v1582_v37 = vpop.f32.mrf.mxu0  ;;  %v1614_v38 = vpop.f32.mrf.mxu1 }
 0x119   : > { %1192 = vst.msk [vmem:[%s1828_s10 + $0x50] sm:$0xf] %vm1171_vm2, %v1459_v31  ;;  %v1462_v39 = vpack.c.bf16 %v874_v33, %v874_v33  ;;  %v1494_v41 = vpack.c.bf16 %v906_v34, %v906_v34  ;;  %v701_v42 = vadd.f32 %v1582_v37, %v1817_v40  ;;  %v829_v43 = vadd.f32 %v1614_v38, %v1817_v40 }
 0x11a   : > { %1224 = vst.msk [vmem:[%s1828_s10 + $0xd0] sm:$0xf] %vm1171_vm2, %v1491_v32  ;;  %v872_v44 = vmax.f32 %v680_v35, 0.0  ;;  %v904_v45 = vmax.f32 %v808_v36, 0.0  ;;  %v692_v46 = vpop.f32.mrf.mxu0  ;;  %v820_v47 = vpop.f32.mrf.mxu1 }
 0x11b   : > { %1195 = vst.msk [vmem:[%s1828_s10 + $0x5c] sm:$0xf] %vm1171_vm2, %v1462_v39  ;;  %1227 = vst.msk [vmem:[%s1828_s10 + $0xdc] sm:$0xf] %vm1171_vm2, %v1494_v41  ;;  %v877_v48 = vmax.f32 %v701_v42, 0.0  ;;  %v909_v49 = vmax.f32 %v829_v43, 0.0  ;;  %v693_v50 = vadd.f32 %v1817_v40, %v692_v46  ;;  %v821_v51 = vadd.f32 %v1817_v40, %v820_v47 }
 0x11c   : > { %v1460_v52 = vpack.c.bf16 %v872_v44, %v872_v44  ;;  %v1492_v53 = vpack.c.bf16 %v904_v45, %v904_v45  ;;  %v1583_v54 = vpop.f32.mrf.mxu0  ;;  %v1615_v55 = vpop.f32.mrf.mxu1 }
 0x11d   : > { %v1465_v56 = vpack.c.bf16 %v877_v48, %v877_v48  ;;  %v1497_v57 = vpack.c.bf16 %v909_v49, %v909_v49  ;;  %v875_v58 = vmax.f32 %v693_v50, 0.0  ;;  %v907_v59 = vmax.f32 %v821_v51, 0.0 }
 0x11e   : > { %1193 = vst.msk [vmem:[%s1828_s10 + $0x54] sm:$0xf] %vm1171_vm2, %v1460_v52  ;;  %1225 = vst.msk [vmem:[%s1828_s10 + $0xd4] sm:$0xf] %vm1171_vm2, %v1492_v53  ;;  %v704_v60 = vadd.f32 %v1583_v54, %v1817_v40  ;;  %v832_v61 = vadd.f32 %v1615_v55, %v1817_v40  ;;  %v695_v62 = vpop.f32.mrf.mxu0  ;;  %v823_v63 = vpop.f32.mrf.mxu1 }
 0x11f   : > { %1198 = vst.msk [vmem:[%s1828_s10 + $0x68] sm:$0xf] %vm1171_vm2, %v1465_v56  ;;  %1230 = vst.msk [vmem:[%s1828_s10 + $0xe8] sm:$0xf] %vm1171_vm2, %v1497_v57  ;;  %v1463_v0 = vpack.c.bf16 %v875_v58, %v875_v58  ;;  %v1495_v1 = vpack.c.bf16 %v907_v59, %v907_v59  ;;  %v696_v2 = vadd.f32 %v1817_v40, %v695_v62 }
 0x120   : > { %v824_v3 = vadd.f32 %v1817_v40, %v823_v63  ;;  %v878_v4 = vmax.f32 %v704_v60, 0.0  ;;  %v910_v5 = vmax.f32 %v832_v61, 0.0  ;;  %v1586_v6 = vpop.f32.mrf.mxu0  ;;  %v1618_v7 = vpop.f32.mrf.mxu1 }
 0x121   : > { %1196 = vst.msk [vmem:[%s1828_s10 + $0x60] sm:$0xf] %vm1171_vm2, %v1463_v0  ;;  %1228 = vst.msk [vmem:[%s1828_s10 + $0xe0] sm:$0xf] %vm1171_vm2, %v1495_v1  ;;  %v876_v8 = vmax.f32 %v696_v2, 0.0  ;;  %v717_v10 = vadd.f32 %v1586_v6, %v1817_v40  ;;  %v845_v11 = vadd.f32 %v1618_v7, %v1817_v40 }
 0x122   : > { %v908_v9 = vmax.f32 %v824_v3, 0.0  ;;  %v1466_v12 = vpack.c.bf16 %v878_v4, %v878_v4  ;;  %v1498_v13 = vpack.c.bf16 %v910_v5, %v910_v5  ;;  %v708_v14 = vpop.f32.mrf.mxu0  ;;  %v836_v15 = vpop.f32.mrf.mxu1 }
 0x123   : > { %v1464_v16 = vpack.c.bf16 %v876_v8, %v876_v8  ;;  %v881_v18 = vmax.f32 %v717_v10, 0.0  ;;  %v913_v19 = vmax.f32 %v845_v11, 0.0  ;;  %v709_v20 = vadd.f32 %v1817_v40, %v708_v14 }
 0x124   : > { %v1496_v17 = vpack.c.bf16 %v908_v9, %v908_v9  ;;  %1199 = vst.msk [vmem:[%s1828_s10 + $0x6c] sm:$0xf] %vm1171_vm2, %v1466_v12  ;;  %1231 = vst.msk [vmem:[%s1828_s10 + $0xec] sm:$0xf] %vm1171_vm2, %v1498_v13  ;;  %v837_v21 = vadd.f32 %v1817_v40, %v836_v15  ;;  %v1587_v22 = vpop.f32.mrf.mxu0  ;;  %v1619_v23 = vpop.f32.mrf.mxu1 }
 0x125   : > { %1197 = vst.msk [vmem:[%s1828_s10 + $0x64] sm:$0xf] %vm1171_vm2, %v1464_v16  ;;  %v1469_v24 = vpack.c.bf16 %v881_v18, %v881_v18  ;;  %v1501_v25 = vpack.c.bf16 %v913_v19, %v913_v19  ;;  %v720_v26 = vadd.f32 %v1587_v22, %v1817_v40  ;;  %v848_v27 = vadd.f32 %v1619_v23, %v1817_v40 }
 0x126   : > { %1229 = vst.msk [vmem:[%s1828_s10 + $0xe4] sm:$0xf] %vm1171_vm2, %v1496_v17  ;;  %v879_v28 = vmax.f32 %v709_v20, 0.0  ;;  %v911_v29 = vmax.f32 %v837_v21, 0.0  ;;  %v711_v30 = vpop.f32.mrf.mxu0  ;;  %v839_v31 = vpop.f32.mrf.mxu1 }
 0x127   : > { %1202 = vst.msk [vmem:[%s1828_s10 + $0x78] sm:$0xf] %vm1171_vm2, %v1469_v24  ;;  %1234 = vst.msk [vmem:[%s1828_s10 + $0xf8] sm:$0xf] %vm1171_vm2, %v1501_v25  ;;  %v882_v32 = vmax.f32 %v720_v26, 0.0  ;;  %v914_v33 = vmax.f32 %v848_v27, 0.0  ;;  %v712_v34 = vadd.f32 %v1817_v40, %v711_v30  ;;  %v840_v35 = vadd.f32 %v1817_v40, %v839_v31 }
 0x128   : > { %v1467_v36 = vpack.c.bf16 %v879_v28, %v879_v28  ;;  %v1499_v37 = vpack.c.bf16 %v911_v29, %v911_v29 }
 0x129   : > { %v1470_v38 = vpack.c.bf16 %v882_v32, %v882_v32  ;;  %v1502_v39 = vpack.c.bf16 %v914_v33, %v914_v33  ;;  %v880_v41 = vmax.f32 %v712_v34, 0.0  ;;  %v912_v42 = vmax.f32 %v840_v35, 0.0 }
 0x12a   : > { %1200 = vst.msk [vmem:[%s1828_s10 + $0x70] sm:$0xf] %vm1171_vm2, %v1467_v36  ;;  %1232 = vst.msk [vmem:[%s1828_s10 + $0xf0] sm:$0xf] %vm1171_vm2, %v1499_v37 }
 0x12b   : > { %1203 = vst.msk [vmem:[%s1828_s10 + $0x7c] sm:$0xf] %vm1171_vm2, %v1470_v38  ;;  %1235 = vst.msk [vmem:[%s1828_s10 + $0xfc] sm:$0xf] %vm1171_vm2, %v1502_v39  ;;  %v1468_v43 = vpack.c.bf16 %v880_v41, %v880_v41  ;;  %v1500_v44 = vpack.c.bf16 %v912_v42, %v912_v42 }
 0x12d   : > { %1201 = vst.msk [vmem:[%s1828_s10 + $0x74] sm:$0xf] %vm1171_vm2, %v1468_v43  ;;  %1233 = vst.msk [vmem:[%s1828_s10 + $0xf4] sm:$0xf] %vm1171_vm2, %v1500_v44 }
 0x12e PF: > { %s13_s12 = sadd.s32 1, %s1689_s12  }
 0x12f   : > { %p10_p4 = scmp.ge.s32.totalorder %s13_s12, 27  }
 0x131   :  { %12 = sbr.rel (!%p10_p4) target bundleno = 1 (0x1), region = 62 }

// kernel: _lambda_.13
= control target key start
LH: loop header
LB: loop body
LE: loop exit
PB: predicated region body
PF: predicated region fallthrough
CT: control target
= control target key end

     0   :  { %s2829_s12 = smov 0   ;;  %s3350_s0 = inlined_call_operand.vmem [shape: bf16[12800,432], index: 0, kind: input, shape index: {}]   ;;  %s3351_s1 = inlined_call_operand.vmem [shape: bf16[432,16], index: 1, kind: input, shape index: {}]   ;;  %s3352_s2 = inlined_call_operand.vmem [shape: f32[1,16], index: 2, kind: input, shape index: {}]   ;;  %s3353_s3 = inlined_call_operand.vmem [shape: bf16[12800,16], index: 3, kind: output, shape index: {}]  }
   0x1 LB: > { %s2253_s13 = sadd.s32 4294967295, %s2806_s12   ;;  %p2257_p0 = scmp.ge.s32.totalorder %s2806_s12, 1  ;;  %s2806_s12 = sphi %s2829_s12, %s13_s12  }
   0x2   : > { %p139_p1 = scmp.lt.s32.totalorder %s2806_s12, 26 }
   0x4   : > { %p140_p2 = pnand %p2257_p0, %p139_p1 }
   0x5   : > { %s2258_s26 = sshll.u32 (!%p140_p2), %s2253_s13, 6 }
   0x6   : > { %143 = sbr.rel (%p140_p2) target bundleno = 530 (0x212), region = 32  ;;  %p165_p3 = scmp.lt.s32.totalorder (!%p140_p2), %s2258_s26, 1599 }
   0xb   : > { %v2591_v0 = vld [vmem:[%s3351_s1 + $0x38] sm:$0xff]   ;;  %v2808_v1 = vmov 0   ;;  %v2592_v2 = vld [vmem:[%s3351_s1 + $0x30] sm:$0xff]   ;;  %v2593_v4 = vld [vmem:[%s3351_s1 + $0x28] sm:$0xff]   ;;  %s3355_s26 = smov (!%p165_p3, %s2258_s26), 1599  ;;  %vm1137_vm0 = vcmask 392192  }
   0xc   : > { %1234 = vmatprep.subr.bf16.mxu0 %v2808_v1  ;;  %1523 = vmatprep.subr.bf16.mxu1 %v2808_v1  ;;  %v2596_v3 = vld [vmem:[%s3351_s1 + $0xb8] sm:$0xff]   ;;  %v2598_v5 = vld [vmem:[%s3351_s1 + $0xb0] sm:$0xff]   ;;  %v2594_v6 = vld [vmem:[%s3351_s1 + $0x20] sm:$0xff]   ;;  %s2517_s10 = sshll.u32 %s3355_s26, 4  ;;  %s2262_s25 = sshll.u32 %s3355_s26, 2  ;;  %vm2132_vm1 = vcmask 125952  }
   0xd   : > { %1235 = vmatpush1.bf16.msra.mxu0 %v2591_v0  ;;  %1524 = vmatpush1.bf16.msra.mxu1 %v2596_v3  ;;  %v2600_v7 = vld [vmem:[%s3351_s1 + $0xa8] sm:$0xff]   ;;  %v2595_v8 = vld [vmem:[%s3351_s1 + $0x18] sm:$0xff]   ;;  %v2602_v9 = vld [vmem:[%s3351_s1 + $0xa0] sm:$0xff]   ;;  %s2895_s18 = scalar_lea.vmem %s3350_s0, %s2517_s10  ;;  %s3110_s29 = scalar_lea.vmem %s3353_s3, %s2262_s25 }
   0xe   : > { %1236 = vmatprep.subr.bf16.mxu0 %v2808_v1  ;;  %1525 = vmatprep.subr.bf16.mxu1 %v2808_v1  ;;  %v2597_v10 = vld [vmem:[%s3351_s1 + $0x10] sm:$0xff]   ;;  %v2604_v11 = vld [vmem:[%s3351_s1 + $0x98] sm:$0xff]   ;;  %v2599_v12 = vld [vmem:[%s3351_s1 + $0x8] sm:$0xff]  }
   0xf   : > { %v2606_v13 = vld [vmem:[%s3351_s1 + $0x90] sm:$0xff]   ;;  %v2601_v14 = vld [vmem:[%s3351_s1] sm:$0xff]   ;;  %v2608_v15 = vld [vmem:[%s3351_s1 + $0x88] sm:$0xff]  }
  0x10   : > { %v2619_v16 = vld [vmem:[%s2895_s18 + $0xc] ss:$16 sps:$4 sm:$0xff]   ;;  %v2623_v17 = vld [vmem:[%s2895_s18 + $0x4] ss:$16 sps:$4 sm:$0xff]   ;;  %v2617_v27 = vld [vmem:[%s2895_s18 + $0x8] ss:$16 sps:$4 sm:$0xff]  }
  0x11   : > { %1237 = vmatpush1.bf16.msra.mxu0 %v2592_v2  ;;  %1526 = vmatpush1.bf16.msra.mxu1 %v2598_v5  ;;  %v2603_v18 = vld [vmem:[%s3351_s1 + $0x78] sm:$0xff]   ;;  %v2610_v19 = vld [vmem:[%s3351_s1 + $0x80] sm:$0xff]   ;;  %v2605_v20 = vld [vmem:[%s3351_s1 + $0x70] sm:$0xff]  }
  0x12   : > { %1238 = vmatprep.subr.bf16.mxu0 %v2808_v1  ;;  %1527 = vmatprep.subr.bf16.mxu1 %v2808_v1  ;;  %v2612_v21 = vld [vmem:[%s3351_s1 + $0xd0] sm:$0xff]   ;;  %v2607_v22 = vld [vmem:[%s3351_s1 + $0x68] sm:$0xff]   ;;  %v2609_v24 = vld [vmem:[%s3351_s1 + $0x60] sm:$0xff]  }
  0x13   : > { %2419 = vmatprep.mubr.msk.bf16.mxu1 %vm1137_vm0, %v2619_v16  ;;  %1266 = vmatprep.mubr.bf16.mxu0 %v2623_v17  ;;  %v2614_v23 = vld [vmem:[%s3351_s1 + $0xc8] sm:$0xff]   ;;  %v2616_v25 = vld [vmem:[%s3351_s1 + $0xc0] sm:$0xff]   ;;  %v2611_v26 = vld [vmem:[%s3351_s1 + $0x58] sm:$0xff]  }
  0x14   : > { %v2624_v28 = vld [vmem:[%s2895_s18 + $0x2c] ss:$16 sps:$4 sm:$0xff]   ;;  %v2613_v29 = vld [vmem:[%s3351_s1 + $0x50] sm:$0xff]   ;;  %v2626_v31 = vld [vmem:[%s2895_s18 + $0x28] ss:$16 sps:$4 sm:$0xff]  }
  0x15   : > { %1239 = vmatpush1.bf16.msra.mxu0 %v2593_v4  ;;  %1528 = vmatpush1.bf16.msra.mxu1 %v2600_v7  ;;  %v2615_v30 = vld [vmem:[%s3351_s1 + $0x48] sm:$0xff]   ;;  %v2620_v33 = vld [vmem:[%s3351_s1 + $0x40] sm:$0xff]  }
  0x16   : > { %1240 = vmatprep.subr.bf16.mxu0 %v2808_v1  ;;  %1529 = vmatprep.subr.bf16.mxu1 %v2808_v1  ;;  %v2630_v32 = vld [vmem:[%s2895_s18 + $0x4c] ss:$16 sps:$4 sm:$0xff]   ;;  %v2621_v34 = vld [vmem:[%s2895_s18] ss:$16 sps:$4 sm:$0xff]   ;;  %v2627_v35 = vld [vmem:[%s2895_s18 + $0x24] ss:$16 sps:$4 sm:$0xff]  }
  0x17   : > { %v2632_v36 = vld [vmem:[%s2895_s18 + $0x48] ss:$16 sps:$4 sm:$0xff]   ;;  %v2636_v37 = vld [vmem:[%s2895_s18 + $0x6c] ss:$16 sps:$4 sm:$0xff]   ;;  %v2629_v38 = vld [vmem:[%s2895_s18 + $0x20] ss:$16 sps:$4 sm:$0xff]  }
  0x18   : > { %v2633_v39 = vld [vmem:[%s2895_s18 + $0x44] ss:$16 sps:$4 sm:$0xff]   ;;  %v2638_v40 = vld [vmem:[%s2895_s18 + $0x68] ss:$16 sps:$4 sm:$0xff]   ;;  %v2642_v41 = vld [vmem:[%s2895_s18 + $0x8c] ss:$16 sps:$4 sm:$0xff]  }
  0x19   : > { %1241 = vmatpush1.bf16.msra.mxu0 %v2594_v6  ;;  %1530 = vmatpush1.bf16.msra.mxu1 %v2602_v9  ;;  %v2635_v42 = vld [vmem:[%s2895_s18 + $0x40] ss:$16 sps:$4 sm:$0xff]   ;;  %v2639_v43 = vld [vmem:[%s2895_s18 + $0x64] ss:$16 sps:$4 sm:$0xff]   ;;  %v2644_v44 = vld [vmem:[%s2895_s18 + $0x88] ss:$16 sps:$4 sm:$0xff]  }
  0x1a   : > { %1242 = vmatprep.subr.bf16.mxu0 %v2808_v1  ;;  %1531 = vmatprep.subr.bf16.mxu1 %v2808_v1  ;;  %v2648_v45 = vld [vmem:[%s2895_s18 + $0xac] ss:$16 sps:$4 sm:$0xff]   ;;  %v2641_v46 = vld [vmem:[%s2895_s18 + $0x60] ss:$16 sps:$4 sm:$0xff]   ;;  %v2645_v47 = vld [vmem:[%s2895_s18 + $0x84] ss:$16 sps:$4 sm:$0xff]  }
  0x1b   : > { %v2650_v48 = vld [vmem:[%s2895_s18 + $0xa8] ss:$16 sps:$4 sm:$0xff]   ;;  %v2654_v49 = vld [vmem:[%s2895_s18 + $0xcc] ss:$16 sps:$4 sm:$0xff]   ;;  %v2647_v50 = vld [vmem:[%s2895_s18 + $0x80] ss:$16 sps:$4 sm:$0xff]  }
  0x1c   : > { %v2651_v51 = vld [vmem:[%s2895_s18 + $0xa4] ss:$16 sps:$4 sm:$0xff]   ;;  %v2656_v52 = vld [vmem:[%s2895_s18 + $0xc8] ss:$16 sps:$4 sm:$0xff]   ;;  %v2660_v53 = vld [vmem:[%s2895_s18 + $0xec] ss:$16 sps:$4 sm:$0xff]  }
  0x1d   : > { %1243 = vmatpush1.bf16.msra.mxu0 %v2595_v8  ;;  %1532 = vmatpush1.bf16.msra.mxu1 %v2604_v11  ;;  %v2653_v54 = vld [vmem:[%s2895_s18 + $0xa0] ss:$16 sps:$4 sm:$0xff]   ;;  %v2657_v55 = vld [vmem:[%s2895_s18 + $0xc4] ss:$16 sps:$4 sm:$0xff]   ;;  %v2662_v56 = vld [vmem:[%s2895_s18 + $0xe8] ss:$16 sps:$4 sm:$0xff]  }
  0x1e   : > { %1244 = vmatprep.subr.bf16.mxu0 %v2808_v1  ;;  %1533 = vmatprep.subr.bf16.mxu1 %v2808_v1  ;;  %v2666_v57 = vld [vmem:[%s2895_s18 + $0x10c] ss:$16 sps:$4 sm:$0xff]   ;;  %v2659_v58 = vld [vmem:[%s2895_s18 + $0xc0] ss:$16 sps:$4 sm:$0xff]   ;;  %v2663_v59 = vld [vmem:[%s2895_s18 + $0xe4] ss:$16 sps:$4 sm:$0xff]  }
  0x1f   : > { %v2668_v60 = vld [vmem:[%s2895_s18 + $0x108] ss:$16 sps:$4 sm:$0xff]   ;;  %v2672_v61 = vld [vmem:[%s2895_s18 + $0x12c] ss:$16 sps:$4 sm:$0xff]   ;;  %v2665_v62 = vld [vmem:[%s2895_s18 + $0xe0] ss:$16 sps:$4 sm:$0xff]  }
  0x20   : > { %v2669_v63 = vld [vmem:[%s2895_s18 + $0x104] ss:$16 sps:$4 sm:$0xff]   ;;  %v2674_v0 = vld [vmem:[%s2895_s18 + $0x128] ss:$16 sps:$4 sm:$0xff]   ;;  %v2671_v2 = vld [vmem:[%s2895_s18 + $0x100] ss:$16 sps:$4 sm:$0xff]  }
  0x21   : > { %1245 = vmatpush1.bf16.msra.mxu0 %v2597_v10  ;;  %1534 = vmatpush1.bf16.msra.mxu1 %v2606_v13  ;;  %v2675_v3 = vld [vmem:[%s2895_s18 + $0x124] ss:$16 sps:$4 sm:$0xff]   ;;  %v2680_v4 = vld [vmem:[%s2895_s18 + $0x148] ss:$16 sps:$4 sm:$0xff]   ;;  %v2684_v5 = vld [vmem:[%s2895_s18 + $0x16c] ss:$16 sps:$4 sm:$0xff]  }
  0x22   : > { %1246 = vmatprep.subr.bf16.mxu0 %v2808_v1  ;;  %1535 = vmatprep.subr.bf16.mxu1 %v2808_v1  ;;  %v2677_v6 = vld [vmem:[%s2895_s18 + $0x120] ss:$16 sps:$4 sm:$0xff]   ;;  %v2681_v7 = vld [vmem:[%s2895_s18 + $0x144] ss:$16 sps:$4 sm:$0xff]   ;;  %v2686_v8 = vld [vmem:[%s2895_s18 + $0x168] ss:$16 sps:$4 sm:$0xff]  }
  0x23   : > { %v2690_v9 = vld [vmem:[%s2895_s18 + $0x18c] ss:$16 sps:$4 sm:$0xff]   ;;  %v2683_v10 = vld [vmem:[%s2895_s18 + $0x140] ss:$16 sps:$4 sm:$0xff]   ;;  %v2687_v11 = vld [vmem:[%s2895_s18 + $0x164] ss:$16 sps:$4 sm:$0xff]  }
  0x24   : > { %v2696_v13 = vld [vmem:[%s2895_s18 + $0x1ac] ss:$16 sps:$4 sm:$0xff]   ;;  %v2698_v16 = vld [vmem:[%s2895_s18 + $0x1a8] ss:$16 sps:$4 sm:$0xff]  }
  0x25   : > { %1247 = vmatpush1.bf16.msra.mxu0 %v2599_v12  ;;  %1536 = vmatpush1.bf16.msra.mxu1 %v2608_v15  ;;  %v2692_v12 = vld [vmem:[%s2895_s18 + $0x188] ss:$16 sps:$4 sm:$0xff]   ;;  %v2693_v15 = vld [vmem:[%s2895_s18 + $0x184] ss:$16 sps:$4 sm:$0xff]   ;;  %v2702_v17 = vld [vmem:[%s2895_s18 + $0x1cc] ss:$16 sps:$4 sm:$0xff]  }
  0x26   : > { %1248 = vmatprep.subr.bf16.mxu0 %v2808_v1  ;;  %1537 = vmatprep.subr.bf16.mxu1 %v2808_v1 }
  0x29   : > { %1249 = vmatpush1.bf16.msra.mxu0 %v2601_v14  ;;  %1538 = vmatpush1.bf16.msra.mxu1 %v2610_v19  ;;  %v2689_v14 = vld [vmem:[%s2895_s18 + $0x160] ss:$16 sps:$4 sm:$0xff]   ;;  %v2699_v19 = vld [vmem:[%s2895_s18 + $0x1a4] ss:$16 sps:$4 sm:$0xff]  }
  0x2a   : > { %1250 = vmatprep.subr.bf16.mxu0 %v2808_v1  ;;  %1549 = vmatprep.subr.bf16.mxu1 %v2808_v1 }
  0x2d   : > { %1251 = vmatpush2.bf16.msra.mxu0 %v2603_v18  ;;  %1550 = vmatpush2.bf16.msra.mxu1 %v2612_v21  ;;  %v2695_v18 = vld [vmem:[%s2895_s18 + $0x180] ss:$16 sps:$4 sm:$0xff]   ;;  %v2708_v21 = vld [vmem:[%s2895_s18 + $0x1ec] ss:$16 sps:$4 sm:$0xff]  }
  0x2e   : > { %1252 = vmatprep.subr.bf16.mxu0 %v2808_v1  ;;  %1551 = vmatprep.subr.bf16.mxu1 %v2808_v1 }
  0x31   : > { %1253 = vmatpush2.bf16.msra.mxu0 %v2605_v20  ;;  %1552 = vmatpush2.bf16.msra.mxu1 %v2614_v23  ;;  %v2704_v20 = vld [vmem:[%s2895_s18 + $0x1c8] ss:$16 sps:$4 sm:$0xff]   ;;  %v2705_v23 = vld [vmem:[%s2895_s18 + $0x1c4] ss:$16 sps:$4 sm:$0xff]  }
  0x32   : > { %1254 = vmatprep.subr.bf16.mxu0 %v2808_v1  ;;  %1553 = vmatprep.subr.bf16.mxu1 %v2808_v1 }
  0x35   : > { %1255 = vmatpush2.bf16.msra.mxu0 %v2607_v22  ;;  %1554 = vmatpush2.bf16.msra.mxu1 %v2616_v25  ;;  %v2701_v22 = vld [vmem:[%s2895_s18 + $0x1a0] ss:$16 sps:$4 sm:$0xff]   ;;  %v2714_v25 = vld [vmem:[%s2895_s18 + $0x20c] ss:$16 sps:$4 sm:$0xff]  }
  0x36   : > { %1256 = vmatprep.subr.bf16.mxu0 %v2808_v1 }
  0x38   : > { %1556 = vmatmul.mubr.bf16.vlgmr.msra.gmra.mxu1 %v2617_v27  ;;  %v2711_v27 = vld [vmem:[%s2895_s18 + $0x1e4] ss:$16 sps:$4 sm:$0xff]  }
  0x39   : > { %1257 = vmatpush2.bf16.msra.mxu0 %v2609_v24  ;;  %2420 = vmatprep.mubr.msk.bf16.mxu1 %vm1137_vm0, %v2624_v28  ;;  %v2710_v24 = vld [vmem:[%s2895_s18 + $0x1e8] ss:$16 sps:$4 sm:$0xff]  }
  0x3a   : > { %1258 = vmatprep.subr.bf16.mxu0 %v2808_v1  ;;  %v2716_v28 = vld [vmem:[%s2895_s18 + $0x208] ss:$16 sps:$4 sm:$0xff]  }
  0x3d   : > { %1259 = vmatpush2.bf16.msra.mxu0 %v2611_v26  ;;  %v2707_v26 = vld [vmem:[%s2895_s18 + $0x1c0] ss:$16 sps:$4 sm:$0xff]  }
  0x3e   : > { %1260 = vmatprep.subr.bf16.mxu0 %v2808_v1 }
  0x40   : > { %1564 = vmatmul.mubr.bf16.gmra.mxu1 %v2626_v31  ;;  %v2717_v31 = vld [vmem:[%s2895_s18 + $0x204] ss:$16 sps:$4 sm:$0xff]  }
  0x41   : > { %1261 = vmatpush2.bf16.msra.mxu0 %v2613_v29  ;;  %2421 = vmatprep.mubr.msk.bf16.mxu1 %vm1137_vm0, %v2630_v32  ;;  %v2720_v29 = vld [vmem:[%s2895_s18 + $0x22c] ss:$16 sps:$4 sm:$0xff]   ;;  %v2722_v32 = vld [vmem:[%s2895_s18 + $0x228] ss:$16 sps:$4 sm:$0xff]  }
  0x42   : > { %1262 = vmatprep.subr.bf16.mxu0 %v2808_v1 }
  0x45   : > { %1263 = vmatpush2.bf16.msra.mxu0 %v2615_v30  ;;  %v2713_v30 = vld [vmem:[%s2895_s18 + $0x1e0] ss:$16 sps:$4 sm:$0xff]  }
  0x46   : > { %1264 = vmatprep.subr.bf16.mxu0 %v2808_v1  ;;  %v2678_v1 = vld [vmem:[%s2895_s18 + $0x14c] ss:$16 sps:$4 sm:$0xff]  }
  0x48   : > { %1572 = vmatmul.mubr.bf16.gmra.mxu1 %v2632_v36  ;;  %v2728_v36 = vld [vmem:[%s2895_s18 + $0x248] ss:$16 sps:$4 sm:$0xff]  }
  0x49   : > { %1265 = vmatpush2.bf16.msra.mxu0 %v2620_v33  ;;  %2422 = vmatprep.mubr.msk.bf16.mxu1 %vm1137_vm0, %v2636_v37  ;;  %v2726_v33 = vld [vmem:[%s2895_s18 + $0x24c] ss:$16 sps:$4 sm:$0xff]  }
  0x4a   : > { %v2732_v37 = vld [vmem:[%s2895_s18 + $0x26c] ss:$16 sps:$4 sm:$0xff]  }
  0x4c   : > { %1267 = vmatmul.mubr.bf16.vlgmr.msra.gmra.mxu0 %v2621_v34  ;;  %v2719_v34 = vld [vmem:[%s2895_s18 + $0x200] ss:$16 sps:$4 sm:$0xff]  }
  0x4d   : > { %1274 = vmatprep.mubr.bf16.mxu0 %v2627_v35  ;;  %v2723_v35 = vld [vmem:[%s2895_s18 + $0x224] ss:$16 sps:$4 sm:$0xff]  }
  0x50   : > { %1580 = vmatmul.mubr.bf16.gmra.mxu1 %v2638_v40  ;;  %v2734_v40 = vld [vmem:[%s2895_s18 + $0x268] ss:$16 sps:$4 sm:$0xff]  }
  0x51   : > { %2423 = vmatprep.mubr.msk.bf16.mxu1 %vm1137_vm0, %v2642_v41  ;;  %v2738_v41 = vld [vmem:[%s2895_s18 + $0x28c] ss:$16 sps:$4 sm:$0xff]  }
  0x54   : > { %1275 = vmatmul.mubr.bf16.gmra.mxu0 %v2629_v38  ;;  %v2725_v38 = vld [vmem:[%s2895_s18 + $0x220] ss:$16 sps:$4 sm:$0xff]  }
  0x55   : > { %1282 = vmatprep.mubr.bf16.mxu0 %v2633_v39  ;;  %v2729_v39 = vld [vmem:[%s2895_s18 + $0x244] ss:$16 sps:$4 sm:$0xff]  }
  0x58   : > { %1588 = vmatmul.mubr.bf16.gmra.mxu1 %v2644_v44  ;;  %v2740_v44 = vld [vmem:[%s2895_s18 + $0x288] ss:$16 sps:$4 sm:$0xff]  }
  0x59   : > { %2424 = vmatprep.mubr.msk.bf16.mxu1 %vm1137_vm0, %v2648_v45  ;;  %v2744_v45 = vld [vmem:[%s2895_s18 + $0x2ac] ss:$16 sps:$4 sm:$0xff]  }
  0x5c   : > { %1283 = vmatmul.mubr.bf16.gmra.mxu0 %v2635_v42  ;;  %v2731_v42 = vld [vmem:[%s2895_s18 + $0x240] ss:$16 sps:$4 sm:$0xff]  }
  0x5d   : > { %1290 = vmatprep.mubr.bf16.mxu0 %v2639_v43  ;;  %v2735_v43 = vld [vmem:[%s2895_s18 + $0x264] ss:$16 sps:$4 sm:$0xff]  }
  0x60   : > { %1596 = vmatmul.mubr.bf16.gmra.mxu1 %v2650_v48  ;;  %v2746_v48 = vld [vmem:[%s2895_s18 + $0x2a8] ss:$16 sps:$4 sm:$0xff]  }
  0x61   : > { %2425 = vmatprep.mubr.msk.bf16.mxu1 %vm1137_vm0, %v2654_v49  ;;  %v2750_v49 = vld [vmem:[%s2895_s18 + $0x2cc] ss:$16 sps:$4 sm:$0xff]  }
  0x64   : > { %1291 = vmatmul.mubr.bf16.gmra.mxu0 %v2641_v46  ;;  %v2737_v46 = vld [vmem:[%s2895_s18 + $0x260] ss:$16 sps:$4 sm:$0xff]  }
  0x65   : > { %1298 = vmatprep.mubr.bf16.mxu0 %v2645_v47  ;;  %v2741_v47 = vld [vmem:[%s2895_s18 + $0x284] ss:$16 sps:$4 sm:$0xff]  }
  0x68   : > { %1604 = vmatmul.mubr.bf16.gmra.mxu1 %v2656_v52  ;;  %v2752_v52 = vld [vmem:[%s2895_s18 + $0x2c8] ss:$16 sps:$4 sm:$0xff]  }
  0x69   : > { %2426 = vmatprep.mubr.msk.bf16.mxu1 %vm1137_vm0, %v2660_v53  ;;  %v2756_v53 = vld [vmem:[%s2895_s18 + $0x2ec] ss:$16 sps:$4 sm:$0xff]  }
  0x6c   : > { %1299 = vmatmul.mubr.bf16.gmra.mxu0 %v2647_v50  ;;  %v2743_v50 = vld [vmem:[%s2895_s18 + $0x280] ss:$16 sps:$4 sm:$0xff]  }
  0x6d   : > { %1306 = vmatprep.mubr.bf16.mxu0 %v2651_v51  ;;  %v2747_v51 = vld [vmem:[%s2895_s18 + $0x2a4] ss:$16 sps:$4 sm:$0xff]  }
  0x70   : > { %1612 = vmatmul.mubr.bf16.gmra.mxu1 %v2662_v56  ;;  %v2758_v56 = vld [vmem:[%s2895_s18 + $0x2e8] ss:$16 sps:$4 sm:$0xff]  }
  0x71   : > { %2427 = vmatprep.mubr.msk.bf16.mxu1 %vm1137_vm0, %v2666_v57  ;;  %v2762_v57 = vld [vmem:[%s2895_s18 + $0x30c] ss:$16 sps:$4 sm:$0xff]  }
  0x74   : > { %1307 = vmatmul.mubr.bf16.gmra.mxu0 %v2653_v54  ;;  %v2749_v54 = vld [vmem:[%s2895_s18 + $0x2a0] ss:$16 sps:$4 sm:$0xff]  }
  0x75   : > { %1314 = vmatprep.mubr.bf16.mxu0 %v2657_v55  ;;  %v2753_v55 = vld [vmem:[%s2895_s18 + $0x2c4] ss:$16 sps:$4 sm:$0xff]  }
  0x78   : > { %1620 = vmatmul.mubr.bf16.gmra.mxu1 %v2668_v60  ;;  %v2764_v60 = vld [vmem:[%s2895_s18 + $0x308] ss:$16 sps:$4 sm:$0xff]  }
  0x79   : > { %2428 = vmatprep.mubr.msk.bf16.mxu1 %vm1137_vm0, %v2672_v61  ;;  %v2767_v61 = vld [vmem:[%s2895_s18 + $0x32c] ss:$16 sps:$4 sm:$0xff]  }
  0x7c   : > { %1315 = vmatmul.mubr.bf16.gmra.mxu0 %v2659_v58  ;;  %v2755_v58 = vld [vmem:[%s2895_s18 + $0x2c0] ss:$16 sps:$4 sm:$0xff]  }
  0x7d   : > { %1322 = vmatprep.mubr.bf16.mxu0 %v2663_v59  ;;  %v2759_v59 = vld [vmem:[%s2895_s18 + $0x2e4] ss:$16 sps:$4 sm:$0xff]  }
  0x80   : > { %1628 = vmatmul.mubr.bf16.gmra.mxu1 %v2674_v0  ;;  %v281_v0 = vld [vmem:[%s2895_s18 + $0x338] sm:$0xff] }
  0x81   : > { %2429 = vmatprep.mubr.msk.bf16.mxu1 %vm1137_vm0, %v2678_v1 }
  0x84   : > { %1323 = vmatmul.mubr.bf16.gmra.mxu0 %v2665_v62 }
  0x85   : > { %1330 = vmatprep.mubr.bf16.mxu0 %v2669_v63  ;;  %v279_v63 = vld [vmem:[%s2895_s18 + $0x328] sm:$0xff] }
  0x88   : > { %1636 = vmatmul.mubr.bf16.gmra.mxu1 %v2680_v4 }
  0x89   : > { %2430 = vmatprep.mubr.msk.bf16.mxu1 %vm1137_vm0, %v2684_v5  ;;  %v2366_v5 = vcombine.low %v279_v63, %v281_v0  ;;  %v2784_v63 = vld [vmem:[%s2895_s18 + $0x3ac] ss:$16 sps:$4 sm:$0xff]  }
  0x8c   : > { %1331 = vmatmul.mubr.bf16.gmra.mxu0 %v2671_v2  ;;  %v2761_v2 = vld [vmem:[%s2895_s18 + $0x2e0] ss:$16 sps:$4 sm:$0xff]  }
  0x8d   : > { %1338 = vmatprep.mubr.bf16.mxu0 %v2675_v3  ;;  %v2765_v3 = vld [vmem:[%s2895_s18 + $0x304] ss:$16 sps:$4 sm:$0xff]  }
  0x90   : > { %1644 = vmatmul.mubr.bf16.gmra.mxu1 %v2686_v8  ;;  %v274_v8 = vld [vmem:[%s2895_s18 + $0x300] sm:$0xff] }
  0x91   : > { %2431 = vmatprep.mubr.msk.bf16.mxu1 %vm1137_vm0, %v2690_v9  ;;  %v276_v9 = vld [vmem:[%s2895_s18 + $0x310] sm:$0xff] }
  0x94   : > { %1339 = vmatmul.mubr.bf16.gmra.mxu0 %v2677_v6  ;;  %v2771_v6 = vld [vmem:[%s2895_s18 + $0x34c] ss:$16 sps:$4 sm:$0xff]  }
  0x95   : > { %1346 = vmatprep.mubr.bf16.mxu0 %v2681_v7 }
  0x98   : > { %1652 = vmatmul.mubr.bf16.gmra.mxu1 %v2692_v12  ;;  %v285_v12 = vld [vmem:[%s2895_s18 + $0x358] sm:$0xff] }
  0x99   : > { %2432 = vmatprep.mubr.msk.bf16.mxu1 %vm1137_vm0, %v2696_v13 }
  0x9c   : > { %1347 = vmatmul.mubr.bf16.gmra.mxu0 %v2683_v10 }
  0x9d   : > { %1354 = vmatprep.mubr.bf16.mxu0 %v2687_v11  ;;  %v283_v11 = vld [vmem:[%s2895_s18 + $0x348] sm:$0xff] }
  0xa0   : > { %1660 = vmatmul.mubr.bf16.gmra.mxu1 %v2698_v16 }
  0xa1   : > { %2433 = vmatprep.mubr.msk.bf16.mxu1 %vm1137_vm0, %v2702_v17  ;;  %v2370_v17 = vcombine.low %v283_v11, %v285_v12  ;;  %v297_v11 = vld [vmem:[%s2895_s18 + $0x3b8] sm:$0xff] }
  0xa4   : > { %1355 = vmatmul.mubr.bf16.gmra.mxu0 %v2689_v14  ;;  %v2360_v14 = vcombine.low %v274_v8, %v276_v9 }
  0xa5   : > { %1362 = vmatprep.mubr.bf16.mxu0 %v2693_v15  ;;  %v2769_v15 = vld [vmem:[%s2895_s18 + $0x324] ss:$16 sps:$4 sm:$0xff]  }
  0xa8   : > { %1668 = vmatmul.mubr.bf16.gmra.mxu1 %v2704_v20 }
  0xa9   : > { %2434 = vmatprep.mubr.msk.bf16.mxu1 %vm1137_vm0, %v2708_v21 }
  0xac   : > { %1363 = vmatmul.mubr.bf16.gmra.mxu0 %v2695_v18  ;;  %v3091_v18 = vld [vmem:[%s3352_s2] ss:$0 sm:$0xff] }
  0xad   : > { %1370 = vmatprep.mubr.bf16.mxu0 %v2699_v19  ;;  %v2775_v19 = vld [vmem:[%s2895_s18 + $0x36c] ss:$16 sps:$4 sm:$0xff]  }
  0xb0   : > { %1676 = vmatmul.mubr.bf16.gmra.mxu1 %v2710_v24  ;;  %v280_v24 = vld [vmem:[%s2895_s18 + $0x330] sm:$0xff] }
  0xb1   : > { %2435 = vmatprep.mubr.msk.bf16.mxu1 %vm1137_vm0, %v2714_v25 }
  0xb4   : > { %1371 = vmatmul.mubr.bf16.gmra.mxu0 %v2701_v22 }
  0xb5   : > { %1378 = vmatprep.mubr.bf16.mxu0 %v2705_v23  ;;  %v278_v23 = vld [vmem:[%s2895_s18 + $0x320] sm:$0xff] }
  0xb8   : > { %1684 = vmatmul.mubr.bf16.gmra.mxu1 %v2716_v28  ;;  %v289_v28 = vld [vmem:[%s2895_s18 + $0x378] sm:$0xff] }
  0xb9   : > { %2436 = vmatprep.mubr.msk.bf16.mxu1 %vm1137_vm0, %v2720_v29 }
  0xbc   : > { %1379 = vmatmul.mubr.bf16.gmra.mxu0 %v2707_v26 }
  0xbd   : > { %1386 = vmatprep.mubr.bf16.mxu0 %v2711_v27  ;;  %v287_v27 = vld [vmem:[%s2895_s18 + $0x368] sm:$0xff] }
  0xc0   : > { %1692 = vmatmul.mubr.bf16.gmra.mxu1 %v2722_v32  ;;  %v2364_v32 = vcombine.low %v278_v23, %v280_v24  ;;  %v2789_v24 = vld [vmem:[%s2895_s18 + $0x3cc] ss:$16 sps:$4 sm:$0xff]  }
  0xc1   : > { %2437 = vmatprep.mubr.msk.bf16.mxu1 %vm1137_vm0, %v2726_v33 }
  0xc4   : > { %1387 = vmatmul.mubr.bf16.gmra.mxu0 %v2713_v30 }
  0xc5   : > { %1394 = vmatprep.mubr.bf16.mxu0 %v2717_v31 }
  0xc8   : > { %1700 = vmatmul.mubr.bf16.gmra.mxu1 %v2728_v36 }
  0xc9   : > { %2438 = vmatprep.mubr.msk.bf16.mxu1 %vm1137_vm0, %v2732_v37  ;;  %v2374_v37 = vcombine.low %v287_v27, %v289_v28 }
  0xcc   : > { %1395 = vmatmul.mubr.bf16.gmra.mxu0 %v2719_v34 }
  0xcd   : > { %1402 = vmatprep.mubr.bf16.mxu0 %v2723_v35  ;;  %v2773_v35 = vld [vmem:[%s2895_s18 + $0x344] ss:$16 sps:$4 sm:$0xff]  }
  0xd0   : > { %1708 = vmatmul.mubr.bf16.gmra.mxu1 %v2734_v40 }
  0xd1   : > { %2439 = vmatprep.mubr.msk.bf16.mxu1 %vm1137_vm0, %v2738_v41 }
  0xd4   : > { %1403 = vmatmul.mubr.bf16.gmra.mxu0 %v2725_v38 }
  0xd5   : > { %1410 = vmatprep.mubr.bf16.mxu0 %v2729_v39  ;;  %v2779_v39 = vld [vmem:[%s2895_s18 + $0x38c] ss:$16 sps:$4 sm:$0xff]  }
  0xd8   : > { %1716 = vmatmul.mubr.bf16.gmra.mxu1 %v2740_v44 }
  0xd9   : > { %2440 = vmatprep.mubr.msk.bf16.mxu1 %vm1137_vm0, %v2744_v45 }
  0xdc   : > { %1411 = vmatmul.mubr.bf16.gmra.mxu0 %v2731_v42 }
  0xdd   : > { %1418 = vmatprep.mubr.bf16.mxu0 %v2735_v43 }
  0xe0   : > { %1724 = vmatmul.mubr.bf16.gmra.mxu1 %v2746_v48 }
  0xe1   : > { %2441 = vmatprep.mubr.msk.bf16.mxu1 %vm1137_vm0, %v2750_v49 }
  0xe4   : > { %1419 = vmatmul.mubr.bf16.gmra.mxu0 %v2737_v46  ;;  %v282_v46 = vld [vmem:[%s2895_s18 + $0x340] sm:$0xff] }
  0xe5   : > { %1426 = vmatprep.mubr.bf16.mxu0 %v2741_v47  ;;  %v284_v47 = vld [vmem:[%s2895_s18 + $0x350] sm:$0xff] }
  0xe8   : > { %1732 = vmatmul.mubr.bf16.gmra.mxu1 %v2752_v52 }
  0xe9   : > { %2442 = vmatprep.mubr.msk.bf16.mxu1 %vm1137_vm0, %v2756_v53 }
  0xec   : > { %1427 = vmatmul.mubr.bf16.gmra.mxu0 %v2743_v50  ;;  %v291_v50 = vld [vmem:[%s2895_s18 + $0x388] sm:$0xff] }
  0xed   : > { %1434 = vmatprep.mubr.bf16.mxu0 %v2747_v51  ;;  %v293_v51 = vld [vmem:[%s2895_s18 + $0x398] sm:$0xff] }
  0xf0   : > { %1740 = vmatmul.mubr.bf16.gmra.mxu1 %v2758_v56  ;;  %v2368_v56 = vcombine.low %v282_v46, %v284_v47  ;;  %v2794_v46 = vld [vmem:[%s2895_s18 + $0x3ec] ss:$16 sps:$4 sm:$0xff]  }
  0xf1   : > { %2443 = vmatprep.mubr.msk.bf16.mxu1 %vm1137_vm0, %v2762_v57 }
  0xf4   : > { %1435 = vmatmul.mubr.bf16.gmra.mxu0 %v2749_v54 }
  0xf5   : > { %1442 = vmatprep.mubr.bf16.mxu0 %v2753_v55 }
  0xf8   : > { %v1557_v62 = vpop.f32.mrf.mxu1  ;;  %1748 = vmatmul.mubr.bf16.gmra.mxu1 %v2764_v60 }
  0xf9   : > { %2444 = vmatprep.mubr.msk.bf16.mxu1 %vm1137_vm0, %v2767_v61  ;;  %v2378_v61 = vcombine.low %v291_v50, %v293_v51 }
  0xfa   : > { %v1559_v1 = vpop.f32.mrf.mxu1 }
  0xfc   : > { %1443 = vmatmul.mubr.bf16.gmra.mxu0 %v2755_v58  ;;  %v1560_v4 = vpop.f32.mrf.mxu1 }
  0xfd   : > { %1450 = vmatprep.mubr.bf16.mxu0 %v2759_v59  ;;  %v2777_v59 = vld [vmem:[%s2895_s18 + $0x364] ss:$16 sps:$4 sm:$0xff]  }
  0xfe   : > { %v1562_v7 = vpop.f32.mrf.mxu1 }
  0xff   : > { %v288_v7 = vld [vmem:[%s2895_s18 + $0x370] sm:$0xff] }
 0x100   : > { %v1565_v10 = vpop.f32.mrf.mxu1  ;;  %1756 = vmatmul.mubr.bf16.gmra.mxu1 %v2366_v5 }
 0x101   : > { %2445 = vmatprep.mubr.msk.bf16.mxu1 %vm1137_vm0, %v2771_v6  ;;  %v286_v6 = vld [vmem:[%s2895_s18 + $0x360] sm:$0xff] }
 0x102   : > { %v1567_v13 = vpop.f32.mrf.mxu1 }
 0x104   : > { %1451 = vmatmul.mubr.bf16.gmra.mxu0 %v2761_v2  ;;  %v1568_v16 = vpop.f32.mrf.mxu1 }
 0x105   : > { %1458 = vmatprep.mubr.bf16.mxu0 %v2765_v3 }
 0x106   : > { %v1570_v20 = vpop.f32.mrf.mxu1 }
 0x107   : > { %v2783_v20 = vld [vmem:[%s2895_s18 + $0x384] ss:$16 sps:$4 sm:$0xff]  }
 0x108   : > { %v3097_v25 = vpop.f32.mrf.mxu1  ;;  %1764 = vmatmul.mubr.bf16.gmra.mxu1 %v2370_v17 }
 0x109   : > { %2446 = vmatprep.mubr.msk.bf16.mxu1 %vm1137_vm0, %v2775_v19 }
 0x10a   : > { %v1575_v30 = vpop.f32.mrf.mxu1 }
 0x10c   : > { %v1268_v21 = vpop.f32.mrf.mxu0  ;;  %1459 = vmatmul.mubr.bf16.gmra.mxu0 %v2360_v14  ;;  %v3105_v36 = vpop.f32.mrf.mxu1 }
 0x10d   : > { %v1269_v22 = vadd.f32 %v3091_v18, %v1268_v21  ;;  %1466 = vmatprep.mubr.bf16.mxu0 %v2769_v15 }
 0x10e   : > { %v1270_v26 = vpop.f32.mrf.mxu0  ;;  %v1578_v42 = vpop.f32.mrf.mxu1 }
 0x10f   : > { %v1558_v29 = vadd.f32 %v1557_v62, %v1269_v22  ;;  %v2788_v42 = vld [vmem:[%s2895_s18 + $0x3a4] ss:$16 sps:$4 sm:$0xff]  }
 0x110   : > { %v1271_v31 = vpop.f32.mrf.mxu0  ;;  %v3118_v48 = vpop.f32.mrf.mxu1  ;;  %1772 = vmatmul.mubr.bf16.gmra.mxu1 %v2374_v37 }
 0x111   : > { %v1812_v33 = vmax.f32 %v1558_v29, 0.0  ;;  %v1272_v34 = vadd.f32 %v3091_v18, %v1271_v31  ;;  %2447 = vmatprep.mubr.msk.bf16.mxu1 %vm1137_vm0, %v2779_v39  ;;  %v2781_v39 = vld [vmem:[%s2895_s18 + $0x380] ss:$16 sps:$4 sm:$0xff]  }
 0x112   : > { %v1273_v38 = vpop.f32.mrf.mxu0  ;;  %v1583_v54 = vpop.f32.mrf.mxu1 }
 0x113   : > { %v2518_v40 = vpack.c.bf16 %v1812_v33, %v1812_v33  ;;  %v1561_v41 = vadd.f32 %v1560_v4, %v1272_v34  ;;  %v299_v33 = vld [vmem:[%s2895_s18 + $0x3c8] sm:$0xff]  ;;  %v301_v34 = vld [vmem:[%s2895_s18 + $0x3d8] sm:$0xff] }
 0x114   : > { %v1276_v43 = vpop.f32.mrf.mxu0  ;;  %1467 = vmatmul.mubr.bf16.gmra.mxu0 %v2364_v32  ;;  %v3127_v60 = vpop.f32.mrf.mxu1 }
 0x115   : > { %2133 = vst.msk [vmem:[%s3110_s29] sm:$0xf] %vm2132_vm1, %v2518_v40  ;;  %v1813_v44 = vmax.f32 %v1561_v41, 0.0  ;;  %v1277_v45 = vadd.f32 %v3091_v18, %v1276_v43  ;;  %1474 = vmatprep.mubr.bf16.mxu0 %v2773_v35 }
 0x116   : > { %v1278_v49 = vpop.f32.mrf.mxu0  ;;  %v1586_v2 = vpop.f32.mrf.mxu1 }
 0x117   : > { %v2519_v52 = vpack.c.bf16 %v1813_v44, %v1813_v44  ;;  %v1566_v53 = vadd.f32 %v1565_v10, %v1277_v45  ;;  %v295_v10 = vld [vmem:[%s2895_s18 + $0x3a8] sm:$0xff]  ;;  %v2386_v44 = vcombine.low %v299_v33, %v301_v34 }
 0x118   : > { %v1279_v55 = vpop.f32.mrf.mxu0  ;;  %v3135_v8 = vpop.f32.mrf.mxu1  ;;  %1780 = vmatmul.mubr.bf16.gmra.mxu1 %v2378_v61  ;;  %v2382_v22 = vcombine.low %v295_v10, %v297_v11  ;;  %v2786_v61 = vld [vmem:[%s2895_s18 + $0x3a0] ss:$16 sps:$4 sm:$0xff]  }
 0x119   : > { %2134 = vst.msk [vmem:[%s3110_s29 + $0x4] sm:$0xf] %vm2132_vm1, %v2519_v52  ;;  %v1814_v57 = vmax.f32 %v1566_v53, 0.0  ;;  %v1280_v58 = vadd.f32 %v3091_v18, %v1279_v55  ;;  %2448 = vmatprep.mubr.msk.bf16.mxu1 %vm1137_vm0, %v2784_v63  ;;  %v303_v55 = vld [vmem:[%s2895_s18 + $0x3e8] sm:$0xff] }
 0x11a   : > { %v1281_v62 = vpop.f32.mrf.mxu0  ;;  %v1591_v14 = vpop.f32.mrf.mxu1 }
 0x11b   : > { %v2520_v0 = vpack.c.bf16 %v1814_v57, %v1814_v57  ;;  %v1569_v1 = vadd.f32 %v1568_v16, %v1280_v58  ;;  %v2372_v16 = vcombine.low %v286_v6, %v288_v7 }
 0x11c   : > { %v1284_v3 = vpop.f32.mrf.mxu0  ;;  %1475 = vmatmul.mubr.bf16.gmra.mxu0 %v2368_v56  ;;  %v1592_v21 = vpop.f32.mrf.mxu1  ;;  %v305_v56 = vld [vmem:[%s2895_s18 + $0x3f8] sm:$0xff] }
 0x11d   : > { %2135 = vst.msk [vmem:[%s3110_s29 + $0x8] sm:$0xf] %vm2132_vm1, %v2520_v0  ;;  %v1815_v4 = vmax.f32 %v1569_v1, 0.0  ;;  %v1285_v5 = vadd.f32 %v3091_v18, %v1284_v3  ;;  %1482 = vmatprep.mubr.bf16.mxu0 %v2777_v59  ;;  %v2793_v0 = vld [vmem:[%s2895_s18 + $0x3c4] ss:$16 sps:$4 sm:$0xff]   ;;  %v2390_v2 = vcombine.low %v303_v55, %v305_v56 }
 0x11e   : > { %v1286_v9 = vpop.f32.mrf.mxu0 }
 0x11f   : > { %v2521_v12 = vpack.c.bf16 %v1815_v4, %v1815_v4  ;;  %v1574_v13 = vadd.f32 %v3097_v25, %v1285_v5  ;;  %v1594_v25 = vpop.f32.mrf.mxu1 }
 0x120   : > { %v1287_v15 = vpop.f32.mrf.mxu0  ;;  %1788 = vmatmul.mubr.bf16.gmra.mxu1 %v2382_v22 }
 0x121   : > { %2136 = vst.msk [vmem:[%s3110_s29 + $0xc] sm:$0xf] %vm2132_vm1, %v2521_v12  ;;  %v1816_v17 = vmax.f32 %v1574_v13, 0.0  ;;  %v1288_v19 = vadd.f32 %v3091_v18, %v1287_v15  ;;  %v1597_v31 = vpop.f32.mrf.mxu1  ;;  %2449 = vmatprep.mubr.msk.bf16.mxu1 %vm1137_vm0, %v2789_v24 }
 0x122   : > { %v1289_v23 = vpop.f32.mrf.mxu0 }
 0x123   : > { %v2522_v26 = vpack.c.bf16 %v1816_v17, %v1816_v17  ;;  %v1577_v27 = vadd.f32 %v3105_v36, %v1288_v19  ;;  %v1599_v37 = vpop.f32.mrf.mxu1 }
 0x124   : > { %v1292_v28 = vpop.f32.mrf.mxu0  ;;  %1483 = vmatmul.mubr.bf16.gmra.mxu0 %v2372_v16  ;;  %v2791_v16 = vld [vmem:[%s2895_s18 + $0x3c0] ss:$16 sps:$4 sm:$0xff]  }
 0x125   : > { %2137 = vst.msk [vmem:[%s3110_s29 + $0x10] sm:$0xf] %vm2132_vm1, %v2522_v26  ;;  %v1817_v29 = vmax.f32 %v1577_v27, 0.0  ;;  %v1293_v30 = vadd.f32 %v3091_v18, %v1292_v28  ;;  %1490 = vmatprep.mubr.bf16.mxu0 %v2783_v20  ;;  %v1600_v43 = vpop.f32.mrf.mxu1  ;;  %v2798_v20 = vld [vmem:[%s2895_s18 + $0x3e4] ss:$16 sps:$4 sm:$0xff]  }
 0x126   : > { %v1294_v32 = vpop.f32.mrf.mxu0 }
 0x127   : > { %v2523_v35 = vpack.c.bf16 %v1817_v29, %v1817_v29  ;;  %v1582_v36 = vadd.f32 %v3118_v48, %v1293_v30  ;;  %v1602_v48 = vpop.f32.mrf.mxu1 }
 0x128   : > { %v1295_v38 = vpop.f32.mrf.mxu0  ;;  %1796 = vmatmul.mubr.bf16.gmra.mxu1 %v2386_v44 }
 0x129   : > { %2138 = vst.msk [vmem:[%s3110_s29 + $0x14] sm:$0xf] %vm2132_vm1, %v2523_v35  ;;  %v1818_v40 = vmax.f32 %v1582_v36, 0.0  ;;  %v1296_v41 = vadd.f32 %v3091_v18, %v1295_v38  ;;  %v1605_v53 = vpop.f32.mrf.mxu1  ;;  %2450 = vmatprep.mubr.msk.bf16.mxu1 %vm1137_vm0, %v2794_v46  ;;  %v2796_v35 = vld [vmem:[%s2895_s18 + $0x3e0] ss:$16 sps:$4 sm:$0xff]  }
 0x12a   : > { %v1297_v45 = vpop.f32.mrf.mxu0 }
 0x12b   : > { %v2524_v47 = vpack.c.bf16 %v1818_v40, %v1818_v40  ;;  %v1585_v49 = vadd.f32 %v3127_v60, %v1296_v41  ;;  %v1607_v59 = vpop.f32.mrf.mxu1 }
 0x12c   : > { %v1300_v50 = vpop.f32.mrf.mxu0  ;;  %1491 = vmatmul.mubr.bf16.gmra.mxu0 %v2781_v39 }
 0x12d   : > { %2139 = vst.msk [vmem:[%s3110_s29 + $0x18] sm:$0xf] %vm2132_vm1, %v2524_v47  ;;  %v1819_v51 = vmax.f32 %v1585_v49, 0.0  ;;  %v1301_v52 = vadd.f32 %v3091_v18, %v1300_v50  ;;  %1498 = vmatprep.mubr.bf16.mxu0 %v2788_v42  ;;  %v1608_v1 = vpop.f32.mrf.mxu1 }
 0x12e   : > { %v1302_v54 = vpop.f32.mrf.mxu0 }
 0x12f   : > { %v2525_v57 = vpack.c.bf16 %v1819_v51, %v1819_v51  ;;  %v1590_v58 = vadd.f32 %v3135_v8, %v1301_v52  ;;  %v1610_v6 = vpop.f32.mrf.mxu1 }
 0x130   : > { %v1303_v60 = vpop.f32.mrf.mxu0  ;;  %1804 = vmatmul.mubr.bf16.gmra.mxu1 %v2390_v2 }
 0x131   : > { %2140 = vst.msk [vmem:[%s3110_s29 + $0x1c] sm:$0xf] %vm2132_vm1, %v2525_v57  ;;  %v1820_v62 = vmax.f32 %v1590_v58, 0.0  ;;  %v1304_v63 = vadd.f32 %v3091_v18, %v1303_v60  ;;  %v1613_v10 = vpop.f32.mrf.mxu1 }
 0x132   : > { %v1305_v3 = vpop.f32.mrf.mxu0 }
 0x133   : > { %v2526_v4 = vpack.c.bf16 %v1820_v62, %v1820_v62  ;;  %v1593_v5 = vadd.f32 %v1592_v21, %v1304_v63  ;;  %v1615_v14 = vpop.f32.mrf.mxu1 }
 0x134   : > { %v1308_v7 = vpop.f32.mrf.mxu0  ;;  %1499 = vmatmul.mubr.bf16.gmra.mxu0 %v2786_v61 }
 0x135   : > { %2141 = vst.msk [vmem:[%s3110_s29 + $0x20] sm:$0xf] %vm2132_vm1, %v2526_v4  ;;  %v1821_v8 = vmax.f32 %v1593_v5, 0.0  ;;  %v1309_v9 = vadd.f32 %v3091_v18, %v1308_v7  ;;  %1506 = vmatprep.mubr.bf16.mxu0 %v2793_v0  ;;  %v1616_v21 = vpop.f32.mrf.mxu1 }
 0x136   : > { %v1310_v11 = vpop.f32.mrf.mxu0 }
 0x137   : > { %v2527_v12 = vpack.c.bf16 %v1821_v8, %v1821_v8  ;;  %v1598_v13 = vadd.f32 %v1597_v31, %v1309_v9  ;;  %v1618_v26 = vpop.f32.mrf.mxu1 }
 0x138   : > { %v1311_v15 = vpop.f32.mrf.mxu0 }
 0x139   : > { %2142 = vst.msk [vmem:[%s3110_s29 + $0x24] sm:$0xf] %vm2132_vm1, %v2527_v12  ;;  %v1822_v17 = vmax.f32 %v1598_v13, 0.0  ;;  %v1312_v19 = vadd.f32 %v3091_v18, %v1311_v15  ;;  %v1621_v29 = vpop.f32.mrf.mxu1 }
 0x13a   : > { %v1313_v22 = vpop.f32.mrf.mxu0 }
 0x13b   : > { %v2528_v23 = vpack.c.bf16 %v1822_v17, %v1822_v17  ;;  %v1601_v24 = vadd.f32 %v1600_v43, %v1312_v19  ;;  %v1623_v33 = vpop.f32.mrf.mxu1 }
 0x13c   : > { %v1316_v27 = vpop.f32.mrf.mxu0  ;;  %1507 = vmatmul.mubr.bf16.gmra.mxu0 %v2791_v16 }
 0x13d   : > { %2143 = vst.msk [vmem:[%s3110_s29 + $0x28] sm:$0xf] %vm2132_vm1, %v2528_v23  ;;  %v1823_v25 = vmax.f32 %v1601_v24, 0.0  ;;  %v1317_v28 = vadd.f32 %v3091_v18, %v1316_v27  ;;  %1514 = vmatprep.mubr.bf16.mxu0 %v2798_v20  ;;  %v1624_v38 = vpop.f32.mrf.mxu1 }
 0x13e   : > { %v1318_v30 = vpop.f32.mrf.mxu0 }
 0x13f   : > { %v2529_v31 = vpack.c.bf16 %v1823_v25, %v1823_v25  ;;  %v1606_v32 = vadd.f32 %v1605_v53, %v1317_v28  ;;  %v1626_v42 = vpop.f32.mrf.mxu1 }
 0x140   : > { %v1319_v34 = vpop.f32.mrf.mxu0 }
 0x141   : > { %2144 = vst.msk [vmem:[%s3110_s29 + $0x2c] sm:$0xf] %vm2132_vm1, %v2529_v31  ;;  %v1824_v36 = vmax.f32 %v1606_v32, 0.0  ;;  %v1320_v37 = vadd.f32 %v3091_v18, %v1319_v34  ;;  %v1629_v46 = vpop.f32.mrf.mxu1 }
 0x142   : > { %v1321_v39 = vpop.f32.mrf.mxu0 }
 0x143   : > { %v2530_v40 = vpack.c.bf16 %v1824_v36, %v1824_v36  ;;  %v1609_v41 = vadd.f32 %v1608_v1, %v1320_v37  ;;  %v1631_v50 = vpop.f32.mrf.mxu1 }
 0x144   : > { %v1324_v43 = vpop.f32.mrf.mxu0  ;;  %1515 = vmatmul.mubr.bf16.gmra.mxu0 %v2796_v35 }
 0x145   : > { %2145 = vst.msk [vmem:[%s3110_s29 + $0x30] sm:$0xf] %vm2132_vm1, %v2530_v40  ;;  %v1825_v44 = vmax.f32 %v1609_v41, 0.0  ;;  %v1325_v45 = vadd.f32 %v3091_v18, %v1324_v43  ;;  %v1632_v54 = vpop.f32.mrf.mxu1 }
 0x146   : > { %v1326_v47 = vpop.f32.mrf.mxu0 }
 0x147   : > { %v2531_v49 = vpack.c.bf16 %v1825_v44, %v1825_v44  ;;  %v1614_v48 = vadd.f32 %v1613_v10, %v1325_v45  ;;  %v1634_v58 = vpop.f32.mrf.mxu1 }
 0x148   : > { %v1327_v51 = vpop.f32.mrf.mxu0 }
 0x149   : > { %2146 = vst.msk [vmem:[%s3110_s29 + $0x34] sm:$0xf] %vm2132_vm1, %v2531_v49  ;;  %v1826_v52 = vmax.f32 %v1614_v48, 0.0  ;;  %v1328_v53 = vadd.f32 %v3091_v18, %v1327_v51  ;;  %v1637_v62 = vpop.f32.mrf.mxu1 }
 0x14a   : > { %v1329_v55 = vpop.f32.mrf.mxu0 }
 0x14b   : > { %v2532_v56 = vpack.c.bf16 %v1826_v52, %v1826_v52  ;;  %v1617_v57 = vadd.f32 %v1616_v21, %v1328_v53  ;;  %v1639_v2 = vpop.f32.mrf.mxu1 }
 0x14c   : > { %v1332_v59 = vpop.f32.mrf.mxu0 }
 0x14d   : > { %2147 = vst.msk [vmem:[%s3110_s29 + $0x38] sm:$0xf] %vm2132_vm1, %v2532_v56  ;;  %v1827_v60 = vmax.f32 %v1617_v57, 0.0  ;;  %v1333_v61 = vadd.f32 %v3091_v18, %v1332_v59  ;;  %v1640_v6 = vpop.f32.mrf.mxu1 }
 0x14e   : > { %v1334_v63 = vpop.f32.mrf.mxu0 }
 0x14f   : > { %v2533_v0 = vpack.c.bf16 %v1827_v60, %v1827_v60  ;;  %v1622_v1 = vadd.f32 %v1621_v29, %v1333_v61  ;;  %v1642_v10 = vpop.f32.mrf.mxu1 }
 0x150   : > { %v1335_v3 = vpop.f32.mrf.mxu0 }
 0x151   : > { %2148 = vst.msk [vmem:[%s3110_s29 + $0x3c] sm:$0xf] %vm2132_vm1, %v2533_v0  ;;  %v1828_v4 = vmax.f32 %v1622_v1, 0.0  ;;  %v1336_v5 = vadd.f32 %v3091_v18, %v1335_v3  ;;  %v1645_v14 = vpop.f32.mrf.mxu1 }
 0x152   : > { %v1337_v7 = vpop.f32.mrf.mxu0 }
 0x153   : > { %v2534_v8 = vpack.c.bf16 %v1828_v4, %v1828_v4  ;;  %v1625_v9 = vadd.f32 %v1624_v38, %v1336_v5  ;;  %v1647_v19 = vpop.f32.mrf.mxu1 }
 0x154   : > { %v1340_v11 = vpop.f32.mrf.mxu0 }
 0x155   : > { %2149 = vst.msk [vmem:[%s3110_s29 + $0x40] sm:$0xf] %vm2132_vm1, %v2534_v8  ;;  %v1829_v12 = vmax.f32 %v1625_v9, 0.0  ;;  %v1341_v13 = vadd.f32 %v3091_v18, %v1340_v11  ;;  %v1648_v23 = vpop.f32.mrf.mxu1 }
 0x156   : > { %v1342_v15 = vpop.f32.mrf.mxu0 }
 0x157   : > { %v2535_v16 = vpack.c.bf16 %v1829_v12, %v1829_v12  ;;  %v1630_v17 = vadd.f32 %v1629_v46, %v1341_v13  ;;  %v1650_v25 = vpop.f32.mrf.mxu1 }
 0x158   : > { %v1343_v20 = vpop.f32.mrf.mxu0 }
 0x159   : > { %2150 = vst.msk [vmem:[%s3110_s29 + $0x44] sm:$0xf] %vm2132_vm1, %v2535_v16  ;;  %v1830_v21 = vmax.f32 %v1630_v17, 0.0  ;;  %v1344_v22 = vadd.f32 %v3091_v18, %v1343_v20  ;;  %v1653_v31 = vpop.f32.mrf.mxu1 }
 0x15a   : > { %v1345_v24 = vpop.f32.mrf.mxu0 }
 0x15b   : > { %v2536_v26 = vpack.c.bf16 %v1830_v21, %v1830_v21  ;;  %v1633_v27 = vadd.f32 %v1632_v54, %v1344_v22  ;;  %v1655_v35 = vpop.f32.mrf.mxu1 }
 0x15c   : > { %v1348_v28 = vpop.f32.mrf.mxu0 }
 0x15d   : > { %2151 = vst.msk [vmem:[%s3110_s29 + $0x48] sm:$0xf] %vm2132_vm1, %v2536_v26  ;;  %v1831_v29 = vmax.f32 %v1633_v27, 0.0  ;;  %v1349_v30 = vadd.f32 %v3091_v18, %v1348_v28  ;;  %v1656_v39 = vpop.f32.mrf.mxu1 }
 0x15e   : > { %v1350_v32 = vpop.f32.mrf.mxu0 }
 0x15f   : > { %v2537_v33 = vpack.c.bf16 %v1831_v29, %v1831_v29  ;;  %v1638_v34 = vadd.f32 %v1637_v62, %v1349_v30  ;;  %v1658_v43 = vpop.f32.mrf.mxu1 }
 0x160   : > { %v1351_v36 = vpop.f32.mrf.mxu0 }
 0x161   : > { %2152 = vst.msk [vmem:[%s3110_s29 + $0x4c] sm:$0xf] %vm2132_vm1, %v2537_v33  ;;  %v1832_v37 = vmax.f32 %v1638_v34, 0.0  ;;  %v1352_v38 = vadd.f32 %v3091_v18, %v1351_v36  ;;  %v1661_v47 = vpop.f32.mrf.mxu1 }
 0x162   : > { %v1353_v40 = vpop.f32.mrf.mxu0 }
 0x163   : > { %v2538_v41 = vpack.c.bf16 %v1832_v37, %v1832_v37  ;;  %v1641_v42 = vadd.f32 %v1640_v6, %v1352_v38  ;;  %v1663_v51 = vpop.f32.mrf.mxu1 }
 0x164   : > { %v1356_v44 = vpop.f32.mrf.mxu0 }
 0x165   : > { %2153 = vst.msk [vmem:[%s3110_s29 + $0x50] sm:$0xf] %vm2132_vm1, %v2538_v41  ;;  %v1833_v45 = vmax.f32 %v1641_v42, 0.0  ;;  %v1357_v46 = vadd.f32 %v3091_v18, %v1356_v44  ;;  %v1664_v55 = vpop.f32.mrf.mxu1 }
 0x166   : > { %v1358_v49 = vpop.f32.mrf.mxu0 }
 0x167   : > { %v2539_v48 = vpack.c.bf16 %v1833_v45, %v1833_v45  ;;  %v1646_v50 = vadd.f32 %v1645_v14, %v1357_v46  ;;  %v1666_v59 = vpop.f32.mrf.mxu1 }
 0x168   : > { %v1359_v52 = vpop.f32.mrf.mxu0 }
 0x169   : > { %2154 = vst.msk [vmem:[%s3110_s29 + $0x54] sm:$0xf] %vm2132_vm1, %v2539_v48  ;;  %v1834_v53 = vmax.f32 %v1646_v50, 0.0  ;;  %v1360_v54 = vadd.f32 %v3091_v18, %v1359_v52  ;;  %v1669_v63 = vpop.f32.mrf.mxu1 }
 0x16a   : > { %v1361_v56 = vpop.f32.mrf.mxu0 }
 0x16b   : > { %v2540_v57 = vpack.c.bf16 %v1834_v53, %v1834_v53  ;;  %v1649_v58 = vadd.f32 %v1648_v23, %v1360_v54  ;;  %v1671_v3 = vpop.f32.mrf.mxu1 }
 0x16c   : > { %v1364_v60 = vpop.f32.mrf.mxu0 }
 0x16d   : > { %2155 = vst.msk [vmem:[%s3110_s29 + $0x58] sm:$0xf] %vm2132_vm1, %v2540_v57  ;;  %v1835_v61 = vmax.f32 %v1649_v58, 0.0  ;;  %v1365_v62 = vadd.f32 %v3091_v18, %v1364_v60  ;;  %v1672_v7 = vpop.f32.mrf.mxu1 }
 0x16e   : > { %v1366_v0 = vpop.f32.mrf.mxu0 }
 0x16f   : > { %v2541_v1 = vpack.c.bf16 %v1835_v61, %v1835_v61  ;;  %v1654_v2 = vadd.f32 %v1653_v31, %v1365_v62  ;;  %v1674_v11 = vpop.f32.mrf.mxu1 }
 0x170   : > { %v1367_v4 = vpop.f32.mrf.mxu0 }
 0x171   : > { %2156 = vst.msk [vmem:[%s3110_s29 + $0x5c] sm:$0xf] %vm2132_vm1, %v2541_v1  ;;  %v1836_v5 = vmax.f32 %v1654_v2, 0.0  ;;  %v1368_v6 = vadd.f32 %v3091_v18, %v1367_v4  ;;  %v1677_v15 = vpop.f32.mrf.mxu1 }
 0x172   : > { %v1369_v8 = vpop.f32.mrf.mxu0 }
 0x173   : > { %v2542_v9 = vpack.c.bf16 %v1836_v5, %v1836_v5  ;;  %v1657_v10 = vadd.f32 %v1656_v39, %v1368_v6  ;;  %v1679_v20 = vpop.f32.mrf.mxu1 }
 0x174   : > { %v1372_v12 = vpop.f32.mrf.mxu0 }
 0x175   : > { %2157 = vst.msk [vmem:[%s3110_s29 + $0x60] sm:$0xf] %vm2132_vm1, %v2542_v9  ;;  %v1837_v13 = vmax.f32 %v1657_v10, 0.0  ;;  %v1373_v14 = vadd.f32 %v3091_v18, %v1372_v12  ;;  %v1680_v24 = vpop.f32.mrf.mxu1 }
 0x176   : > { %v1374_v16 = vpop.f32.mrf.mxu0 }
 0x177   : > { %v2543_v17 = vpack.c.bf16 %v1837_v13, %v1837_v13  ;;  %v1662_v19 = vadd.f32 %v1661_v47, %v1373_v14  ;;  %v1682_v28 = vpop.f32.mrf.mxu1 }
 0x178   : > { %v1375_v21 = vpop.f32.mrf.mxu0 }
 0x179   : > { %2158 = vst.msk [vmem:[%s3110_s29 + $0x64] sm:$0xf] %vm2132_vm1, %v2543_v17  ;;  %v1838_v22 = vmax.f32 %v1662_v19, 0.0  ;;  %v1376_v23 = vadd.f32 %v3091_v18, %v1375_v21  ;;  %v1685_v32 = vpop.f32.mrf.mxu1 }
 0x17a   : > { %v1377_v26 = vpop.f32.mrf.mxu0 }
 0x17b   : > { %v2544_v27 = vpack.c.bf16 %v1838_v22, %v1838_v22  ;;  %v1665_v25 = vadd.f32 %v1664_v55, %v1376_v23  ;;  %v1687_v36 = vpop.f32.mrf.mxu1 }
 0x17c   : > { %v1380_v29 = vpop.f32.mrf.mxu0 }
 0x17d   : > { %2159 = vst.msk [vmem:[%s3110_s29 + $0x68] sm:$0xf] %vm2132_vm1, %v2544_v27  ;;  %v1839_v30 = vmax.f32 %v1665_v25, 0.0  ;;  %v1381_v31 = vadd.f32 %v3091_v18, %v1380_v29  ;;  %v1688_v40 = vpop.f32.mrf.mxu1 }
 0x17e   : > { %v1382_v33 = vpop.f32.mrf.mxu0 }
 0x17f   : > { %v2545_v34 = vpack.c.bf16 %v1839_v30, %v1839_v30  ;;  %v1670_v35 = vadd.f32 %v1669_v63, %v1381_v31  ;;  %v1690_v44 = vpop.f32.mrf.mxu1 }
 0x180   : > { %v1383_v37 = vpop.f32.mrf.mxu0 }
 0x181   : > { %2160 = vst.msk [vmem:[%s3110_s29 + $0x6c] sm:$0xf] %vm2132_vm1, %v2545_v34  ;;  %v1840_v38 = vmax.f32 %v1670_v35, 0.0  ;;  %v1384_v39 = vadd.f32 %v3091_v18, %v1383_v37  ;;  %v1693_v49 = vpop.f32.mrf.mxu1 }
 0x182   : > { %v1385_v41 = vpop.f32.mrf.mxu0 }
 0x183   : > { %v2546_v42 = vpack.c.bf16 %v1840_v38, %v1840_v38  ;;  %v1673_v43 = vadd.f32 %v1672_v7, %v1384_v39  ;;  %v1695_v52 = vpop.f32.mrf.mxu1 }
 0x184   : > { %v1388_v45 = vpop.f32.mrf.mxu0 }
 0x185   : > { %2161 = vst.msk [vmem:[%s3110_s29 + $0x70] sm:$0xf] %vm2132_vm1, %v2546_v42  ;;  %v1841_v46 = vmax.f32 %v1673_v43, 0.0  ;;  %v1389_v47 = vadd.f32 %v3091_v18, %v1388_v45  ;;  %v1696_v56 = vpop.f32.mrf.mxu1 }
 0x186   : > { %v1390_v48 = vpop.f32.mrf.mxu0 }
 0x187   : > { %v2547_v50 = vpack.c.bf16 %v1841_v46, %v1841_v46  ;;  %v1678_v51 = vadd.f32 %v1677_v15, %v1389_v47  ;;  %v1698_v60 = vpop.f32.mrf.mxu1 }
 0x188   : > { %v1391_v53 = vpop.f32.mrf.mxu0 }
 0x189   : > { %2162 = vst.msk [vmem:[%s3110_s29 + $0x74] sm:$0xf] %vm2132_vm1, %v2547_v50  ;;  %v1842_v54 = vmax.f32 %v1678_v51, 0.0  ;;  %v1392_v55 = vadd.f32 %v3091_v18, %v1391_v53  ;;  %v1701_v0 = vpop.f32.mrf.mxu1 }
 0x18a   : > { %v1393_v57 = vpop.f32.mrf.mxu0 }
 0x18b   : > { %v2548_v58 = vpack.c.bf16 %v1842_v54, %v1842_v54  ;;  %v1681_v59 = vadd.f32 %v1680_v24, %v1392_v55  ;;  %v1703_v4 = vpop.f32.mrf.mxu1 }
 0x18c   : > { %v1396_v61 = vpop.f32.mrf.mxu0 }
 0x18d   : > { %2163 = vst.msk [vmem:[%s3110_s29 + $0x78] sm:$0xf] %vm2132_vm1, %v2548_v58  ;;  %v1843_v62 = vmax.f32 %v1681_v59, 0.0  ;;  %v1397_v63 = vadd.f32 %v3091_v18, %v1396_v61  ;;  %v1704_v8 = vpop.f32.mrf.mxu1 }
 0x18e   : > { %v1398_v1 = vpop.f32.mrf.mxu0 }
 0x18f   : > { %v2549_v2 = vpack.c.bf16 %v1843_v62, %v1843_v62  ;;  %v1686_v3 = vadd.f32 %v1685_v32, %v1397_v63  ;;  %v1706_v12 = vpop.f32.mrf.mxu1 }
 0x190   : > { %v1399_v5 = vpop.f32.mrf.mxu0 }
 0x191   : > { %2164 = vst.msk [vmem:[%s3110_s29 + $0x7c] sm:$0xf] %vm2132_vm1, %v2549_v2  ;;  %v1844_v6 = vmax.f32 %v1686_v3, 0.0  ;;  %v1400_v7 = vadd.f32 %v3091_v18, %v1399_v5  ;;  %v1709_v16 = vpop.f32.mrf.mxu1 }
 0x192   : > { %v1401_v9 = vpop.f32.mrf.mxu0 }
 0x193   : > { %v2550_v10 = vpack.c.bf16 %v1844_v6, %v1844_v6  ;;  %v1689_v11 = vadd.f32 %v1688_v40, %v1400_v7  ;;  %v1711_v21 = vpop.f32.mrf.mxu1 }
 0x194   : > { %v1404_v13 = vpop.f32.mrf.mxu0 }
 0x195   : > { %2165 = vst.msk [vmem:[%s3110_s29 + $0x80] sm:$0xf] %vm2132_vm1, %v2550_v10  ;;  %v1845_v14 = vmax.f32 %v1689_v11, 0.0  ;;  %v1405_v15 = vadd.f32 %v3091_v18, %v1404_v13  ;;  %v1712_v26 = vpop.f32.mrf.mxu1 }
 0x196   : > { %v1406_v17 = vpop.f32.mrf.mxu0 }
 0x197   : > { %v2551_v19 = vpack.c.bf16 %v1845_v14, %v1845_v14  ;;  %v1694_v20 = vadd.f32 %v1693_v49, %v1405_v15  ;;  %v1714_v29 = vpop.f32.mrf.mxu1 }
 0x198   : > { %v1407_v22 = vpop.f32.mrf.mxu0 }
 0x199   : > { %2166 = vst.msk [vmem:[%s3110_s29 + $0x84] sm:$0xf] %vm2132_vm1, %v2551_v19  ;;  %v1846_v23 = vmax.f32 %v1694_v20, 0.0  ;;  %v1408_v24 = vadd.f32 %v3091_v18, %v1407_v22  ;;  %v1717_v33 = vpop.f32.mrf.mxu1 }
 0x19a   : > { %v1409_v27 = vpop.f32.mrf.mxu0 }
 0x19b   : > { %v2552_v25 = vpack.c.bf16 %v1846_v23, %v1846_v23  ;;  %v1697_v28 = vadd.f32 %v1696_v56, %v1408_v24  ;;  %v1719_v37 = vpop.f32.mrf.mxu1 }
 0x19c   : > { %v1412_v30 = vpop.f32.mrf.mxu0 }
 0x19d   : > { %2167 = vst.msk [vmem:[%s3110_s29 + $0x88] sm:$0xf] %vm2132_vm1, %v2552_v25  ;;  %v1847_v31 = vmax.f32 %v1697_v28, 0.0  ;;  %v1413_v32 = vadd.f32 %v3091_v18, %v1412_v30  ;;  %v1720_v41 = vpop.f32.mrf.mxu1 }
 0x19e   : > { %v1414_v34 = vpop.f32.mrf.mxu0 }
 0x19f   : > { %v2553_v35 = vpack.c.bf16 %v1847_v31, %v1847_v31  ;;  %v1702_v36 = vadd.f32 %v1701_v0, %v1413_v32  ;;  %v1722_v45 = vpop.f32.mrf.mxu1 }
 0x1a0   : > { %v1415_v38 = vpop.f32.mrf.mxu0 }
 0x1a1   : > { %2168 = vst.msk [vmem:[%s3110_s29 + $0x8c] sm:$0xf] %vm2132_vm1, %v2553_v35  ;;  %v1848_v39 = vmax.f32 %v1702_v36, 0.0  ;;  %v1416_v40 = vadd.f32 %v3091_v18, %v1415_v38  ;;  %v1725_v48 = vpop.f32.mrf.mxu1 }
 0x1a2   : > { %v1417_v42 = vpop.f32.mrf.mxu0 }
 0x1a3   : > { %v2554_v43 = vpack.c.bf16 %v1848_v39, %v1848_v39  ;;  %v1705_v44 = vadd.f32 %v1704_v8, %v1416_v40  ;;  %v1727_v53 = vpop.f32.mrf.mxu1 }
 0x1a4   : > { %v1420_v46 = vpop.f32.mrf.mxu0 }
 0x1a5   : > { %2169 = vst.msk [vmem:[%s3110_s29 + $0x90] sm:$0xf] %vm2132_vm1, %v2554_v43  ;;  %v1849_v47 = vmax.f32 %v1705_v44, 0.0  ;;  %v1421_v49 = vadd.f32 %v3091_v18, %v1420_v46  ;;  %v1728_v57 = vpop.f32.mrf.mxu1 }
 0x1a6   : > { %v1422_v50 = vpop.f32.mrf.mxu0 }
 0x1a7   : > { %v2555_v51 = vpack.c.bf16 %v1849_v47, %v1849_v47  ;;  %v1710_v52 = vadd.f32 %v1709_v16, %v1421_v49  ;;  %v1730_v61 = vpop.f32.mrf.mxu1 }
 0x1a8   : > { %v1423_v54 = vpop.f32.mrf.mxu0 }
 0x1a9   : > { %2170 = vst.msk [vmem:[%s3110_s29 + $0x94] sm:$0xf] %vm2132_vm1, %v2555_v51  ;;  %v1850_v55 = vmax.f32 %v1710_v52, 0.0  ;;  %v1424_v56 = vadd.f32 %v3091_v18, %v1423_v54  ;;  %v1733_v1 = vpop.f32.mrf.mxu1 }
 0x1aa   : > { %v1425_v58 = vpop.f32.mrf.mxu0 }
 0x1ab   : > { %v2556_v59 = vpack.c.bf16 %v1850_v55, %v1850_v55  ;;  %v1713_v60 = vadd.f32 %v1712_v26, %v1424_v56  ;;  %v1735_v5 = vpop.f32.mrf.mxu1 }
 0x1ac   : > { %v1428_v62 = vpop.f32.mrf.mxu0 }
 0x1ad   : > { %2171 = vst.msk [vmem:[%s3110_s29 + $0x98] sm:$0xf] %vm2132_vm1, %v2556_v59  ;;  %v1851_v63 = vmax.f32 %v1713_v60, 0.0  ;;  %v1429_v0 = vadd.f32 %v3091_v18, %v1428_v62  ;;  %v1736_v9 = vpop.f32.mrf.mxu1 }
 0x1ae   : > { %v1430_v2 = vpop.f32.mrf.mxu0 }
 0x1af   : > { %v2557_v3 = vpack.c.bf16 %v1851_v63, %v1851_v63  ;;  %v1718_v4 = vadd.f32 %v1717_v33, %v1429_v0  ;;  %v1738_v13 = vpop.f32.mrf.mxu1 }
 0x1b0   : > { %v1431_v6 = vpop.f32.mrf.mxu0 }
 0x1b1   : > { %2172 = vst.msk [vmem:[%s3110_s29 + $0x9c] sm:$0xf] %vm2132_vm1, %v2557_v3  ;;  %v1852_v7 = vmax.f32 %v1718_v4, 0.0  ;;  %v1432_v8 = vadd.f32 %v3091_v18, %v1431_v6  ;;  %v1741_v17 = vpop.f32.mrf.mxu1 }
 0x1b2   : > { %v1433_v10 = vpop.f32.mrf.mxu0 }
 0x1b3   : > { %v2558_v11 = vpack.c.bf16 %v1852_v7, %v1852_v7  ;;  %v1721_v12 = vadd.f32 %v1720_v41, %v1432_v8  ;;  %v1743_v22 = vpop.f32.mrf.mxu1 }
 0x1b4   : > { %v1436_v14 = vpop.f32.mrf.mxu0 }
 0x1b5   : > { %2173 = vst.msk [vmem:[%s3110_s29 + $0xa0] sm:$0xf] %vm2132_vm1, %v2558_v11  ;;  %v1853_v15 = vmax.f32 %v1721_v12, 0.0  ;;  %v1437_v16 = vadd.f32 %v3091_v18, %v1436_v14  ;;  %v1744_v27 = vpop.f32.mrf.mxu1 }
 0x1b6   : > { %v1438_v19 = vpop.f32.mrf.mxu0 }
 0x1b7   : > { %v2559_v20 = vpack.c.bf16 %v1853_v15, %v1853_v15  ;;  %v1726_v21 = vadd.f32 %v1725_v48, %v1437_v16  ;;  %v1746_v30 = vpop.f32.mrf.mxu1 }
 0x1b8   : > { %v1439_v23 = vpop.f32.mrf.mxu0 }
 0x1b9   : > { %2174 = vst.msk [vmem:[%s3110_s29 + $0xa4] sm:$0xf] %vm2132_vm1, %v2559_v20  ;;  %v1854_v24 = vmax.f32 %v1726_v21, 0.0  ;;  %v1440_v26 = vadd.f32 %v3091_v18, %v1439_v23  ;;  %v1749_v34 = vpop.f32.mrf.mxu1 }
 0x1ba   : > { %v1441_v25 = vpop.f32.mrf.mxu0 }
 0x1bb   : > { %v2560_v28 = vpack.c.bf16 %v1854_v24, %v1854_v24  ;;  %v1729_v29 = vadd.f32 %v1728_v57, %v1440_v26  ;;  %v1751_v38 = vpop.f32.mrf.mxu1 }
 0x1bc   : > { %v1444_v31 = vpop.f32.mrf.mxu0 }
 0x1bd   : > { %2175 = vst.msk [vmem:[%s3110_s29 + $0xa8] sm:$0xf] %vm2132_vm1, %v2560_v28  ;;  %v1855_v32 = vmax.f32 %v1729_v29, 0.0  ;;  %v1445_v33 = vadd.f32 %v3091_v18, %v1444_v31  ;;  %v1752_v42 = vpop.f32.mrf.mxu1 }
 0x1be   : > { %v1446_v35 = vpop.f32.mrf.mxu0 }
 0x1bf   : > { %v2561_v36 = vpack.c.bf16 %v1855_v32, %v1855_v32  ;;  %v1734_v37 = vadd.f32 %v1733_v1, %v1445_v33  ;;  %v1754_v46 = vpop.f32.mrf.mxu1 }
 0x1c0   : > { %v1447_v39 = vpop.f32.mrf.mxu0 }
 0x1c1   : > { %2176 = vst.msk [vmem:[%s3110_s29 + $0xac] sm:$0xf] %vm2132_vm1, %v2561_v36  ;;  %v1856_v40 = vmax.f32 %v1734_v37, 0.0  ;;  %v1448_v41 = vadd.f32 %v3091_v18, %v1447_v39  ;;  %v1757_v50 = vpop.f32.mrf.mxu1 }
 0x1c2   : > { %v1449_v43 = vpop.f32.mrf.mxu0 }
 0x1c3   : > { %v2562_v44 = vpack.c.bf16 %v1856_v40, %v1856_v40  ;;  %v1737_v45 = vadd.f32 %v1736_v9, %v1448_v41  ;;  %v1759_v54 = vpop.f32.mrf.mxu1 }
 0x1c4   : > { %v1452_v47 = vpop.f32.mrf.mxu0 }
 0x1c5   : > { %2177 = vst.msk [vmem:[%s3110_s29 + $0xb0] sm:$0xf] %vm2132_vm1, %v2562_v44  ;;  %v1857_v49 = vmax.f32 %v1737_v45, 0.0  ;;  %v1453_v48 = vadd.f32 %v3091_v18, %v1452_v47  ;;  %v1760_v58 = vpop.f32.mrf.mxu1 }
 0x1c6   : > { %v1454_v51 = vpop.f32.mrf.mxu0 }
 0x1c7   : > { %v2563_v52 = vpack.c.bf16 %v1857_v49, %v1857_v49  ;;  %v1742_v53 = vadd.f32 %v1741_v17, %v1453_v48  ;;  %v1762_v62 = vpop.f32.mrf.mxu1  ;;  %v3301_v17 = vld [vmem:[%s3352_s2] ss:$0 sm:$0xff] }
 0x1c8   : > { %v1455_v55 = vpop.f32.mrf.mxu0 }
 0x1c9   : > { %2178 = vst.msk [vmem:[%s3110_s29 + $0xb4] sm:$0xf] %vm2132_vm1, %v2563_v52  ;;  %v1858_v56 = vmax.f32 %v1742_v53, 0.0  ;;  %v1456_v57 = vadd.f32 %v3091_v18, %v1455_v55  ;;  %v1765_v2 = vpop.f32.mrf.mxu1 }
 0x1ca   : > { %v1457_v59 = vpop.f32.mrf.mxu0 }
 0x1cb   : > { %v2564_v60 = vpack.c.bf16 %v1858_v56, %v1858_v56  ;;  %v1745_v61 = vadd.f32 %v1744_v27, %v1456_v57  ;;  %v1767_v6 = vpop.f32.mrf.mxu1 }
 0x1cc   : > { %v1460_v63 = vpop.f32.mrf.mxu0 }
 0x1cd   : > { %2179 = vst.msk [vmem:[%s3110_s29 + $0xb8] sm:$0xf] %vm2132_vm1, %v2564_v60  ;;  %v1859_v0 = vmax.f32 %v1745_v61, 0.0  ;;  %v1461_v1 = vadd.f32 %v3091_v18, %v1460_v63  ;;  %v1768_v10 = vpop.f32.mrf.mxu1 }
 0x1ce   : > { %v1462_v3 = vpop.f32.mrf.mxu0 }
 0x1cf   : > { %v2565_v4 = vpack.c.bf16 %v1859_v0, %v1859_v0  ;;  %v1750_v5 = vadd.f32 %v1749_v34, %v1461_v1  ;;  %v1770_v14 = vpop.f32.mrf.mxu1 }
 0x1d0   : > { %v1463_v7 = vpop.f32.mrf.mxu0 }
 0x1d1   : > { %2180 = vst.msk [vmem:[%s3110_s29 + $0xbc] sm:$0xf] %vm2132_vm1, %v2565_v4  ;;  %v1860_v8 = vmax.f32 %v1750_v5, 0.0  ;;  %v1464_v9 = vadd.f32 %v3091_v18, %v1463_v7  ;;  %v1773_v20 = vpop.f32.mrf.mxu1 }
 0x1d2   : > { %v1465_v11 = vpop.f32.mrf.mxu0 }
 0x1d3   : > { %v2566_v12 = vpack.c.bf16 %v1860_v8, %v1860_v8  ;;  %v1753_v13 = vadd.f32 %v1752_v42, %v1464_v9  ;;  %v1775_v23 = vpop.f32.mrf.mxu1 }
 0x1d4   : > { %v1468_v15 = vpop.f32.mrf.mxu0 }
 0x1d5   : > { %2181 = vst.msk [vmem:[%s3110_s29 + $0xc0] sm:$0xf] %vm2132_vm1, %v2566_v12  ;;  %v1861_v16 = vmax.f32 %v1753_v13, 0.0  ;;  %v1469_v19 = vadd.f32 %v3301_v17, %v1468_v15  ;;  %v1776_v25 = vpop.f32.mrf.mxu1 }
 0x1d6   : > { %v1470_v18 = vpop.f32.mrf.mxu0 }
 0x1d7   : > { %v2567_v21 = vpack.c.bf16 %v1861_v16, %v1861_v16  ;;  %v1758_v22 = vadd.f32 %v1757_v50, %v1469_v19  ;;  %v1778_v31 = vpop.f32.mrf.mxu1 }
 0x1d8   : > { %v1471_v24 = vpop.f32.mrf.mxu0 }
 0x1d9   : > { %2182 = vst.msk [vmem:[%s3110_s29 + $0xc4] sm:$0xf] %vm2132_vm1, %v2567_v21  ;;  %v1862_v26 = vmax.f32 %v1758_v22, 0.0  ;;  %v1472_v27 = vadd.f32 %v3301_v17, %v1471_v24  ;;  %v1781_v35 = vpop.f32.mrf.mxu1 }
 0x1da   : > { %v1473_v28 = vpop.f32.mrf.mxu0 }
 0x1db   : > { %v2568_v29 = vpack.c.bf16 %v1862_v26, %v1862_v26  ;;  %v1761_v30 = vadd.f32 %v1760_v58, %v1472_v27  ;;  %v1783_v39 = vpop.f32.mrf.mxu1 }
 0x1dc   : > { %v1476_v32 = vpop.f32.mrf.mxu0 }
 0x1dd   : > { %2183 = vst.msk [vmem:[%s3110_s29 + $0xc8] sm:$0xf] %vm2132_vm1, %v2568_v29  ;;  %v1863_v33 = vmax.f32 %v1761_v30, 0.0  ;;  %v1477_v34 = vadd.f32 %v3301_v17, %v1476_v32  ;;  %v1784_v43 = vpop.f32.mrf.mxu1 }
 0x1de   : > { %v1478_v36 = vpop.f32.mrf.mxu0 }
 0x1df   : > { %v2569_v37 = vpack.c.bf16 %v1863_v33, %v1863_v33  ;;  %v1766_v38 = vadd.f32 %v1765_v2, %v1477_v34  ;;  %v1786_v47 = vpop.f32.mrf.mxu1 }
 0x1e0   : > { %v1479_v40 = vpop.f32.mrf.mxu0 }
 0x1e1   : > { %2184 = vst.msk [vmem:[%s3110_s29 + $0xcc] sm:$0xf] %vm2132_vm1, %v2569_v37  ;;  %v1864_v41 = vmax.f32 %v1766_v38, 0.0  ;;  %v1480_v42 = vadd.f32 %v3301_v17, %v1479_v40  ;;  %v1789_v51 = vpop.f32.mrf.mxu1 }
 0x1e2   : > { %v1481_v44 = vpop.f32.mrf.mxu0 }
 0x1e3   : > { %v2570_v45 = vpack.c.bf16 %v1864_v41, %v1864_v41  ;;  %v1769_v46 = vadd.f32 %v1768_v10, %v1480_v42  ;;  %v1791_v55 = vpop.f32.mrf.mxu1 }
 0x1e4   : > { %v1484_v49 = vpop.f32.mrf.mxu0 }
 0x1e5   : > { %2185 = vst.msk [vmem:[%s3110_s29 + $0xd0] sm:$0xf] %vm2132_vm1, %v2570_v45  ;;  %v1865_v48 = vmax.f32 %v1769_v46, 0.0  ;;  %v1485_v50 = vadd.f32 %v3301_v17, %v1484_v49  ;;  %v1792_v59 = vpop.f32.mrf.mxu1 }
 0x1e6   : > { %v1486_v52 = vpop.f32.mrf.mxu0 }
 0x1e7   : > { %v2571_v53 = vpack.c.bf16 %v1865_v48, %v1865_v48  ;;  %v1774_v54 = vadd.f32 %v1773_v20, %v1485_v50  ;;  %v1794_v63 = vpop.f32.mrf.mxu1 }
 0x1e8   : > { %v1487_v56 = vpop.f32.mrf.mxu0 }
 0x1e9   : > { %2186 = vst.msk [vmem:[%s3110_s29 + $0xd4] sm:$0xf] %vm2132_vm1, %v2571_v53  ;;  %v1866_v57 = vmax.f32 %v1774_v54, 0.0  ;;  %v1488_v58 = vadd.f32 %v3301_v17, %v1487_v56  ;;  %v1797_v3 = vpop.f32.mrf.mxu1 }
 0x1ea   : > { %v1489_v60 = vpop.f32.mrf.mxu0 }
 0x1eb   : > { %v2572_v61 = vpack.c.bf16 %v1866_v57, %v1866_v57  ;;  %v1777_v62 = vadd.f32 %v1776_v25, %v1488_v58  ;;  %v1799_v7 = vpop.f32.mrf.mxu1 }
 0x1ec   : > { %v1492_v0 = vpop.f32.mrf.mxu0 }
 0x1ed   : > { %2187 = vst.msk [vmem:[%s3110_s29 + $0xd8] sm:$0xf] %vm2132_vm1, %v2572_v61  ;;  %v1867_v1 = vmax.f32 %v1777_v62, 0.0  ;;  %v1493_v2 = vadd.f32 %v3301_v17, %v1492_v0  ;;  %v1800_v11 = vpop.f32.mrf.mxu1 }
 0x1ee   : > { %v1494_v4 = vpop.f32.mrf.mxu0 }
 0x1ef   : > { %v2573_v5 = vpack.c.bf16 %v1867_v1, %v1867_v1  ;;  %v1782_v6 = vadd.f32 %v1781_v35, %v1493_v2  ;;  %v1802_v15 = vpop.f32.mrf.mxu1 }
 0x1f0   : > { %v1495_v8 = vpop.f32.mrf.mxu0 }
 0x1f1   : > { %2188 = vst.msk [vmem:[%s3110_s29 + $0xdc] sm:$0xf] %vm2132_vm1, %v2573_v5  ;;  %v1868_v9 = vmax.f32 %v1782_v6, 0.0  ;;  %v1496_v10 = vadd.f32 %v3301_v17, %v1495_v8  ;;  %v1805_v18 = vpop.f32.mrf.mxu1 }
 0x1f2   : > { %v1497_v12 = vpop.f32.mrf.mxu0 }
 0x1f3   : > { %v2574_v13 = vpack.c.bf16 %v1868_v9, %v1868_v9  ;;  %v1785_v14 = vadd.f32 %v1784_v43, %v1496_v10  ;;  %v1807_v24 = vpop.f32.mrf.mxu1 }
 0x1f4   : > { %v1500_v16 = vpop.f32.mrf.mxu0 }
 0x1f5   : > { %2189 = vst.msk [vmem:[%s3110_s29 + $0xe0] sm:$0xf] %vm2132_vm1, %v2574_v13  ;;  %v1869_v19 = vmax.f32 %v1785_v14, 0.0  ;;  %v1501_v20 = vadd.f32 %v3301_v17, %v1500_v16  ;;  %v1808_v28 = vpop.f32.mrf.mxu1 }
 0x1f6   : > { %v1502_v21 = vpop.f32.mrf.mxu0 }
 0x1f7   : > { %v2575_v22 = vpack.c.bf16 %v1869_v19, %v1869_v19  ;;  %v1790_v23 = vadd.f32 %v1789_v51, %v1501_v20  ;;  %v1810_v32 = vpop.f32.mrf.mxu1 }
 0x1f8   : > { %v1503_v26 = vpop.f32.mrf.mxu0 }
 0x1f9   : > { %2190 = vst.msk [vmem:[%s3110_s29 + $0xe4] sm:$0xf] %vm2132_vm1, %v2575_v22  ;;  %v1870_v27 = vmax.f32 %v1790_v23, 0.0  ;;  %v1504_v25 = vadd.f32 %v3301_v17, %v1503_v26 }
 0x1fa   : > { %v1505_v29 = vpop.f32.mrf.mxu0 }
 0x1fb   : > { %v2576_v30 = vpack.c.bf16 %v1870_v27, %v1870_v27  ;;  %v1793_v31 = vadd.f32 %v1792_v59, %v1504_v25 }
 0x1fc   : > { %v1508_v33 = vpop.f32.mrf.mxu0 }
 0x1fd   : > { %2191 = vst.msk [vmem:[%s3110_s29 + $0xe8] sm:$0xf] %vm2132_vm1, %v2576_v30  ;;  %v1871_v34 = vmax.f32 %v1793_v31, 0.0  ;;  %v1509_v35 = vadd.f32 %v3301_v17, %v1508_v33 }
 0x1fe   : > { %v1510_v36 = vpop.f32.mrf.mxu0 }
 0x1ff   : > { %v2577_v37 = vpack.c.bf16 %v1871_v34, %v1871_v34  ;;  %v1798_v38 = vadd.f32 %v1797_v3, %v1509_v35 }
 0x200   : > { %v1511_v39 = vpop.f32.mrf.mxu0 }
 0x201   : > { %2192 = vst.msk [vmem:[%s3110_s29 + $0xec] sm:$0xf] %vm2132_vm1, %v2577_v37  ;;  %v1872_v40 = vmax.f32 %v1798_v38, 0.0  ;;  %v1512_v41 = vadd.f32 %v3301_v17, %v1511_v39 }
 0x202   : > { %v1513_v42 = vpop.f32.mrf.mxu0 }
 0x203   : > { %v2578_v43 = vpack.c.bf16 %v1872_v40, %v1872_v40  ;;  %v1801_v44 = vadd.f32 %v1800_v11, %v1512_v41 }
 0x204   : > { %v1516_v45 = vpop.f32.mrf.mxu0 }
 0x205   : > { %2193 = vst.msk [vmem:[%s3110_s29 + $0xf0] sm:$0xf] %vm2132_vm1, %v2578_v43  ;;  %v1873_v46 = vmax.f32 %v1801_v44, 0.0  ;;  %v1517_v47 = vadd.f32 %v3301_v17, %v1516_v45 }
 0x206   : > { %v1518_v49 = vpop.f32.mrf.mxu0 }
 0x207   : > { %v2579_v48 = vpack.c.bf16 %v1873_v46, %v1873_v46  ;;  %v1806_v50 = vadd.f32 %v1805_v18, %v1517_v47 }
 0x208   : > { %v1519_v51 = vpop.f32.mrf.mxu0 }
 0x209   : > { %2194 = vst.msk [vmem:[%s3110_s29 + $0xf4] sm:$0xf] %vm2132_vm1, %v2579_v48  ;;  %v1874_v52 = vmax.f32 %v1806_v50, 0.0  ;;  %v1520_v53 = vadd.f32 %v3301_v17, %v1519_v51 }
 0x20a   : > { %v1521_v54 = vpop.f32.mrf.mxu0 }
 0x20b   : > { %v2580_v55 = vpack.c.bf16 %v1874_v52, %v1874_v52  ;;  %v1809_v56 = vadd.f32 %v1808_v28, %v1520_v53 }
 0x20d   : > { %2195 = vst.msk [vmem:[%s3110_s29 + $0xf8] sm:$0xf] %vm2132_vm1, %v2580_v55  ;;  %v1875_v57 = vmax.f32 %v1809_v56, 0.0 }
 0x20f   : > { %v2581_v58 = vpack.c.bf16 %v1875_v57, %v1875_v57 }
 0x211   : > { %2196 = vst.msk [vmem:[%s3110_s29 + $0xfc] sm:$0xf] %vm2132_vm1, %v2581_v58 }
 0x212 PF: > { %s13_s12 = sadd.s32 1, %s2806_s12  }
 0x213   : > { %p10_p4 = scmp.ge.s32.totalorder %s13_s12, 27  }
 0x215   :  { %12 = sbr.rel (!%p10_p4) target bundleno = 1 (0x1), region = 62 }

// kernel: _lambda_.14
= control target key start
LH: loop header
LB: loop body
LE: loop exit
PB: predicated region body
PF: predicated region fallthrough
CT: control target
= control target key end

     0   :  { %s2829_s12 = smov 0   ;;  %s3350_s0 = inlined_call_operand.vmem [shape: bf16[2048,432], index: 0, kind: input, shape index: {}]   ;;  %s3351_s1 = inlined_call_operand.vmem [shape: bf16[432,32], index: 1, kind: input, shape index: {}]   ;;  %s3352_s2 = inlined_call_operand.vmem [shape: f32[1,32], index: 2, kind: input, shape index: {}]   ;;  %s3353_s3 = inlined_call_operand.vmem [shape: bf16[2048,32], index: 3, kind: output, shape index: {}]  }
   0x1 LB: > { %s2253_s13 = sadd.s32 4294967295, %s2806_s12   ;;  %p2257_p0 = scmp.ge.s32.totalorder %s2806_s12, 1  ;;  %s2806_s12 = sphi %s2829_s12, %s13_s12  }
   0x2   : > { %p139_p1 = scmp.lt.s32.totalorder %s2806_s12, 5 }
   0x4   : > { %p140_p2 = pnand %p2257_p0, %p139_p1 }
   0x5   : > { %s2258_s26 = sshll.u32 (!%p140_p2), %s2253_s13, 6 }
   0x6   : > { %143 = sbr.rel (%p140_p2) target bundleno = 530 (0x212), region = 32  ;;  %p165_p3 = scmp.lt.s32.totalorder (!%p140_p2), %s2258_s26, 255 }
   0xb   : > { %v2591_v0 = vld [vmem:[%s3351_s1 + $0x38] sm:$0xff]   ;;  %v2808_v1 = vmov 0   ;;  %v2592_v2 = vld [vmem:[%s3351_s1 + $0x30] sm:$0xff]   ;;  %v2593_v4 = vld [vmem:[%s3351_s1 + $0x28] sm:$0xff]   ;;  %s3355_s26 = smov (!%p165_p3, %s2258_s26), 255  ;;  %vm1137_vm0 = vcmask 392192  }
   0xc   : > { %1234 = vmatprep.subr.bf16.mxu0 %v2808_v1  ;;  %1523 = vmatprep.subr.bf16.mxu1 %v2808_v1  ;;  %v2596_v3 = vld [vmem:[%s3351_s1 + $0xb8] sm:$0xff]   ;;  %v2598_v5 = vld [vmem:[%s3351_s1 + $0xb0] sm:$0xff]   ;;  %v2594_v6 = vld [vmem:[%s3351_s1 + $0x20] sm:$0xff]   ;;  %s2517_s10 = sshll.u32 %s3355_s26, 4  ;;  %s2262_s25 = sshll.u32 %s3355_s26, 2  ;;  %vm2132_vm1 = vcmask 257024  }
   0xd   : > { %1235 = vmatpush1.bf16.msra.mxu0 %v2591_v0  ;;  %1524 = vmatpush1.bf16.msra.mxu1 %v2596_v3  ;;  %v2600_v7 = vld [vmem:[%s3351_s1 + $0xa8] sm:$0xff]   ;;  %v2595_v8 = vld [vmem:[%s3351_s1 + $0x18] sm:$0xff]   ;;  %v2602_v9 = vld [vmem:[%s3351_s1 + $0xa0] sm:$0xff]   ;;  %s2895_s18 = scalar_lea.vmem %s3350_s0, %s2517_s10  ;;  %s3110_s29 = scalar_lea.vmem %s3353_s3, %s2262_s25 }
   0xe   : > { %1236 = vmatprep.subr.bf16.mxu0 %v2808_v1  ;;  %1525 = vmatprep.subr.bf16.mxu1 %v2808_v1  ;;  %v2597_v10 = vld [vmem:[%s3351_s1 + $0x10] sm:$0xff]   ;;  %v2604_v11 = vld [vmem:[%s3351_s1 + $0x98] sm:$0xff]   ;;  %v2599_v12 = vld [vmem:[%s3351_s1 + $0x8] sm:$0xff]  }
   0xf   : > { %v2606_v13 = vld [vmem:[%s3351_s1 + $0x90] sm:$0xff]   ;;  %v2601_v14 = vld [vmem:[%s3351_s1] sm:$0xff]   ;;  %v2608_v15 = vld [vmem:[%s3351_s1 + $0x88] sm:$0xff]  }
  0x10   : > { %v2619_v16 = vld [vmem:[%s2895_s18 + $0xc] ss:$16 sps:$4 sm:$0xff]   ;;  %v2623_v17 = vld [vmem:[%s2895_s18 + $0x4] ss:$16 sps:$4 sm:$0xff]   ;;  %v2617_v27 = vld [vmem:[%s2895_s18 + $0x8] ss:$16 sps:$4 sm:$0xff]  }
  0x11   : > { %1237 = vmatpush1.bf16.msra.mxu0 %v2592_v2  ;;  %1526 = vmatpush1.bf16.msra.mxu1 %v2598_v5  ;;  %v2603_v18 = vld [vmem:[%s3351_s1 + $0x78] sm:$0xff]   ;;  %v2610_v19 = vld [vmem:[%s3351_s1 + $0x80] sm:$0xff]   ;;  %v2605_v20 = vld [vmem:[%s3351_s1 + $0x70] sm:$0xff]  }
  0x12   : > { %1238 = vmatprep.subr.bf16.mxu0 %v2808_v1  ;;  %1527 = vmatprep.subr.bf16.mxu1 %v2808_v1  ;;  %v2612_v21 = vld [vmem:[%s3351_s1 + $0xd0] sm:$0xff]   ;;  %v2607_v22 = vld [vmem:[%s3351_s1 + $0x68] sm:$0xff]   ;;  %v2609_v24 = vld [vmem:[%s3351_s1 + $0x60] sm:$0xff]  }
  0x13   : > { %2419 = vmatprep.mubr.msk.bf16.mxu1 %vm1137_vm0, %v2619_v16  ;;  %1266 = vmatprep.mubr.bf16.mxu0 %v2623_v17  ;;  %v2614_v23 = vld [vmem:[%s3351_s1 + $0xc8] sm:$0xff]   ;;  %v2616_v25 = vld [vmem:[%s3351_s1 + $0xc0] sm:$0xff]   ;;  %v2611_v26 = vld [vmem:[%s3351_s1 + $0x58] sm:$0xff]  }
  0x14   : > { %v2624_v28 = vld [vmem:[%s2895_s18 + $0x2c] ss:$16 sps:$4 sm:$0xff]   ;;  %v2613_v29 = vld [vmem:[%s3351_s1 + $0x50] sm:$0xff]   ;;  %v2626_v31 = vld [vmem:[%s2895_s18 + $0x28] ss:$16 sps:$4 sm:$0xff]  }
  0x15   : > { %1239 = vmatpush1.bf16.msra.mxu0 %v2593_v4  ;;  %1528 = vmatpush1.bf16.msra.mxu1 %v2600_v7  ;;  %v2615_v30 = vld [vmem:[%s3351_s1 + $0x48] sm:$0xff]   ;;  %v2620_v33 = vld [vmem:[%s3351_s1 + $0x40] sm:$0xff]  }
  0x16   : > { %1240 = vmatprep.subr.bf16.mxu0 %v2808_v1  ;;  %1529 = vmatprep.subr.bf16.mxu1 %v2808_v1  ;;  %v2630_v32 = vld [vmem:[%s2895_s18 + $0x4c] ss:$16 sps:$4 sm:$0xff]   ;;  %v2621_v34 = vld [vmem:[%s2895_s18] ss:$16 sps:$4 sm:$0xff]   ;;  %v2627_v35 = vld [vmem:[%s2895_s18 + $0x24] ss:$16 sps:$4 sm:$0xff]  }
  0x17   : > { %v2632_v36 = vld [vmem:[%s2895_s18 + $0x48] ss:$16 sps:$4 sm:$0xff]   ;;  %v2636_v37 = vld [vmem:[%s2895_s18 + $0x6c] ss:$16 sps:$4 sm:$0xff]   ;;  %v2629_v38 = vld [vmem:[%s2895_s18 + $0x20] ss:$16 sps:$4 sm:$0xff]  }
  0x18   : > { %v2633_v39 = vld [vmem:[%s2895_s18 + $0x44] ss:$16 sps:$4 sm:$0xff]   ;;  %v2638_v40 = vld [vmem:[%s2895_s18 + $0x68] ss:$16 sps:$4 sm:$0xff]   ;;  %v2642_v41 = vld [vmem:[%s2895_s18 + $0x8c] ss:$16 sps:$4 sm:$0xff]  }
  0x19   : > { %1241 = vmatpush1.bf16.msra.mxu0 %v2594_v6  ;;  %1530 = vmatpush1.bf16.msra.mxu1 %v2602_v9  ;;  %v2635_v42 = vld [vmem:[%s2895_s18 + $0x40] ss:$16 sps:$4 sm:$0xff]   ;;  %v2639_v43 = vld [vmem:[%s2895_s18 + $0x64] ss:$16 sps:$4 sm:$0xff]   ;;  %v2644_v44 = vld [vmem:[%s2895_s18 + $0x88] ss:$16 sps:$4 sm:$0xff]  }
  0x1a   : > { %1242 = vmatprep.subr.bf16.mxu0 %v2808_v1  ;;  %1531 = vmatprep.subr.bf16.mxu1 %v2808_v1  ;;  %v2648_v45 = vld [vmem:[%s2895_s18 + $0xac] ss:$16 sps:$4 sm:$0xff]   ;;  %v2641_v46 = vld [vmem:[%s2895_s18 + $0x60] ss:$16 sps:$4 sm:$0xff]   ;;  %v2645_v47 = vld [vmem:[%s2895_s18 + $0x84] ss:$16 sps:$4 sm:$0xff]  }
  0x1b   : > { %v2650_v48 = vld [vmem:[%s2895_s18 + $0xa8] ss:$16 sps:$4 sm:$0xff]   ;;  %v2654_v49 = vld [vmem:[%s2895_s18 + $0xcc] ss:$16 sps:$4 sm:$0xff]   ;;  %v2647_v50 = vld [vmem:[%s2895_s18 + $0x80] ss:$16 sps:$4 sm:$0xff]  }
  0x1c   : > { %v2651_v51 = vld [vmem:[%s2895_s18 + $0xa4] ss:$16 sps:$4 sm:$0xff]   ;;  %v2656_v52 = vld [vmem:[%s2895_s18 + $0xc8] ss:$16 sps:$4 sm:$0xff]   ;;  %v2660_v53 = vld [vmem:[%s2895_s18 + $0xec] ss:$16 sps:$4 sm:$0xff]  }
  0x1d   : > { %1243 = vmatpush1.bf16.msra.mxu0 %v2595_v8  ;;  %1532 = vmatpush1.bf16.msra.mxu1 %v2604_v11  ;;  %v2653_v54 = vld [vmem:[%s2895_s18 + $0xa0] ss:$16 sps:$4 sm:$0xff]   ;;  %v2657_v55 = vld [vmem:[%s2895_s18 + $0xc4] ss:$16 sps:$4 sm:$0xff]   ;;  %v2662_v56 = vld [vmem:[%s2895_s18 + $0xe8] ss:$16 sps:$4 sm:$0xff]  }
  0x1e   : > { %1244 = vmatprep.subr.bf16.mxu0 %v2808_v1  ;;  %1533 = vmatprep.subr.bf16.mxu1 %v2808_v1  ;;  %v2666_v57 = vld [vmem:[%s2895_s18 + $0x10c] ss:$16 sps:$4 sm:$0xff]   ;;  %v2659_v58 = vld [vmem:[%s2895_s18 + $0xc0] ss:$16 sps:$4 sm:$0xff]   ;;  %v2663_v59 = vld [vmem:[%s2895_s18 + $0xe4] ss:$16 sps:$4 sm:$0xff]  }
  0x1f   : > { %v2668_v60 = vld [vmem:[%s2895_s18 + $0x108] ss:$16 sps:$4 sm:$0xff]   ;;  %v2672_v61 = vld [vmem:[%s2895_s18 + $0x12c] ss:$16 sps:$4 sm:$0xff]   ;;  %v2665_v62 = vld [vmem:[%s2895_s18 + $0xe0] ss:$16 sps:$4 sm:$0xff]  }
  0x20   : > { %v2669_v63 = vld [vmem:[%s2895_s18 + $0x104] ss:$16 sps:$4 sm:$0xff]   ;;  %v2674_v0 = vld [vmem:[%s2895_s18 + $0x128] ss:$16 sps:$4 sm:$0xff]   ;;  %v2671_v2 = vld [vmem:[%s2895_s18 + $0x100] ss:$16 sps:$4 sm:$0xff]  }
  0x21   : > { %1245 = vmatpush1.bf16.msra.mxu0 %v2597_v10  ;;  %1534 = vmatpush1.bf16.msra.mxu1 %v2606_v13  ;;  %v2675_v3 = vld [vmem:[%s2895_s18 + $0x124] ss:$16 sps:$4 sm:$0xff]   ;;  %v2680_v4 = vld [vmem:[%s2895_s18 + $0x148] ss:$16 sps:$4 sm:$0xff]   ;;  %v2684_v5 = vld [vmem:[%s2895_s18 + $0x16c] ss:$16 sps:$4 sm:$0xff]  }
  0x22   : > { %1246 = vmatprep.subr.bf16.mxu0 %v2808_v1  ;;  %1535 = vmatprep.subr.bf16.mxu1 %v2808_v1  ;;  %v2677_v6 = vld [vmem:[%s2895_s18 + $0x120] ss:$16 sps:$4 sm:$0xff]   ;;  %v2681_v7 = vld [vmem:[%s2895_s18 + $0x144] ss:$16 sps:$4 sm:$0xff]   ;;  %v2686_v8 = vld [vmem:[%s2895_s18 + $0x168] ss:$16 sps:$4 sm:$0xff]  }
  0x23   : > { %v2690_v9 = vld [vmem:[%s2895_s18 + $0x18c] ss:$16 sps:$4 sm:$0xff]   ;;  %v2683_v10 = vld [vmem:[%s2895_s18 + $0x140] ss:$16 sps:$4 sm:$0xff]   ;;  %v2687_v11 = vld [vmem:[%s2895_s18 + $0x164] ss:$16 sps:$4 sm:$0xff]  }
  0x24   : > { %v2696_v13 = vld [vmem:[%s2895_s18 + $0x1ac] ss:$16 sps:$4 sm:$0xff]   ;;  %v2698_v16 = vld [vmem:[%s2895_s18 + $0x1a8] ss:$16 sps:$4 sm:$0xff]  }
  0x25   : > { %1247 = vmatpush1.bf16.msra.mxu0 %v2599_v12  ;;  %1536 = vmatpush1.bf16.msra.mxu1 %v2608_v15  ;;  %v2692_v12 = vld [vmem:[%s2895_s18 + $0x188] ss:$16 sps:$4 sm:$0xff]   ;;  %v2693_v15 = vld [vmem:[%s2895_s18 + $0x184] ss:$16 sps:$4 sm:$0xff]   ;;  %v2702_v17 = vld [vmem:[%s2895_s18 + $0x1cc] ss:$16 sps:$4 sm:$0xff]  }
  0x26   : > { %1248 = vmatprep.subr.bf16.mxu0 %v2808_v1  ;;  %1537 = vmatprep.subr.bf16.mxu1 %v2808_v1 }
  0x29   : > { %1249 = vmatpush1.bf16.msra.mxu0 %v2601_v14  ;;  %1538 = vmatpush1.bf16.msra.mxu1 %v2610_v19  ;;  %v2689_v14 = vld [vmem:[%s2895_s18 + $0x160] ss:$16 sps:$4 sm:$0xff]   ;;  %v2699_v19 = vld [vmem:[%s2895_s18 + $0x1a4] ss:$16 sps:$4 sm:$0xff]  }
  0x2a   : > { %1250 = vmatprep.subr.bf16.mxu0 %v2808_v1  ;;  %1549 = vmatprep.subr.bf16.mxu1 %v2808_v1 }
  0x2d   : > { %1251 = vmatpush2.bf16.msra.mxu0 %v2603_v18  ;;  %1550 = vmatpush2.bf16.msra.mxu1 %v2612_v21  ;;  %v2695_v18 = vld [vmem:[%s2895_s18 + $0x180] ss:$16 sps:$4 sm:$0xff]   ;;  %v2708_v21 = vld [vmem:[%s2895_s18 + $0x1ec] ss:$16 sps:$4 sm:$0xff]  }
  0x2e   : > { %1252 = vmatprep.subr.bf16.mxu0 %v2808_v1  ;;  %1551 = vmatprep.subr.bf16.mxu1 %v2808_v1 }
  0x31   : > { %1253 = vmatpush2.bf16.msra.mxu0 %v2605_v20  ;;  %1552 = vmatpush2.bf16.msra.mxu1 %v2614_v23  ;;  %v2704_v20 = vld [vmem:[%s2895_s18 + $0x1c8] ss:$16 sps:$4 sm:$0xff]   ;;  %v2705_v23 = vld [vmem:[%s2895_s18 + $0x1c4] ss:$16 sps:$4 sm:$0xff]  }
  0x32   : > { %1254 = vmatprep.subr.bf16.mxu0 %v2808_v1  ;;  %1553 = vmatprep.subr.bf16.mxu1 %v2808_v1 }
  0x35   : > { %1255 = vmatpush2.bf16.msra.mxu0 %v2607_v22  ;;  %1554 = vmatpush2.bf16.msra.mxu1 %v2616_v25  ;;  %v2701_v22 = vld [vmem:[%s2895_s18 + $0x1a0] ss:$16 sps:$4 sm:$0xff]   ;;  %v2714_v25 = vld [vmem:[%s2895_s18 + $0x20c] ss:$16 sps:$4 sm:$0xff]  }
  0x36   : > { %1256 = vmatprep.subr.bf16.mxu0 %v2808_v1 }
  0x38   : > { %1556 = vmatmul.mubr.bf16.vlgmr.msra.gmra.mxu1 %v2617_v27  ;;  %v2711_v27 = vld [vmem:[%s2895_s18 + $0x1e4] ss:$16 sps:$4 sm:$0xff]  }
  0x39   : > { %1257 = vmatpush2.bf16.msra.mxu0 %v2609_v24  ;;  %2420 = vmatprep.mubr.msk.bf16.mxu1 %vm1137_vm0, %v2624_v28  ;;  %v2710_v24 = vld [vmem:[%s2895_s18 + $0x1e8] ss:$16 sps:$4 sm:$0xff]  }
  0x3a   : > { %1258 = vmatprep.subr.bf16.mxu0 %v2808_v1  ;;  %v2716_v28 = vld [vmem:[%s2895_s18 + $0x208] ss:$16 sps:$4 sm:$0xff]  }
  0x3d   : > { %1259 = vmatpush2.bf16.msra.mxu0 %v2611_v26  ;;  %v2707_v26 = vld [vmem:[%s2895_s18 + $0x1c0] ss:$16 sps:$4 sm:$0xff]  }
  0x3e   : > { %1260 = vmatprep.subr.bf16.mxu0 %v2808_v1 }
  0x40   : > { %1564 = vmatmul.mubr.bf16.gmra.mxu1 %v2626_v31  ;;  %v2717_v31 = vld [vmem:[%s2895_s18 + $0x204] ss:$16 sps:$4 sm:$0xff]  }
  0x41   : > { %1261 = vmatpush2.bf16.msra.mxu0 %v2613_v29  ;;  %2421 = vmatprep.mubr.msk.bf16.mxu1 %vm1137_vm0, %v2630_v32  ;;  %v2720_v29 = vld [vmem:[%s2895_s18 + $0x22c] ss:$16 sps:$4 sm:$0xff]   ;;  %v2722_v32 = vld [vmem:[%s2895_s18 + $0x228] ss:$16 sps:$4 sm:$0xff]  }
  0x42   : > { %1262 = vmatprep.subr.bf16.mxu0 %v2808_v1 }
  0x45   : > { %1263 = vmatpush2.bf16.msra.mxu0 %v2615_v30  ;;  %v2713_v30 = vld [vmem:[%s2895_s18 + $0x1e0] ss:$16 sps:$4 sm:$0xff]  }
  0x46   : > { %1264 = vmatprep.subr.bf16.mxu0 %v2808_v1  ;;  %v2678_v1 = vld [vmem:[%s2895_s18 + $0x14c] ss:$16 sps:$4 sm:$0xff]  }
  0x48   : > { %1572 = vmatmul.mubr.bf16.gmra.mxu1 %v2632_v36  ;;  %v2728_v36 = vld [vmem:[%s2895_s18 + $0x248] ss:$16 sps:$4 sm:$0xff]  }
  0x49   : > { %1265 = vmatpush2.bf16.msra.mxu0 %v2620_v33  ;;  %2422 = vmatprep.mubr.msk.bf16.mxu1 %vm1137_vm0, %v2636_v37  ;;  %v2726_v33 = vld [vmem:[%s2895_s18 + $0x24c] ss:$16 sps:$4 sm:$0xff]  }
  0x4a   : > { %v2732_v37 = vld [vmem:[%s2895_s18 + $0x26c] ss:$16 sps:$4 sm:$0xff]  }
  0x4c   : > { %1267 = vmatmul.mubr.bf16.vlgmr.msra.gmra.mxu0 %v2621_v34  ;;  %v2719_v34 = vld [vmem:[%s2895_s18 + $0x200] ss:$16 sps:$4 sm:$0xff]  }
  0x4d   : > { %1274 = vmatprep.mubr.bf16.mxu0 %v2627_v35  ;;  %v2723_v35 = vld [vmem:[%s2895_s18 + $0x224] ss:$16 sps:$4 sm:$0xff]  }
  0x50   : > { %1580 = vmatmul.mubr.bf16.gmra.mxu1 %v2638_v40  ;;  %v2734_v40 = vld [vmem:[%s2895_s18 + $0x268] ss:$16 sps:$4 sm:$0xff]  }
  0x51   : > { %2423 = vmatprep.mubr.msk.bf16.mxu1 %vm1137_vm0, %v2642_v41  ;;  %v2738_v41 = vld [vmem:[%s2895_s18 + $0x28c] ss:$16 sps:$4 sm:$0xff]  }
  0x54   : > { %1275 = vmatmul.mubr.bf16.gmra.mxu0 %v2629_v38  ;;  %v2725_v38 = vld [vmem:[%s2895_s18 + $0x220] ss:$16 sps:$4 sm:$0xff]  }
  0x55   : > { %1282 = vmatprep.mubr.bf16.mxu0 %v2633_v39  ;;  %v2729_v39 = vld [vmem:[%s2895_s18 + $0x244] ss:$16 sps:$4 sm:$0xff]  }
  0x58   : > { %1588 = vmatmul.mubr.bf16.gmra.mxu1 %v2644_v44  ;;  %v2740_v44 = vld [vmem:[%s2895_s18 + $0x288] ss:$16 sps:$4 sm:$0xff]  }
  0x59   : > { %2424 = vmatprep.mubr.msk.bf16.mxu1 %vm1137_vm0, %v2648_v45  ;;  %v2744_v45 = vld [vmem:[%s2895_s18 + $0x2ac] ss:$16 sps:$4 sm:$0xff]  }
  0x5c   : > { %1283 = vmatmul.mubr.bf16.gmra.mxu0 %v2635_v42  ;;  %v2731_v42 = vld [vmem:[%s2895_s18 + $0x240] ss:$16 sps:$4 sm:$0xff]  }
  0x5d   : > { %1290 = vmatprep.mubr.bf16.mxu0 %v2639_v43  ;;  %v2735_v43 = vld [vmem:[%s2895_s18 + $0x264] ss:$16 sps:$4 sm:$0xff]  }
  0x60   : > { %1596 = vmatmul.mubr.bf16.gmra.mxu1 %v2650_v48  ;;  %v2746_v48 = vld [vmem:[%s2895_s18 + $0x2a8] ss:$16 sps:$4 sm:$0xff]  }
  0x61   : > { %2425 = vmatprep.mubr.msk.bf16.mxu1 %vm1137_vm0, %v2654_v49  ;;  %v2750_v49 = vld [vmem:[%s2895_s18 + $0x2cc] ss:$16 sps:$4 sm:$0xff]  }
  0x64   : > { %1291 = vmatmul.mubr.bf16.gmra.mxu0 %v2641_v46  ;;  %v2737_v46 = vld [vmem:[%s2895_s18 + $0x260] ss:$16 sps:$4 sm:$0xff]  }
  0x65   : > { %1298 = vmatprep.mubr.bf16.mxu0 %v2645_v47  ;;  %v2741_v47 = vld [vmem:[%s2895_s18 + $0x284] ss:$16 sps:$4 sm:$0xff]  }
  0x68   : > { %1604 = vmatmul.mubr.bf16.gmra.mxu1 %v2656_v52  ;;  %v2752_v52 = vld [vmem:[%s2895_s18 + $0x2c8] ss:$16 sps:$4 sm:$0xff]  }
  0x69   : > { %2426 = vmatprep.mubr.msk.bf16.mxu1 %vm1137_vm0, %v2660_v53  ;;  %v2756_v53 = vld [vmem:[%s2895_s18 + $0x2ec] ss:$16 sps:$4 sm:$0xff]  }
  0x6c   : > { %1299 = vmatmul.mubr.bf16.gmra.mxu0 %v2647_v50  ;;  %v2743_v50 = vld [vmem:[%s2895_s18 + $0x280] ss:$16 sps:$4 sm:$0xff]  }
  0x6d   : > { %1306 = vmatprep.mubr.bf16.mxu0 %v2651_v51  ;;  %v2747_v51 = vld [vmem:[%s2895_s18 + $0x2a4] ss:$16 sps:$4 sm:$0xff]  }
  0x70   : > { %1612 = vmatmul.mubr.bf16.gmra.mxu1 %v2662_v56  ;;  %v2758_v56 = vld [vmem:[%s2895_s18 + $0x2e8] ss:$16 sps:$4 sm:$0xff]  }
  0x71   : > { %2427 = vmatprep.mubr.msk.bf16.mxu1 %vm1137_vm0, %v2666_v57  ;;  %v2762_v57 = vld [vmem:[%s2895_s18 + $0x30c] ss:$16 sps:$4 sm:$0xff]  }
  0x74   : > { %1307 = vmatmul.mubr.bf16.gmra.mxu0 %v2653_v54  ;;  %v2749_v54 = vld [vmem:[%s2895_s18 + $0x2a0] ss:$16 sps:$4 sm:$0xff]  }
  0x75   : > { %1314 = vmatprep.mubr.bf16.mxu0 %v2657_v55  ;;  %v2753_v55 = vld [vmem:[%s2895_s18 + $0x2c4] ss:$16 sps:$4 sm:$0xff]  }
  0x78   : > { %1620 = vmatmul.mubr.bf16.gmra.mxu1 %v2668_v60  ;;  %v2764_v60 = vld [vmem:[%s2895_s18 + $0x308] ss:$16 sps:$4 sm:$0xff]  }
  0x79   : > { %2428 = vmatprep.mubr.msk.bf16.mxu1 %vm1137_vm0, %v2672_v61  ;;  %v2767_v61 = vld [vmem:[%s2895_s18 + $0x32c] ss:$16 sps:$4 sm:$0xff]  }
  0x7c   : > { %1315 = vmatmul.mubr.bf16.gmra.mxu0 %v2659_v58  ;;  %v2755_v58 = vld [vmem:[%s2895_s18 + $0x2c0] ss:$16 sps:$4 sm:$0xff]  }
  0x7d   : > { %1322 = vmatprep.mubr.bf16.mxu0 %v2663_v59  ;;  %v2759_v59 = vld [vmem:[%s2895_s18 + $0x2e4] ss:$16 sps:$4 sm:$0xff]  }
  0x80   : > { %1628 = vmatmul.mubr.bf16.gmra.mxu1 %v2674_v0  ;;  %v281_v0 = vld [vmem:[%s2895_s18 + $0x338] sm:$0xff] }
  0x81   : > { %2429 = vmatprep.mubr.msk.bf16.mxu1 %vm1137_vm0, %v2678_v1 }
  0x84   : > { %1323 = vmatmul.mubr.bf16.gmra.mxu0 %v2665_v62 }
  0x85   : > { %1330 = vmatprep.mubr.bf16.mxu0 %v2669_v63  ;;  %v279_v63 = vld [vmem:[%s2895_s18 + $0x328] sm:$0xff] }
  0x88   : > { %1636 = vmatmul.mubr.bf16.gmra.mxu1 %v2680_v4 }
  0x89   : > { %2430 = vmatprep.mubr.msk.bf16.mxu1 %vm1137_vm0, %v2684_v5  ;;  %v2366_v5 = vcombine.low %v279_v63, %v281_v0  ;;  %v2784_v63 = vld [vmem:[%s2895_s18 + $0x3ac] ss:$16 sps:$4 sm:$0xff]  }
  0x8c   : > { %1331 = vmatmul.mubr.bf16.gmra.mxu0 %v2671_v2  ;;  %v2761_v2 = vld [vmem:[%s2895_s18 + $0x2e0] ss:$16 sps:$4 sm:$0xff]  }
  0x8d   : > { %1338 = vmatprep.mubr.bf16.mxu0 %v2675_v3  ;;  %v2765_v3 = vld [vmem:[%s2895_s18 + $0x304] ss:$16 sps:$4 sm:$0xff]  }
  0x90   : > { %1644 = vmatmul.mubr.bf16.gmra.mxu1 %v2686_v8  ;;  %v274_v8 = vld [vmem:[%s2895_s18 + $0x300] sm:$0xff] }
  0x91   : > { %2431 = vmatprep.mubr.msk.bf16.mxu1 %vm1137_vm0, %v2690_v9  ;;  %v276_v9 = vld [vmem:[%s2895_s18 + $0x310] sm:$0xff] }
  0x94   : > { %1339 = vmatmul.mubr.bf16.gmra.mxu0 %v2677_v6  ;;  %v2771_v6 = vld [vmem:[%s2895_s18 + $0x34c] ss:$16 sps:$4 sm:$0xff]  }
  0x95   : > { %1346 = vmatprep.mubr.bf16.mxu0 %v2681_v7 }
  0x98   : > { %1652 = vmatmul.mubr.bf16.gmra.mxu1 %v2692_v12  ;;  %v285_v12 = vld [vmem:[%s2895_s18 + $0x358] sm:$0xff] }
  0x99   : > { %2432 = vmatprep.mubr.msk.bf16.mxu1 %vm1137_vm0, %v2696_v13 }
  0x9c   : > { %1347 = vmatmul.mubr.bf16.gmra.mxu0 %v2683_v10 }
  0x9d   : > { %1354 = vmatprep.mubr.bf16.mxu0 %v2687_v11  ;;  %v283_v11 = vld [vmem:[%s2895_s18 + $0x348] sm:$0xff] }
  0xa0   : > { %1660 = vmatmul.mubr.bf16.gmra.mxu1 %v2698_v16 }
  0xa1   : > { %2433 = vmatprep.mubr.msk.bf16.mxu1 %vm1137_vm0, %v2702_v17  ;;  %v2370_v17 = vcombine.low %v283_v11, %v285_v12  ;;  %v297_v11 = vld [vmem:[%s2895_s18 + $0x3b8] sm:$0xff] }
  0xa4   : > { %1355 = vmatmul.mubr.bf16.gmra.mxu0 %v2689_v14  ;;  %v2360_v14 = vcombine.low %v274_v8, %v276_v9 }
  0xa5   : > { %1362 = vmatprep.mubr.bf16.mxu0 %v2693_v15  ;;  %v2769_v15 = vld [vmem:[%s2895_s18 + $0x324] ss:$16 sps:$4 sm:$0xff]  }
  0xa8   : > { %1668 = vmatmul.mubr.bf16.gmra.mxu1 %v2704_v20 }
  0xa9   : > { %2434 = vmatprep.mubr.msk.bf16.mxu1 %vm1137_vm0, %v2708_v21 }
  0xac   : > { %1363 = vmatmul.mubr.bf16.gmra.mxu0 %v2695_v18  ;;  %v3091_v18 = vld [vmem:[%s3352_s2] ss:$0 sm:$0xff] }
  0xad   : > { %1370 = vmatprep.mubr.bf16.mxu0 %v2699_v19  ;;  %v2775_v19 = vld [vmem:[%s2895_s18 + $0x36c] ss:$16 sps:$4 sm:$0xff]  }
  0xb0   : > { %1676 = vmatmul.mubr.bf16.gmra.mxu1 %v2710_v24  ;;  %v280_v24 = vld [vmem:[%s2895_s18 + $0x330] sm:$0xff] }
  0xb1   : > { %2435 = vmatprep.mubr.msk.bf16.mxu1 %vm1137_vm0, %v2714_v25 }
  0xb4   : > { %1371 = vmatmul.mubr.bf16.gmra.mxu0 %v2701_v22 }
  0xb5   : > { %1378 = vmatprep.mubr.bf16.mxu0 %v2705_v23  ;;  %v278_v23 = vld [vmem:[%s2895_s18 + $0x320] sm:$0xff] }
  0xb8   : > { %1684 = vmatmul.mubr.bf16.gmra.mxu1 %v2716_v28  ;;  %v289_v28 = vld [vmem:[%s2895_s18 + $0x378] sm:$0xff] }
  0xb9   : > { %2436 = vmatprep.mubr.msk.bf16.mxu1 %vm1137_vm0, %v2720_v29 }
  0xbc   : > { %1379 = vmatmul.mubr.bf16.gmra.mxu0 %v2707_v26 }
  0xbd   : > { %1386 = vmatprep.mubr.bf16.mxu0 %v2711_v27  ;;  %v287_v27 = vld [vmem:[%s2895_s18 + $0x368] sm:$0xff] }
  0xc0   : > { %1692 = vmatmul.mubr.bf16.gmra.mxu1 %v2722_v32  ;;  %v2364_v32 = vcombine.low %v278_v23, %v280_v24  ;;  %v2789_v24 = vld [vmem:[%s2895_s18 + $0x3cc] ss:$16 sps:$4 sm:$0xff]  }
  0xc1   : > { %2437 = vmatprep.mubr.msk.bf16.mxu1 %vm1137_vm0, %v2726_v33 }
  0xc4   : > { %1387 = vmatmul.mubr.bf16.gmra.mxu0 %v2713_v30 }
  0xc5   : > { %1394 = vmatprep.mubr.bf16.mxu0 %v2717_v31 }
  0xc8   : > { %1700 = vmatmul.mubr.bf16.gmra.mxu1 %v2728_v36 }
  0xc9   : > { %2438 = vmatprep.mubr.msk.bf16.mxu1 %vm1137_vm0, %v2732_v37  ;;  %v2374_v37 = vcombine.low %v287_v27, %v289_v28 }
  0xcc   : > { %1395 = vmatmul.mubr.bf16.gmra.mxu0 %v2719_v34 }
  0xcd   : > { %1402 = vmatprep.mubr.bf16.mxu0 %v2723_v35  ;;  %v2773_v35 = vld [vmem:[%s2895_s18 + $0x344] ss:$16 sps:$4 sm:$0xff]  }
  0xd0   : > { %1708 = vmatmul.mubr.bf16.gmra.mxu1 %v2734_v40 }
  0xd1   : > { %2439 = vmatprep.mubr.msk.bf16.mxu1 %vm1137_vm0, %v2738_v41 }
  0xd4   : > { %1403 = vmatmul.mubr.bf16.gmra.mxu0 %v2725_v38 }
  0xd5   : > { %1410 = vmatprep.mubr.bf16.mxu0 %v2729_v39  ;;  %v2779_v39 = vld [vmem:[%s2895_s18 + $0x38c] ss:$16 sps:$4 sm:$0xff]  }
  0xd8   : > { %1716 = vmatmul.mubr.bf16.gmra.mxu1 %v2740_v44 }
  0xd9   : > { %2440 = vmatprep.mubr.msk.bf16.mxu1 %vm1137_vm0, %v2744_v45 }
  0xdc   : > { %1411 = vmatmul.mubr.bf16.gmra.mxu0 %v2731_v42 }
  0xdd   : > { %1418 = vmatprep.mubr.bf16.mxu0 %v2735_v43 }
  0xe0   : > { %1724 = vmatmul.mubr.bf16.gmra.mxu1 %v2746_v48 }
  0xe1   : > { %2441 = vmatprep.mubr.msk.bf16.mxu1 %vm1137_vm0, %v2750_v49 }
  0xe4   : > { %1419 = vmatmul.mubr.bf16.gmra.mxu0 %v2737_v46  ;;  %v282_v46 = vld [vmem:[%s2895_s18 + $0x340] sm:$0xff] }
  0xe5   : > { %1426 = vmatprep.mubr.bf16.mxu0 %v2741_v47  ;;  %v284_v47 = vld [vmem:[%s2895_s18 + $0x350] sm:$0xff] }
  0xe8   : > { %1732 = vmatmul.mubr.bf16.gmra.mxu1 %v2752_v52 }
  0xe9   : > { %2442 = vmatprep.mubr.msk.bf16.mxu1 %vm1137_vm0, %v2756_v53 }
  0xec   : > { %1427 = vmatmul.mubr.bf16.gmra.mxu0 %v2743_v50  ;;  %v291_v50 = vld [vmem:[%s2895_s18 + $0x388] sm:$0xff] }
  0xed   : > { %1434 = vmatprep.mubr.bf16.mxu0 %v2747_v51  ;;  %v293_v51 = vld [vmem:[%s2895_s18 + $0x398] sm:$0xff] }
  0xf0   : > { %1740 = vmatmul.mubr.bf16.gmra.mxu1 %v2758_v56  ;;  %v2368_v56 = vcombine.low %v282_v46, %v284_v47  ;;  %v2794_v46 = vld [vmem:[%s2895_s18 + $0x3ec] ss:$16 sps:$4 sm:$0xff]  }
  0xf1   : > { %2443 = vmatprep.mubr.msk.bf16.mxu1 %vm1137_vm0, %v2762_v57 }
  0xf4   : > { %1435 = vmatmul.mubr.bf16.gmra.mxu0 %v2749_v54 }
  0xf5   : > { %1442 = vmatprep.mubr.bf16.mxu0 %v2753_v55 }
  0xf8   : > { %v1557_v62 = vpop.f32.mrf.mxu1  ;;  %1748 = vmatmul.mubr.bf16.gmra.mxu1 %v2764_v60 }
  0xf9   : > { %2444 = vmatprep.mubr.msk.bf16.mxu1 %vm1137_vm0, %v2767_v61  ;;  %v2378_v61 = vcombine.low %v291_v50, %v293_v51 }
  0xfa   : > { %v1559_v1 = vpop.f32.mrf.mxu1 }
  0xfc   : > { %1443 = vmatmul.mubr.bf16.gmra.mxu0 %v2755_v58  ;;  %v1560_v4 = vpop.f32.mrf.mxu1 }
  0xfd   : > { %1450 = vmatprep.mubr.bf16.mxu0 %v2759_v59  ;;  %v2777_v59 = vld [vmem:[%s2895_s18 + $0x364] ss:$16 sps:$4 sm:$0xff]  }
  0xfe   : > { %v1562_v7 = vpop.f32.mrf.mxu1 }
  0xff   : > { %v288_v7 = vld [vmem:[%s2895_s18 + $0x370] sm:$0xff] }
 0x100   : > { %v1565_v10 = vpop.f32.mrf.mxu1  ;;  %1756 = vmatmul.mubr.bf16.gmra.mxu1 %v2366_v5 }
 0x101   : > { %2445 = vmatprep.mubr.msk.bf16.mxu1 %vm1137_vm0, %v2771_v6  ;;  %v286_v6 = vld [vmem:[%s2895_s18 + $0x360] sm:$0xff] }
 0x102   : > { %v1567_v13 = vpop.f32.mrf.mxu1 }
 0x104   : > { %1451 = vmatmul.mubr.bf16.gmra.mxu0 %v2761_v2  ;;  %v1568_v16 = vpop.f32.mrf.mxu1 }
 0x105   : > { %1458 = vmatprep.mubr.bf16.mxu0 %v2765_v3 }
 0x106   : > { %v1570_v20 = vpop.f32.mrf.mxu1 }
 0x107   : > { %v2783_v20 = vld [vmem:[%s2895_s18 + $0x384] ss:$16 sps:$4 sm:$0xff]  }
 0x108   : > { %v3097_v25 = vpop.f32.mrf.mxu1  ;;  %1764 = vmatmul.mubr.bf16.gmra.mxu1 %v2370_v17 }
 0x109   : > { %2446 = vmatprep.mubr.msk.bf16.mxu1 %vm1137_vm0, %v2775_v19 }
 0x10a   : > { %v1575_v30 = vpop.f32.mrf.mxu1 }
 0x10c   : > { %v1268_v21 = vpop.f32.mrf.mxu0  ;;  %1459 = vmatmul.mubr.bf16.gmra.mxu0 %v2360_v14  ;;  %v3105_v36 = vpop.f32.mrf.mxu1 }
 0x10d   : > { %v1269_v22 = vadd.f32 %v3091_v18, %v1268_v21  ;;  %1466 = vmatprep.mubr.bf16.mxu0 %v2769_v15 }
 0x10e   : > { %v1270_v26 = vpop.f32.mrf.mxu0  ;;  %v1578_v42 = vpop.f32.mrf.mxu1 }
 0x10f   : > { %v1558_v29 = vadd.f32 %v1557_v62, %v1269_v22  ;;  %v2788_v42 = vld [vmem:[%s2895_s18 + $0x3a4] ss:$16 sps:$4 sm:$0xff]  }
 0x110   : > { %v1271_v31 = vpop.f32.mrf.mxu0  ;;  %v3118_v48 = vpop.f32.mrf.mxu1  ;;  %1772 = vmatmul.mubr.bf16.gmra.mxu1 %v2374_v37 }
 0x111   : > { %v1812_v33 = vmax.f32 %v1558_v29, 0.0  ;;  %v1272_v34 = vadd.f32 %v3091_v18, %v1271_v31  ;;  %2447 = vmatprep.mubr.msk.bf16.mxu1 %vm1137_vm0, %v2779_v39  ;;  %v2781_v39 = vld [vmem:[%s2895_s18 + $0x380] ss:$16 sps:$4 sm:$0xff]  }
 0x112   : > { %v1273_v38 = vpop.f32.mrf.mxu0  ;;  %v1583_v54 = vpop.f32.mrf.mxu1 }
 0x113   : > { %v2518_v40 = vpack.c.bf16 %v1812_v33, %v1812_v33  ;;  %v1561_v41 = vadd.f32 %v1560_v4, %v1272_v34  ;;  %v299_v33 = vld [vmem:[%s2895_s18 + $0x3c8] sm:$0xff]  ;;  %v301_v34 = vld [vmem:[%s2895_s18 + $0x3d8] sm:$0xff] }
 0x114   : > { %v1276_v43 = vpop.f32.mrf.mxu0  ;;  %1467 = vmatmul.mubr.bf16.gmra.mxu0 %v2364_v32  ;;  %v3127_v60 = vpop.f32.mrf.mxu1 }
 0x115   : > { %2133 = vst.msk [vmem:[%s3110_s29] sm:$0xf] %vm2132_vm1, %v2518_v40  ;;  %v1813_v44 = vmax.f32 %v1561_v41, 0.0  ;;  %v1277_v45 = vadd.f32 %v3091_v18, %v1276_v43  ;;  %1474 = vmatprep.mubr.bf16.mxu0 %v2773_v35 }
 0x116   : > { %v1278_v49 = vpop.f32.mrf.mxu0  ;;  %v1586_v2 = vpop.f32.mrf.mxu1 }
 0x117   : > { %v2519_v52 = vpack.c.bf16 %v1813_v44, %v1813_v44  ;;  %v1566_v53 = vadd.f32 %v1565_v10, %v1277_v45  ;;  %v295_v10 = vld [vmem:[%s2895_s18 + $0x3a8] sm:$0xff]  ;;  %v2386_v44 = vcombine.low %v299_v33, %v301_v34 }
 0x118   : > { %v1279_v55 = vpop.f32.mrf.mxu0  ;;  %v3135_v8 = vpop.f32.mrf.mxu1  ;;  %1780 = vmatmul.mubr.bf16.gmra.mxu1 %v2378_v61  ;;  %v2382_v22 = vcombine.low %v295_v10, %v297_v11  ;;  %v2786_v61 = vld [vmem:[%s2895_s18 + $0x3a0] ss:$16 sps:$4 sm:$0xff]  }
 0x119   : > { %2134 = vst.msk [vmem:[%s3110_s29 + $0x4] sm:$0xf] %vm2132_vm1, %v2519_v52  ;;  %v1814_v57 = vmax.f32 %v1566_v53, 0.0  ;;  %v1280_v58 = vadd.f32 %v3091_v18, %v1279_v55  ;;  %2448 = vmatprep.mubr.msk.bf16.mxu1 %vm1137_vm0, %v2784_v63  ;;  %v303_v55 = vld [vmem:[%s2895_s18 + $0x3e8] sm:$0xff] }
 0x11a   : > { %v1281_v62 = vpop.f32.mrf.mxu0  ;;  %v1591_v14 = vpop.f32.mrf.mxu1 }
 0x11b   : > { %v2520_v0 = vpack.c.bf16 %v1814_v57, %v1814_v57  ;;  %v1569_v1 = vadd.f32 %v1568_v16, %v1280_v58  ;;  %v2372_v16 = vcombine.low %v286_v6, %v288_v7 }
 0x11c   : > { %v1284_v3 = vpop.f32.mrf.mxu0  ;;  %1475 = vmatmul.mubr.bf16.gmra.mxu0 %v2368_v56  ;;  %v1592_v21 = vpop.f32.mrf.mxu1  ;;  %v305_v56 = vld [vmem:[%s2895_s18 + $0x3f8] sm:$0xff] }
 0x11d   : > { %2135 = vst.msk [vmem:[%s3110_s29 + $0x8] sm:$0xf] %vm2132_vm1, %v2520_v0  ;;  %v1815_v4 = vmax.f32 %v1569_v1, 0.0  ;;  %v1285_v5 = vadd.f32 %v3091_v18, %v1284_v3  ;;  %1482 = vmatprep.mubr.bf16.mxu0 %v2777_v59  ;;  %v2793_v0 = vld [vmem:[%s2895_s18 + $0x3c4] ss:$16 sps:$4 sm:$0xff]   ;;  %v2390_v2 = vcombine.low %v303_v55, %v305_v56 }
 0x11e   : > { %v1286_v9 = vpop.f32.mrf.mxu0 }
 0x11f   : > { %v2521_v12 = vpack.c.bf16 %v1815_v4, %v1815_v4  ;;  %v1574_v13 = vadd.f32 %v3097_v25, %v1285_v5  ;;  %v1594_v25 = vpop.f32.mrf.mxu1 }
 0x120   : > { %v1287_v15 = vpop.f32.mrf.mxu0  ;;  %1788 = vmatmul.mubr.bf16.gmra.mxu1 %v2382_v22 }
 0x121   : > { %2136 = vst.msk [vmem:[%s3110_s29 + $0xc] sm:$0xf] %vm2132_vm1, %v2521_v12  ;;  %v1816_v17 = vmax.f32 %v1574_v13, 0.0  ;;  %v1288_v19 = vadd.f32 %v3091_v18, %v1287_v15  ;;  %v1597_v31 = vpop.f32.mrf.mxu1  ;;  %2449 = vmatprep.mubr.msk.bf16.mxu1 %vm1137_vm0, %v2789_v24 }
 0x122   : > { %v1289_v23 = vpop.f32.mrf.mxu0 }
 0x123   : > { %v2522_v26 = vpack.c.bf16 %v1816_v17, %v1816_v17  ;;  %v1577_v27 = vadd.f32 %v3105_v36, %v1288_v19  ;;  %v1599_v37 = vpop.f32.mrf.mxu1 }
 0x124   : > { %v1292_v28 = vpop.f32.mrf.mxu0  ;;  %1483 = vmatmul.mubr.bf16.gmra.mxu0 %v2372_v16  ;;  %v2791_v16 = vld [vmem:[%s2895_s18 + $0x3c0] ss:$16 sps:$4 sm:$0xff]  }
 0x125   : > { %2137 = vst.msk [vmem:[%s3110_s29 + $0x10] sm:$0xf] %vm2132_vm1, %v2522_v26  ;;  %v1817_v29 = vmax.f32 %v1577_v27, 0.0  ;;  %v1293_v30 = vadd.f32 %v3091_v18, %v1292_v28  ;;  %1490 = vmatprep.mubr.bf16.mxu0 %v2783_v20  ;;  %v1600_v43 = vpop.f32.mrf.mxu1  ;;  %v2798_v20 = vld [vmem:[%s2895_s18 + $0x3e4] ss:$16 sps:$4 sm:$0xff]  }
 0x126   : > { %v1294_v32 = vpop.f32.mrf.mxu0 }
 0x127   : > { %v2523_v35 = vpack.c.bf16 %v1817_v29, %v1817_v29  ;;  %v1582_v36 = vadd.f32 %v3118_v48, %v1293_v30  ;;  %v1602_v48 = vpop.f32.mrf.mxu1 }
 0x128   : > { %v1295_v38 = vpop.f32.mrf.mxu0  ;;  %1796 = vmatmul.mubr.bf16.gmra.mxu1 %v2386_v44 }
 0x129   : > { %2138 = vst.msk [vmem:[%s3110_s29 + $0x14] sm:$0xf] %vm2132_vm1, %v2523_v35  ;;  %v1818_v40 = vmax.f32 %v1582_v36, 0.0  ;;  %v1296_v41 = vadd.f32 %v3091_v18, %v1295_v38  ;;  %v1605_v53 = vpop.f32.mrf.mxu1  ;;  %2450 = vmatprep.mubr.msk.bf16.mxu1 %vm1137_vm0, %v2794_v46  ;;  %v2796_v35 = vld [vmem:[%s2895_s18 + $0x3e0] ss:$16 sps:$4 sm:$0xff]  }
 0x12a   : > { %v1297_v45 = vpop.f32.mrf.mxu0 }
 0x12b   : > { %v2524_v47 = vpack.c.bf16 %v1818_v40, %v1818_v40  ;;  %v1585_v49 = vadd.f32 %v3127_v60, %v1296_v41  ;;  %v1607_v59 = vpop.f32.mrf.mxu1 }
 0x12c   : > { %v1300_v50 = vpop.f32.mrf.mxu0  ;;  %1491 = vmatmul.mubr.bf16.gmra.mxu0 %v2781_v39 }
 0x12d   : > { %2139 = vst.msk [vmem:[%s3110_s29 + $0x18] sm:$0xf] %vm2132_vm1, %v2524_v47  ;;  %v1819_v51 = vmax.f32 %v1585_v49, 0.0  ;;  %v1301_v52 = vadd.f32 %v3091_v18, %v1300_v50  ;;  %1498 = vmatprep.mubr.bf16.mxu0 %v2788_v42  ;;  %v1608_v1 = vpop.f32.mrf.mxu1 }
 0x12e   : > { %v1302_v54 = vpop.f32.mrf.mxu0 }
 0x12f   : > { %v2525_v57 = vpack.c.bf16 %v1819_v51, %v1819_v51  ;;  %v1590_v58 = vadd.f32 %v3135_v8, %v1301_v52  ;;  %v1610_v6 = vpop.f32.mrf.mxu1 }
 0x130   : > { %v1303_v60 = vpop.f32.mrf.mxu0  ;;  %1804 = vmatmul.mubr.bf16.gmra.mxu1 %v2390_v2 }
 0x131   : > { %2140 = vst.msk [vmem:[%s3110_s29 + $0x1c] sm:$0xf] %vm2132_vm1, %v2525_v57  ;;  %v1820_v62 = vmax.f32 %v1590_v58, 0.0  ;;  %v1304_v63 = vadd.f32 %v3091_v18, %v1303_v60  ;;  %v1613_v10 = vpop.f32.mrf.mxu1 }
 0x132   : > { %v1305_v3 = vpop.f32.mrf.mxu0 }
 0x133   : > { %v2526_v4 = vpack.c.bf16 %v1820_v62, %v1820_v62  ;;  %v1593_v5 = vadd.f32 %v1592_v21, %v1304_v63  ;;  %v1615_v14 = vpop.f32.mrf.mxu1 }
 0x134   : > { %v1308_v7 = vpop.f32.mrf.mxu0  ;;  %1499 = vmatmul.mubr.bf16.gmra.mxu0 %v2786_v61 }
 0x135   : > { %2141 = vst.msk [vmem:[%s3110_s29 + $0x20] sm:$0xf] %vm2132_vm1, %v2526_v4  ;;  %v1821_v8 = vmax.f32 %v1593_v5, 0.0  ;;  %v1309_v9 = vadd.f32 %v3091_v18, %v1308_v7  ;;  %1506 = vmatprep.mubr.bf16.mxu0 %v2793_v0  ;;  %v1616_v21 = vpop.f32.mrf.mxu1 }
 0x136   : > { %v1310_v11 = vpop.f32.mrf.mxu0 }
 0x137   : > { %v2527_v12 = vpack.c.bf16 %v1821_v8, %v1821_v8  ;;  %v1598_v13 = vadd.f32 %v1597_v31, %v1309_v9  ;;  %v1618_v26 = vpop.f32.mrf.mxu1 }
 0x138   : > { %v1311_v15 = vpop.f32.mrf.mxu0 }
 0x139   : > { %2142 = vst.msk [vmem:[%s3110_s29 + $0x24] sm:$0xf] %vm2132_vm1, %v2527_v12  ;;  %v1822_v17 = vmax.f32 %v1598_v13, 0.0  ;;  %v1312_v19 = vadd.f32 %v3091_v18, %v1311_v15  ;;  %v1621_v29 = vpop.f32.mrf.mxu1 }
 0x13a   : > { %v1313_v22 = vpop.f32.mrf.mxu0 }
 0x13b   : > { %v2528_v23 = vpack.c.bf16 %v1822_v17, %v1822_v17  ;;  %v1601_v24 = vadd.f32 %v1600_v43, %v1312_v19  ;;  %v1623_v33 = vpop.f32.mrf.mxu1 }
 0x13c   : > { %v1316_v27 = vpop.f32.mrf.mxu0  ;;  %1507 = vmatmul.mubr.bf16.gmra.mxu0 %v2791_v16 }
 0x13d   : > { %2143 = vst.msk [vmem:[%s3110_s29 + $0x28] sm:$0xf] %vm2132_vm1, %v2528_v23  ;;  %v1823_v25 = vmax.f32 %v1601_v24, 0.0  ;;  %v1317_v28 = vadd.f32 %v3091_v18, %v1316_v27  ;;  %1514 = vmatprep.mubr.bf16.mxu0 %v2798_v20  ;;  %v1624_v38 = vpop.f32.mrf.mxu1 }
 0x13e   : > { %v1318_v30 = vpop.f32.mrf.mxu0 }
 0x13f   : > { %v2529_v31 = vpack.c.bf16 %v1823_v25, %v1823_v25  ;;  %v1606_v32 = vadd.f32 %v1605_v53, %v1317_v28  ;;  %v1626_v42 = vpop.f32.mrf.mxu1 }
 0x140   : > { %v1319_v34 = vpop.f32.mrf.mxu0 }
 0x141   : > { %2144 = vst.msk [vmem:[%s3110_s29 + $0x2c] sm:$0xf] %vm2132_vm1, %v2529_v31  ;;  %v1824_v36 = vmax.f32 %v1606_v32, 0.0  ;;  %v1320_v37 = vadd.f32 %v3091_v18, %v1319_v34  ;;  %v1629_v46 = vpop.f32.mrf.mxu1 }
 0x142   : > { %v1321_v39 = vpop.f32.mrf.mxu0 }
 0x143   : > { %v2530_v40 = vpack.c.bf16 %v1824_v36, %v1824_v36  ;;  %v1609_v41 = vadd.f32 %v1608_v1, %v1320_v37  ;;  %v1631_v50 = vpop.f32.mrf.mxu1 }
 0x144   : > { %v1324_v43 = vpop.f32.mrf.mxu0  ;;  %1515 = vmatmul.mubr.bf16.gmra.mxu0 %v2796_v35 }
 0x145   : > { %2145 = vst.msk [vmem:[%s3110_s29 + $0x30] sm:$0xf] %vm2132_vm1, %v2530_v40  ;;  %v1825_v44 = vmax.f32 %v1609_v41, 0.0  ;;  %v1325_v45 = vadd.f32 %v3091_v18, %v1324_v43  ;;  %v1632_v54 = vpop.f32.mrf.mxu1 }
 0x146   : > { %v1326_v47 = vpop.f32.mrf.mxu0 }
 0x147   : > { %v2531_v49 = vpack.c.bf16 %v1825_v44, %v1825_v44  ;;  %v1614_v48 = vadd.f32 %v1613_v10, %v1325_v45  ;;  %v1634_v58 = vpop.f32.mrf.mxu1 }
 0x148   : > { %v1327_v51 = vpop.f32.mrf.mxu0 }
 0x149   : > { %2146 = vst.msk [vmem:[%s3110_s29 + $0x34] sm:$0xf] %vm2132_vm1, %v2531_v49  ;;  %v1826_v52 = vmax.f32 %v1614_v48, 0.0  ;;  %v1328_v53 = vadd.f32 %v3091_v18, %v1327_v51  ;;  %v1637_v62 = vpop.f32.mrf.mxu1 }
 0x14a   : > { %v1329_v55 = vpop.f32.mrf.mxu0 }
 0x14b   : > { %v2532_v56 = vpack.c.bf16 %v1826_v52, %v1826_v52  ;;  %v1617_v57 = vadd.f32 %v1616_v21, %v1328_v53  ;;  %v1639_v2 = vpop.f32.mrf.mxu1 }
 0x14c   : > { %v1332_v59 = vpop.f32.mrf.mxu0 }
 0x14d   : > { %2147 = vst.msk [vmem:[%s3110_s29 + $0x38] sm:$0xf] %vm2132_vm1, %v2532_v56  ;;  %v1827_v60 = vmax.f32 %v1617_v57, 0.0  ;;  %v1333_v61 = vadd.f32 %v3091_v18, %v1332_v59  ;;  %v1640_v6 = vpop.f32.mrf.mxu1 }
 0x14e   : > { %v1334_v63 = vpop.f32.mrf.mxu0 }
 0x14f   : > { %v2533_v0 = vpack.c.bf16 %v1827_v60, %v1827_v60  ;;  %v1622_v1 = vadd.f32 %v1621_v29, %v1333_v61  ;;  %v1642_v10 = vpop.f32.mrf.mxu1 }
 0x150   : > { %v1335_v3 = vpop.f32.mrf.mxu0 }
 0x151   : > { %2148 = vst.msk [vmem:[%s3110_s29 + $0x3c] sm:$0xf] %vm2132_vm1, %v2533_v0  ;;  %v1828_v4 = vmax.f32 %v1622_v1, 0.0  ;;  %v1336_v5 = vadd.f32 %v3091_v18, %v1335_v3  ;;  %v1645_v14 = vpop.f32.mrf.mxu1 }
 0x152   : > { %v1337_v7 = vpop.f32.mrf.mxu0 }
 0x153   : > { %v2534_v8 = vpack.c.bf16 %v1828_v4, %v1828_v4  ;;  %v1625_v9 = vadd.f32 %v1624_v38, %v1336_v5  ;;  %v1647_v19 = vpop.f32.mrf.mxu1 }
 0x154   : > { %v1340_v11 = vpop.f32.mrf.mxu0 }
 0x155   : > { %2149 = vst.msk [vmem:[%s3110_s29 + $0x40] sm:$0xf] %vm2132_vm1, %v2534_v8  ;;  %v1829_v12 = vmax.f32 %v1625_v9, 0.0  ;;  %v1341_v13 = vadd.f32 %v3091_v18, %v1340_v11  ;;  %v1648_v23 = vpop.f32.mrf.mxu1 }
 0x156   : > { %v1342_v15 = vpop.f32.mrf.mxu0 }
 0x157   : > { %v2535_v16 = vpack.c.bf16 %v1829_v12, %v1829_v12  ;;  %v1630_v17 = vadd.f32 %v1629_v46, %v1341_v13  ;;  %v1650_v25 = vpop.f32.mrf.mxu1 }
 0x158   : > { %v1343_v20 = vpop.f32.mrf.mxu0 }
 0x159   : > { %2150 = vst.msk [vmem:[%s3110_s29 + $0x44] sm:$0xf] %vm2132_vm1, %v2535_v16  ;;  %v1830_v21 = vmax.f32 %v1630_v17, 0.0  ;;  %v1344_v22 = vadd.f32 %v3091_v18, %v1343_v20  ;;  %v1653_v31 = vpop.f32.mrf.mxu1 }
 0x15a   : > { %v1345_v24 = vpop.f32.mrf.mxu0 }
 0x15b   : > { %v2536_v26 = vpack.c.bf16 %v1830_v21, %v1830_v21  ;;  %v1633_v27 = vadd.f32 %v1632_v54, %v1344_v22  ;;  %v1655_v35 = vpop.f32.mrf.mxu1 }
 0x15c   : > { %v1348_v28 = vpop.f32.mrf.mxu0 }
 0x15d   : > { %2151 = vst.msk [vmem:[%s3110_s29 + $0x48] sm:$0xf] %vm2132_vm1, %v2536_v26  ;;  %v1831_v29 = vmax.f32 %v1633_v27, 0.0  ;;  %v1349_v30 = vadd.f32 %v3091_v18, %v1348_v28  ;;  %v1656_v39 = vpop.f32.mrf.mxu1 }
 0x15e   : > { %v1350_v32 = vpop.f32.mrf.mxu0 }
 0x15f   : > { %v2537_v33 = vpack.c.bf16 %v1831_v29, %v1831_v29  ;;  %v1638_v34 = vadd.f32 %v1637_v62, %v1349_v30  ;;  %v1658_v43 = vpop.f32.mrf.mxu1 }
 0x160   : > { %v1351_v36 = vpop.f32.mrf.mxu0 }
 0x161   : > { %2152 = vst.msk [vmem:[%s3110_s29 + $0x4c] sm:$0xf] %vm2132_vm1, %v2537_v33  ;;  %v1832_v37 = vmax.f32 %v1638_v34, 0.0  ;;  %v1352_v38 = vadd.f32 %v3091_v18, %v1351_v36  ;;  %v1661_v47 = vpop.f32.mrf.mxu1 }
 0x162   : > { %v1353_v40 = vpop.f32.mrf.mxu0 }
 0x163   : > { %v2538_v41 = vpack.c.bf16 %v1832_v37, %v1832_v37  ;;  %v1641_v42 = vadd.f32 %v1640_v6, %v1352_v38  ;;  %v1663_v51 = vpop.f32.mrf.mxu1 }
 0x164   : > { %v1356_v44 = vpop.f32.mrf.mxu0 }
 0x165   : > { %2153 = vst.msk [vmem:[%s3110_s29 + $0x50] sm:$0xf] %vm2132_vm1, %v2538_v41  ;;  %v1833_v45 = vmax.f32 %v1641_v42, 0.0  ;;  %v1357_v46 = vadd.f32 %v3091_v18, %v1356_v44  ;;  %v1664_v55 = vpop.f32.mrf.mxu1 }
 0x166   : > { %v1358_v49 = vpop.f32.mrf.mxu0 }
 0x167   : > { %v2539_v48 = vpack.c.bf16 %v1833_v45, %v1833_v45  ;;  %v1646_v50 = vadd.f32 %v1645_v14, %v1357_v46  ;;  %v1666_v59 = vpop.f32.mrf.mxu1 }
 0x168   : > { %v1359_v52 = vpop.f32.mrf.mxu0 }
 0x169   : > { %2154 = vst.msk [vmem:[%s3110_s29 + $0x54] sm:$0xf] %vm2132_vm1, %v2539_v48  ;;  %v1834_v53 = vmax.f32 %v1646_v50, 0.0  ;;  %v1360_v54 = vadd.f32 %v3091_v18, %v1359_v52  ;;  %v1669_v63 = vpop.f32.mrf.mxu1 }
 0x16a   : > { %v1361_v56 = vpop.f32.mrf.mxu0 }
 0x16b   : > { %v2540_v57 = vpack.c.bf16 %v1834_v53, %v1834_v53  ;;  %v1649_v58 = vadd.f32 %v1648_v23, %v1360_v54  ;;  %v1671_v3 = vpop.f32.mrf.mxu1 }
 0x16c   : > { %v1364_v60 = vpop.f32.mrf.mxu0 }
 0x16d   : > { %2155 = vst.msk [vmem:[%s3110_s29 + $0x58] sm:$0xf] %vm2132_vm1, %v2540_v57  ;;  %v1835_v61 = vmax.f32 %v1649_v58, 0.0  ;;  %v1365_v62 = vadd.f32 %v3091_v18, %v1364_v60  ;;  %v1672_v7 = vpop.f32.mrf.mxu1 }
 0x16e   : > { %v1366_v0 = vpop.f32.mrf.mxu0 }
 0x16f   : > { %v2541_v1 = vpack.c.bf16 %v1835_v61, %v1835_v61  ;;  %v1654_v2 = vadd.f32 %v1653_v31, %v1365_v62  ;;  %v1674_v11 = vpop.f32.mrf.mxu1 }
 0x170   : > { %v1367_v4 = vpop.f32.mrf.mxu0 }
 0x171   : > { %2156 = vst.msk [vmem:[%s3110_s29 + $0x5c] sm:$0xf] %vm2132_vm1, %v2541_v1  ;;  %v1836_v5 = vmax.f32 %v1654_v2, 0.0  ;;  %v1368_v6 = vadd.f32 %v3091_v18, %v1367_v4  ;;  %v1677_v15 = vpop.f32.mrf.mxu1 }
 0x172   : > { %v1369_v8 = vpop.f32.mrf.mxu0 }
 0x173   : > { %v2542_v9 = vpack.c.bf16 %v1836_v5, %v1836_v5  ;;  %v1657_v10 = vadd.f32 %v1656_v39, %v1368_v6  ;;  %v1679_v20 = vpop.f32.mrf.mxu1 }
 0x174   : > { %v1372_v12 = vpop.f32.mrf.mxu0 }
 0x175   : > { %2157 = vst.msk [vmem:[%s3110_s29 + $0x60] sm:$0xf] %vm2132_vm1, %v2542_v9  ;;  %v1837_v13 = vmax.f32 %v1657_v10, 0.0  ;;  %v1373_v14 = vadd.f32 %v3091_v18, %v1372_v12  ;;  %v1680_v24 = vpop.f32.mrf.mxu1 }
 0x176   : > { %v1374_v16 = vpop.f32.mrf.mxu0 }
 0x177   : > { %v2543_v17 = vpack.c.bf16 %v1837_v13, %v1837_v13  ;;  %v1662_v19 = vadd.f32 %v1661_v47, %v1373_v14  ;;  %v1682_v28 = vpop.f32.mrf.mxu1 }
 0x178   : > { %v1375_v21 = vpop.f32.mrf.mxu0 }
 0x179   : > { %2158 = vst.msk [vmem:[%s3110_s29 + $0x64] sm:$0xf] %vm2132_vm1, %v2543_v17  ;;  %v1838_v22 = vmax.f32 %v1662_v19, 0.0  ;;  %v1376_v23 = vadd.f32 %v3091_v18, %v1375_v21  ;;  %v1685_v32 = vpop.f32.mrf.mxu1 }
 0x17a   : > { %v1377_v26 = vpop.f32.mrf.mxu0 }
 0x17b   : > { %v2544_v27 = vpack.c.bf16 %v1838_v22, %v1838_v22  ;;  %v1665_v25 = vadd.f32 %v1664_v55, %v1376_v23  ;;  %v1687_v36 = vpop.f32.mrf.mxu1 }
 0x17c   : > { %v1380_v29 = vpop.f32.mrf.mxu0 }
 0x17d   : > { %2159 = vst.msk [vmem:[%s3110_s29 + $0x68] sm:$0xf] %vm2132_vm1, %v2544_v27  ;;  %v1839_v30 = vmax.f32 %v1665_v25, 0.0  ;;  %v1381_v31 = vadd.f32 %v3091_v18, %v1380_v29  ;;  %v1688_v40 = vpop.f32.mrf.mxu1 }
 0x17e   : > { %v1382_v33 = vpop.f32.mrf.mxu0 }
 0x17f   : > { %v2545_v34 = vpack.c.bf16 %v1839_v30, %v1839_v30  ;;  %v1670_v35 = vadd.f32 %v1669_v63, %v1381_v31  ;;  %v1690_v44 = vpop.f32.mrf.mxu1 }
 0x180   : > { %v1383_v37 = vpop.f32.mrf.mxu0 }
 0x181   : > { %2160 = vst.msk [vmem:[%s3110_s29 + $0x6c] sm:$0xf] %vm2132_vm1, %v2545_v34  ;;  %v1840_v38 = vmax.f32 %v1670_v35, 0.0  ;;  %v1384_v39 = vadd.f32 %v3091_v18, %v1383_v37  ;;  %v1693_v49 = vpop.f32.mrf.mxu1 }
 0x182   : > { %v1385_v41 = vpop.f32.mrf.mxu0 }
 0x183   : > { %v2546_v42 = vpack.c.bf16 %v1840_v38, %v1840_v38  ;;  %v1673_v43 = vadd.f32 %v1672_v7, %v1384_v39  ;;  %v1695_v52 = vpop.f32.mrf.mxu1 }
 0x184   : > { %v1388_v45 = vpop.f32.mrf.mxu0 }
 0x185   : > { %2161 = vst.msk [vmem:[%s3110_s29 + $0x70] sm:$0xf] %vm2132_vm1, %v2546_v42  ;;  %v1841_v46 = vmax.f32 %v1673_v43, 0.0  ;;  %v1389_v47 = vadd.f32 %v3091_v18, %v1388_v45  ;;  %v1696_v56 = vpop.f32.mrf.mxu1 }
 0x186   : > { %v1390_v48 = vpop.f32.mrf.mxu0 }
 0x187   : > { %v2547_v50 = vpack.c.bf16 %v1841_v46, %v1841_v46  ;;  %v1678_v51 = vadd.f32 %v1677_v15, %v1389_v47  ;;  %v1698_v60 = vpop.f32.mrf.mxu1 }
 0x188   : > { %v1391_v53 = vpop.f32.mrf.mxu0 }
 0x189   : > { %2162 = vst.msk [vmem:[%s3110_s29 + $0x74] sm:$0xf] %vm2132_vm1, %v2547_v50  ;;  %v1842_v54 = vmax.f32 %v1678_v51, 0.0  ;;  %v1392_v55 = vadd.f32 %v3091_v18, %v1391_v53  ;;  %v1701_v0 = vpop.f32.mrf.mxu1 }
 0x18a   : > { %v1393_v57 = vpop.f32.mrf.mxu0 }
 0x18b   : > { %v2548_v58 = vpack.c.bf16 %v1842_v54, %v1842_v54  ;;  %v1681_v59 = vadd.f32 %v1680_v24, %v1392_v55  ;;  %v1703_v4 = vpop.f32.mrf.mxu1 }
 0x18c   : > { %v1396_v61 = vpop.f32.mrf.mxu0 }
 0x18d   : > { %2163 = vst.msk [vmem:[%s3110_s29 + $0x78] sm:$0xf] %vm2132_vm1, %v2548_v58  ;;  %v1843_v62 = vmax.f32 %v1681_v59, 0.0  ;;  %v1397_v63 = vadd.f32 %v3091_v18, %v1396_v61  ;;  %v1704_v8 = vpop.f32.mrf.mxu1 }
 0x18e   : > { %v1398_v1 = vpop.f32.mrf.mxu0 }
 0x18f   : > { %v2549_v2 = vpack.c.bf16 %v1843_v62, %v1843_v62  ;;  %v1686_v3 = vadd.f32 %v1685_v32, %v1397_v63  ;;  %v1706_v12 = vpop.f32.mrf.mxu1 }
 0x190   : > { %v1399_v5 = vpop.f32.mrf.mxu0 }
 0x191   : > { %2164 = vst.msk [vmem:[%s3110_s29 + $0x7c] sm:$0xf] %vm2132_vm1, %v2549_v2  ;;  %v1844_v6 = vmax.f32 %v1686_v3, 0.0  ;;  %v1400_v7 = vadd.f32 %v3091_v18, %v1399_v5  ;;  %v1709_v16 = vpop.f32.mrf.mxu1 }
 0x192   : > { %v1401_v9 = vpop.f32.mrf.mxu0 }
 0x193   : > { %v2550_v10 = vpack.c.bf16 %v1844_v6, %v1844_v6  ;;  %v1689_v11 = vadd.f32 %v1688_v40, %v1400_v7  ;;  %v1711_v21 = vpop.f32.mrf.mxu1 }
 0x194   : > { %v1404_v13 = vpop.f32.mrf.mxu0 }
 0x195   : > { %2165 = vst.msk [vmem:[%s3110_s29 + $0x80] sm:$0xf] %vm2132_vm1, %v2550_v10  ;;  %v1845_v14 = vmax.f32 %v1689_v11, 0.0  ;;  %v1405_v15 = vadd.f32 %v3091_v18, %v1404_v13  ;;  %v1712_v26 = vpop.f32.mrf.mxu1 }
 0x196   : > { %v1406_v17 = vpop.f32.mrf.mxu0 }
 0x197   : > { %v2551_v19 = vpack.c.bf16 %v1845_v14, %v1845_v14  ;;  %v1694_v20 = vadd.f32 %v1693_v49, %v1405_v15  ;;  %v1714_v29 = vpop.f32.mrf.mxu1 }
 0x198   : > { %v1407_v22 = vpop.f32.mrf.mxu0 }
 0x199   : > { %2166 = vst.msk [vmem:[%s3110_s29 + $0x84] sm:$0xf] %vm2132_vm1, %v2551_v19  ;;  %v1846_v23 = vmax.f32 %v1694_v20, 0.0  ;;  %v1408_v24 = vadd.f32 %v3091_v18, %v1407_v22  ;;  %v1717_v33 = vpop.f32.mrf.mxu1 }
 0x19a   : > { %v1409_v27 = vpop.f32.mrf.mxu0 }
 0x19b   : > { %v2552_v25 = vpack.c.bf16 %v1846_v23, %v1846_v23  ;;  %v1697_v28 = vadd.f32 %v1696_v56, %v1408_v24  ;;  %v1719_v37 = vpop.f32.mrf.mxu1 }
 0x19c   : > { %v1412_v30 = vpop.f32.mrf.mxu0 }
 0x19d   : > { %2167 = vst.msk [vmem:[%s3110_s29 + $0x88] sm:$0xf] %vm2132_vm1, %v2552_v25  ;;  %v1847_v31 = vmax.f32 %v1697_v28, 0.0  ;;  %v1413_v32 = vadd.f32 %v3091_v18, %v1412_v30  ;;  %v1720_v41 = vpop.f32.mrf.mxu1 }
 0x19e   : > { %v1414_v34 = vpop.f32.mrf.mxu0 }
 0x19f   : > { %v2553_v35 = vpack.c.bf16 %v1847_v31, %v1847_v31  ;;  %v1702_v36 = vadd.f32 %v1701_v0, %v1413_v32  ;;  %v1722_v45 = vpop.f32.mrf.mxu1 }
 0x1a0   : > { %v1415_v38 = vpop.f32.mrf.mxu0 }
 0x1a1   : > { %2168 = vst.msk [vmem:[%s3110_s29 + $0x8c] sm:$0xf] %vm2132_vm1, %v2553_v35  ;;  %v1848_v39 = vmax.f32 %v1702_v36, 0.0  ;;  %v1416_v40 = vadd.f32 %v3091_v18, %v1415_v38  ;;  %v1725_v48 = vpop.f32.mrf.mxu1 }
 0x1a2   : > { %v1417_v42 = vpop.f32.mrf.mxu0 }
 0x1a3   : > { %v2554_v43 = vpack.c.bf16 %v1848_v39, %v1848_v39  ;;  %v1705_v44 = vadd.f32 %v1704_v8, %v1416_v40  ;;  %v1727_v53 = vpop.f32.mrf.mxu1 }
 0x1a4   : > { %v1420_v46 = vpop.f32.mrf.mxu0 }
 0x1a5   : > { %2169 = vst.msk [vmem:[%s3110_s29 + $0x90] sm:$0xf] %vm2132_vm1, %v2554_v43  ;;  %v1849_v47 = vmax.f32 %v1705_v44, 0.0  ;;  %v1421_v49 = vadd.f32 %v3091_v18, %v1420_v46  ;;  %v1728_v57 = vpop.f32.mrf.mxu1 }
 0x1a6   : > { %v1422_v50 = vpop.f32.mrf.mxu0 }
 0x1a7   : > { %v2555_v51 = vpack.c.bf16 %v1849_v47, %v1849_v47  ;;  %v1710_v52 = vadd.f32 %v1709_v16, %v1421_v49  ;;  %v1730_v61 = vpop.f32.mrf.mxu1 }
 0x1a8   : > { %v1423_v54 = vpop.f32.mrf.mxu0 }
 0x1a9   : > { %2170 = vst.msk [vmem:[%s3110_s29 + $0x94] sm:$0xf] %vm2132_vm1, %v2555_v51  ;;  %v1850_v55 = vmax.f32 %v1710_v52, 0.0  ;;  %v1424_v56 = vadd.f32 %v3091_v18, %v1423_v54  ;;  %v1733_v1 = vpop.f32.mrf.mxu1 }
 0x1aa   : > { %v1425_v58 = vpop.f32.mrf.mxu0 }
 0x1ab   : > { %v2556_v59 = vpack.c.bf16 %v1850_v55, %v1850_v55  ;;  %v1713_v60 = vadd.f32 %v1712_v26, %v1424_v56  ;;  %v1735_v5 = vpop.f32.mrf.mxu1 }
 0x1ac   : > { %v1428_v62 = vpop.f32.mrf.mxu0 }
 0x1ad   : > { %2171 = vst.msk [vmem:[%s3110_s29 + $0x98] sm:$0xf] %vm2132_vm1, %v2556_v59  ;;  %v1851_v63 = vmax.f32 %v1713_v60, 0.0  ;;  %v1429_v0 = vadd.f32 %v3091_v18, %v1428_v62  ;;  %v1736_v9 = vpop.f32.mrf.mxu1 }
 0x1ae   : > { %v1430_v2 = vpop.f32.mrf.mxu0 }
 0x1af   : > { %v2557_v3 = vpack.c.bf16 %v1851_v63, %v1851_v63  ;;  %v1718_v4 = vadd.f32 %v1717_v33, %v1429_v0  ;;  %v1738_v13 = vpop.f32.mrf.mxu1 }
 0x1b0   : > { %v1431_v6 = vpop.f32.mrf.mxu0 }
 0x1b1   : > { %2172 = vst.msk [vmem:[%s3110_s29 + $0x9c] sm:$0xf] %vm2132_vm1, %v2557_v3  ;;  %v1852_v7 = vmax.f32 %v1718_v4, 0.0  ;;  %v1432_v8 = vadd.f32 %v3091_v18, %v1431_v6  ;;  %v1741_v17 = vpop.f32.mrf.mxu1 }
 0x1b2   : > { %v1433_v10 = vpop.f32.mrf.mxu0 }
 0x1b3   : > { %v2558_v11 = vpack.c.bf16 %v1852_v7, %v1852_v7  ;;  %v1721_v12 = vadd.f32 %v1720_v41, %v1432_v8  ;;  %v1743_v22 = vpop.f32.mrf.mxu1 }
 0x1b4   : > { %v1436_v14 = vpop.f32.mrf.mxu0 }
 0x1b5   : > { %2173 = vst.msk [vmem:[%s3110_s29 + $0xa0] sm:$0xf] %vm2132_vm1, %v2558_v11  ;;  %v1853_v15 = vmax.f32 %v1721_v12, 0.0  ;;  %v1437_v16 = vadd.f32 %v3091_v18, %v1436_v14  ;;  %v1744_v27 = vpop.f32.mrf.mxu1 }
 0x1b6   : > { %v1438_v19 = vpop.f32.mrf.mxu0 }
 0x1b7   : > { %v2559_v20 = vpack.c.bf16 %v1853_v15, %v1853_v15  ;;  %v1726_v21 = vadd.f32 %v1725_v48, %v1437_v16  ;;  %v1746_v30 = vpop.f32.mrf.mxu1 }
 0x1b8   : > { %v1439_v23 = vpop.f32.mrf.mxu0 }
 0x1b9   : > { %2174 = vst.msk [vmem:[%s3110_s29 + $0xa4] sm:$0xf] %vm2132_vm1, %v2559_v20  ;;  %v1854_v24 = vmax.f32 %v1726_v21, 0.0  ;;  %v1440_v26 = vadd.f32 %v3091_v18, %v1439_v23  ;;  %v1749_v34 = vpop.f32.mrf.mxu1 }
 0x1ba   : > { %v1441_v25 = vpop.f32.mrf.mxu0 }
 0x1bb   : > { %v2560_v28 = vpack.c.bf16 %v1854_v24, %v1854_v24  ;;  %v1729_v29 = vadd.f32 %v1728_v57, %v1440_v26  ;;  %v1751_v38 = vpop.f32.mrf.mxu1 }
 0x1bc   : > { %v1444_v31 = vpop.f32.mrf.mxu0 }
 0x1bd   : > { %2175 = vst.msk [vmem:[%s3110_s29 + $0xa8] sm:$0xf] %vm2132_vm1, %v2560_v28  ;;  %v1855_v32 = vmax.f32 %v1729_v29, 0.0  ;;  %v1445_v33 = vadd.f32 %v3091_v18, %v1444_v31  ;;  %v1752_v42 = vpop.f32.mrf.mxu1 }
 0x1be   : > { %v1446_v35 = vpop.f32.mrf.mxu0 }
 0x1bf   : > { %v2561_v36 = vpack.c.bf16 %v1855_v32, %v1855_v32  ;;  %v1734_v37 = vadd.f32 %v1733_v1, %v1445_v33  ;;  %v1754_v46 = vpop.f32.mrf.mxu1 }
 0x1c0   : > { %v1447_v39 = vpop.f32.mrf.mxu0 }
 0x1c1   : > { %2176 = vst.msk [vmem:[%s3110_s29 + $0xac] sm:$0xf] %vm2132_vm1, %v2561_v36  ;;  %v1856_v40 = vmax.f32 %v1734_v37, 0.0  ;;  %v1448_v41 = vadd.f32 %v3091_v18, %v1447_v39  ;;  %v1757_v50 = vpop.f32.mrf.mxu1 }
 0x1c2   : > { %v1449_v43 = vpop.f32.mrf.mxu0 }
 0x1c3   : > { %v2562_v44 = vpack.c.bf16 %v1856_v40, %v1856_v40  ;;  %v1737_v45 = vadd.f32 %v1736_v9, %v1448_v41  ;;  %v1759_v54 = vpop.f32.mrf.mxu1 }
 0x1c4   : > { %v1452_v47 = vpop.f32.mrf.mxu0 }
 0x1c5   : > { %2177 = vst.msk [vmem:[%s3110_s29 + $0xb0] sm:$0xf] %vm2132_vm1, %v2562_v44  ;;  %v1857_v49 = vmax.f32 %v1737_v45, 0.0  ;;  %v1453_v48 = vadd.f32 %v3091_v18, %v1452_v47  ;;  %v1760_v58 = vpop.f32.mrf.mxu1 }
 0x1c6   : > { %v1454_v51 = vpop.f32.mrf.mxu0 }
 0x1c7   : > { %v2563_v52 = vpack.c.bf16 %v1857_v49, %v1857_v49  ;;  %v1742_v53 = vadd.f32 %v1741_v17, %v1453_v48  ;;  %v1762_v62 = vpop.f32.mrf.mxu1  ;;  %v3301_v17 = vld [vmem:[%s3352_s2] ss:$0 sm:$0xff] }
 0x1c8   : > { %v1455_v55 = vpop.f32.mrf.mxu0 }
 0x1c9   : > { %2178 = vst.msk [vmem:[%s3110_s29 + $0xb4] sm:$0xf] %vm2132_vm1, %v2563_v52  ;;  %v1858_v56 = vmax.f32 %v1742_v53, 0.0  ;;  %v1456_v57 = vadd.f32 %v3091_v18, %v1455_v55  ;;  %v1765_v2 = vpop.f32.mrf.mxu1 }
 0x1ca   : > { %v1457_v59 = vpop.f32.mrf.mxu0 }
 0x1cb   : > { %v2564_v60 = vpack.c.bf16 %v1858_v56, %v1858_v56  ;;  %v1745_v61 = vadd.f32 %v1744_v27, %v1456_v57  ;;  %v1767_v6 = vpop.f32.mrf.mxu1 }
 0x1cc   : > { %v1460_v63 = vpop.f32.mrf.mxu0 }
 0x1cd   : > { %2179 = vst.msk [vmem:[%s3110_s29 + $0xb8] sm:$0xf] %vm2132_vm1, %v2564_v60  ;;  %v1859_v0 = vmax.f32 %v1745_v61, 0.0  ;;  %v1461_v1 = vadd.f32 %v3091_v18, %v1460_v63  ;;  %v1768_v10 = vpop.f32.mrf.mxu1 }
 0x1ce   : > { %v1462_v3 = vpop.f32.mrf.mxu0 }
 0x1cf   : > { %v2565_v4 = vpack.c.bf16 %v1859_v0, %v1859_v0  ;;  %v1750_v5 = vadd.f32 %v1749_v34, %v1461_v1  ;;  %v1770_v14 = vpop.f32.mrf.mxu1 }
 0x1d0   : > { %v1463_v7 = vpop.f32.mrf.mxu0 }
 0x1d1   : > { %2180 = vst.msk [vmem:[%s3110_s29 + $0xbc] sm:$0xf] %vm2132_vm1, %v2565_v4  ;;  %v1860_v8 = vmax.f32 %v1750_v5, 0.0  ;;  %v1464_v9 = vadd.f32 %v3091_v18, %v1463_v7  ;;  %v1773_v20 = vpop.f32.mrf.mxu1 }
 0x1d2   : > { %v1465_v11 = vpop.f32.mrf.mxu0 }
 0x1d3   : > { %v2566_v12 = vpack.c.bf16 %v1860_v8, %v1860_v8  ;;  %v1753_v13 = vadd.f32 %v1752_v42, %v1464_v9  ;;  %v1775_v23 = vpop.f32.mrf.mxu1 }
 0x1d4   : > { %v1468_v15 = vpop.f32.mrf.mxu0 }
 0x1d5   : > { %2181 = vst.msk [vmem:[%s3110_s29 + $0xc0] sm:$0xf] %vm2132_vm1, %v2566_v12  ;;  %v1861_v16 = vmax.f32 %v1753_v13, 0.0  ;;  %v1469_v19 = vadd.f32 %v3301_v17, %v1468_v15  ;;  %v1776_v25 = vpop.f32.mrf.mxu1 }
 0x1d6   : > { %v1470_v18 = vpop.f32.mrf.mxu0 }
 0x1d7   : > { %v2567_v21 = vpack.c.bf16 %v1861_v16, %v1861_v16  ;;  %v1758_v22 = vadd.f32 %v1757_v50, %v1469_v19  ;;  %v1778_v31 = vpop.f32.mrf.mxu1 }
 0x1d8   : > { %v1471_v24 = vpop.f32.mrf.mxu0 }
 0x1d9   : > { %2182 = vst.msk [vmem:[%s3110_s29 + $0xc4] sm:$0xf] %vm2132_vm1, %v2567_v21  ;;  %v1862_v26 = vmax.f32 %v1758_v22, 0.0  ;;  %v1472_v27 = vadd.f32 %v3301_v17, %v1471_v24  ;;  %v1781_v35 = vpop.f32.mrf.mxu1 }
 0x1da   : > { %v1473_v28 = vpop.f32.mrf.mxu0 }
 0x1db   : > { %v2568_v29 = vpack.c.bf16 %v1862_v26, %v1862_v26  ;;  %v1761_v30 = vadd.f32 %v1760_v58, %v1472_v27  ;;  %v1783_v39 = vpop.f32.mrf.mxu1 }
 0x1dc   : > { %v1476_v32 = vpop.f32.mrf.mxu0 }
 0x1dd   : > { %2183 = vst.msk [vmem:[%s3110_s29 + $0xc8] sm:$0xf] %vm2132_vm1, %v2568_v29  ;;  %v1863_v33 = vmax.f32 %v1761_v30, 0.0  ;;  %v1477_v34 = vadd.f32 %v3301_v17, %v1476_v32  ;;  %v1784_v43 = vpop.f32.mrf.mxu1 }
 0x1de   : > { %v1478_v36 = vpop.f32.mrf.mxu0 }
 0x1df   : > { %v2569_v37 = vpack.c.bf16 %v1863_v33, %v1863_v33  ;;  %v1766_v38 = vadd.f32 %v1765_v2, %v1477_v34  ;;  %v1786_v47 = vpop.f32.mrf.mxu1 }
 0x1e0   : > { %v1479_v40 = vpop.f32.mrf.mxu0 }
 0x1e1   : > { %2184 = vst.msk [vmem:[%s3110_s29 + $0xcc] sm:$0xf] %vm2132_vm1, %v2569_v37  ;;  %v1864_v41 = vmax.f32 %v1766_v38, 0.0  ;;  %v1480_v42 = vadd.f32 %v3301_v17, %v1479_v40  ;;  %v1789_v51 = vpop.f32.mrf.mxu1 }
 0x1e2   : > { %v1481_v44 = vpop.f32.mrf.mxu0 }
 0x1e3   : > { %v2570_v45 = vpack.c.bf16 %v1864_v41, %v1864_v41  ;;  %v1769_v46 = vadd.f32 %v1768_v10, %v1480_v42  ;;  %v1791_v55 = vpop.f32.mrf.mxu1 }
 0x1e4   : > { %v1484_v49 = vpop.f32.mrf.mxu0 }
 0x1e5   : > { %2185 = vst.msk [vmem:[%s3110_s29 + $0xd0] sm:$0xf] %vm2132_vm1, %v2570_v45  ;;  %v1865_v48 = vmax.f32 %v1769_v46, 0.0  ;;  %v1485_v50 = vadd.f32 %v3301_v17, %v1484_v49  ;;  %v1792_v59 = vpop.f32.mrf.mxu1 }
 0x1e6   : > { %v1486_v52 = vpop.f32.mrf.mxu0 }
 0x1e7   : > { %v2571_v53 = vpack.c.bf16 %v1865_v48, %v1865_v48  ;;  %v1774_v54 = vadd.f32 %v1773_v20, %v1485_v50  ;;  %v1794_v63 = vpop.f32.mrf.mxu1 }
 0x1e8   : > { %v1487_v56 = vpop.f32.mrf.mxu0 }
 0x1e9   : > { %2186 = vst.msk [vmem:[%s3110_s29 + $0xd4] sm:$0xf] %vm2132_vm1, %v2571_v53  ;;  %v1866_v57 = vmax.f32 %v1774_v54, 0.0  ;;  %v1488_v58 = vadd.f32 %v3301_v17, %v1487_v56  ;;  %v1797_v3 = vpop.f32.mrf.mxu1 }
 0x1ea   : > { %v1489_v60 = vpop.f32.mrf.mxu0 }
 0x1eb   : > { %v2572_v61 = vpack.c.bf16 %v1866_v57, %v1866_v57  ;;  %v1777_v62 = vadd.f32 %v1776_v25, %v1488_v58  ;;  %v1799_v7 = vpop.f32.mrf.mxu1 }
 0x1ec   : > { %v1492_v0 = vpop.f32.mrf.mxu0 }
 0x1ed   : > { %2187 = vst.msk [vmem:[%s3110_s29 + $0xd8] sm:$0xf] %vm2132_vm1, %v2572_v61  ;;  %v1867_v1 = vmax.f32 %v1777_v62, 0.0  ;;  %v1493_v2 = vadd.f32 %v3301_v17, %v1492_v0  ;;  %v1800_v11 = vpop.f32.mrf.mxu1 }
 0x1ee   : > { %v1494_v4 = vpop.f32.mrf.mxu0 }
 0x1ef   : > { %v2573_v5 = vpack.c.bf16 %v1867_v1, %v1867_v1  ;;  %v1782_v6 = vadd.f32 %v1781_v35, %v1493_v2  ;;  %v1802_v15 = vpop.f32.mrf.mxu1 }
 0x1f0   : > { %v1495_v8 = vpop.f32.mrf.mxu0 }
 0x1f1   : > { %2188 = vst.msk [vmem:[%s3110_s29 + $0xdc] sm:$0xf] %vm2132_vm1, %v2573_v5  ;;  %v1868_v9 = vmax.f32 %v1782_v6, 0.0  ;;  %v1496_v10 = vadd.f32 %v3301_v17, %v1495_v8  ;;  %v1805_v18 = vpop.f32.mrf.mxu1 }
 0x1f2   : > { %v1497_v12 = vpop.f32.mrf.mxu0 }
 0x1f3   : > { %v2574_v13 = vpack.c.bf16 %v1868_v9, %v1868_v9  ;;  %v1785_v14 = vadd.f32 %v1784_v43, %v1496_v10  ;;  %v1807_v24 = vpop.f32.mrf.mxu1 }
 0x1f4   : > { %v1500_v16 = vpop.f32.mrf.mxu0 }
 0x1f5   : > { %2189 = vst.msk [vmem:[%s3110_s29 + $0xe0] sm:$0xf] %vm2132_vm1, %v2574_v13  ;;  %v1869_v19 = vmax.f32 %v1785_v14, 0.0  ;;  %v1501_v20 = vadd.f32 %v3301_v17, %v1500_v16  ;;  %v1808_v28 = vpop.f32.mrf.mxu1 }
 0x1f6   : > { %v1502_v21 = vpop.f32.mrf.mxu0 }
 0x1f7   : > { %v2575_v22 = vpack.c.bf16 %v1869_v19, %v1869_v19  ;;  %v1790_v23 = vadd.f32 %v1789_v51, %v1501_v20  ;;  %v1810_v32 = vpop.f32.mrf.mxu1 }
 0x1f8   : > { %v1503_v26 = vpop.f32.mrf.mxu0 }
 0x1f9   : > { %2190 = vst.msk [vmem:[%s3110_s29 + $0xe4] sm:$0xf] %vm2132_vm1, %v2575_v22  ;;  %v1870_v27 = vmax.f32 %v1790_v23, 0.0  ;;  %v1504_v25 = vadd.f32 %v3301_v17, %v1503_v26 }
 0x1fa   : > { %v1505_v29 = vpop.f32.mrf.mxu0 }
 0x1fb   : > { %v2576_v30 = vpack.c.bf16 %v1870_v27, %v1870_v27  ;;  %v1793_v31 = vadd.f32 %v1792_v59, %v1504_v25 }
 0x1fc   : > { %v1508_v33 = vpop.f32.mrf.mxu0 }
 0x1fd   : > { %2191 = vst.msk [vmem:[%s3110_s29 + $0xe8] sm:$0xf] %vm2132_vm1, %v2576_v30  ;;  %v1871_v34 = vmax.f32 %v1793_v31, 0.0  ;;  %v1509_v35 = vadd.f32 %v3301_v17, %v1508_v33 }
 0x1fe   : > { %v1510_v36 = vpop.f32.mrf.mxu0 }
 0x1ff   : > { %v2577_v37 = vpack.c.bf16 %v1871_v34, %v1871_v34  ;;  %v1798_v38 = vadd.f32 %v1797_v3, %v1509_v35 }
 0x200   : > { %v1511_v39 = vpop.f32.mrf.mxu0 }
 0x201   : > { %2192 = vst.msk [vmem:[%s3110_s29 + $0xec] sm:$0xf] %vm2132_vm1, %v2577_v37  ;;  %v1872_v40 = vmax.f32 %v1798_v38, 0.0  ;;  %v1512_v41 = vadd.f32 %v3301_v17, %v1511_v39 }
 0x202   : > { %v1513_v42 = vpop.f32.mrf.mxu0 }
 0x203   : > { %v2578_v43 = vpack.c.bf16 %v1872_v40, %v1872_v40  ;;  %v1801_v44 = vadd.f32 %v1800_v11, %v1512_v41 }
 0x204   : > { %v1516_v45 = vpop.f32.mrf.mxu0 }
 0x205   : > { %2193 = vst.msk [vmem:[%s3110_s29 + $0xf0] sm:$0xf] %vm2132_vm1, %v2578_v43  ;;  %v1873_v46 = vmax.f32 %v1801_v44, 0.0  ;;  %v1517_v47 = vadd.f32 %v3301_v17, %v1516_v45 }
 0x206   : > { %v1518_v49 = vpop.f32.mrf.mxu0 }
 0x207   : > { %v2579_v48 = vpack.c.bf16 %v1873_v46, %v1873_v46  ;;  %v1806_v50 = vadd.f32 %v1805_v18, %v1517_v47 }
 0x208   : > { %v1519_v51 = vpop.f32.mrf.mxu0 }
 0x209   : > { %2194 = vst.msk [vmem:[%s3110_s29 + $0xf4] sm:$0xf] %vm2132_vm1, %v2579_v48  ;;  %v1874_v52 = vmax.f32 %v1806_v50, 0.0  ;;  %v1520_v53 = vadd.f32 %v3301_v17, %v1519_v51 }
 0x20a   : > { %v1521_v54 = vpop.f32.mrf.mxu0 }
 0x20b   : > { %v2580_v55 = vpack.c.bf16 %v1874_v52, %v1874_v52  ;;  %v1809_v56 = vadd.f32 %v1808_v28, %v1520_v53 }
 0x20d   : > { %2195 = vst.msk [vmem:[%s3110_s29 + $0xf8] sm:$0xf] %vm2132_vm1, %v2580_v55  ;;  %v1875_v57 = vmax.f32 %v1809_v56, 0.0 }
 0x20f   : > { %v2581_v58 = vpack.c.bf16 %v1875_v57, %v1875_v57 }
 0x211   : > { %2196 = vst.msk [vmem:[%s3110_s29 + $0xfc] sm:$0xf] %vm2132_vm1, %v2581_v58 }
 0x212 PF: > { %s13_s12 = sadd.s32 1, %s2806_s12  }
 0x213   : > { %p10_p4 = scmp.ge.s32.totalorder %s13_s12, 6  }
 0x215   :  { %12 = sbr.rel (!%p10_p4) target bundleno = 1 (0x1), region = 62 }

// kernel: _lambda_.15
= control target key start
LH: loop header
LB: loop body
LE: loop exit
PB: predicated region body
PF: predicated region fallthrough
CT: control target
= control target key end

     0   :  { %s4697_s12 = smov 0   ;;  %s5952_s0 = inlined_call_operand.vmem [shape: bf16[2048,864], index: 0, kind: input, shape index: {}]   ;;  %s5953_s1 = inlined_call_operand.vmem [shape: bf16[864,32], index: 1, kind: input, shape index: {}]   ;;  %s5954_s2 = inlined_call_operand.vmem [shape: f32[1,32], index: 2, kind: input, shape index: {}]   ;;  %s5955_s3 = inlined_call_operand.vmem [shape: bf16[2048,32], index: 3, kind: output, shape index: {}]  }
   0x1 LB: > { %s3687_s13 = sadd.s32 4294967295, %s4674_s12   ;;  %p3691_p0 = scmp.ge.s32.totalorder %s4674_s12, 1  ;;  %s4674_s12 = sphi %s4697_s12, %s13_s12  }
   0x2   : > { %p139_p1 = scmp.lt.s32.totalorder %s4674_s12, 5 }
   0x4   : > { %p140_p2 = pnand %p3691_p0, %p139_p1 }
   0x6   : > { %143 = sbr.rel (%p140_p2) target bundleno = 722 (0x2d2), region = 32 }
   0xb   : > { %v4293_v0 = vld [vmem:[%s5953_s1 + $0x38] sm:$0xff]   ;;  %v4676_v1 = vmov 0   ;;  %s3692_s16 = sshll.u32 %s3687_s13, 6  ;;  %v4294_v2 = vld [vmem:[%s5953_s1 + $0x30] sm:$0xff]   ;;  %v4295_v3 = vld [vmem:[%s5953_s1 + $0x28] sm:$0xff]   ;;  %vm1993_vm0 = vcmask 785408  }
   0xc   : > { %2090 = vmatprep.subr.bf16.mxu0 %v4676_v1  ;;  %4251 = vmatprep.subr.bf16.mxu1 %v4676_v1  ;;  %p165_p3 = scmp.lt.s32.totalorder %s3692_s16, 255  ;;  %v4296_v4 = vld [vmem:[%s5953_s1 + $0x20] sm:$0xff]   ;;  %v4297_v5 = vld [vmem:[%s5953_s1 + $0x18] sm:$0xff]   ;;  %v4298_v7 = vld [vmem:[%s5953_s1 + $0x10] sm:$0xff]   ;;  %vm3566_vm1 = vcmask 257024  }
   0xd   : > { %2091 = vmatpush1.bf16.msra.mxu0 %v4293_v0  ;;  %4267 = vmatpush1.bf16.msra.mxu1 %v4293_v0  ;;  %v4299_v9 = vld [vmem:[%s5953_s1 + $0x8] sm:$0xff]   ;;  %v4300_v10 = vld [vmem:[%s5953_s1] sm:$0xff]   ;;  %v4301_v11 = vld [vmem:[%s5953_s1 + $0x78] sm:$0xff]  }
   0xe   : > { %2092 = vmatprep.subr.bf16.mxu0 %v4676_v1  ;;  %4252 = vmatprep.subr.bf16.mxu1 %v4676_v1  ;;  %s6017_s16 = smov (!%p165_p3, %s3692_s16), 255  ;;  %v4302_v12 = vld [vmem:[%s5953_s1 + $0x70] sm:$0xff]   ;;  %v4303_v13 = vld [vmem:[%s5953_s1 + $0x68] sm:$0xff]   ;;  %v4304_v14 = vld [vmem:[%s5953_s1 + $0x60] sm:$0xff]  }
   0xf   : > { %s4283_s23 = smul.u32 28, %s6017_s16  ;;  %v4305_v15 = vld [vmem:[%s5953_s1 + $0x58] sm:$0xff]   ;;  %v4306_v16 = vld [vmem:[%s5953_s1 + $0x50] sm:$0xff]   ;;  %v4307_v17 = vld [vmem:[%s5953_s1 + $0x48] sm:$0xff]   ;;  %s3695_s7 = sshll.u32 %s6017_s16, 2 }
  0x10   : > { %v4308_v18 = vld [vmem:[%s5953_s1 + $0x40] sm:$0xff]   ;;  %v4315_v21 = vld [vmem:[%s5953_s1 + $0xb8] sm:$0xff]   ;;  %v4317_v25 = vld [vmem:[%s5953_s1 + $0xb0] sm:$0xff]   ;;  %s5692_s10 = scalar_lea.vmem %s5955_s3, %s3695_s7 }
  0x11   : > { %2093 = vmatpush1.bf16.msra.mxu0 %v4294_v2  ;;  %4268 = vmatpush1.bf16.msra.mxu1 %v4294_v2  ;;  %s4734_s28 = scalar_lea.vmem %s5952_s0, %s4283_s23  ;;  %v4316_v22 = vld [vmem:[%s5953_s1 + $0x138] sm:$0xff]   ;;  %v4326_v26 = vld [vmem:[%s5953_s1 + $0x130] sm:$0xff]   ;;  %v4324_v29 = vld [vmem:[%s5953_s1 + $0xa8] sm:$0xff]  }
  0x12   : > { %2094 = vmatprep.subr.bf16.mxu0 %v4676_v1  ;;  %4253 = vmatprep.subr.bf16.mxu1 %v4676_v1  ;;  %v4311_v6 = vld [vmem:[%s4734_s28 + $0x4] ss:$28 sps:$4 sm:$0xff]   ;;  %v4318_v23 = vld [vmem:[%s4734_s28 + $0x3c] ss:$28 sps:$4 sm:$0xff]   ;;  %v4327_v30 = vld [vmem:[%s4734_s28 + $0x74] ss:$28 sps:$4 sm:$0xff]  }
  0x13   : > { %v4314_v8 = vld [vmem:[%s4734_s28 + $0x544] ss:$28 sps:$4 sm:$0xff]   ;;  %2122 = vmatprep.mubr.bf16.mxu0 %v4311_v6  ;;  %v4320_v24 = vld [vmem:[%s4734_s28 + $0x57c] ss:$28 sps:$4 sm:$0xff]   ;;  %v4329_v31 = vld [vmem:[%s4734_s28 + $0x5b4] ss:$28 sps:$4 sm:$0xff]  }
  0x14   : > { %2314 = vmatprep.mubr.bf16.mxu1 %v4314_v8  ;;  %v4309_v19 = vld [vmem:[%s4734_s28] ss:$28 sps:$4 sm:$0xff]   ;;  %v4322_v27 = vld [vmem:[%s4734_s28 + $0x38] ss:$28 sps:$4 sm:$0xff]   ;;  %v4342_v32 = vld [vmem:[%s5953_s1 + $0x128] sm:$0xff]  }
  0x15   : > { %2095 = vmatpush1.bf16.msra.mxu0 %v4295_v3  ;;  %4269 = vmatpush1.bf16.msra.mxu1 %v4295_v3  ;;  %v4312_v20 = vld [vmem:[%s4734_s28 + $0x540] ss:$28 sps:$4 sm:$0xff]   ;;  %v4323_v28 = vld [vmem:[%s4734_s28 + $0x578] ss:$28 sps:$4 sm:$0xff]   ;;  %v4331_v34 = vld [vmem:[%s4734_s28 + $0x70] ss:$28 sps:$4 sm:$0xff]  }
  0x16   : > { %2096 = vmatprep.subr.bf16.mxu0 %v4676_v1  ;;  %4254 = vmatprep.subr.bf16.mxu1 %v4676_v1  ;;  %v4325_v33 = vld [vmem:[%s5953_s1 + $0xa0] sm:$0xff]   ;;  %v4332_v36 = vld [vmem:[%s4734_s28 + $0x5b0] ss:$28 sps:$4 sm:$0xff]   ;;  %v4333_v37 = vld [vmem:[%s5953_s1 + $0x98] sm:$0xff]  }
  0x17   : > { %v4352_v35 = vld [vmem:[%s5953_s1 + $0x120] sm:$0xff]   ;;  %v4335_v38 = vld [vmem:[%s4734_s28 + $0xac] ss:$28 sps:$4 sm:$0xff]   ;;  %v4368_v40 = vld [vmem:[%s5953_s1 + $0x118] sm:$0xff]  }
  0x18   : > { %v4337_v39 = vld [vmem:[%s4734_s28 + $0x5ec] ss:$28 sps:$4 sm:$0xff]   ;;  %v4334_v41 = vld [vmem:[%s5953_s1 + $0x90] sm:$0xff]   ;;  %v4344_v45 = vld [vmem:[%s4734_s28 + $0xe4] ss:$28 sps:$4 sm:$0xff]  }
  0x19   : > { %2097 = vmatpush1.bf16.msra.mxu0 %v4296_v4  ;;  %4270 = vmatpush1.bf16.msra.mxu1 %v4296_v4  ;;  %v4339_v42 = vld [vmem:[%s4734_s28 + $0xa8] ss:$28 sps:$4 sm:$0xff]   ;;  %v4378_v47 = vld [vmem:[%s5953_s1 + $0x110] sm:$0xff]   ;;  %v4348_v50 = vld [vmem:[%s4734_s28 + $0xe0] ss:$28 sps:$4 sm:$0xff]  }
  0x1a   : > { %2098 = vmatprep.subr.bf16.mxu0 %v4676_v1  ;;  %4255 = vmatprep.subr.bf16.mxu1 %v4676_v1  ;;  %v4340_v43 = vld [vmem:[%s4734_s28 + $0x5e8] ss:$28 sps:$4 sm:$0xff]   ;;  %v4349_v51 = vld [vmem:[%s4734_s28 + $0x620] ss:$28 sps:$4 sm:$0xff]   ;;  %v4351_v56 = vld [vmem:[%s5953_s1 + $0xf0] sm:$0xff]  }
  0x1b   : > { %v4341_v44 = vld [vmem:[%s5953_s1 + $0x88] sm:$0xff]   ;;  %v4346_v46 = vld [vmem:[%s4734_s28 + $0x624] ss:$28 sps:$4 sm:$0xff]   ;;  %v4350_v52 = vld [vmem:[%s5953_s1 + $0xf8] sm:$0xff]  }
  0x1c   : > { %v4343_v48 = vld [vmem:[%s5953_s1 + $0x80] sm:$0xff]   ;;  %v4392_v49 = vld [vmem:[%s5953_s1 + $0x108] sm:$0xff]   ;;  %v4353_v53 = vld [vmem:[%s4734_s28 + $0x11c] ss:$28 sps:$4 sm:$0xff]  }
  0x1d   : > { %2099 = vmatpush1.bf16.msra.mxu0 %v4297_v5  ;;  %4271 = vmatpush1.bf16.msra.mxu1 %v4297_v5  ;;  %v4355_v54 = vld [vmem:[%s4734_s28 + $0x65c] ss:$28 sps:$4 sm:$0xff]   ;;  %v4399_v55 = vld [vmem:[%s5953_s1 + $0x100] sm:$0xff]   ;;  %v4359_v59 = vld [vmem:[%s5953_s1 + $0xe8] sm:$0xff]  }
  0x1e   : > { %2100 = vmatprep.subr.bf16.mxu0 %v4676_v1  ;;  %4256 = vmatprep.subr.bf16.mxu1 %v4676_v1  ;;  %v4357_v57 = vld [vmem:[%s4734_s28 + $0x118] ss:$28 sps:$4 sm:$0xff]   ;;  %v4360_v63 = vld [vmem:[%s5953_s1 + $0xe0] sm:$0xff]   ;;  %v4365_v0 = vld [vmem:[%s4734_s28 + $0x150] ss:$28 sps:$4 sm:$0xff]  }
  0x1f   : > { %v4358_v58 = vld [vmem:[%s4734_s28 + $0x658] ss:$28 sps:$4 sm:$0xff]   ;;  %v4366_v3 = vld [vmem:[%s4734_s28 + $0x690] ss:$28 sps:$4 sm:$0xff]  }
  0x20   : > { %v4361_v60 = vld [vmem:[%s4734_s28 + $0x154] ss:$28 sps:$4 sm:$0xff]   ;;  %v4412_v62 = vld [vmem:[%s5953_s1 + $0x178] sm:$0xff]   ;;  %v4370_v5 = vld [vmem:[%s4734_s28 + $0x18c] ss:$28 sps:$4 sm:$0xff]  }
  0x21   : > { %2101 = vmatpush1.bf16.msra.mxu0 %v4298_v7  ;;  %4272 = vmatpush1.bf16.msra.mxu1 %v4298_v7  ;;  %v4363_v61 = vld [vmem:[%s4734_s28 + $0x694] ss:$28 sps:$4 sm:$0xff]   ;;  %v4367_v4 = vld [vmem:[%s5953_s1 + $0xd8] sm:$0xff]   ;;  %v4372_v6 = vld [vmem:[%s4734_s28 + $0x6cc] ss:$28 sps:$4 sm:$0xff]  }
  0x22   : > { %2102 = vmatprep.subr.bf16.mxu0 %v4676_v1  ;;  %4257 = vmatprep.subr.bf16.mxu1 %v4676_v1  ;;  %v4420_v2 = vld [vmem:[%s5953_s1 + $0x170] sm:$0xff]   ;;  %v4433_v7 = vld [vmem:[%s5953_s1 + $0x168] sm:$0xff]  }
  0x23   : > { %v4369_v8 = vld [vmem:[%s5953_s1 + $0xd0] sm:$0xff]  }
  0x25   : > { %2103 = vmatpush1.bf16.msra.mxu0 %v4299_v9  ;;  %4273 = vmatpush1.bf16.msra.mxu1 %v4299_v9  ;;  %v4374_v9 = vld [vmem:[%s4734_s28 + $0x188] ss:$28 sps:$4 sm:$0xff]  }
  0x26   : > { %2104 = vmatprep.subr.bf16.mxu0 %v4676_v1  ;;  %4258 = vmatprep.subr.bf16.mxu1 %v4676_v1 }
  0x29   : > { %2105 = vmatpush1.bf16.msra.mxu0 %v4300_v10  ;;  %4274 = vmatpush1.bf16.msra.mxu1 %v4300_v10  ;;  %v4375_v10 = vld [vmem:[%s4734_s28 + $0x6c8] ss:$28 sps:$4 sm:$0xff]  }
  0x2a   : > { %2106 = vmatprep.subr.bf16.mxu0 %v4676_v1  ;;  %4259 = vmatprep.subr.bf16.mxu1 %v4676_v1 }
  0x2d   : > { %2107 = vmatpush2.bf16.msra.mxu0 %v4301_v11  ;;  %4275 = vmatpush2.bf16.msra.mxu1 %v4301_v11  ;;  %v4376_v11 = vld [vmem:[%s5953_s1 + $0xc8] sm:$0xff]  }
  0x2e   : > { %2108 = vmatprep.subr.bf16.mxu0 %v4676_v1  ;;  %4260 = vmatprep.subr.bf16.mxu1 %v4676_v1 }
  0x31   : > { %2109 = vmatpush2.bf16.msra.mxu0 %v4302_v12  ;;  %4276 = vmatpush2.bf16.msra.mxu1 %v4302_v12  ;;  %v4379_v12 = vld [vmem:[%s4734_s28 + $0x1c4] ss:$28 sps:$4 sm:$0xff]  }
  0x32   : > { %2110 = vmatprep.subr.bf16.mxu0 %v4676_v1  ;;  %4261 = vmatprep.subr.bf16.mxu1 %v4676_v1 }
  0x35   : > { %2111 = vmatpush2.bf16.msra.mxu0 %v4303_v13  ;;  %4277 = vmatpush2.bf16.msra.mxu1 %v4303_v13  ;;  %v4383_v13 = vld [vmem:[%s4734_s28 + $0xc] ss:$28 sps:$4 sm:$0xff]  }
  0x36   : > { %2112 = vmatprep.subr.bf16.mxu0 %v4676_v1  ;;  %4262 = vmatprep.subr.bf16.mxu1 %v4676_v1 }
  0x39   : > { %2113 = vmatpush2.bf16.msra.mxu0 %v4304_v14  ;;  %4278 = vmatpush2.bf16.msra.mxu1 %v4304_v14  ;;  %v4440_v14 = vld [vmem:[%s5953_s1 + $0x160] sm:$0xff]  }
  0x3a   : > { %2114 = vmatprep.subr.bf16.mxu0 %v4676_v1  ;;  %4263 = vmatprep.subr.bf16.mxu1 %v4676_v1 }
  0x3d   : > { %2115 = vmatpush2.bf16.msra.mxu0 %v4305_v15  ;;  %4279 = vmatpush2.bf16.msra.mxu1 %v4305_v15  ;;  %v4377_v15 = vld [vmem:[%s5953_s1 + $0xc0] sm:$0xff]  }
  0x3e   : > { %2116 = vmatprep.subr.bf16.mxu0 %v4676_v1  ;;  %4264 = vmatprep.subr.bf16.mxu1 %v4676_v1 }
  0x41   : > { %2117 = vmatpush2.bf16.msra.mxu0 %v4306_v16  ;;  %4280 = vmatpush2.bf16.msra.mxu1 %v4306_v16  ;;  %v4385_v16 = vld [vmem:[%s5953_s1 + $0x1a8] sm:$0xff]  }
  0x42   : > { %2118 = vmatprep.subr.bf16.mxu0 %v4676_v1  ;;  %4265 = vmatprep.subr.bf16.mxu1 %v4676_v1 }
  0x45   : > { %2119 = vmatpush2.bf16.msra.mxu0 %v4307_v17  ;;  %4281 = vmatpush2.bf16.msra.mxu1 %v4307_v17  ;;  %v4453_v17 = vld [vmem:[%s5953_s1 + $0x158] sm:$0xff]  }
  0x46   : > { %2120 = vmatprep.subr.bf16.mxu0 %v4676_v1  ;;  %4266 = vmatprep.subr.bf16.mxu1 %v4676_v1 }
  0x49   : > { %2121 = vmatpush2.bf16.msra.mxu0 %v4308_v18  ;;  %4282 = vmatpush2.bf16.msra.mxu1 %v4308_v18  ;;  %v4381_v18 = vld [vmem:[%s4734_s28 + $0x8] ss:$28 sps:$4 sm:$0xff]  }
  0x4a   : > { %2379 = vmatprep.subr.bf16.mxu1 %v4676_v1  ;;  %2668 = vmatprep.subr.bf16.mxu0 %v4676_v1 }
  0x4c   : > { %2123 = vmatmul.mubr.bf16.vlgmr.msra.gmra.mxu0 %v4309_v19  ;;  %2315 = vmatmul.mubr.bf16.vlgmr.msra.gmra.mxu1 %v4312_v20  ;;  %v4384_v19 = vld [vmem:[%s4734_s28 + $0x1c0] ss:$28 sps:$4 sm:$0xff]  }
  0x4d   : > { %2380 = vmatpush1.bf16.msra.mxu1 %v4315_v21  ;;  %2669 = vmatpush1.bf16.msra.mxu0 %v4316_v22  ;;  %v4386_v20 = vld [vmem:[%s4734_s28 + $0x1fc] ss:$28 sps:$4 sm:$0xff]   ;;  %v4388_v21 = vld [vmem:[%s4734_s28 + $0x44] ss:$28 sps:$4 sm:$0xff]  }
  0x4e   : > { %2381 = vmatprep.subr.bf16.mxu1 %v4676_v1  ;;  %2130 = vmatprep.mubr.bf16.mxu0 %v4318_v23  ;;  %v4419_v22 = vld [vmem:[%s5953_s1 + $0x1a0] sm:$0xff]   ;;  %v4461_v23 = vld [vmem:[%s5953_s1 + $0x150] sm:$0xff]  }
  0x4f   : > { %2322 = vmatprep.mubr.bf16.mxu1 %v4320_v24  ;;  %2670 = vmatprep.subr.bf16.mxu0 %v4676_v1  ;;  %v4454_v24 = vld [vmem:[%s5953_s1 + $0x198] sm:$0xff]  }
  0x51   : > { %2382 = vmatpush1.bf16.msra.mxu1 %v4317_v25  ;;  %2671 = vmatpush1.bf16.msra.mxu0 %v4326_v26  ;;  %v4390_v25 = vld [vmem:[%s4734_s28 + $0x1f8] ss:$28 sps:$4 sm:$0xff]   ;;  %v4391_v26 = vld [vmem:[%s4734_s28 + $0x40] ss:$28 sps:$4 sm:$0xff]  }
  0x52   : > { %2383 = vmatprep.subr.bf16.mxu1 %v4676_v1  ;;  %2672 = vmatprep.subr.bf16.mxu0 %v4676_v1 }
  0x54   : > { %2131 = vmatmul.mubr.bf16.gmra.mxu0 %v4322_v27  ;;  %2323 = vmatmul.mubr.bf16.gmra.mxu1 %v4323_v28  ;;  %v4393_v27 = vld [vmem:[%s4734_s28 + $0x234] ss:$28 sps:$4 sm:$0xff]   ;;  %v4395_v28 = vld [vmem:[%s4734_s28 + $0x7c] ss:$28 sps:$4 sm:$0xff]  }
  0x55   : > { %2384 = vmatpush1.bf16.msra.mxu1 %v4324_v29  ;;  %2138 = vmatprep.mubr.bf16.mxu0 %v4327_v30  ;;  %v4474_v29 = vld [vmem:[%s5953_s1 + $0x148] sm:$0xff]   ;;  %v4494_v30 = vld [vmem:[%s5953_s1 + $0x190] sm:$0xff]  }
  0x56   : > { %2385 = vmatprep.subr.bf16.mxu1 %v4676_v1  ;;  %2330 = vmatprep.mubr.bf16.mxu1 %v4329_v31  ;;  %v4481_v31 = vld [vmem:[%s5953_s1 + $0x140] sm:$0xff]  }
  0x57   : > { %2673 = vmatpush1.bf16.msra.mxu0 %v4342_v32  ;;  %v4397_v32 = vld [vmem:[%s4734_s28 + $0x230] ss:$28 sps:$4 sm:$0xff]  }
  0x58   : > { %2674 = vmatprep.subr.bf16.mxu0 %v4676_v1 }
  0x59   : > { %2386 = vmatpush1.bf16.msra.mxu1 %v4325_v33  ;;  %v4398_v33 = vld [vmem:[%s4734_s28 + $0x78] ss:$28 sps:$4 sm:$0xff]  }
  0x5a   : > { %2387 = vmatprep.subr.bf16.mxu1 %v4676_v1 }
  0x5b   : > { %2675 = vmatpush1.bf16.msra.mxu0 %v4352_v35  ;;  %v4402_v35 = vld [vmem:[%s4734_s28 + $0xb4] ss:$28 sps:$4 sm:$0xff]  }
  0x5c   : > { %2139 = vmatmul.mubr.bf16.gmra.mxu0 %v4331_v34  ;;  %2331 = vmatmul.mubr.bf16.gmra.mxu1 %v4332_v36  ;;  %v4400_v34 = vld [vmem:[%s4734_s28 + $0x26c] ss:$28 sps:$4 sm:$0xff]  }
  0x5d   : > { %2388 = vmatpush1.bf16.msra.mxu1 %v4333_v37  ;;  %2146 = vmatprep.mubr.bf16.mxu0 %v4335_v38  ;;  %v4404_v36 = vld [vmem:[%s4734_s28 + $0x268] ss:$28 sps:$4 sm:$0xff]   ;;  %v4405_v37 = vld [vmem:[%s4734_s28 + $0xb0] ss:$28 sps:$4 sm:$0xff]  }
  0x5e   : > { %2389 = vmatprep.subr.bf16.mxu1 %v4676_v1  ;;  %2338 = vmatprep.mubr.bf16.mxu1 %v4337_v39  ;;  %v4406_v38 = vld [vmem:[%s4734_s28 + $0x2a4] ss:$28 sps:$4 sm:$0xff]  }
  0x5f   : > { %2676 = vmatprep.subr.bf16.mxu0 %v4676_v1  ;;  %v4410_v39 = vld [vmem:[%s4734_s28 + $0x2a0] ss:$28 sps:$4 sm:$0xff]  }
  0x60   : > { %2677 = vmatpush1.bf16.msra.mxu0 %v4368_v40  ;;  %v4411_v40 = vld [vmem:[%s4734_s28 + $0xe8] ss:$28 sps:$4 sm:$0xff]  }
  0x61   : > { %2390 = vmatpush1.bf16.msra.mxu1 %v4334_v41  ;;  %2678 = vmatprep.subr.bf16.mxu0 %v4676_v1  ;;  %v4413_v41 = vld [vmem:[%s4734_s28 + $0x2dc] ss:$28 sps:$4 sm:$0xff]  }
  0x62   : > { %2391 = vmatprep.subr.bf16.mxu1 %v4676_v1 }
  0x64   : > { %2147 = vmatmul.mubr.bf16.gmra.mxu0 %v4339_v42  ;;  %2339 = vmatmul.mubr.bf16.gmra.mxu1 %v4340_v43  ;;  %v4415_v42 = vld [vmem:[%s4734_s28 + $0x124] ss:$28 sps:$4 sm:$0xff]   ;;  %v4417_v43 = vld [vmem:[%s4734_s28 + $0x2d8] ss:$28 sps:$4 sm:$0xff]  }
  0x65   : > { %2392 = vmatpush1.bf16.msra.mxu1 %v4341_v44  ;;  %2154 = vmatprep.mubr.bf16.mxu0 %v4344_v45  ;;  %v4418_v44 = vld [vmem:[%s4734_s28 + $0x120] ss:$28 sps:$4 sm:$0xff]   ;;  %v4421_v45 = vld [vmem:[%s4734_s28 + $0x314] ss:$28 sps:$4 sm:$0xff]  }
  0x66   : > { %2393 = vmatprep.subr.bf16.mxu1 %v4676_v1  ;;  %2346 = vmatprep.mubr.bf16.mxu1 %v4346_v46  ;;  %v4423_v46 = vld [vmem:[%s4734_s28 + $0x15c] ss:$28 sps:$4 sm:$0xff]  }
  0x67   : > { %2679 = vmatpush1.bf16.msra.mxu0 %v4378_v47  ;;  %v4425_v47 = vld [vmem:[%s4734_s28 + $0x310] ss:$28 sps:$4 sm:$0xff]  }
  0x68   : > { %2680 = vmatprep.subr.bf16.mxu0 %v4676_v1 }
  0x69   : > { %2394 = vmatpush1.bf16.msra.mxu1 %v4343_v48  ;;  %v4426_v48 = vld [vmem:[%s4734_s28 + $0x158] ss:$28 sps:$4 sm:$0xff]  }
  0x6a   : > { %2395 = vmatprep.subr.bf16.mxu1 %v4676_v1 }
  0x6b   : > { %2681 = vmatpush1.bf16.msra.mxu0 %v4392_v49  ;;  %v4525_v49 = vld [vmem:[%s5953_s1 + $0x188] sm:$0xff]  }
  0x6c   : > { %2155 = vmatmul.mubr.bf16.gmra.mxu0 %v4348_v50  ;;  %2347 = vmatmul.mubr.bf16.gmra.mxu1 %v4349_v51  ;;  %v4427_v50 = vld [vmem:[%s4734_s28 + $0x34c] ss:$28 sps:$4 sm:$0xff]   ;;  %v4429_v51 = vld [vmem:[%s4734_s28 + $0x194] ss:$28 sps:$4 sm:$0xff]  }
  0x6d   : > { %2396 = vmatpush2.bf16.msra.mxu1 %v4350_v52  ;;  %2162 = vmatprep.mubr.bf16.mxu0 %v4353_v53  ;;  %v4431_v52 = vld [vmem:[%s4734_s28 + $0x348] ss:$28 sps:$4 sm:$0xff]   ;;  %v4432_v53 = vld [vmem:[%s4734_s28 + $0x190] ss:$28 sps:$4 sm:$0xff]  }
  0x6e   : > { %2397 = vmatprep.subr.bf16.mxu1 %v4676_v1  ;;  %2354 = vmatprep.mubr.bf16.mxu1 %v4355_v54  ;;  %v4434_v54 = vld [vmem:[%s4734_s28 + $0x384] ss:$28 sps:$4 sm:$0xff]  }
  0x6f   : > { %2682 = vmatprep.subr.bf16.mxu0 %v4676_v1 }
  0x70   : > { %2683 = vmatpush1.bf16.msra.mxu0 %v4399_v55  ;;  %v4436_v55 = vld [vmem:[%s4734_s28 + $0x1cc] ss:$28 sps:$4 sm:$0xff]  }
  0x71   : > { %2398 = vmatpush2.bf16.msra.mxu1 %v4351_v56  ;;  %2684 = vmatprep.subr.bf16.mxu0 %v4676_v1  ;;  %v4438_v56 = vld [vmem:[%s4734_s28 + $0x380] ss:$28 sps:$4 sm:$0xff]  }
  0x72   : > { %2399 = vmatprep.subr.bf16.mxu1 %v4676_v1 }
  0x74   : > { %2163 = vmatmul.mubr.bf16.gmra.mxu0 %v4357_v57  ;;  %2355 = vmatmul.mubr.bf16.gmra.mxu1 %v4358_v58  ;;  %v4439_v57 = vld [vmem:[%s4734_s28 + $0x1c8] ss:$28 sps:$4 sm:$0xff]   ;;  %v4441_v58 = vld [vmem:[%s4734_s28 + $0x3bc] ss:$28 sps:$4 sm:$0xff]  }
  0x75   : > { %2400 = vmatpush2.bf16.msra.mxu1 %v4359_v59  ;;  %2170 = vmatprep.mubr.bf16.mxu0 %v4361_v60  ;;  %v4443_v59 = vld [vmem:[%s4734_s28 + $0x204] ss:$28 sps:$4 sm:$0xff]   ;;  %v4445_v60 = vld [vmem:[%s4734_s28 + $0x3b8] ss:$28 sps:$4 sm:$0xff]  }
  0x76   : > { %2401 = vmatprep.subr.bf16.mxu1 %v4676_v1  ;;  %2362 = vmatprep.mubr.bf16.mxu1 %v4363_v61  ;;  %v4446_v61 = vld [vmem:[%s4734_s28 + $0x200] ss:$28 sps:$4 sm:$0xff]  }
  0x77   : > { %2685 = vmatpush2.bf16.msra.mxu0 %v4412_v62  ;;  %v4447_v62 = vld [vmem:[%s4734_s28 + $0x3f4] ss:$28 sps:$4 sm:$0xff]  }
  0x78   : > { %2686 = vmatprep.subr.bf16.mxu0 %v4676_v1 }
  0x79   : > { %2402 = vmatpush2.bf16.msra.mxu1 %v4360_v63  ;;  %v4449_v63 = vld [vmem:[%s4734_s28 + $0x23c] ss:$28 sps:$4 sm:$0xff]  }
  0x7a   : > { %2403 = vmatprep.subr.bf16.mxu1 %v4676_v1 }
  0x7b   : > { %2687 = vmatpush2.bf16.msra.mxu0 %v4420_v2  ;;  %v4452_v2 = vld [vmem:[%s4734_s28 + $0x238] ss:$28 sps:$4 sm:$0xff]  }
  0x7c   : > { %2171 = vmatmul.mubr.bf16.gmra.mxu0 %v4365_v0  ;;  %2363 = vmatmul.mubr.bf16.gmra.mxu1 %v4366_v3  ;;  %v4451_v0 = vld [vmem:[%s4734_s28 + $0x3f0] ss:$28 sps:$4 sm:$0xff]  }
  0x7d   : > { %2404 = vmatpush2.bf16.msra.mxu1 %v4367_v4  ;;  %2178 = vmatprep.mubr.bf16.mxu0 %v4370_v5  ;;  %v4455_v3 = vld [vmem:[%s4734_s28 + $0x42c] ss:$28 sps:$4 sm:$0xff]   ;;  %v4457_v4 = vld [vmem:[%s4734_s28 + $0x274] ss:$28 sps:$4 sm:$0xff]  }
  0x7e   : > { %2405 = vmatprep.subr.bf16.mxu1 %v4676_v1  ;;  %2370 = vmatprep.mubr.bf16.mxu1 %v4372_v6  ;;  %v4459_v5 = vld [vmem:[%s4734_s28 + $0x428] ss:$28 sps:$4 sm:$0xff]   ;;  %v4460_v6 = vld [vmem:[%s4734_s28 + $0x270] ss:$28 sps:$4 sm:$0xff]  }
  0x7f   : > { %2688 = vmatprep.subr.bf16.mxu0 %v4676_v1 }
  0x80   : > { %2689 = vmatpush2.bf16.msra.mxu0 %v4433_v7  ;;  %v4462_v7 = vld [vmem:[%s4734_s28 + $0x464] ss:$28 sps:$4 sm:$0xff]  }
  0x81   : > { %2406 = vmatpush2.bf16.msra.mxu1 %v4369_v8  ;;  %2690 = vmatprep.subr.bf16.mxu0 %v4676_v1  ;;  %v4464_v8 = vld [vmem:[%s4734_s28 + $0x2ac] ss:$28 sps:$4 sm:$0xff]  }
  0x82   : > { %2407 = vmatprep.subr.bf16.mxu1 %v4676_v1 }
  0x84   : > { %2179 = vmatmul.mubr.bf16.gmra.mxu0 %v4374_v9  ;;  %2371 = vmatmul.mubr.bf16.gmra.mxu1 %v4375_v10  ;;  %v4556_v9 = vld [vmem:[%s5953_s1 + $0x180] sm:$0xff]  }
  0x85   : > { %2408 = vmatpush2.bf16.msra.mxu1 %v4376_v11  ;;  %2186 = vmatprep.mubr.bf16.mxu0 %v4379_v12  ;;  %v4466_v10 = vld [vmem:[%s4734_s28 + $0x460] ss:$28 sps:$4 sm:$0xff]   ;;  %v4467_v11 = vld [vmem:[%s4734_s28 + $0x2a8] ss:$28 sps:$4 sm:$0xff]  }
  0x86   : > { %2409 = vmatprep.subr.bf16.mxu1 %v4676_v1  ;;  %2411 = vmatprep.mubr.bf16.mxu1 %v4383_v13  ;;  %v4468_v12 = vld [vmem:[%s4734_s28 + $0x49c] ss:$28 sps:$4 sm:$0xff]   ;;  %v4470_v13 = vld [vmem:[%s4734_s28 + $0x2e4] ss:$28 sps:$4 sm:$0xff]  }
  0x87   : > { %2691 = vmatpush2.bf16.msra.mxu0 %v4440_v14  ;;  %v4472_v14 = vld [vmem:[%s4734_s28 + $0x498] ss:$28 sps:$4 sm:$0xff]  }
  0x88   : > { %2692 = vmatprep.subr.bf16.mxu0 %v4676_v1 }
  0x89   : > { %2410 = vmatpush2.bf16.msra.mxu1 %v4377_v15  ;;  %v4473_v15 = vld [vmem:[%s4734_s28 + $0x2e0] ss:$28 sps:$4 sm:$0xff]  }
  0x8a   : > { %4175 = vmatprep.subr.bf16.mxu1 %v4385_v16 }
  0x8b   : > { %2693 = vmatpush2.bf16.msra.mxu0 %v4453_v17  ;;  %v4477_v17 = vld [vmem:[%s4734_s28 + $0x31c] ss:$28 sps:$4 sm:$0xff]  }
  0x8c   : > { %2187 = vmatmul.mubr.bf16.gmra.mxu0 %v4384_v19  ;;  %2412 = vmatmul.mubr.bf16.vlgmr.msra.gmra.mxu1 %v4381_v18  ;;  %v4479_v18 = vld [vmem:[%s4734_s28 + $0x4d0] ss:$28 sps:$4 sm:$0xff]   ;;  %v4480_v19 = vld [vmem:[%s4734_s28 + $0x318] ss:$28 sps:$4 sm:$0xff]  }
  0x8d   : > { %4176 = vmatpush3.bf16.msra.mxu1 %v4385_v16  ;;  %2194 = vmatprep.mubr.bf16.mxu0 %v4386_v20  ;;  %v4475_v16 = vld [vmem:[%s4734_s28 + $0x4d4] ss:$28 sps:$4 sm:$0xff]   ;;  %v4482_v20 = vld [vmem:[%s4734_s28 + $0x50c] ss:$28 sps:$4 sm:$0xff]  }
  0x8e   : > { %2419 = vmatprep.mubr.bf16.mxu1 %v4388_v21  ;;  %4177 = vmatprep.subr.bf16.mxu1 %v4419_v22  ;;  %v4484_v21 = vld [vmem:[%s4734_s28 + $0x354] ss:$28 sps:$4 sm:$0xff]  }
  0x8f   : > { %2694 = vmatprep.subr.bf16.mxu0 %v4676_v1 }
  0x90   : > { %2695 = vmatpush2.bf16.msra.mxu0 %v4461_v23  ;;  %v4487_v23 = vld [vmem:[%s4734_s28 + $0x350] ss:$28 sps:$4 sm:$0xff]  }
  0x91   : > { %4178 = vmatpush3.bf16.msra.mxu1 %v4419_v22  ;;  %2696 = vmatprep.subr.bf16.mxu0 %v4676_v1  ;;  %v4486_v22 = vld [vmem:[%s4734_s28 + $0x508] ss:$28 sps:$4 sm:$0xff]  }
  0x92   : > { %4179 = vmatprep.subr.bf16.mxu1 %v4454_v24 }
  0x94   : > { %2195 = vmatmul.mubr.bf16.gmra.mxu0 %v4390_v25  ;;  %2420 = vmatmul.mubr.bf16.gmra.mxu1 %v4391_v26  ;;  %v4492_v25 = vld [vmem:[%s4734_s28 + $0x14] ss:$28 sps:$4 sm:$0xff]  }
  0x95   : > { %2202 = vmatprep.mubr.bf16.mxu0 %v4393_v27  ;;  %2427 = vmatprep.mubr.bf16.mxu1 %v4395_v28  ;;  %v4490_v26 = vld [vmem:[%s4734_s28 + $0x10] ss:$28 sps:$4 sm:$0xff]   ;;  %v4493_v27 = vld [vmem:[%s4734_s28 + $0x388] ss:$28 sps:$4 sm:$0xff]  }
  0x96   : > { %4180 = vmatpush3.bf16.msra.mxu1 %v4454_v24  ;;  %2697 = vmatpush2.bf16.msra.mxu0 %v4474_v29  ;;  %v4488_v24 = vld [vmem:[%s4734_s28 + $0x38c] ss:$28 sps:$4 sm:$0xff]   ;;  %v4495_v28 = vld [vmem:[%s4734_s28 + $0x3c4] ss:$28 sps:$4 sm:$0xff]  }
  0x97   : > { %2698 = vmatprep.subr.bf16.mxu0 %v4676_v1  ;;  %4181 = vmatprep.subr.bf16.mxu1 %v4494_v30  ;;  %v4408_v1 = vld [vmem:[%s4734_s28 + $0xec] ss:$28 sps:$4 sm:$0xff]  }
  0x98   : > { %v4497_v29 = vld [vmem:[%s4734_s28 + $0x4c] ss:$28 sps:$4 sm:$0xff]  }
  0x9a   : > { %2699 = vmatpush2.bf16.msra.mxu0 %v4481_v31  ;;  %4182 = vmatpush3.bf16.msra.mxu1 %v4494_v30 }
  0x9b   : > { %4183 = vmatprep.subr.bf16.mxu1 %v4525_v49 }
  0x9c   : > { %2203 = vmatmul.mubr.bf16.gmra.mxu0 %v4397_v32  ;;  %2428 = vmatmul.mubr.bf16.gmra.mxu1 %v4398_v33 }
  0x9d   : > { %2210 = vmatprep.mubr.bf16.mxu0 %v4400_v34  ;;  %2435 = vmatprep.mubr.bf16.mxu1 %v4402_v35 }
  0x9e   : > { %4184 = vmatpush3.bf16.msra.mxu1 %v4525_v49  ;;  %v4507_v49 = vld [vmem:[%s4734_s28 + $0x434] ss:$28 sps:$4 sm:$0xff]  }
  0x9f   : > { %4185 = vmatprep.subr.bf16.mxu1 %v4556_v9 }
  0xa2   : > { %4186 = vmatpush3.bf16.msra.mxu1 %v4556_v9  ;;  %v4516_v9 = vld [vmem:[%s4734_s28 + $0xf0] ss:$28 sps:$4 sm:$0xff]  }
  0xa4   : > { %2211 = vmatmul.mubr.bf16.gmra.mxu0 %v4404_v36  ;;  %2436 = vmatmul.mubr.bf16.gmra.mxu1 %v4405_v37  ;;  %v4499_v36 = vld [vmem:[%s4734_s28 + $0x3c0] ss:$28 sps:$4 sm:$0xff]   ;;  %v4500_v37 = vld [vmem:[%s4734_s28 + $0x48] ss:$28 sps:$4 sm:$0xff]  }
  0xa5   : > { %2218 = vmatprep.mubr.bf16.mxu0 %v4406_v38  ;;  %2443 = vmatprep.mubr.bf16.mxu1 %v4408_v1  ;;  %v4501_v38 = vld [vmem:[%s4734_s28 + $0x3fc] ss:$28 sps:$4 sm:$0xff]   ;;  %v4503_v1 = vld [vmem:[%s4734_s28 + $0x84] ss:$28 sps:$4 sm:$0xff]  }
  0xac   : > { %2219 = vmatmul.mubr.bf16.gmra.mxu0 %v4410_v39  ;;  %2444 = vmatmul.mubr.bf16.gmra.mxu1 %v4411_v40 }
  0xad   : > { %2226 = vmatprep.mubr.bf16.mxu0 %v4413_v41  ;;  %2451 = vmatprep.mubr.bf16.mxu1 %v4415_v42 }
  0xb4   : > { %2227 = vmatmul.mubr.bf16.gmra.mxu0 %v4417_v43  ;;  %2452 = vmatmul.mubr.bf16.gmra.mxu1 %v4418_v44 }
  0xb5   : > { %2234 = vmatprep.mubr.bf16.mxu0 %v4421_v45  ;;  %2459 = vmatprep.mubr.bf16.mxu1 %v4423_v46 }
  0xbc   : > { %2235 = vmatmul.mubr.bf16.gmra.mxu0 %v4425_v47  ;;  %2460 = vmatmul.mubr.bf16.gmra.mxu1 %v4426_v48  ;;  %v4505_v47 = vld [vmem:[%s4734_s28 + $0x3f8] ss:$28 sps:$4 sm:$0xff]   ;;  %v4506_v48 = vld [vmem:[%s4734_s28 + $0x80] ss:$28 sps:$4 sm:$0xff]  }
  0xbd   : > { %2242 = vmatprep.mubr.bf16.mxu0 %v4427_v50  ;;  %2467 = vmatprep.mubr.bf16.mxu1 %v4429_v51  ;;  %v4509_v50 = vld [vmem:[%s4734_s28 + $0xbc] ss:$28 sps:$4 sm:$0xff]  }
  0xc4   : > { %2243 = vmatmul.mubr.bf16.gmra.mxu0 %v4431_v52  ;;  %2468 = vmatmul.mubr.bf16.gmra.mxu1 %v4432_v53 }
  0xc5   : > { %2250 = vmatprep.mubr.bf16.mxu0 %v4434_v54  ;;  %2475 = vmatprep.mubr.bf16.mxu1 %v4436_v55 }
  0xcc   : > { %2251 = vmatmul.mubr.bf16.gmra.mxu0 %v4438_v56  ;;  %2476 = vmatmul.mubr.bf16.gmra.mxu1 %v4439_v57 }
  0xcd   : > { %2258 = vmatprep.mubr.bf16.mxu0 %v4441_v58  ;;  %2483 = vmatprep.mubr.bf16.mxu1 %v4443_v59  ;;  %v4511_v59 = vld [vmem:[%s4734_s28 + $0x430] ss:$28 sps:$4 sm:$0xff]  }
  0xd4   : > { %2259 = vmatmul.mubr.bf16.gmra.mxu0 %v4445_v60  ;;  %2484 = vmatmul.mubr.bf16.gmra.mxu1 %v4446_v61  ;;  %v4512_v60 = vld [vmem:[%s4734_s28 + $0xb8] ss:$28 sps:$4 sm:$0xff]   ;;  %v4515_v61 = vld [vmem:[%s4734_s28 + $0x46c] ss:$28 sps:$4 sm:$0xff]  }
  0xd5   : > { %2266 = vmatprep.mubr.bf16.mxu0 %v4447_v62  ;;  %2491 = vmatprep.mubr.bf16.mxu1 %v4449_v63  ;;  %v4518_v62 = vld [vmem:[%s4734_s28 + $0xf4] ss:$28 sps:$4 sm:$0xff]  }
  0xdc   : > { %2267 = vmatmul.mubr.bf16.gmra.mxu0 %v4451_v0  ;;  %2492 = vmatmul.mubr.bf16.gmra.mxu1 %v4452_v2 }
  0xdd   : > { %2274 = vmatprep.mubr.bf16.mxu0 %v4455_v3  ;;  %2499 = vmatprep.mubr.bf16.mxu1 %v4457_v4 }
  0xe4   : > { %2275 = vmatmul.mubr.bf16.gmra.mxu0 %v4459_v5  ;;  %2500 = vmatmul.mubr.bf16.gmra.mxu1 %v4460_v6 }
  0xe5   : > { %2282 = vmatprep.mubr.bf16.mxu0 %v4462_v7  ;;  %2507 = vmatprep.mubr.bf16.mxu1 %v4464_v8  ;;  %v4513_v8 = vld [vmem:[%s4734_s28 + $0x468] ss:$28 sps:$4 sm:$0xff]  }
  0xec   : > { %2283 = vmatmul.mubr.bf16.gmra.mxu0 %v4466_v10  ;;  %2508 = vmatmul.mubr.bf16.gmra.mxu1 %v4467_v11  ;;  %v4521_v10 = vld [vmem:[%s4734_s28 + $0x4a4] ss:$28 sps:$4 sm:$0xff]   ;;  %v4524_v11 = vld [vmem:[%s4734_s28 + $0x12c] ss:$28 sps:$4 sm:$0xff]  }
  0xed   : > { %2290 = vmatprep.mubr.bf16.mxu0 %v4468_v12  ;;  %2515 = vmatprep.mubr.bf16.mxu1 %v4470_v13 }
  0xf4   : > { %2291 = vmatmul.mubr.bf16.gmra.mxu0 %v4472_v14  ;;  %2516 = vmatmul.mubr.bf16.gmra.mxu1 %v4473_v15 }
  0xf5   : > { %2298 = vmatprep.mubr.bf16.mxu0 %v4475_v16  ;;  %2523 = vmatprep.mubr.bf16.mxu1 %v4477_v17 }
  0xfc   : > { %2299 = vmatmul.mubr.bf16.gmra.mxu0 %v4479_v18  ;;  %2524 = vmatmul.mubr.bf16.gmra.mxu1 %v4480_v19 }
  0xfd   : > { %2306 = vmatprep.mubr.bf16.mxu0 %v4482_v20  ;;  %2531 = vmatprep.mubr.bf16.mxu1 %v4484_v21  ;;  %v4519_v20 = vld [vmem:[%s4734_s28 + $0x4a0] ss:$28 sps:$4 sm:$0xff]   ;;  %v4522_v21 = vld [vmem:[%s4734_s28 + $0x128] ss:$28 sps:$4 sm:$0xff]  }
 0x104   : > { %2307 = vmatmul.mubr.bf16.gmra.mxu0 %v4486_v22  ;;  %2532 = vmatmul.mubr.bf16.gmra.mxu1 %v4487_v23  ;;  %v4528_v22 = vld [vmem:[%s4734_s28 + $0x4dc] ss:$28 sps:$4 sm:$0xff]   ;;  %v4531_v23 = vld [vmem:[%s4734_s28 + $0x164] ss:$28 sps:$4 sm:$0xff]  }
 0x105   : > { %2539 = vmatprep.mubr.bf16.mxu1 %v4488_v24  ;;  %2700 = vmatprep.mubr.bf16.mxu0 %v4492_v25 }
 0x10c   : > { %v5041_v30 = vpop.f32.mrf.mxu0  ;;  %v5043_v31 = vpop.f32.mrf.mxu1  ;;  %2540 = vmatmul.mubr.bf16.gmra.mxu1 %v4493_v27  ;;  %2701 = vmatmul.mubr.bf16.vlgmr.msra.gmra.mxu0 %v4490_v26 }
 0x10d   : > { %2547 = vmatprep.mubr.bf16.mxu1 %v4495_v28  ;;  %2708 = vmatprep.mubr.bf16.mxu0 %v4497_v29 }
 0x10e   : > { %v2126_v32 = vpop.f32.mrf.mxu0  ;;  %v2318_v33 = vpop.f32.mrf.mxu1 }
 0x110   : > { %v5045_v34 = vpop.f32.mrf.mxu0  ;;  %v5047_v35 = vpop.f32.mrf.mxu1 }
 0x112   : > { %v2129_v39 = vpop.f32.mrf.mxu0  ;;  %v2321_v40 = vpop.f32.mrf.mxu1 }
 0x114   : > { %v5053_v41 = vpop.f32.mrf.mxu0  ;;  %v5055_v42 = vpop.f32.mrf.mxu1  ;;  %2548 = vmatmul.mubr.bf16.gmra.mxu1 %v4499_v36  ;;  %2709 = vmatmul.mubr.bf16.gmra.mxu0 %v4500_v37  ;;  %v4526_v36 = vld [vmem:[%s4734_s28 + $0x4d8] ss:$28 sps:$4 sm:$0xff]   ;;  %v4529_v37 = vld [vmem:[%s4734_s28 + $0x160] ss:$28 sps:$4 sm:$0xff]  }
 0x115   : > { %2555 = vmatprep.mubr.bf16.mxu1 %v4501_v38  ;;  %2716 = vmatprep.mubr.bf16.mxu0 %v4503_v1  ;;  %v4534_v38 = vld [vmem:[%s4734_s28 + $0x514] ss:$28 sps:$4 sm:$0xff]   ;;  %v4537_v1 = vld [vmem:[%s4734_s28 + $0x19c] ss:$28 sps:$4 sm:$0xff]  }
 0x116   : > { %v2134_v43 = vpop.f32.mrf.mxu0  ;;  %v2326_v44 = vpop.f32.mrf.mxu1 }
 0x118   : > { %v5057_v45 = vpop.f32.mrf.mxu0  ;;  %v5059_v46 = vpop.f32.mrf.mxu1 }
 0x11a   : > { %v2137_v51 = vpop.f32.mrf.mxu0  ;;  %v2329_v52 = vpop.f32.mrf.mxu1 }
 0x11b   : > { %v4532_v51 = vld [vmem:[%s4734_s28 + $0x510] ss:$28 sps:$4 sm:$0xff]   ;;  %v4535_v52 = vld [vmem:[%s4734_s28 + $0x198] ss:$28 sps:$4 sm:$0xff]  }
 0x11c   : > { %v5065_v53 = vpop.f32.mrf.mxu0  ;;  %v5067_v54 = vpop.f32.mrf.mxu1  ;;  %2556 = vmatmul.mubr.bf16.gmra.mxu1 %v4505_v47  ;;  %2717 = vmatmul.mubr.bf16.gmra.mxu0 %v4506_v48 }
 0x11d   : > { %2563 = vmatprep.mubr.bf16.mxu1 %v4507_v49  ;;  %2724 = vmatprep.mubr.bf16.mxu0 %v4509_v50 }
 0x11e   : > { %v2142_v55 = vpop.f32.mrf.mxu0  ;;  %v2334_v56 = vpop.f32.mrf.mxu1 }
 0x11f   : > { %v4540_v55 = vld [vmem:[%s4734_s28 + $0x54c] ss:$28 sps:$4 sm:$0xff]   ;;  %v4543_v56 = vld [vmem:[%s4734_s28 + $0x1d4] ss:$28 sps:$4 sm:$0xff]  }
 0x120   : > { %v5069_v57 = vpop.f32.mrf.mxu0  ;;  %v5071_v58 = vpop.f32.mrf.mxu1 }
 0x122   : > { %v2145_v63 = vpop.f32.mrf.mxu0  ;;  %v2337_v0 = vpop.f32.mrf.mxu1 }
 0x124   : > { %v5077_v2 = vpop.f32.mrf.mxu0  ;;  %v5079_v3 = vpop.f32.mrf.mxu1  ;;  %2564 = vmatmul.mubr.bf16.gmra.mxu1 %v4511_v59  ;;  %2725 = vmatmul.mubr.bf16.gmra.mxu0 %v4512_v60 }
 0x125   : > { %2571 = vmatprep.mubr.bf16.mxu1 %v4515_v61  ;;  %2732 = vmatprep.mubr.bf16.mxu0 %v4518_v62 }
 0x126   : > { %v2150_v4 = vpop.f32.mrf.mxu0  ;;  %v2342_v5 = vpop.f32.mrf.mxu1 }
 0x127   : > { %v5132_v4 = vld [vmem:[%s5954_s2] ss:$0 sm:$0xff] }
 0x128   : > { %v5081_v6 = vpop.f32.mrf.mxu0  ;;  %v5083_v7 = vpop.f32.mrf.mxu1 }
 0x12a   : > { %v2153_v12 = vpop.f32.mrf.mxu0  ;;  %v2345_v13 = vpop.f32.mrf.mxu1 }
 0x12b   : > { %v4549_v12 = vld [vmem:[%s4734_s28 + $0x20c] ss:$28 sps:$4 sm:$0xff]  }
 0x12c   : > { %v5089_v14 = vpop.f32.mrf.mxu0  ;;  %v5091_v15 = vpop.f32.mrf.mxu1  ;;  %2572 = vmatmul.mubr.bf16.gmra.mxu1 %v4513_v8  ;;  %2733 = vmatmul.mubr.bf16.gmra.mxu0 %v4516_v9  ;;  %v4538_v9 = vld [vmem:[%s4734_s28 + $0x548] ss:$28 sps:$4 sm:$0xff]  }
 0x12d   : > { %5956 = vst [vmem:[#allocation2_spill] sm:$0xff] %v5091_v15  ;;  %2579 = vmatprep.mubr.bf16.mxu1 %v4521_v10  ;;  %2740 = vmatprep.mubr.bf16.mxu0 %v4524_v11  ;;  %v4541_v10 = vld [vmem:[%s4734_s28 + $0x1d0] ss:$28 sps:$4 sm:$0xff]   ;;  %v4546_v11 = vld [vmem:[%s4734_s28 + $0x584] ss:$28 sps:$4 sm:$0xff]  }
 0x12e   : > { %v2158_v16 = vpop.f32.mrf.mxu0  ;;  %v2350_v17 = vpop.f32.mrf.mxu1 }
 0x12f   : > { %v2125_v17 = vadd.f32 %v5132_v4, %v5041_v30  ;;  %v4544_v30 = vld [vmem:[%s4734_s28 + $0x580] ss:$28 sps:$4 sm:$0xff]  }
 0x130   : > { %v5093_v18 = vpop.f32.mrf.mxu0  ;;  %v5095_v19 = vpop.f32.mrf.mxu1 }
 0x131   : > { %5957 = vst [vmem:[#allocation3_spill] sm:$0xff] %v5095_v19  ;;  %v4615_v19 = vld [vmem:[%s4734_s28 + $0x248] ss:$28 sps:$4 sm:$0xff]  }
 0x132   : > { %v2161_v24 = vpop.f32.mrf.mxu0  ;;  %v2353_v25 = vpop.f32.mrf.mxu1 }
 0x133   : > { %v2128_v25 = vadd.f32 %v5132_v4, %v5045_v34 }
 0x134   : > { %v5101_v26 = vpop.f32.mrf.mxu0  ;;  %v5103_v27 = vpop.f32.mrf.mxu1  ;;  %2580 = vmatmul.mubr.bf16.gmra.mxu1 %v4519_v20  ;;  %2741 = vmatmul.mubr.bf16.gmra.mxu0 %v4522_v21 }
 0x135   : > { %5958 = vst [vmem:[#allocation4_spill] sm:$0xff] %v5103_v27  ;;  %2587 = vmatprep.mubr.bf16.mxu1 %v4528_v22  ;;  %2748 = vmatprep.mubr.bf16.mxu0 %v4531_v23 }
 0x136   : > { %v2166_v28 = vpop.f32.mrf.mxu0  ;;  %v2358_v29 = vpop.f32.mrf.mxu1 }
 0x138   : > { %v5105_v32 = vpop.f32.mrf.mxu0  ;;  %v5107_v33 = vpop.f32.mrf.mxu1 }
 0x139   : > { %5959 = vst [vmem:[#allocation5_spill] sm:$0xff] %v5107_v33  ;;  %v4610_v33 = vld [vmem:[%s4734_s28 + $0x1d8] ss:$28 sps:$4 sm:$0xff]  }
 0x13a   : > { %v2169_v39 = vpop.f32.mrf.mxu0  ;;  %v2361_v40 = vpop.f32.mrf.mxu1 }
 0x13c   : > { %v5113_v43 = vpop.f32.mrf.mxu0  ;;  %v5115_v44 = vpop.f32.mrf.mxu1  ;;  %2588 = vmatmul.mubr.bf16.gmra.mxu1 %v4526_v36  ;;  %2749 = vmatmul.mubr.bf16.gmra.mxu0 %v4529_v37  ;;  %v4547_v36 = vld [vmem:[%s4734_s28 + $0x208] ss:$28 sps:$4 sm:$0xff]  }
 0x13d   : > { %5960 = vst [vmem:[#allocation6_spill] sm:$0xff] %v5115_v44  ;;  %2595 = vmatprep.mubr.bf16.mxu1 %v4534_v38  ;;  %2756 = vmatprep.mubr.bf16.mxu0 %v4537_v1  ;;  %v4552_v38 = vld [vmem:[%s4734_s28 + $0x5bc] ss:$28 sps:$4 sm:$0xff]   ;;  %v4555_v1 = vld [vmem:[%s4734_s28 + $0x244] ss:$28 sps:$4 sm:$0xff]  }
 0x13e   : > { %v2174_v47 = vpop.f32.mrf.mxu0  ;;  %v2366_v48 = vpop.f32.mrf.mxu1 }
 0x13f   : > { %v2133_v47 = vadd.f32 %v5132_v4, %v5053_v41  ;;  %v4550_v41 = vld [vmem:[%s4734_s28 + $0x5b8] ss:$28 sps:$4 sm:$0xff]  }
 0x140   : > { %v5117_v49 = vpop.f32.mrf.mxu0  ;;  %v5119_v50 = vpop.f32.mrf.mxu1 }
 0x141   : > { %5961 = vst [vmem:[#allocation7_spill] sm:$0xff] %v5119_v50  ;;  %v4605_v50 = vld [vmem:[%s4734_s28 + $0x168] ss:$28 sps:$4 sm:$0xff]  }
 0x142   : > { %v2177_v59 = vpop.f32.mrf.mxu0  ;;  %v2369_v60 = vpop.f32.mrf.mxu1 }
 0x144   : > { %v5125_v61 = vpop.f32.mrf.mxu0  ;;  %v5127_v62 = vpop.f32.mrf.mxu1  ;;  %2596 = vmatmul.mubr.bf16.gmra.mxu1 %v4532_v51  ;;  %2757 = vmatmul.mubr.bf16.gmra.mxu0 %v4535_v52 }
 0x145   : > { %5962 = vst [vmem:[#allocation8_spill] sm:$0xff] %v5127_v62  ;;  %2603 = vmatprep.mubr.bf16.mxu1 %v4540_v55  ;;  %2764 = vmatprep.mubr.bf16.mxu0 %v4543_v56  ;;  %v2136_v56 = vadd.f32 %v5132_v4, %v5057_v45 }
 0x146   : > { %v2182_v63 = vpop.f32.mrf.mxu0  ;;  %v2374_v0 = vpop.f32.mrf.mxu1 }
 0x147   : > { %v4553_v63 = vld [vmem:[%s4734_s28 + $0x240] ss:$28 sps:$4 sm:$0xff]  }
 0x148   : > { %v5134_v5 = vpop.f32.mrf.mxu0  ;;  %v5136_v8 = vpop.f32.mrf.mxu1 }
 0x149   : > { %5963 = vst [vmem:[#allocation9_spill] sm:$0xff] %v5136_v8  ;;  %v4600_v8 = vld [vmem:[%s4734_s28 + $0xf8] ss:$28 sps:$4 sm:$0xff]  }
 0x14a   : > { %v2185_v13 = vpop.f32.mrf.mxu0  ;;  %v2377_v16 = vpop.f32.mrf.mxu1 }
 0x14b   : > { %v2141_v13 = vadd.f32 %v5132_v4, %v5065_v53  ;;  %v4557_v53 = vld [vmem:[%s4734_s28 + $0x5f0] ss:$28 sps:$4 sm:$0xff]  }
 0x14c   : > { %v5144_v20 = vpop.f32.mrf.mxu0  ;;  %v2413_v21 = vpop.f32.mrf.mxu1  ;;  %2604 = vmatmul.mubr.bf16.gmra.mxu1 %v4538_v9  ;;  %2765 = vmatmul.mubr.bf16.gmra.mxu0 %v4541_v10  ;;  %v4559_v9 = vld [vmem:[%s4734_s28 + $0x5f4] ss:$28 sps:$4 sm:$0xff]   ;;  %v4562_v10 = vld [vmem:[%s4734_s28 + $0x27c] ss:$28 sps:$4 sm:$0xff]  }
 0x14d   : > { %v5146_v22 = vadd.f32 %v2413_v21, %v2125_v17  ;;  %2611 = vmatprep.mubr.bf16.mxu1 %v4546_v11  ;;  %2772 = vmatprep.mubr.bf16.mxu0 %v4549_v12 }
 0x14e   : > { %v2190_v23 = vpop.f32.mrf.mxu0  ;;  %v2415_v24 = vpop.f32.mrf.mxu1 }
 0x14f   : > { %v2144_v24 = vadd.f32 %v5132_v4, %v5069_v57 }
 0x150   : > { %v5150_v28 = vpop.f32.mrf.mxu0  ;;  %v2416_v29 = vpop.f32.mrf.mxu1 }
 0x151   : > { %v5154_v37 = vadd.f32 %v2416_v29, %v2128_v25 }
 0x152   : > { %v2193_v39 = vpop.f32.mrf.mxu0  ;;  %v2418_v40 = vpop.f32.mrf.mxu1 }
 0x154   : > { %v5160_v48 = vpop.f32.mrf.mxu0  ;;  %v2421_v34 = vpop.f32.mrf.mxu1  ;;  %2612 = vmatmul.mubr.bf16.gmra.mxu1 %v4544_v30  ;;  %2773 = vmatmul.mubr.bf16.gmra.mxu0 %v4547_v36  ;;  %v4560_v30 = vld [vmem:[%s4734_s28 + $0x278] ss:$28 sps:$4 sm:$0xff]  }
 0x155   : > { %v5162_v51 = vadd.f32 %v2421_v34, %v2133_v47  ;;  %2619 = vmatprep.mubr.bf16.mxu1 %v4552_v38  ;;  %2780 = vmatprep.mubr.bf16.mxu0 %v4555_v1  ;;  %v4565_v38 = vld [vmem:[%s4734_s28 + $0x62c] ss:$28 sps:$4 sm:$0xff]   ;;  %v4568_v1 = vld [vmem:[%s4734_s28 + $0x2b4] ss:$28 sps:$4 sm:$0xff]   ;;  %v2149_v47 = vadd.f32 %v5132_v4, %v5077_v2 }
 0x156   : > { %v2198_v52 = vpop.f32.mrf.mxu0  ;;  %v2423_v55 = vpop.f32.mrf.mxu1  ;;  %v4563_v2 = vld [vmem:[%s4734_s28 + $0x628] ss:$28 sps:$4 sm:$0xff]  }
 0x158   : > { %v5166_v59 = vpop.f32.mrf.mxu0  ;;  %v2424_v60 = vpop.f32.mrf.mxu1 }
 0x159   : > { %v5170_v0 = vadd.f32 %v2424_v60, %v2136_v56  ;;  %v2152_v60 = vadd.f32 %v5132_v4, %v5081_v6 }
 0x15a   : > { %v2201_v11 = vpop.f32.mrf.mxu0  ;;  %v2426_v12 = vpop.f32.mrf.mxu1 }
 0x15b   : > { %v4571_v11 = vld [vmem:[%s4734_s28 + $0x664] ss:$28 sps:$4 sm:$0xff]   ;;  %v4574_v12 = vld [vmem:[%s4734_s28 + $0x2ec] ss:$28 sps:$4 sm:$0xff]  }
 0x15c   : > { %v5176_v16 = vpop.f32.mrf.mxu0  ;;  %v2429_v45 = vpop.f32.mrf.mxu1  ;;  %2620 = vmatmul.mubr.bf16.gmra.mxu1 %v4550_v41  ;;  %2781 = vmatmul.mubr.bf16.gmra.mxu0 %v4553_v63 }
 0x15d   : > { %v5178_v17 = vadd.f32 %v2429_v45, %v2141_v13  ;;  %2627 = vmatprep.mubr.bf16.mxu1 %v4559_v9  ;;  %2788 = vmatprep.mubr.bf16.mxu0 %v4562_v10  ;;  %v4566_v9 = vld [vmem:[%s4734_s28 + $0x2b0] ss:$28 sps:$4 sm:$0xff]  }
 0x15e   : > { %v2206_v21 = vpop.f32.mrf.mxu0  ;;  %v2431_v23 = vpop.f32.mrf.mxu1 }
 0x15f   : > { %v2157_v21 = vadd.f32 %v5132_v4, %v5089_v14  ;;  %v4569_v14 = vld [vmem:[%s4734_s28 + $0x660] ss:$28 sps:$4 sm:$0xff]  }
 0x160   : > { %v5182_v25 = vpop.f32.mrf.mxu0  ;;  %v2432_v29 = vpop.f32.mrf.mxu1 }
 0x161   : > { %v5186_v36 = vadd.f32 %v2432_v29, %v2144_v24 }
 0x162   : > { %v2209_v39 = vpop.f32.mrf.mxu0  ;;  %v2434_v40 = vpop.f32.mrf.mxu1 }
 0x163   : > { %v4572_v39 = vld [vmem:[%s4734_s28 + $0x2e8] ss:$28 sps:$4 sm:$0xff]  }
 0x164   : > { %v5192_v34 = vpop.f32.mrf.mxu0  ;;  %v2437_v57 = vpop.f32.mrf.mxu1  ;;  %2628 = vmatmul.mubr.bf16.gmra.mxu1 %v4557_v53  ;;  %2789 = vmatmul.mubr.bf16.gmra.mxu0 %v4560_v30  ;;  %v2160_v30 = vadd.f32 %v5132_v4, %v5093_v18 }
 0x165   : > { %v5194_v52 = vadd.f32 %v2437_v57, %v2149_v47  ;;  %2635 = vmatprep.mubr.bf16.mxu1 %v4565_v38  ;;  %2796 = vmatprep.mubr.bf16.mxu0 %v4568_v1  ;;  %v4577_v47 = vld [vmem:[%s4734_s28 + $0x69c] ss:$28 sps:$4 sm:$0xff]   ;;  %v4580_v57 = vld [vmem:[%s4734_s28 + $0x324] ss:$28 sps:$4 sm:$0xff]  }
 0x166   : > { %v2214_v55 = vpop.f32.mrf.mxu0  ;;  %v2439_v56 = vpop.f32.mrf.mxu1 }
 0x168   : > { %v5198_v41 = vpop.f32.mrf.mxu0  ;;  %v2440_v63 = vpop.f32.mrf.mxu1 }
 0x169   : > { %v5202_v10 = vadd.f32 %v2440_v63, %v2152_v60  ;;  %v2165_v60 = vadd.f32 %v5132_v4, %v5101_v26  ;;  %v4575_v26 = vld [vmem:[%s4734_s28 + $0x698] ss:$28 sps:$4 sm:$0xff]  }
 0x16a   : > { %v2217_v13 = vpop.f32.mrf.mxu0  ;;  %v2442_v45 = vpop.f32.mrf.mxu1 }
 0x16c   : > { %v5208_v23 = vpop.f32.mrf.mxu0  ;;  %v2445_v6 = vpop.f32.mrf.mxu1  ;;  %2636 = vmatmul.mubr.bf16.gmra.mxu1 %v4563_v2  ;;  %2797 = vmatmul.mubr.bf16.gmra.mxu0 %v4566_v9 }
 0x16d   : > { %v5210_v24 = vadd.f32 %v2445_v6, %v2157_v21  ;;  %2643 = vmatprep.mubr.bf16.mxu1 %v4571_v11  ;;  %2804 = vmatprep.mubr.bf16.mxu0 %v4574_v12  ;;  %v2168_v12 = vadd.f32 %v5132_v4, %v5105_v32  ;;  %v4578_v21 = vld [vmem:[%s4734_s28 + $0x320] ss:$28 sps:$4 sm:$0xff]  }
 0x16e   : > { %v2222_v29 = vpop.f32.mrf.mxu0  ;;  %v2447_v53 = vpop.f32.mrf.mxu1 }
 0x16f   : > { %v4583_v29 = vld [vmem:[%s4734_s28 + $0x6d4] ss:$28 sps:$4 sm:$0xff]   ;;  %v4586_v53 = vld [vmem:[%s4734_s28 + $0x35c] ss:$28 sps:$4 sm:$0xff]  }
 0x170   : > { %v5214_v38 = vpop.f32.mrf.mxu0  ;;  %v2448_v1 = vpop.f32.mrf.mxu1 }
 0x171   : > { %v5218_v40 = vadd.f32 %v2448_v1, %v2160_v30 }
 0x172   : > { %v2225_v55 = vpop.f32.mrf.mxu0  ;;  %v2450_v56 = vpop.f32.mrf.mxu1 }
 0x173   : > { %v2176_v56 = vadd.f32 %v5132_v4, %v5117_v49 }
 0x174   : > { %v5224_v63 = vpop.f32.mrf.mxu0  ;;  %v2453_v18 = vpop.f32.mrf.mxu1  ;;  %2644 = vmatmul.mubr.bf16.gmra.mxu1 %v4569_v14  ;;  %2805 = vmatmul.mubr.bf16.gmra.mxu0 %v4572_v39  ;;  %v2173_v14 = vadd.f32 %v5132_v4, %v5113_v43  ;;  %v4581_v43 = vld [vmem:[%s4734_s28 + $0x6d0] ss:$28 sps:$4 sm:$0xff]  }
 0x175   : > { %v5226_v2 = vadd.f32 %v2453_v18, %v2165_v60  ;;  %2651 = vmatprep.mubr.bf16.mxu1 %v4577_v47  ;;  %2812 = vmatprep.mubr.bf16.mxu0 %v4580_v57 }
 0x176   : > { %v2230_v9 = vpop.f32.mrf.mxu0  ;;  %v2455_v11 = vpop.f32.mrf.mxu1 }
 0x177   : > { %v4584_v9 = vld [vmem:[%s4734_s28 + $0x358] ss:$28 sps:$4 sm:$0xff]  }
 0x178   : > { %v5230_v13 = vpop.f32.mrf.mxu0  ;;  %v2456_v45 = vpop.f32.mrf.mxu1 }
 0x179   : > { %v5234_v6 = vadd.f32 %v2456_v45, %v2168_v12  ;;  %v4589_v12 = vld [vmem:[%s4734_s28 + $0x394] ss:$28 sps:$4 sm:$0xff]  }
 0x17a   : > { %v2233_v30 = vpop.f32.mrf.mxu0  ;;  %v2458_v1 = vpop.f32.mrf.mxu1  ;;  %v4590_v45 = vld [vmem:[%s4734_s28 + $0x18] ss:$28 sps:$4 sm:$0xff]  }
 0x17c   : > { %v5240_v39 = vpop.f32.mrf.mxu0  ;;  %v2461_v32 = vpop.f32.mrf.mxu1  ;;  %2652 = vmatmul.mubr.bf16.gmra.mxu1 %v4575_v26  ;;  %2813 = vmatmul.mubr.bf16.gmra.mxu0 %v4578_v21 }
 0x17d   : > { %v5242_v47 = vadd.f32 %v2461_v32, %v2173_v14  ;;  %2659 = vmatprep.mubr.bf16.mxu1 %v4583_v29  ;;  %2820 = vmatprep.mubr.bf16.mxu0 %v4586_v53  ;;  %v2181_v29 = vadd.f32 %v5132_v4, %v5125_v61  ;;  %v2184_v32 = vadd.f32 %v5132_v4, %v5134_v5 }
 0x17e   : > { %v2238_v57 = vpop.f32.mrf.mxu0  ;;  %v2463_v55 = vpop.f32.mrf.mxu1 }
 0x17f   : > { %v4587_v55 = vld [vmem:[%s4734_s28 + $0x390] ss:$28 sps:$4 sm:$0xff]  }
 0x180   : > { %v5246_v60 = vpop.f32.mrf.mxu0  ;;  %v2464_v18 = vpop.f32.mrf.mxu1 }
 0x181   : > { %v5250_v11 = vadd.f32 %v2464_v18, %v2176_v56  ;;  %v4591_v56 = vld [vmem:[%s4734_s28 + $0x50] ss:$28 sps:$4 sm:$0xff]  }
 0x182   : > { %v2241_v26 = vpop.f32.mrf.mxu0  ;;  %v2466_v21 = vpop.f32.mrf.mxu1 }
 0x183   : > { %v4594_v26 = vld [vmem:[%s4734_s28 + $0x3cc] ss:$28 sps:$4 sm:$0xff]  }
 0x184   : > { %v5256_v53 = vpop.f32.mrf.mxu0  ;;  %v2469_v49 = vpop.f32.mrf.mxu1  ;;  %2660 = vmatmul.mubr.bf16.gmra.mxu1 %v4581_v43  ;;  %2821 = vmatmul.mubr.bf16.gmra.mxu0 %v4584_v9  ;;  %v4595_v43 = vld [vmem:[%s4734_s28 + $0x88] ss:$28 sps:$4 sm:$0xff]  }
 0x185   : > { %v5258_v30 = vadd.f32 %v2469_v49, %v2181_v29  ;;  %2828 = vmatprep.mubr.bf16.mxu0 %v4589_v12  ;;  %4187 = vmatprep.mubr.msk.bf16.mxu1 %vm1993_vm0, %v4590_v45  ;;  %v2189_v45 = vadd.f32 %v5132_v4, %v5144_v20 }
 0x186   : > { %v2246_v1 = vpop.f32.mrf.mxu0  ;;  %v2471_v14 = vpop.f32.mrf.mxu1 }
 0x187   : > { %v2192_v14 = vadd.f32 %v5132_v4, %v5150_v28 }
 0x188   : > { %v5263_v57 = vpop.f32.mrf.mxu0  ;;  %v2472_v61 = vpop.f32.mrf.mxu1 }
 0x189   : > { %v5267_v18 = vadd.f32 %v2472_v61, %v2184_v32  ;;  %v4592_v61 = vld [vmem:[%s4734_s28 + $0x3c8] ss:$28 sps:$4 sm:$0xff]  }
 0x18a   : > { %v2249_v9 = vpop.f32.mrf.mxu0  ;;  %v2474_v12 = vpop.f32.mrf.mxu1 }
 0x18b   : > { %v4596_v9 = vld [vmem:[%s4734_s28 + $0xc0] ss:$28 sps:$4 sm:$0xff]  }
 0x18c   : > { %v5273_v21 = vpop.f32.mrf.mxu0  ;;  %v2477_v5 = vpop.f32.mrf.mxu1  ;;  %2829 = vmatmul.mubr.bf16.gmra.mxu0 %v4587_v55  ;;  %4188 = vmatmul.mubr.msk.bf16.vlgmr.msra.gmra.mxu1 %vm1993_vm0, %v4591_v56  ;;  %v4599_v55 = vld [vmem:[%s4734_s28 + $0x404] ss:$28 sps:$4 sm:$0xff]  }
 0x18d   : > { %v5276_v29 = vadd.f32 %v2477_v5, %v2189_v45  ;;  %2836 = vmatprep.mubr.bf16.mxu0 %v4594_v26  ;;  %4191 = vmatprep.mubr.msk.bf16.mxu1 %vm1993_vm0, %v4595_v43  ;;  %v2197_v43 = vadd.f32 %v5132_v4, %v5160_v48 }
 0x18e   : > { %v2254_v49 = vpop.f32.mrf.mxu0  ;;  %v2479_v1 = vpop.f32.mrf.mxu1 }
 0x190   : > { %v5281_v32 = vpop.f32.mrf.mxu0  ;;  %v2480_v20 = vpop.f32.mrf.mxu1 }
 0x191   : > { %v5285_v12 = vadd.f32 %v2480_v20, %v2192_v14  ;;  %v2200_v14 = vadd.f32 %v5132_v4, %v5166_v59 }
 0x192   : > { %v2257_v56 = vpop.f32.mrf.mxu0  ;;  %v2482_v26 = vpop.f32.mrf.mxu1 }
 0x193   : > { %v4597_v56 = vld [vmem:[%s4734_s28 + $0x400] ss:$28 sps:$4 sm:$0xff]   ;;  %v4601_v26 = vld [vmem:[%s4734_s28 + $0x130] ss:$28 sps:$4 sm:$0xff]  }
 0x194   : > { %v5291_v45 = vpop.f32.mrf.mxu0  ;;  %v2485_v28 = vpop.f32.mrf.mxu1  ;;  %2837 = vmatmul.mubr.bf16.gmra.mxu0 %v4592_v61  ;;  %4192 = vmatmul.mubr.msk.bf16.gmra.mxu1 %vm1993_vm0, %v4596_v9  ;;  %v4604_v61 = vld [vmem:[%s4734_s28 + $0x43c] ss:$28 sps:$4 sm:$0xff]  }
 0x195   : > { %v5294_v5 = vadd.f32 %v2485_v28, %v2197_v43  ;;  %2844 = vmatprep.mubr.bf16.mxu0 %v4599_v55  ;;  %4195 = vmatprep.mubr.msk.bf16.mxu1 %vm1993_vm0, %v4600_v8  ;;  %v2205_v8 = vadd.f32 %v5132_v4, %v5176_v16 }
 0x196   : > { %v2262_v49 = vpop.f32.mrf.mxu0  ;;  %v2487_v1 = vpop.f32.mrf.mxu1 }
 0x198   : > { %v5299_v20 = vpop.f32.mrf.mxu0  ;;  %v2488_v48 = vpop.f32.mrf.mxu1 }
 0x199   : > { %v5303_v62 = vadd.f32 %v2488_v48, %v2200_v14  ;;  %v2208_v14 = vadd.f32 %v5132_v4, %v5182_v25 }
 0x19a   : > { %v2265_v9 = vpop.f32.mrf.mxu0  ;;  %v2490_v55 = vpop.f32.mrf.mxu1 }
 0x19b   : > { %v4602_v9 = vld [vmem:[%s4734_s28 + $0x438] ss:$28 sps:$4 sm:$0xff]   ;;  %v4606_v55 = vld [vmem:[%s4734_s28 + $0x1a0] ss:$28 sps:$4 sm:$0xff]  }
 0x19c   : > { %v5309_v43 = vpop.f32.mrf.mxu0  ;;  %v2493_v59 = vpop.f32.mrf.mxu1  ;;  %2845 = vmatmul.mubr.bf16.gmra.mxu0 %v4597_v56  ;;  %4196 = vmatmul.mubr.msk.bf16.gmra.mxu1 %vm1993_vm0, %v4601_v26  ;;  %v4609_v56 = vld [vmem:[%s4734_s28 + $0x474] ss:$28 sps:$4 sm:$0xff]  }
 0x19d   : > { %v5312_v28 = vadd.f32 %v2493_v59, %v2205_v8  ;;  %2852 = vmatprep.mubr.bf16.mxu0 %v4604_v61  ;;  %4199 = vmatprep.mubr.msk.bf16.mxu1 %vm1993_vm0, %v4605_v50  ;;  %v2213_v50 = vadd.f32 %v5132_v4, %v5192_v34 }
 0x19e   : > { %v2270_v49 = vpop.f32.mrf.mxu0  ;;  %v2495_v1 = vpop.f32.mrf.mxu1 }
 0x1a0   : > { %v5317_v48 = vpop.f32.mrf.mxu0  ;;  %v2496_v16 = vpop.f32.mrf.mxu1 }
 0x1a1   : > { %v5321_v44 = vadd.f32 %v2496_v16, %v2208_v14  ;;  %v2216_v14 = vadd.f32 %v5132_v4, %v5198_v41 }
 0x1a2   : > { %v2273_v26 = vpop.f32.mrf.mxu0  ;;  %v2498_v61 = vpop.f32.mrf.mxu1 }
 0x1a3   : > { %v4607_v26 = vld [vmem:[%s4734_s28 + $0x470] ss:$28 sps:$4 sm:$0xff]  }
 0x1a4   : > { %v5327_v8 = vpop.f32.mrf.mxu0  ;;  %v2501_v25 = vpop.f32.mrf.mxu1  ;;  %2853 = vmatmul.mubr.bf16.gmra.mxu0 %v4602_v9  ;;  %4200 = vmatmul.mubr.msk.bf16.gmra.mxu1 %vm1993_vm0, %v4606_v55  ;;  %v4611_v61 = vld [vmem:[%s4734_s28 + $0x210] ss:$28 sps:$4 sm:$0xff]  }
 0x1a5   : > { %v5330_v59 = vadd.f32 %v2501_v25, %v2213_v50  ;;  %2860 = vmatprep.mubr.bf16.mxu0 %v4609_v56  ;;  %4203 = vmatprep.mubr.msk.bf16.mxu1 %vm1993_vm0, %v4610_v33  ;;  %v4614_v9 = vld [vmem:[%s4734_s28 + $0x4ac] ss:$28 sps:$4 sm:$0xff]   ;;  %v2221_v33 = vadd.f32 %v5132_v4, %v5208_v23 }
 0x1a6   : > { %v2278_v49 = vpop.f32.mrf.mxu0  ;;  %v2503_v1 = vpop.f32.mrf.mxu1 }
 0x1a8   : > { %v5335_v16 = vpop.f32.mrf.mxu0  ;;  %v2504_v34 = vpop.f32.mrf.mxu1 }
 0x1a9   : > { %v5339_v27 = vadd.f32 %v2504_v34, %v2216_v14  ;;  %v2224_v14 = vadd.f32 %v5132_v4, %v5214_v38 }
 0x1aa   : > { %v2281_v55 = vpop.f32.mrf.mxu0  ;;  %v2506_v56 = vpop.f32.mrf.mxu1 }
 0x1ab   : > { %5964 = vst [vmem:[#allocation10_spill] sm:$0xff] %v5339_v27  ;;  %v4612_v55 = vld [vmem:[%s4734_s28 + $0x4a8] ss:$28 sps:$4 sm:$0xff]   ;;  %v4616_v56 = vld [vmem:[%s4734_s28 + $0x280] ss:$28 sps:$4 sm:$0xff]  }
 0x1ac   : > { %v5345_v50 = vpop.f32.mrf.mxu0  ;;  %v2509_v41 = vpop.f32.mrf.mxu1  ;;  %2861 = vmatmul.mubr.bf16.gmra.mxu0 %v4607_v26  ;;  %4204 = vmatmul.mubr.msk.bf16.gmra.mxu1 %vm1993_vm0, %v4611_v61  ;;  %v4619_v26 = vld [vmem:[%s4734_s28 + $0x4e4] ss:$28 sps:$4 sm:$0xff]   ;;  %v4620_v27 = vld [vmem:[%s4734_s28 + $0x2b8] ss:$28 sps:$4 sm:$0xff]  }
 0x1ad   : > { %v5348_v25 = vadd.f32 %v2509_v41, %v2221_v33  ;;  %2868 = vmatprep.mubr.bf16.mxu0 %v4614_v9  ;;  %4207 = vmatprep.mubr.msk.bf16.mxu1 %vm1993_vm0, %v4615_v19  ;;  %v2229_v19 = vadd.f32 %v5132_v4, %v5224_v63 }
 0x1ae   : > { %v2286_v49 = vpop.f32.mrf.mxu0  ;;  %v2511_v1 = vpop.f32.mrf.mxu1 }
 0x1af   : > { %5965 = vst [vmem:[#allocation11_spill] sm:$0xff] %v5348_v25  ;;  %v4625_v25 = vld [vmem:[%s4734_s28 + $0x328] ss:$28 sps:$4 sm:$0xff]  }
 0x1b0   : > { %v5353_v34 = vpop.f32.mrf.mxu0  ;;  %v2512_v23 = vpop.f32.mrf.mxu1 }
 0x1b1   : > { %v5357_v15 = vadd.f32 %v2512_v23, %v2224_v14  ;;  %v2232_v14 = vadd.f32 %v5132_v4, %v5230_v13 }
 0x1b2   : > { %v2289_v61 = vpop.f32.mrf.mxu0  ;;  %v2514_v9 = vpop.f32.mrf.mxu1 }
 0x1b3   : > { %5966 = vst [vmem:[#allocation12_spill] sm:$0xff] %v5357_v15  ;;  %v4617_v61 = vld [vmem:[%s4734_s28 + $0x4e0] ss:$28 sps:$4 sm:$0xff]   ;;  %v4621_v9 = vld [vmem:[%s4734_s28 + $0x2f0] ss:$28 sps:$4 sm:$0xff]  }
 0x1b4   : > { %v5363_v33 = vpop.f32.mrf.mxu0  ;;  %v2517_v38 = vpop.f32.mrf.mxu1  ;;  %2869 = vmatmul.mubr.bf16.gmra.mxu0 %v4612_v55  ;;  %4208 = vmatmul.mubr.msk.bf16.gmra.mxu1 %vm1993_vm0, %v4616_v56  ;;  %v4624_v55 = vld [vmem:[%s4734_s28 + $0x51c] ss:$28 sps:$4 sm:$0xff]  }
 0x1b5   : > { %v5366_v41 = vadd.f32 %v2517_v38, %v2229_v19  ;;  %2876 = vmatprep.mubr.bf16.mxu0 %v4619_v26  ;;  %4211 = vmatprep.mubr.msk.bf16.mxu1 %vm1993_vm0, %v4620_v27  ;;  %v2237_v27 = vadd.f32 %v5132_v4, %v5240_v39 }
 0x1b6   : > { %v2294_v49 = vpop.f32.mrf.mxu0  ;;  %v2519_v1 = vpop.f32.mrf.mxu1 }
 0x1b7   : > { %5967 = vst [vmem:[#allocation13_spill] sm:$0xff] %v5366_v41  ;;  %v4630_v41 = vld [vmem:[%s4734_s28 + $0x398] ss:$28 sps:$4 sm:$0xff]  }
 0x1b8   : > { %v5371_v23 = vpop.f32.mrf.mxu0  ;;  %v2520_v63 = vpop.f32.mrf.mxu1 }
 0x1b9   : > { %v5375_v15 = vadd.f32 %v2520_v63, %v2232_v14  ;;  %v2240_v14 = vadd.f32 %v5132_v4, %v5246_v60 }
 0x1ba   : > { %v2297_v56 = vpop.f32.mrf.mxu0  ;;  %v2522_v26 = vpop.f32.mrf.mxu1 }
 0x1bb   : > { %5968 = vst [vmem:[#allocation14_spill] sm:$0xff] %v5375_v15  ;;  %v4622_v56 = vld [vmem:[%s4734_s28 + $0x518] ss:$28 sps:$4 sm:$0xff]   ;;  %v4626_v26 = vld [vmem:[%s4734_s28 + $0x360] ss:$28 sps:$4 sm:$0xff]  }
 0x1bc   : > { %v5381_v19 = vpop.f32.mrf.mxu0  ;;  %v2525_v13 = vpop.f32.mrf.mxu1  ;;  %2877 = vmatmul.mubr.bf16.gmra.mxu0 %v4617_v61  ;;  %4212 = vmatmul.mubr.msk.bf16.gmra.mxu1 %vm1993_vm0, %v4621_v9  ;;  %v4629_v61 = vld [vmem:[%s4734_s28 + $0x554] ss:$28 sps:$4 sm:$0xff]  }
 0x1bd   : > { %v5384_v38 = vadd.f32 %v2525_v13, %v2237_v27  ;;  %2884 = vmatprep.mubr.bf16.mxu0 %v4624_v55  ;;  %4215 = vmatprep.mubr.msk.bf16.mxu1 %vm1993_vm0, %v4625_v25  ;;  %v2245_v25 = vadd.f32 %v5132_v4, %v5256_v53 }
 0x1be   : > { %v2302_v49 = vpop.f32.mrf.mxu0  ;;  %v2527_v1 = vpop.f32.mrf.mxu1 }
 0x1bf   : > { %5969 = vst [vmem:[#allocation15_spill] sm:$0xff] %v5384_v38  ;;  %v4635_v38 = vld [vmem:[%s4734_s28 + $0x408] ss:$28 sps:$4 sm:$0xff]  }
 0x1c0   : > { %v5389_v63 = vpop.f32.mrf.mxu0  ;;  %v2528_v39 = vpop.f32.mrf.mxu1 }
 0x1c1   : > { %v5393_v15 = vadd.f32 %v2528_v39, %v2240_v14  ;;  %v2248_v14 = vadd.f32 %v5132_v4, %v5263_v57 }
 0x1c2   : > { %v2305_v9 = vpop.f32.mrf.mxu0  ;;  %v2530_v55 = vpop.f32.mrf.mxu1 }
 0x1c3   : > { %5970 = vst [vmem:[#allocation16_spill] sm:$0xff] %v5393_v15  ;;  %v4627_v9 = vld [vmem:[%s4734_s28 + $0x550] ss:$28 sps:$4 sm:$0xff]  }
 0x1c4   : > { %v5399_v27 = vpop.f32.mrf.mxu0  ;;  %v2533_v60 = vpop.f32.mrf.mxu1  ;;  %2885 = vmatmul.mubr.bf16.gmra.mxu0 %v4622_v56  ;;  %4216 = vmatmul.mubr.msk.bf16.gmra.mxu1 %vm1993_vm0, %v4626_v26  ;;  %v4631_v55 = vld [vmem:[%s4734_s28 + $0x3d0] ss:$28 sps:$4 sm:$0xff]  }
 0x1c5   : > { %v5402_v13 = vadd.f32 %v2533_v60, %v2245_v25  ;;  %2892 = vmatprep.mubr.bf16.mxu0 %v4629_v61  ;;  %4219 = vmatprep.mubr.msk.bf16.mxu1 %vm1993_vm0, %v4630_v41  ;;  %v4634_v56 = vld [vmem:[%s4734_s28 + $0x58c] ss:$28 sps:$4 sm:$0xff]   ;;  %v2253_v41 = vadd.f32 %v5132_v4, %v5273_v21  ;;  %v2256_v21 = vadd.f32 %v5132_v4, %v5281_v32 }
 0x1c6   : > { %v2310_v49 = vpop.f32.mrf.mxu0  ;;  %v2535_v1 = vpop.f32.mrf.mxu1 }
 0x1c8   : > { %v5407_v39 = vpop.f32.mrf.mxu0  ;;  %v2536_v53 = vpop.f32.mrf.mxu1 }
 0x1c9   : > { %v5411_v15 = vadd.f32 %v2536_v53, %v2248_v14 }
 0x1ca   : > { %v2313_v26 = vpop.f32.mrf.mxu0  ;;  %v2538_v25 = vpop.f32.mrf.mxu1 }
 0x1cb   : > { %5971 = vst [vmem:[#allocation17_spill] sm:$0xff] %v5411_v15  ;;  %v4632_v25 = vld [vmem:[%s4734_s28 + $0x588] ss:$28 sps:$4 sm:$0xff]  }
 0x1cc   : > { %v2541_v61 = vpop.f32.mrf.mxu1  ;;  %v2702_v60 = vpop.f32.mrf.mxu0  ;;  %2893 = vmatmul.mubr.bf16.gmra.mxu0 %v4627_v9  ;;  %4220 = vmatmul.mubr.msk.bf16.gmra.mxu1 %vm1993_vm0, %v4631_v55  ;;  %v4636_v9 = vld [vmem:[%s4734_s28 + $0x440] ss:$28 sps:$4 sm:$0xff]  }
 0x1cd   : > { %v5418_v57 = vadd.f32 %v2541_v61, %v2253_v41  ;;  %v5421_v49 = vadd.f32 %v2702_v60, %v5146_v22  ;;  %2900 = vmatprep.mubr.bf16.mxu0 %v4634_v56  ;;  %4223 = vmatprep.mubr.msk.bf16.mxu1 %vm1993_vm0, %v4635_v38  ;;  %v4639_v41 = vld [vmem:[%s4734_s28 + $0x5c4] ss:$28 sps:$4 sm:$0xff]   ;;  %v4640_v22 = vld [vmem:[%s4734_s28 + $0x478] ss:$28 sps:$4 sm:$0xff]   ;;  %v2261_v38 = vadd.f32 %v5132_v4, %v5291_v45 }
 0x1ce   : > { %v2543_v1 = vpop.f32.mrf.mxu1  ;;  %v2704_v14 = vpop.f32.mrf.mxu0  ;;  %v2264_v45 = vadd.f32 %v5132_v4, %v5299_v20 }
 0x1d0   : > { %v2544_v53 = vpop.f32.mrf.mxu1  ;;  %v2705_v26 = vpop.f32.mrf.mxu0 }
 0x1d1   : > { %v5428_v15 = vadd.f32 %v2544_v53, %v2256_v21  ;;  %v5431_v55 = vadd.f32 %v2705_v26, %v5154_v37 }
 0x1d2   : > { %v2546_v61 = vpop.f32.mrf.mxu1  ;;  %v2707_v56 = vpop.f32.mrf.mxu0 }
 0x1d3   : > { %v4637_v61 = vld [vmem:[%s4734_s28 + $0x5c0] ss:$28 sps:$4 sm:$0xff]  }
 0x1d4   : > { %v2549_v60 = vpop.f32.mrf.mxu1  ;;  %v2710_v32 = vpop.f32.mrf.mxu0  ;;  %2901 = vmatmul.mubr.bf16.gmra.mxu0 %v4632_v25  ;;  %4224 = vmatmul.mubr.msk.bf16.gmra.mxu1 %vm1993_vm0, %v4636_v9  ;;  %v4641_v25 = vld [vmem:[%s4734_s28 + $0x4b0] ss:$28 sps:$4 sm:$0xff]  }
 0x1d5   : > { %v5438_v1 = vadd.f32 %v2549_v60, %v2261_v38  ;;  %v5441_v37 = vadd.f32 %v2710_v32, %v5162_v51  ;;  %2908 = vmatprep.mubr.bf16.mxu0 %v4639_v41  ;;  %4227 = vmatprep.mubr.msk.bf16.mxu1 %vm1993_vm0, %v4640_v22  ;;  %v4644_v38 = vld [vmem:[%s4734_s28 + $0x5fc] ss:$28 sps:$4 sm:$0xff]   ;;  %v4645_v51 = vld [vmem:[%s4734_s28 + $0x4e8] ss:$28 sps:$4 sm:$0xff]   ;;  %v2269_v22 = vadd.f32 %v5132_v4, %v5309_v43 }
 0x1d6   : > { %v2551_v14 = vpop.f32.mrf.mxu1  ;;  %v2712_v21 = vpop.f32.mrf.mxu0  ;;  %v2272_v43 = vadd.f32 %v5132_v4, %v5317_v48 }
 0x1d8   : > { %v2552_v53 = vpop.f32.mrf.mxu1  ;;  %v2713_v26 = vpop.f32.mrf.mxu0 }
 0x1d9   : > { %v5448_v56 = vadd.f32 %v2552_v53, %v2264_v45  ;;  %v5451_v9 = vadd.f32 %v2713_v26, %v5170_v0 }
 0x1da   : > { %v2554_v60 = vpop.f32.mrf.mxu1  ;;  %v2715_v41 = vpop.f32.mrf.mxu0 }
 0x1db   : > { %v4642_v60 = vld [vmem:[%s4734_s28 + $0x5f8] ss:$28 sps:$4 sm:$0xff]  }
 0x1dc   : > { %v2557_v32 = vpop.f32.mrf.mxu1  ;;  %v2718_v20 = vpop.f32.mrf.mxu0  ;;  %2909 = vmatmul.mubr.bf16.gmra.mxu0 %v4637_v61  ;;  %4228 = vmatmul.mubr.msk.bf16.gmra.mxu1 %vm1993_vm0, %v4641_v25  ;;  %v4646_v61 = vld [vmem:[%s4734_s28 + $0x520] ss:$28 sps:$4 sm:$0xff]  }
 0x1dd   : > { %v5458_v14 = vadd.f32 %v2557_v32, %v2269_v22  ;;  %v5461_v0 = vadd.f32 %v2718_v20, %v5178_v17  ;;  %2916 = vmatprep.mubr.bf16.mxu0 %v4644_v38  ;;  %4231 = vmatprep.mubr.msk.bf16.mxu1 %vm1993_vm0, %v4645_v51  ;;  %v4649_v22 = vld [vmem:[%s4734_s28 + $0x634] ss:$28 sps:$4 sm:$0xff]   ;;  %v2277_v51 = vadd.f32 %v5132_v4, %v5327_v8 }
 0x1de   : > { %v2559_v21 = vpop.f32.mrf.mxu1  ;;  %v2720_v45 = vpop.f32.mrf.mxu0  ;;  %v4650_v17 = vld [vmem:[%s4734_s28 + $0x558] ss:$28 sps:$4 sm:$0xff]   ;;  %v2280_v8 = vadd.f32 %v5132_v4, %v5335_v16 }
 0x1e0   : > { %v2560_v53 = vpop.f32.mrf.mxu1  ;;  %v2721_v26 = vpop.f32.mrf.mxu0 }
 0x1e1   : > { %v5468_v41 = vadd.f32 %v2560_v53, %v2272_v43  ;;  %v5471_v25 = vadd.f32 %v2721_v26, %v5186_v36 }
 0x1e2   : > { %v2562_v32 = vpop.f32.mrf.mxu1  ;;  %v2723_v38 = vpop.f32.mrf.mxu0 }
 0x1e3   : > { %v4647_v32 = vld [vmem:[%s4734_s28 + $0x630] ss:$28 sps:$4 sm:$0xff]  }
 0x1e4   : > { %v2565_v20 = vpop.f32.mrf.mxu1  ;;  %v2726_v48 = vpop.f32.mrf.mxu0  ;;  %2917 = vmatmul.mubr.bf16.gmra.mxu0 %v4642_v60  ;;  %4232 = vmatmul.mubr.msk.bf16.gmra.mxu1 %vm1993_vm0, %v4646_v61  ;;  %v4651_v60 = vld [vmem:[%s4734_s28 + $0x590] ss:$28 sps:$4 sm:$0xff]  }
 0x1e5   : > { %v5478_v21 = vadd.f32 %v2565_v20, %v2277_v51  ;;  %v5481_v36 = vadd.f32 %v2726_v48, %v5194_v52  ;;  %2924 = vmatprep.mubr.bf16.mxu0 %v4649_v22  ;;  %4235 = vmatprep.mubr.msk.bf16.mxu1 %vm1993_vm0, %v4650_v17  ;;  %v4654_v51 = vld [vmem:[%s4734_s28 + $0x66c] ss:$28 sps:$4 sm:$0xff]   ;;  %v2285_v17 = vadd.f32 %v5132_v4, %v5345_v50 }
 0x1e6   : > { %v2567_v45 = vpop.f32.mrf.mxu1  ;;  %v2728_v43 = vpop.f32.mrf.mxu0  ;;  %v4655_v52 = vld [vmem:[%s4734_s28 + $0x5c8] ss:$28 sps:$4 sm:$0xff]   ;;  %v2288_v50 = vadd.f32 %v5132_v4, %v5353_v34 }
 0x1e8   : > { %v2568_v53 = vpop.f32.mrf.mxu1  ;;  %v2729_v26 = vpop.f32.mrf.mxu0 }
 0x1e9   : > { %v5488_v38 = vadd.f32 %v2568_v53, %v2280_v8  ;;  %v5491_v61 = vadd.f32 %v2729_v26, %v5202_v10 }
 0x1ea   : > { %v2570_v20 = vpop.f32.mrf.mxu1  ;;  %v2731_v22 = vpop.f32.mrf.mxu0 }
 0x1eb   : > { %v4652_v20 = vld [vmem:[%s4734_s28 + $0x668] ss:$28 sps:$4 sm:$0xff]  }
 0x1ec   : > { %v2573_v48 = vpop.f32.mrf.mxu1  ;;  %v2734_v16 = vpop.f32.mrf.mxu0  ;;  %2925 = vmatmul.mubr.bf16.gmra.mxu0 %v4647_v32  ;;  %4236 = vmatmul.mubr.msk.bf16.gmra.mxu1 %vm1993_vm0, %v4651_v60  ;;  %v4656_v32 = vld [vmem:[%s4734_s28 + $0x600] ss:$28 sps:$4 sm:$0xff]  }
 0x1ed   : > { %v5498_v45 = vadd.f32 %v2573_v48, %v2285_v17  ;;  %v5501_v10 = vadd.f32 %v2734_v16, %v5210_v24  ;;  %2932 = vmatprep.mubr.bf16.mxu0 %v4654_v51  ;;  %4239 = vmatprep.mubr.msk.bf16.mxu1 %vm1993_vm0, %v4655_v52  ;;  %v4659_v17 = vld [vmem:[%s4734_s28 + $0x6a4] ss:$28 sps:$4 sm:$0xff]   ;;  %v4660_v24 = vld [vmem:[%s4734_s28 + $0x638] ss:$28 sps:$4 sm:$0xff]   ;;  %v2293_v52 = vadd.f32 %v5132_v4, %v5363_v33 }
 0x1ee   : > { %v2575_v43 = vpop.f32.mrf.mxu1  ;;  %v2736_v8 = vpop.f32.mrf.mxu0  ;;  %v2296_v33 = vadd.f32 %v5132_v4, %v5371_v23 }
 0x1f0   : > { %v2576_v53 = vpop.f32.mrf.mxu1  ;;  %v2737_v26 = vpop.f32.mrf.mxu0 }
 0x1f1   : > { %v5508_v22 = vadd.f32 %v2576_v53, %v2288_v50  ;;  %v5511_v60 = vadd.f32 %v2737_v26, %v5218_v40 }
 0x1f2   : > { %v2578_v48 = vpop.f32.mrf.mxu1  ;;  %v2739_v51 = vpop.f32.mrf.mxu0 }
 0x1f3   : > { %v4657_v48 = vld [vmem:[%s4734_s28 + $0x6a0] ss:$28 sps:$4 sm:$0xff]  }
 0x1f4   : > { %v2581_v16 = vpop.f32.mrf.mxu1  ;;  %v2742_v34 = vpop.f32.mrf.mxu0  ;;  %2933 = vmatmul.mubr.bf16.gmra.mxu0 %v4652_v20  ;;  %4240 = vmatmul.mubr.msk.bf16.gmra.mxu1 %vm1993_vm0, %v4656_v32  ;;  %v4661_v20 = vld [vmem:[%s4734_s28 + $0x670] ss:$28 sps:$4 sm:$0xff]  }
 0x1f5   : > { %v5518_v43 = vadd.f32 %v2581_v16, %v2293_v52  ;;  %v5521_v40 = vadd.f32 %v2742_v34, %v5226_v2  ;;  %2940 = vmatprep.mubr.bf16.mxu0 %v4659_v17  ;;  %4243 = vmatprep.mubr.msk.bf16.mxu1 %vm1993_vm0, %v4660_v24  ;;  %v4664_v52 = vld [vmem:[%s4734_s28 + $0x6dc] ss:$28 sps:$4 sm:$0xff]   ;;  %v4665_v2 = vld [vmem:[%s4734_s28 + $0x6a8] ss:$28 sps:$4 sm:$0xff]   ;;  %v2301_v24 = vadd.f32 %v5132_v4, %v5381_v19 }
 0x1f6   : > { %v2583_v8 = vpop.f32.mrf.mxu1  ;;  %v2744_v50 = vpop.f32.mrf.mxu0 }
 0x1f8   : > { %v2584_v53 = vpop.f32.mrf.mxu1  ;;  %v2745_v26 = vpop.f32.mrf.mxu0 }
 0x1f9   : > { %v5528_v51 = vadd.f32 %v2584_v53, %v2296_v33  ;;  %v5531_v32 = vadd.f32 %v2745_v26, %v5234_v6  ;;  %v2304_v53 = vadd.f32 %v5132_v4, %v5389_v63 }
 0x1fa   : > { %v2586_v16 = vpop.f32.mrf.mxu1  ;;  %v2747_v17 = vpop.f32.mrf.mxu0 }
 0x1fb   : > { %v4662_v16 = vld [vmem:[%s4734_s28 + $0x6d8] ss:$28 sps:$4 sm:$0xff]   ;;  %v4666_v17 = vld [vmem:[%s4734_s28 + $0x6e0] ss:$28 sps:$4 sm:$0xff]  }
 0x1fc   : > { %v2589_v34 = vpop.f32.mrf.mxu1  ;;  %v2750_v23 = vpop.f32.mrf.mxu0  ;;  %2941 = vmatmul.mubr.bf16.gmra.mxu0 %v4657_v48  ;;  %4244 = vmatmul.mubr.msk.bf16.gmra.mxu1 %vm1993_vm0, %v4661_v20 }
 0x1fd   : > { %v5538_v8 = vadd.f32 %v2589_v34, %v2301_v24  ;;  %v5541_v50 = vadd.f32 %v2750_v23, %v5242_v47  ;;  %2948 = vmatprep.mubr.bf16.mxu0 %v4664_v52  ;;  %4247 = vmatprep.mubr.msk.bf16.mxu1 %vm1993_vm0, %v4665_v2  ;;  %v2309_v52 = vadd.f32 %v5132_v4, %v5399_v27 }
 0x1fe   : > { %v2591_v6 = vpop.f32.mrf.mxu1  ;;  %v2752_v33 = vpop.f32.mrf.mxu0 }
 0x200   : > { %v2592_v26 = vpop.f32.mrf.mxu1  ;;  %v2753_v19 = vpop.f32.mrf.mxu0 }
 0x201   : > { %v5548_v48 = vadd.f32 %v2592_v26, %v2304_v53  ;;  %v5551_v20 = vadd.f32 %v2753_v19, %v5250_v11  ;;  %v2312_v11 = vadd.f32 %v5132_v4, %v5407_v39 }
 0x202   : > { %v2594_v24 = vpop.f32.mrf.mxu1  ;;  %v2755_v47 = vpop.f32.mrf.mxu0 }
 0x204   : > { %v2597_v2 = vpop.f32.mrf.mxu1  ;;  %v2758_v34 = vpop.f32.mrf.mxu0  ;;  %2949 = vmatmul.mubr.bf16.gmra.mxu0 %v4662_v16  ;;  %4248 = vmatmul.mubr.msk.bf16.gmra.mxu1 %vm1993_vm0, %v4666_v17  ;;  %v2317_v17 = vadd.f32 %v5132_v4, %v5043_v31 }
 0x205   : > { %v5556_v63 = vadd.f32 %v2597_v2, %v2309_v52  ;;  %v5559_v23 = vadd.f32 %v2758_v34, %v5258_v30 }
 0x206   : > { %v2599_v6 = vpop.f32.mrf.mxu1  ;;  %v2760_v33 = vpop.f32.mrf.mxu0 }
 0x207   : > { %v2320_v6 = vadd.f32 %v5132_v4, %v5047_v35 }
 0x208   : > { %v2600_v53 = vpop.f32.mrf.mxu1  ;;  %v2761_v26 = vpop.f32.mrf.mxu0 }
 0x209   : > { %v5563_v19 = vadd.f32 %v2600_v53, %v2312_v11  ;;  %v5566_v27 = vadd.f32 %v2761_v26, %v5267_v18 }
 0x20a   : > { %v2602_v16 = vpop.f32.mrf.mxu1  ;;  %v2763_v24 = vpop.f32.mrf.mxu0 }
 0x20b   : > { %v5585_v16 = vld [vmem:[%s5954_s2] ss:$0 sm:$0xff] }
 0x20c   : > { %v2605_v47 = vpop.f32.mrf.mxu1  ;;  %v2766_v30 = vpop.f32.mrf.mxu0 }
 0x20d   : > { %v5570_v52 = vadd.f32 %v2605_v47, %v2317_v17  ;;  %v5573_v2 = vadd.f32 %v2766_v30, %v5276_v29  ;;  %v2325_v29 = vadd.f32 %v5585_v16, %v5055_v42  ;;  %v2328_v30 = vadd.f32 %v5585_v16, %v5059_v46 }
 0x20e   : > { %v2607_v39 = vpop.f32.mrf.mxu1  ;;  %v2768_v34 = vpop.f32.mrf.mxu0 }
 0x20f   : > { %5972 = vst [vmem:[#allocation18_spill] sm:$0xff] %v5570_v52  ;;  %v5996_v52 = vld [vmem:[#allocation7_spill] sm:$0xff] }
 0x210   : > { %v2608_v33 = vpop.f32.mrf.mxu1  ;;  %v2769_v18 = vpop.f32.mrf.mxu0 }
 0x211   : > { %v5577_v11 = vadd.f32 %v2608_v33, %v2320_v6  ;;  %v5580_v53 = vadd.f32 %v2769_v18, %v5285_v12 }
 0x212   : > { %v2610_v31 = vpop.f32.mrf.mxu1  ;;  %v2771_v26 = vpop.f32.mrf.mxu0 }
 0x213   : > { %5973 = vst [vmem:[#allocation19_spill] sm:$0xff] %v5577_v11  ;;  %v2333_v31 = vadd.f32 %v5585_v16, %v5067_v54  ;;  %v5990_v11 = vld [vmem:[#allocation5_spill] sm:$0xff] }
 0x214   : > { %v2613_v24 = vpop.f32.mrf.mxu1  ;;  %v2774_v17 = vpop.f32.mrf.mxu0 }
 0x215   : > { %v5589_v35 = vadd.f32 %v2613_v24, %v2325_v29  ;;  %v5592_v4 = vadd.f32 %v2774_v17, %v5294_v5 }
 0x216   : > { %v2615_v47 = vpop.f32.mrf.mxu1  ;;  %v2776_v12 = vpop.f32.mrf.mxu0 }
 0x217   : > { %5974 = vst [vmem:[#allocation20_spill] sm:$0xff] %v5589_v35  ;;  %v2336_v47 = vadd.f32 %v5585_v16, %v5071_v58  ;;  %v5999_v35 = vld [vmem:[#allocation8_spill] sm:$0xff] }
 0x218   : > { %v2616_v39 = vpop.f32.mrf.mxu1  ;;  %v2777_v34 = vpop.f32.mrf.mxu0 }
 0x219   : > { %v5596_v6 = vadd.f32 %v2616_v39, %v2328_v30  ;;  %v5599_v33 = vadd.f32 %v2777_v34, %v5303_v62 }
 0x21a   : > { %v2618_v42 = vpop.f32.mrf.mxu1  ;;  %v2779_v18 = vpop.f32.mrf.mxu0 }
 0x21b   : > { %5975 = vst [vmem:[#allocation21_spill] sm:$0xff] %v5596_v6  ;;  %v2341_v42 = vadd.f32 %v5585_v16, %v5079_v3  ;;  %v5993_v6 = vld [vmem:[#allocation6_spill] sm:$0xff] }
 0x21c   : > { %v2621_v26 = vpop.f32.mrf.mxu1  ;;  %v2782_v5 = vpop.f32.mrf.mxu0 }
 0x21d   : > { %v5603_v29 = vadd.f32 %v2621_v26, %v2333_v31  ;;  %v5606_v24 = vadd.f32 %v2782_v5, %v5312_v28 }
 0x21e   : > { %v2623_v46 = vpop.f32.mrf.mxu1  ;;  %v2784_v17 = vpop.f32.mrf.mxu0 }
 0x21f   : > { %5976 = vst [vmem:[#allocation22_spill] sm:$0xff] %v5603_v29  ;;  %v2344_v46 = vadd.f32 %v5585_v16, %v5083_v7  ;;  %v5984_v29 = vld [vmem:[#allocation3_spill] sm:$0xff] }
 0x220   : > { %v2624_v12 = vpop.f32.mrf.mxu1  ;;  %v2785_v62 = vpop.f32.mrf.mxu0 }
 0x221   : > { %v5610_v30 = vadd.f32 %v2624_v12, %v2336_v47  ;;  %v5613_v39 = vadd.f32 %v2785_v62, %v5321_v44  ;;  %v5980_v12 = vld [vmem:[#allocation10_spill] sm:$0xff] }
 0x222   : > { %v2626_v54 = vpop.f32.mrf.mxu1  ;;  %v2787_v34 = vpop.f32.mrf.mxu0 }
 0x223   : > { %5977 = vst [vmem:[#allocation23_spill] sm:$0xff] %v5610_v30  ;;  %v5981_v34 = vld [vmem:[#allocation2_spill] sm:$0xff] }
 0x224   : > { %v2629_v18 = vpop.f32.mrf.mxu1  ;;  %v2790_v28 = vpop.f32.mrf.mxu0 }
 0x225   : > { %v5617_v31 = vadd.f32 %v2629_v18, %v2341_v42  ;;  %v5620_v26 = vadd.f32 %v2790_v28, %v5330_v59  ;;  %v2349_v42 = vadd.f32 %v5585_v16, %v5981_v34 }
 0x226   : > { %v2631_v58 = vpop.f32.mrf.mxu1  ;;  %v2792_v5 = vpop.f32.mrf.mxu0 }
 0x227   : > { %5978 = vst [vmem:[#allocation24_spill] sm:$0xff] %v5617_v31  ;;  %v5983_v58 = vld [vmem:[#allocation11_spill] sm:$0xff]  ;;  %v5987_v31 = vld [vmem:[#allocation4_spill] sm:$0xff] }
 0x228   : > { %v2632_v17 = vpop.f32.mrf.mxu1  ;;  %v2793_v44 = vpop.f32.mrf.mxu0 }
 0x229   : > { %v5624_v47 = vadd.f32 %v2632_v17, %v2344_v46  ;;  %v5627_v62 = vadd.f32 %v2793_v44, %v5980_v12  ;;  %v2352_v46 = vadd.f32 %v5585_v16, %v5984_v29 }
 0x22a   : > { %v2634_v3 = vpop.f32.mrf.mxu1  ;;  %v2795_v54 = vpop.f32.mrf.mxu0 }
 0x22b   : > { %5979 = vst [vmem:[#allocation25_spill] sm:$0xff] %v5624_v47  ;;  %v5986_v3 = vld [vmem:[#allocation12_spill] sm:$0xff] }
 0x22c   : > { %v2637_v18 = vpop.f32.mrf.mxu1  ;;  %v2798_v59 = vpop.f32.mrf.mxu0 }
 0x22d   : > { %v5631_v28 = vadd.f32 %v2637_v18, %v2349_v42  ;;  %v5634_v5 = vadd.f32 %v2798_v59, %v5983_v58  ;;  %v2357_v42 = vadd.f32 %v5585_v16, %v5987_v31 }
 0x22e   : > { %v2639_v7 = vpop.f32.mrf.mxu1  ;;  %v2800_v30 = vpop.f32.mrf.mxu0 }
 0x22f   : > { %5982 = vst [vmem:[#allocation10_spill] sm:$0xff] %v5631_v28  ;;  %v5989_v30 = vld [vmem:[#allocation13_spill] sm:$0xff] }
 0x230   : > { %v2640_v17 = vpop.f32.mrf.mxu1  ;;  %v2801_v44 = vpop.f32.mrf.mxu0 }
 0x231   : > { %v5638_v12 = vadd.f32 %v2640_v17, %v2352_v46  ;;  %v5641_v54 = vadd.f32 %v2801_v44, %v5986_v3  ;;  %v2360_v46 = vadd.f32 %v5585_v16, %v5990_v11 }
 0x232   : > { %v2642_v34 = vpop.f32.mrf.mxu1  ;;  %v2803_v47 = vpop.f32.mrf.mxu0 }
 0x233   : > { %5985 = vst [vmem:[#allocation2_spill] sm:$0xff] %v5638_v12  ;;  %v5992_v47 = vld [vmem:[#allocation14_spill] sm:$0xff] }
 0x234   : > { %v2645_v18 = vpop.f32.mrf.mxu1  ;;  %v2806_v59 = vpop.f32.mrf.mxu0 }
 0x235   : > { %v5645_v58 = vadd.f32 %v2645_v18, %v2357_v42  ;;  %v5648_v7 = vadd.f32 %v2806_v59, %v5989_v30  ;;  %v2365_v42 = vadd.f32 %v5585_v16, %v5993_v6 }
 0x236   : > { %v2647_v29 = vpop.f32.mrf.mxu1  ;;  %v2808_v28 = vpop.f32.mrf.mxu0 }
 0x237   : > { %5988 = vst [vmem:[#allocation11_spill] sm:$0xff] %v5645_v58  ;;  %v5995_v28 = vld [vmem:[#allocation15_spill] sm:$0xff] }
 0x238   : > { %v2648_v17 = vpop.f32.mrf.mxu1  ;;  %v2809_v44 = vpop.f32.mrf.mxu0 }
 0x239   : > { %v5652_v3 = vadd.f32 %v2648_v17, %v2360_v46  ;;  %v5655_v34 = vadd.f32 %v2809_v44, %v5992_v47  ;;  %v2368_v46 = vadd.f32 %v5585_v16, %v5996_v52 }
 0x23a   : > { %v2650_v31 = vpop.f32.mrf.mxu1  ;;  %v2811_v12 = vpop.f32.mrf.mxu0 }
 0x23b   : > { %5991 = vst [vmem:[#allocation3_spill] sm:$0xff] %v5652_v3  ;;  %v5998_v12 = vld [vmem:[#allocation16_spill] sm:$0xff] }
 0x23c   : > { %v2653_v18 = vpop.f32.mrf.mxu1  ;;  %v2814_v59 = vpop.f32.mrf.mxu0 }
 0x23d   : > { %v5659_v30 = vadd.f32 %v2653_v18, %v2365_v42  ;;  %v5662_v29 = vadd.f32 %v2814_v59, %v5995_v28  ;;  %v2373_v42 = vadd.f32 %v5585_v16, %v5999_v35 }
 0x23e   : > { %v2655_v11 = vpop.f32.mrf.mxu1  ;;  %v2816_v58 = vpop.f32.mrf.mxu0 }
 0x23f   : > { %5994 = vst [vmem:[#allocation12_spill] sm:$0xff] %v5659_v30  ;;  %v6000_v11 = vld [vmem:[#allocation9_spill] sm:$0xff] }
 0x240   : > { %v2656_v17 = vpop.f32.mrf.mxu1  ;;  %v2817_v44 = vpop.f32.mrf.mxu0 }
 0x241   : > { %v5666_v47 = vadd.f32 %v2656_v17, %v2368_v46  ;;  %v5669_v31 = vadd.f32 %v2817_v44, %v5998_v12  ;;  %v2376_v46 = vadd.f32 %v5585_v16, %v6000_v11 }
 0x242   : > { %v2658_v6 = vpop.f32.mrf.mxu1  ;;  %v2819_v3 = vpop.f32.mrf.mxu0 }
 0x243   : > { %5997 = vst [vmem:[#allocation4_spill] sm:$0xff] %v5666_v47 }
 0x244   : > { %v2661_v18 = vpop.f32.mrf.mxu1  ;;  %v5673_v59 = vpop.f32.mrf.mxu0 }
 0x245   : > { %v5675_v58 = vadd.f32 %v2661_v18, %v2373_v42 }
 0x246   : > { %v2663_v28 = vpop.f32.mrf.mxu1  ;;  %v2824_v52 = vpop.f32.mrf.mxu0 }
 0x248   : > { %v2664_v17 = vpop.f32.mrf.mxu1  ;;  %v5679_v47 = vpop.f32.mrf.mxu0 }
 0x249   : > { %v5681_v44 = vadd.f32 %v2664_v17, %v2376_v46 }
 0x24a   : > { %v2666_v3 = vpop.f32.mrf.mxu1  ;;  %v2827_v12 = vpop.f32.mrf.mxu0 }
 0x24c   : > { %v2830_v6 = vpop.f32.mrf.mxu0  ;;  %v4189_v30 = vpop.f32.mrf.mxu1 }
 0x24d   : > { %v5684_v35 = vadd.f32 %v2830_v6, %v5418_v57  ;;  %v3000_v42 = vadd.f32 %v4189_v30, %v5441_v37 }
 0x24e   : > { %v2832_v18 = vpop.f32.mrf.mxu0  ;;  %v2991_v28 = vpop.f32.mrf.mxu1 }
 0x24f   : > { %v3248_v52 = vmax.f32 %v3000_v42, 0.0  ;;  %v2992_v16 = vadd.f32 %v2991_v28, %v5421_v49 }
 0x250   : > { %v2833_v11 = vpop.f32.mrf.mxu0  ;;  %v4190_v46 = vpop.f32.mrf.mxu1 }
 0x251   : > { %v4075_v57 = vpack.c.bf16 %v3248_v52, %v3248_v52  ;;  %v3246_v17 = vmax.f32 %v2992_v16, 0.0  ;;  %v5695_v3 = vadd.f32 %v2833_v11, %v5428_v15  ;;  %v3003_v37 = vadd.f32 %v4190_v46, %v5451_v9 }
 0x252   : > { %v2835_v30 = vpop.f32.mrf.mxu0  ;;  %v2994_v49 = vpop.f32.mrf.mxu1 }
 0x253   : > { %3569 = vst.msk [vmem:[%s5692_s10 + $0x8] sm:$0xf] %vm3566_vm1, %v4075_v57  ;;  %v4073_v12 = vpack.c.bf16 %v3246_v17, %v3246_v17  ;;  %v3249_v6 = vmax.f32 %v3003_v37, 0.0  ;;  %v2995_v42 = vadd.f32 %v2994_v49, %v5431_v55 }
 0x254   : > { %v5701_v18 = vpop.f32.mrf.mxu0  ;;  %v4193_v28 = vpop.f32.mrf.mxu1 }
 0x255   : > { %3567 = vst.msk [vmem:[%s5692_s10] sm:$0xf] %vm3566_vm1, %v4073_v12  ;;  %v4076_v52 = vpack.c.bf16 %v3249_v6, %v3249_v6  ;;  %v3247_v15 = vmax.f32 %v2995_v42, 0.0  ;;  %v3016_v16 = vadd.f32 %v4193_v28, %v5481_v36 }
 0x256   : > { %v2840_v9 = vpop.f32.mrf.mxu0  ;;  %v3007_v11 = vpop.f32.mrf.mxu1 }
 0x257   : > { %3570 = vst.msk [vmem:[%s5692_s10 + $0xc] sm:$0xf] %vm3566_vm1, %v4076_v52  ;;  %v4074_v46 = vpack.c.bf16 %v3247_v15, %v3247_v15  ;;  %v3252_v57 = vmax.f32 %v3016_v16, 0.0  ;;  %v3008_v17 = vadd.f32 %v3007_v11, %v5461_v0 }
 0x258   : > { %v5709_v55 = vpop.f32.mrf.mxu0  ;;  %v4194_v37 = vpop.f32.mrf.mxu1 }
 0x259   : > { %3568 = vst.msk [vmem:[%s5692_s10 + $0x4] sm:$0xf] %vm3566_vm1, %v4074_v46  ;;  %v4079_v30 = vpack.c.bf16 %v3252_v57, %v3252_v57  ;;  %v3250_v49 = vmax.f32 %v3008_v17, 0.0  ;;  %v3019_v12 = vadd.f32 %v4194_v37, %v5491_v61 }
 0x25a   : > { %v2843_v36 = vpop.f32.mrf.mxu0  ;;  %v3010_v6 = vpop.f32.mrf.mxu1 }
 0x25b   : > { %3573 = vst.msk [vmem:[%s5692_s10 + $0x18] sm:$0xf] %vm3566_vm1, %v4079_v30  ;;  %v4077_v42 = vpack.c.bf16 %v3250_v49, %v3250_v49  ;;  %v3253_v28 = vmax.f32 %v3019_v12, 0.0  ;;  %v3011_v52 = vadd.f32 %v3010_v6, %v5471_v25 }
 0x25c   : > { %v5717_v0 = vpop.f32.mrf.mxu0  ;;  %v4197_v15 = vpop.f32.mrf.mxu1 }
 0x25d   : > { %3571 = vst.msk [vmem:[%s5692_s10 + $0x10] sm:$0xf] %vm3566_vm1, %v4077_v42  ;;  %v4080_v16 = vpack.c.bf16 %v3253_v28, %v3253_v28  ;;  %v3251_v9 = vmax.f32 %v3011_v52, 0.0  ;;  %v3032_v11 = vadd.f32 %v4197_v15, %v5521_v40 }
 0x25e   : > { %v2848_v61 = vpop.f32.mrf.mxu0  ;;  %v3023_v46 = vpop.f32.mrf.mxu1 }
 0x25f   : > { %3574 = vst.msk [vmem:[%s5692_s10 + $0x1c] sm:$0xf] %vm3566_vm1, %v4080_v16  ;;  %v4078_v57 = vpack.c.bf16 %v3251_v9, %v3251_v9  ;;  %v3256_v17 = vmax.f32 %v3032_v11, 0.0  ;;  %v3024_v37 = vadd.f32 %v3023_v46, %v5501_v10 }
 0x260   : > { %v5725_v25 = vpop.f32.mrf.mxu0  ;;  %v4198_v30 = vpop.f32.mrf.mxu1 }
 0x261   : > { %3572 = vst.msk [vmem:[%s5692_s10 + $0x14] sm:$0xf] %vm3566_vm1, %v4078_v57  ;;  %v4083_v49 = vpack.c.bf16 %v3256_v17, %v3256_v17  ;;  %v3254_v12 = vmax.f32 %v3024_v37, 0.0  ;;  %v3035_v36 = vadd.f32 %v4198_v30, %v5531_v32 }
 0x262   : > { %v2851_v40 = vpop.f32.mrf.mxu0  ;;  %v3026_v6 = vpop.f32.mrf.mxu1 }
 0x263   : > { %3577 = vst.msk [vmem:[%s5692_s10 + $0x28] sm:$0xf] %vm3566_vm1, %v4083_v49  ;;  %v4081_v42 = vpack.c.bf16 %v3254_v12, %v3254_v12  ;;  %v3257_v28 = vmax.f32 %v3035_v36, 0.0  ;;  %v3027_v52 = vadd.f32 %v3026_v6, %v5511_v60 }
 0x264   : > { %v5733_v10 = vpop.f32.mrf.mxu0  ;;  %v4201_v15 = vpop.f32.mrf.mxu1 }
 0x265   : > { %3575 = vst.msk [vmem:[%s5692_s10 + $0x20] sm:$0xf] %vm3566_vm1, %v4081_v42  ;;  %v4084_v16 = vpack.c.bf16 %v3257_v28, %v3257_v28  ;;  %v3255_v9 = vmax.f32 %v3027_v52, 0.0  ;;  %v3048_v11 = vadd.f32 %v4201_v15, %v5559_v23 }
 0x266   : > { %v2856_v32 = vpop.f32.mrf.mxu0  ;;  %v3039_v61 = vpop.f32.mrf.mxu1 }
 0x267   : > { %3578 = vst.msk [vmem:[%s5692_s10 + $0x2c] sm:$0xf] %vm3566_vm1, %v4084_v16  ;;  %v4082_v46 = vpack.c.bf16 %v3255_v9, %v3255_v9  ;;  %v3260_v57 = vmax.f32 %v3048_v11, 0.0  ;;  %v3040_v17 = vadd.f32 %v3039_v61, %v5541_v50 }
 0x268   : > { %v5741_v60 = vpop.f32.mrf.mxu0  ;;  %v4202_v37 = vpop.f32.mrf.mxu1 }
 0x269   : > { %3576 = vst.msk [vmem:[%s5692_s10 + $0x24] sm:$0xf] %vm3566_vm1, %v4082_v46  ;;  %v4087_v30 = vpack.c.bf16 %v3260_v57, %v3260_v57  ;;  %v3258_v49 = vmax.f32 %v3040_v17, 0.0  ;;  %v3051_v12 = vadd.f32 %v4202_v37, %v5566_v27 }
 0x26a   : > { %v2859_v23 = vpop.f32.mrf.mxu0  ;;  %v3042_v36 = vpop.f32.mrf.mxu1 }
 0x26b   : > { %3581 = vst.msk [vmem:[%s5692_s10 + $0x38] sm:$0xf] %vm3566_vm1, %v4087_v30  ;;  %v4085_v40 = vpack.c.bf16 %v3258_v49, %v3258_v49  ;;  %v3261_v6 = vmax.f32 %v3051_v12, 0.0  ;;  %v3043_v42 = vadd.f32 %v3042_v36, %v5551_v20 }
 0x26c   : > { %v5749_v50 = vpop.f32.mrf.mxu0  ;;  %v4205_v28 = vpop.f32.mrf.mxu1 }
 0x26d   : > { %3579 = vst.msk [vmem:[%s5692_s10 + $0x30] sm:$0xf] %vm3566_vm1, %v4085_v40  ;;  %v4088_v52 = vpack.c.bf16 %v3261_v6, %v3261_v6  ;;  %v3259_v15 = vmax.f32 %v3043_v42, 0.0  ;;  %v3064_v16 = vadd.f32 %v4205_v28, %v5592_v4 }
 0x26e   : > { %v2864_v27 = vpop.f32.mrf.mxu0  ;;  %v3055_v9 = vpop.f32.mrf.mxu1 }
 0x26f   : > { %3582 = vst.msk [vmem:[%s5692_s10 + $0x3c] sm:$0xf] %vm3566_vm1, %v4088_v52  ;;  %v4086_v11 = vpack.c.bf16 %v3259_v15, %v3259_v15  ;;  %v3264_v32 = vmax.f32 %v3064_v16, 0.0  ;;  %v3056_v61 = vadd.f32 %v3055_v9, %v5573_v2 }
 0x270   : > { %v5757_v20 = vpop.f32.mrf.mxu0  ;;  %v4206_v46 = vpop.f32.mrf.mxu1 }
 0x271   : > { %3580 = vst.msk [vmem:[%s5692_s10 + $0x34] sm:$0xf] %vm3566_vm1, %v4086_v11  ;;  %v4091_v57 = vpack.c.bf16 %v3264_v32, %v3264_v32  ;;  %v3262_v17 = vmax.f32 %v3056_v61, 0.0  ;;  %v3067_v37 = vadd.f32 %v4206_v46, %v5599_v33 }
 0x272   : > { %v2867_v4 = vpop.f32.mrf.mxu0  ;;  %v3058_v30 = vpop.f32.mrf.mxu1 }
 0x273   : > { %3585 = vst.msk [vmem:[%s5692_s10 + $0x48] sm:$0xf] %vm3566_vm1, %v4091_v57  ;;  %v4089_v49 = vpack.c.bf16 %v3262_v17, %v3262_v17  ;;  %v3265_v12 = vmax.f32 %v3067_v37, 0.0  ;;  %v3059_v23 = vadd.f32 %v3058_v30, %v5580_v53 }
 0x274   : > { %v5765_v2 = vpop.f32.mrf.mxu0  ;;  %v4209_v36 = vpop.f32.mrf.mxu1 }
 0x275   : > { %3583 = vst.msk [vmem:[%s5692_s10 + $0x40] sm:$0xf] %vm3566_vm1, %v4089_v49  ;;  %v4092_v40 = vpack.c.bf16 %v3265_v12, %v3265_v12  ;;  %v3263_v6 = vmax.f32 %v3059_v23, 0.0  ;;  %v3080_v42 = vadd.f32 %v4209_v36, %v5620_v26 }
 0x276   : > { %v2872_v33 = vpop.f32.mrf.mxu0  ;;  %v3071_v28 = vpop.f32.mrf.mxu1 }
 0x277   : > { %3586 = vst.msk [vmem:[%s5692_s10 + $0x4c] sm:$0xf] %vm3566_vm1, %v4092_v40  ;;  %v4090_v52 = vpack.c.bf16 %v3263_v6, %v3263_v6  ;;  %v3268_v15 = vmax.f32 %v3080_v42, 0.0  ;;  %v3072_v16 = vadd.f32 %v3071_v28, %v5606_v24 }
 0x278   : > { %v5773_v53 = vpop.f32.mrf.mxu0  ;;  %v4210_v27 = vpop.f32.mrf.mxu1 }
 0x279   : > { %3584 = vst.msk [vmem:[%s5692_s10 + $0x44] sm:$0xf] %vm3566_vm1, %v4090_v52  ;;  %v4095_v9 = vpack.c.bf16 %v3268_v15, %v3268_v15  ;;  %v3266_v11 = vmax.f32 %v3072_v16, 0.0  ;;  %v3083_v32 = vadd.f32 %v4210_v27, %v5627_v62  ;;  %v2823_v15 = vadd.f32 %v5673_v59, %v5402_v13 }
 0x27a   : > { %v2875_v26 = vpop.f32.mrf.mxu0  ;;  %v3074_v61 = vpop.f32.mrf.mxu1 }
 0x27b   : > { %3589 = vst.msk [vmem:[%s5692_s10 + $0x58] sm:$0xf] %vm3566_vm1, %v4095_v9  ;;  %v4093_v46 = vpack.c.bf16 %v3266_v11, %v3266_v11  ;;  %v3269_v57 = vmax.f32 %v3083_v32, 0.0  ;;  %v3075_v17 = vadd.f32 %v3074_v61, %v5613_v39 }
 0x27c   : > { %v5781_v24 = vpop.f32.mrf.mxu0  ;;  %v4213_v37 = vpop.f32.mrf.mxu1 }
 0x27d   : > { %3587 = vst.msk [vmem:[%s5692_s10 + $0x50] sm:$0xf] %vm3566_vm1, %v4093_v46  ;;  %v4096_v4 = vpack.c.bf16 %v3269_v57, %v3269_v57  ;;  %v3267_v30 = vmax.f32 %v3075_v17, 0.0  ;;  %v3096_v49 = vadd.f32 %v4213_v37, %v5648_v7  ;;  %v6001_v57 = vld [vmem:[#allocation17_spill] sm:$0xff] }
 0x27e   : > { %v2880_v62 = vpop.f32.mrf.mxu0  ;;  %v3087_v12 = vpop.f32.mrf.mxu1  ;;  %v2826_v13 = vadd.f32 %v5679_v47, %v6001_v57  ;;  %v2839_v47 = vadd.f32 %v5701_v18, %v5438_v1  ;;  %v2842_v1 = vadd.f32 %v5709_v55, %v5448_v56  ;;  %v2855_v56 = vadd.f32 %v5733_v10, %v5478_v21 }
 0x27f   : > { %3590 = vst.msk [vmem:[%s5692_s10 + $0x5c] sm:$0xf] %vm3566_vm1, %v4096_v4  ;;  %v4094_v23 = vpack.c.bf16 %v3267_v30, %v3267_v30  ;;  %v3272_v36 = vmax.f32 %v3096_v49, 0.0  ;;  %v3088_v40 = vadd.f32 %v3087_v12, %v5634_v5  ;;  %v2858_v10 = vadd.f32 %v5741_v60, %v5488_v38 }
 0x280   : > { %v5789_v39 = vpop.f32.mrf.mxu0  ;;  %v4214_v6 = vpop.f32.mrf.mxu1  ;;  %v2871_v38 = vadd.f32 %v5765_v2, %v5518_v43  ;;  %v2874_v43 = vadd.f32 %v5773_v53, %v5528_v51 }
 0x281   : > { %3588 = vst.msk [vmem:[%s5692_s10 + $0x54] sm:$0xf] %vm3566_vm1, %v4094_v23  ;;  %v4099_v42 = vpack.c.bf16 %v3272_v36, %v3272_v36  ;;  %v3270_v33 = vmax.f32 %v3088_v40, 0.0  ;;  %v3099_v28 = vadd.f32 %v4214_v6, %v5655_v34 }
 0x282   : > { %v2883_v7 = vpop.f32.mrf.mxu0  ;;  %v3090_v52 = vpop.f32.mrf.mxu1 }
 0x283   : > { %3593 = vst.msk [vmem:[%s5692_s10 + $0x68] sm:$0xf] %vm3566_vm1, %v4099_v42  ;;  %v4097_v16 = vpack.c.bf16 %v3270_v33, %v3270_v33  ;;  %v3273_v5 = vmax.f32 %v3099_v28, 0.0  ;;  %v3091_v27 = vadd.f32 %v3090_v52, %v5641_v54 }
 0x284   : > { %v5799_v9 = vpop.f32.mrf.mxu0  ;;  %v4217_v11 = vpop.f32.mrf.mxu1 }
 0x285   : > { %3591 = vst.msk [vmem:[%s5692_s10 + $0x60] sm:$0xf] %vm3566_vm1, %v4097_v16  ;;  %v4100_v32 = vpack.c.bf16 %v3273_v5, %v3273_v5  ;;  %v3271_v34 = vmax.f32 %v3091_v27, 0.0  ;;  %v3112_v26 = vadd.f32 %v4217_v11, %v2823_v15  ;;  %v2887_v51 = vadd.f32 %v5799_v9, %v5556_v63 }
 0x286   : > { %v2888_v61 = vpop.f32.mrf.mxu0  ;;  %v3103_v46 = vpop.f32.mrf.mxu1 }
 0x287   : > { %3594 = vst.msk [vmem:[%s5692_s10 + $0x6c] sm:$0xf] %vm3566_vm1, %v4100_v32  ;;  %v4098_v59 = vpack.c.bf16 %v3271_v34, %v3271_v34  ;;  %v3276_v17 = vmax.f32 %v3112_v26, 0.0  ;;  %v3104_v54 = vadd.f32 %v3103_v46, %v5662_v29 }
 0x288   : > { %v5808_v37 = vpop.f32.mrf.mxu0  ;;  %v4218_v4 = vpop.f32.mrf.mxu1 }
 0x289   : > { %3592 = vst.msk [vmem:[%s5692_s10 + $0x64] sm:$0xf] %vm3566_vm1, %v4098_v59  ;;  %v4103_v30 = vpack.c.bf16 %v3276_v17, %v3276_v17  ;;  %v3274_v49 = vmax.f32 %v3104_v54, 0.0  ;;  %v3115_v62 = vadd.f32 %v4218_v4, %v2826_v13  ;;  %v2847_v59 = vadd.f32 %v5717_v0, %v5458_v14 }
 0x28a   : > { %v2891_v12 = vpop.f32.mrf.mxu0  ;;  %v3106_v23 = vpop.f32.mrf.mxu1  ;;  %v2850_v14 = vadd.f32 %v5725_v25, %v5468_v41  ;;  %v2863_v41 = vadd.f32 %v5749_v50, %v5498_v45  ;;  %v2866_v45 = vadd.f32 %v5757_v20, %v5508_v22  ;;  %v2879_v22 = vadd.f32 %v5781_v24, %v5538_v8 }
 0x28b   : > { %3597 = vst.msk [vmem:[%s5692_s10 + $0x78] sm:$0xf] %vm3566_vm1, %v4103_v30  ;;  %v4101_v36 = vpack.c.bf16 %v3274_v49, %v3274_v49  ;;  %v3277_v40 = vmax.f32 %v3115_v62, 0.0  ;;  %v3107_v29 = vadd.f32 %v3106_v23, %v5669_v31  ;;  %v2890_v63 = vadd.f32 %v5808_v37, %v5563_v19 }
 0x28c   : > { %v5817_v6 = vpop.f32.mrf.mxu0  ;;  %v4221_v42 = vpop.f32.mrf.mxu1  ;;  %v2882_v8 = vadd.f32 %v5789_v39, %v5548_v48 }
 0x28d   : > { %3595 = vst.msk [vmem:[%s5692_s10 + $0x70] sm:$0xf] %vm3566_vm1, %v4101_v36  ;;  %v4104_v33 = vpack.c.bf16 %v3277_v40, %v3277_v40  ;;  %v3275_v28 = vmax.f32 %v3107_v29, 0.0  ;;  %v3128_v7 = vadd.f32 %v4221_v42, %v2839_v47 }
 0x28e   : > { %v2896_v52 = vpop.f32.mrf.mxu0  ;;  %v3119_v15 = vpop.f32.mrf.mxu1 }
 0x28f   : > { %3598 = vst.msk [vmem:[%s5692_s10 + $0x7c] sm:$0xf] %vm3566_vm1, %v4104_v33  ;;  %v4102_v18 = vpack.c.bf16 %v3275_v28, %v3275_v28  ;;  %v3280_v16 = vmax.f32 %v3128_v7, 0.0  ;;  %v3120_v31 = vadd.f32 %v3119_v15, %v5684_v35 }
 0x290   : > { %v5826_v5 = vpop.f32.mrf.mxu0  ;;  %v4222_v27 = vpop.f32.mrf.mxu1 }
 0x291   : > { %3596 = vst.msk [vmem:[%s5692_s10 + $0x74] sm:$0xf] %vm3566_vm1, %v4102_v18  ;;  %v4107_v11 = vpack.c.bf16 %v3280_v16, %v3280_v16  ;;  %v3278_v32 = vmax.f32 %v3120_v31, 0.0  ;;  %v3131_v34 = vadd.f32 %v4222_v27, %v2842_v1 }
 0x292   : > { %v2899_v26 = vpop.f32.mrf.mxu0  ;;  %v3122_v61 = vpop.f32.mrf.mxu1 }
 0x293   : > { %3601 = vst.msk [vmem:[%s5692_s10 + $0x88] sm:$0xf] %vm3566_vm1, %v4107_v11  ;;  %v4105_v55 = vpack.c.bf16 %v3278_v32, %v3278_v32  ;;  %v3281_v46 = vmax.f32 %v3131_v34, 0.0  ;;  %v3123_v35 = vadd.f32 %v3122_v61, %v5695_v3 }
 0x294   : > { %v5835_v57 = vpop.f32.mrf.mxu0  ;;  %v4225_v13 = vpop.f32.mrf.mxu1 }
 0x295   : > { %3599 = vst.msk [vmem:[%s5692_s10 + $0x80] sm:$0xf] %vm3566_vm1, %v4105_v55  ;;  %v4108_v17 = vpack.c.bf16 %v3281_v46, %v3281_v46  ;;  %v3279_v54 = vmax.f32 %v3123_v35, 0.0  ;;  %v3144_v4 = vadd.f32 %v4225_v13, %v2855_v56 }
 0x296   : > { %v2904_v30 = vpop.f32.mrf.mxu0  ;;  %v3135_v21 = vpop.f32.mrf.mxu1 }
 0x297   : > { %3602 = vst.msk [vmem:[%s5692_s10 + $0x8c] sm:$0xf] %vm3566_vm1, %v4108_v17  ;;  %v4106_v3 = vpack.c.bf16 %v3279_v54, %v3279_v54  ;;  %v3284_v49 = vmax.f32 %v3144_v4, 0.0  ;;  %v3136_v62 = vadd.f32 %v3135_v21, %v2847_v59 }
 0x298   : > { %v5845_v12 = vpop.f32.mrf.mxu0  ;;  %v4226_v23 = vpop.f32.mrf.mxu1 }
 0x299   : > { %3600 = vst.msk [vmem:[%s5692_s10 + $0x84] sm:$0xf] %vm3566_vm1, %v4106_v3  ;;  %v4111_v0 = vpack.c.bf16 %v3284_v49, %v3284_v49  ;;  %v3282_v47 = vmax.f32 %v3136_v62, 0.0  ;;  %v3147_v36 = vadd.f32 %v4226_v23, %v2858_v10 }
 0x29a   : > { %v2907_v40 = vpop.f32.mrf.mxu0  ;;  %v3138_v29 = vpop.f32.mrf.mxu1 }
 0x29b   : > { %3605 = vst.msk [vmem:[%s5692_s10 + $0x98] sm:$0xf] %vm3566_vm1, %v4111_v0  ;;  %v4109_v60 = vpack.c.bf16 %v3282_v47, %v3282_v47  ;;  %v3285_v42 = vmax.f32 %v3147_v36, 0.0  ;;  %v3139_v33 = vadd.f32 %v3138_v29, %v2850_v14  ;;  %v6002_v14 = vld [vmem:[#allocation20_spill] sm:$0xff]  ;;  %v6003_v29 = vld [vmem:[#allocation18_spill] sm:$0xff] }
 0x29c   : > { %v5855_v28 = vpop.f32.mrf.mxu0  ;;  %v4229_v7 = vpop.f32.mrf.mxu1  ;;  %v2903_v19 = vadd.f32 %v5835_v57, %v6002_v14  ;;  %v2895_v48 = vadd.f32 %v5817_v6, %v6003_v29 }
 0x29d   : > { %3603 = vst.msk [vmem:[%s5692_s10 + $0x90] sm:$0xf] %vm3566_vm1, %v4109_v60  ;;  %v4112_v25 = vpack.c.bf16 %v3285_v42, %v3285_v42  ;;  %v3283_v52 = vmax.f32 %v3139_v33, 0.0  ;;  %v3160_v15 = vadd.f32 %v4229_v7, %v2871_v38  ;;  %v6004_v7 = vld [vmem:[#allocation21_spill] sm:$0xff] }
 0x29e   : > { %v2912_v1 = vpop.f32.mrf.mxu0  ;;  %v3151_v18 = vpop.f32.mrf.mxu1  ;;  %v2906_v57 = vadd.f32 %v5845_v12, %v6004_v7 }
 0x29f   : > { %3606 = vst.msk [vmem:[%s5692_s10 + $0x9c] sm:$0xf] %vm3566_vm1, %v4112_v25  ;;  %v4110_v2 = vpack.c.bf16 %v3283_v52, %v3283_v52  ;;  %v3288_v16 = vmax.f32 %v3160_v15, 0.0  ;;  %v3152_v31 = vadd.f32 %v3151_v18, %v2863_v41  ;;  %v6005_v18 = vld [vmem:[#allocation19_spill] sm:$0xff] }
 0x2a0   : > { %v5865_v27 = vpop.f32.mrf.mxu0  ;;  %v4230_v11 = vpop.f32.mrf.mxu1  ;;  %v2898_v6 = vadd.f32 %v5826_v5, %v6005_v18 }
 0x2a1   : > { %3604 = vst.msk [vmem:[%s5692_s10 + $0x94] sm:$0xf] %vm3566_vm1, %v4110_v2  ;;  %v4115_v50 = vpack.c.bf16 %v3288_v16, %v3288_v16  ;;  %v3286_v32 = vmax.f32 %v3152_v31, 0.0  ;;  %v3163_v34 = vadd.f32 %v4230_v11, %v2874_v43 }
 0x2a2   : > { %v2915_v26 = vpop.f32.mrf.mxu0  ;;  %v3154_v61 = vpop.f32.mrf.mxu1 }
 0x2a3   : > { %3609 = vst.msk [vmem:[%s5692_s10 + $0xa8] sm:$0xf] %vm3566_vm1, %v4115_v50  ;;  %v4113_v53 = vpack.c.bf16 %v3286_v32, %v3286_v32  ;;  %v3289_v56 = vmax.f32 %v3163_v34, 0.0  ;;  %v3155_v55 = vadd.f32 %v3154_v61, %v2866_v45  ;;  %v6006_v45 = vld [vmem:[#allocation24_spill] sm:$0xff] }
 0x2a4   : > { %v2918_v46 = vpop.f32.mrf.mxu0  ;;  %v4233_v35 = vpop.f32.mrf.mxu1 }
 0x2a5   : > { %3607 = vst.msk [vmem:[%s5692_s10 + $0xa0] sm:$0xf] %vm3566_vm1, %v4113_v53  ;;  %v4116_v20 = vpack.c.bf16 %v3289_v56, %v3289_v56  ;;  %v3287_v13 = vmax.f32 %v3155_v55, 0.0  ;;  %v3176_v59 = vadd.f32 %v4233_v35, %v2887_v51  ;;  %v2919_v12 = vadd.f32 %v2918_v46, %v6006_v45  ;;  %v6007_v51 = vld [vmem:[#allocation22_spill] sm:$0xff]  ;;  %v6014_v45 = vld [vmem:[#allocation12_spill] sm:$0xff] }
 0x2a6   : > { %v2920_v17 = vpop.f32.mrf.mxu0  ;;  %v3167_v54 = vpop.f32.mrf.mxu1  ;;  %v2911_v5 = vadd.f32 %v5855_v28, %v6007_v51 }
 0x2a7   : > { %3610 = vst.msk [vmem:[%s5692_s10 + $0xac] sm:$0xf] %vm3566_vm1, %v4116_v20  ;;  %v4114_v9 = vpack.c.bf16 %v3287_v13, %v3287_v13  ;;  %v3292_v4 = vmax.f32 %v3176_v59, 0.0  ;;  %v3168_v30 = vadd.f32 %v3167_v54, %v2879_v22  ;;  %v6008_v20 = vld [vmem:[#allocation25_spill] sm:$0xff] }
 0x2a8   : > { %v2921_v21 = vpop.f32.mrf.mxu0  ;;  %v4234_v10 = vpop.f32.mrf.mxu1 }
 0x2a9   : > { %3608 = vst.msk [vmem:[%s5692_s10 + $0xa4] sm:$0xf] %vm3566_vm1, %v4114_v9  ;;  %v4119_v24 = vpack.c.bf16 %v3292_v4, %v3292_v4  ;;  %v3290_v3 = vmax.f32 %v3168_v30, 0.0  ;;  %v3179_v49 = vadd.f32 %v4234_v10, %v2890_v63  ;;  %v2922_v46 = vadd.f32 %v2921_v21, %v6008_v20  ;;  %v6009_v9 = vld [vmem:[#allocation23_spill] sm:$0xff] }
 0x2aa   : > { %v2923_v62 = vpop.f32.mrf.mxu0  ;;  %v3170_v23 = vpop.f32.mrf.mxu1  ;;  %v2914_v28 = vadd.f32 %v5865_v27, %v6009_v9 }
 0x2ab   : > { %3613 = vst.msk [vmem:[%s5692_s10 + $0xb8] sm:$0xf] %vm3566_vm1, %v4119_v24  ;;  %v4117_v37 = vpack.c.bf16 %v3290_v3, %v3290_v3  ;;  %v3293_v0 = vmax.f32 %v3179_v49, 0.0  ;;  %v3171_v47 = vadd.f32 %v3170_v23, %v2882_v8  ;;  %v6010_v3 = vld [vmem:[#allocation11_spill] sm:$0xff] }
 0x2ac   : > { %v2926_v36 = vpop.f32.mrf.mxu0  ;;  %v4237_v40 = vpop.f32.mrf.mxu1 }
 0x2ad   : > { %3611 = vst.msk [vmem:[%s5692_s10 + $0xb0] sm:$0xf] %vm3566_vm1, %v4117_v37  ;;  %v4120_v39 = vpack.c.bf16 %v3293_v0, %v3293_v0  ;;  %v3291_v38 = vmax.f32 %v3171_v47, 0.0  ;;  %v3192_v60 = vadd.f32 %v4237_v40, %v2903_v19  ;;  %v6011_v37 = vld [vmem:[#allocation10_spill] sm:$0xff] }
 0x2ae   : > { %v2928_v42 = vpop.f32.mrf.mxu0  ;;  %v3183_v33 = vpop.f32.mrf.mxu1  ;;  %v2927_v27 = vadd.f32 %v2926_v36, %v6011_v37 }
 0x2af   : > { %3614 = vst.msk [vmem:[%s5692_s10 + $0xbc] sm:$0xf] %vm3566_vm1, %v4120_v39  ;;  %v4118_v41 = vpack.c.bf16 %v3291_v38, %v3291_v38  ;;  %v3296_v25 = vmax.f32 %v3192_v60, 0.0  ;;  %v3184_v52 = vadd.f32 %v3183_v33, %v2895_v48  ;;  %v6012_v39 = vld [vmem:[#allocation3_spill] sm:$0xff] }
 0x2b0   : > { %v2929_v15 = vpop.f32.mrf.mxu0  ;;  %v4238_v1 = vpop.f32.mrf.mxu1 }
 0x2b1   : > { %3612 = vst.msk [vmem:[%s5692_s10 + $0xb4] sm:$0xf] %vm3566_vm1, %v4118_v41  ;;  %v4123_v43 = vpack.c.bf16 %v3296_v25, %v3296_v25  ;;  %v3294_v2 = vmax.f32 %v3184_v52, 0.0  ;;  %v3195_v16 = vadd.f32 %v4238_v1, %v2906_v57  ;;  %v6013_v41 = vld [vmem:[#allocation2_spill] sm:$0xff] }
 0x2b2   : > { %v2931_v31 = vpop.f32.mrf.mxu0  ;;  %v3186_v11 = vpop.f32.mrf.mxu1  ;;  %v2930_v36 = vadd.f32 %v2929_v15, %v6013_v41 }
 0x2b3   : > { %3617 = vst.msk [vmem:[%s5692_s10 + $0xc8] sm:$0xf] %vm3566_vm1, %v4123_v43  ;;  %v4121_v50 = vpack.c.bf16 %v3294_v2, %v3294_v2  ;;  %v3297_v32 = vmax.f32 %v3195_v16, 0.0  ;;  %v3187_v34 = vadd.f32 %v3186_v11, %v2898_v6 }
 0x2b4   : > { %v2934_v26 = vpop.f32.mrf.mxu0  ;;  %v4241_v61 = vpop.f32.mrf.mxu1 }
 0x2b5   : > { %3615 = vst.msk [vmem:[%s5692_s10 + $0xc0] sm:$0xf] %vm3566_vm1, %v4121_v50  ;;  %v4124_v53 = vpack.c.bf16 %v3297_v32, %v3297_v32  ;;  %v3295_v56 = vmax.f32 %v3187_v34, 0.0  ;;  %v3208_v55 = vadd.f32 %v4241_v61, %v2919_v12  ;;  %v2935_v21 = vadd.f32 %v2934_v26, %v6010_v3 }
 0x2b6   : > { %v2936_v35 = vpop.f32.mrf.mxu0  ;;  %v3199_v22 = vpop.f32.mrf.mxu1 }
 0x2b7   : > { %3618 = vst.msk [vmem:[%s5692_s10 + $0xcc] sm:$0xf] %vm3566_vm1, %v4124_v53  ;;  %v4122_v13 = vpack.c.bf16 %v3295_v56, %v3295_v56  ;;  %v3300_v59 = vmax.f32 %v3208_v55, 0.0  ;;  %v3200_v17 = vadd.f32 %v3199_v22, %v2911_v5  ;;  %v6015_v55 = vld [vmem:[#allocation4_spill] sm:$0xff] }
 0x2b8   : > { %v2937_v54 = vpop.f32.mrf.mxu0  ;;  %v4242_v63 = vpop.f32.mrf.mxu1 }
 0x2b9   : > { %3616 = vst.msk [vmem:[%s5692_s10 + $0xc4] sm:$0xf] %vm3566_vm1, %v4122_v13  ;;  %v4127_v4 = vpack.c.bf16 %v3300_v59, %v3300_v59  ;;  %v3298_v30 = vmax.f32 %v3200_v17, 0.0  ;;  %v3211_v10 = vadd.f32 %v4242_v63, %v2922_v46  ;;  %v2938_v38 = vadd.f32 %v2937_v54, %v6012_v39 }
 0x2ba   : > { %v2939_v8 = vpop.f32.mrf.mxu0  ;;  %v3202_v24 = vpop.f32.mrf.mxu1 }
 0x2bb   : > { %3621 = vst.msk [vmem:[%s5692_s10 + $0xd8] sm:$0xf] %vm3566_vm1, %v4127_v4  ;;  %v4125_v49 = vpack.c.bf16 %v3298_v30, %v3298_v30  ;;  %v3301_v62 = vmax.f32 %v3211_v10, 0.0  ;;  %v3203_v23 = vadd.f32 %v3202_v24, %v2914_v28 }
 0x2bc   : > { %v2942_v14 = vpop.f32.mrf.mxu0  ;;  %v4245_v19 = vpop.f32.mrf.mxu1 }
 0x2bd   : > { %3619 = vst.msk [vmem:[%s5692_s10 + $0xd0] sm:$0xf] %vm3566_vm1, %v4125_v49  ;;  %v4128_v0 = vpack.c.bf16 %v3301_v62, %v3301_v62  ;;  %v3299_v47 = vmax.f32 %v3203_v23, 0.0  ;;  %v3224_v40 = vadd.f32 %v4245_v19, %v2935_v21  ;;  %v2943_v12 = vadd.f32 %v2942_v14, %v6014_v45 }
 0x2be   : > { %v2944_v29 = vpop.f32.mrf.mxu0  ;;  %v3215_v48 = vpop.f32.mrf.mxu1 }
 0x2bf   : > { %3622 = vst.msk [vmem:[%s5692_s10 + $0xdc] sm:$0xf] %vm3566_vm1, %v4128_v0  ;;  %v4126_v60 = vpack.c.bf16 %v3299_v47, %v3299_v47  ;;  %v3304_v42 = vmax.f32 %v3224_v40, 0.0  ;;  %v3216_v33 = vadd.f32 %v3215_v48, %v2927_v27 }
 0x2c0   : > { %v2945_v7 = vpop.f32.mrf.mxu0  ;;  %v4246_v57 = vpop.f32.mrf.mxu1 }
 0x2c1   : > { %3620 = vst.msk [vmem:[%s5692_s10 + $0xd4] sm:$0xf] %vm3566_vm1, %v4126_v60  ;;  %v4131_v25 = vpack.c.bf16 %v3304_v42, %v3304_v42  ;;  %v3302_v52 = vmax.f32 %v3216_v33, 0.0  ;;  %v3227_v1 = vadd.f32 %v4246_v57, %v2938_v38  ;;  %v2946_v35 = vadd.f32 %v2945_v7, %v6015_v55 }
 0x2c2   : > { %v2947_v18 = vpop.f32.mrf.mxu0  ;;  %v3218_v6 = vpop.f32.mrf.mxu1 }
 0x2c3   : > { %3625 = vst.msk [vmem:[%s5692_s10 + $0xe8] sm:$0xf] %vm3566_vm1, %v4131_v25  ;;  %v4129_v43 = vpack.c.bf16 %v3302_v52, %v3302_v52  ;;  %v3305_v2 = vmax.f32 %v3227_v1, 0.0  ;;  %v3219_v16 = vadd.f32 %v3218_v6, %v2930_v36 }
 0x2c4   : > { %v2950_v31 = vpop.f32.mrf.mxu0  ;;  %v4249_v11 = vpop.f32.mrf.mxu1 }
 0x2c5   : > { %3623 = vst.msk [vmem:[%s5692_s10 + $0xe0] sm:$0xf] %vm3566_vm1, %v4129_v43  ;;  %v4132_v15 = vpack.c.bf16 %v3305_v2, %v3305_v2  ;;  %v3303_v50 = vmax.f32 %v3219_v16, 0.0  ;;  %v2951_v32 = vadd.f32 %v2950_v31, %v5675_v58 }
 0x2c6   : > { %v2952_v34 = vpop.f32.mrf.mxu0  ;;  %v3231_v26 = vpop.f32.mrf.mxu1 }
 0x2c7   : > { %3626 = vst.msk [vmem:[%s5692_s10 + $0xec] sm:$0xf] %vm3566_vm1, %v4132_v15  ;;  %v4130_v61 = vpack.c.bf16 %v3303_v50, %v3303_v50  ;;  %v3240_v51 = vadd.f32 %v4249_v11, %v2951_v32  ;;  %v3232_v5 = vadd.f32 %v3231_v26, %v2943_v12 }
 0x2c8   : > { %v2953_v53 = vpop.f32.mrf.mxu0  ;;  %v4250_v56 = vpop.f32.mrf.mxu1 }
 0x2c9   : > { %3624 = vst.msk [vmem:[%s5692_s10 + $0xe4] sm:$0xf] %vm3566_vm1, %v4130_v61  ;;  %v3308_v22 = vmax.f32 %v3240_v51, 0.0  ;;  %v3306_v20 = vmax.f32 %v3232_v5, 0.0  ;;  %v2954_v58 = vadd.f32 %v2953_v53, %v5681_v44 }
 0x2ca   : > { %v2955_v46 = vpop.f32.mrf.mxu0  ;;  %v3234_v13 = vpop.f32.mrf.mxu1 }
 0x2cb   : > { %v4135_v59 = vpack.c.bf16 %v3308_v22, %v3308_v22  ;;  %v4133_v17 = vpack.c.bf16 %v3306_v20, %v3306_v20  ;;  %v3243_v54 = vadd.f32 %v4250_v56, %v2954_v58  ;;  %v3235_v63 = vadd.f32 %v3234_v13, %v2946_v35 }
 0x2cd   : > { %3629 = vst.msk [vmem:[%s5692_s10 + $0xf8] sm:$0xf] %vm3566_vm1, %v4135_v59  ;;  %3627 = vst.msk [vmem:[%s5692_s10 + $0xf0] sm:$0xf] %vm3566_vm1, %v4133_v17  ;;  %v3309_v9 = vmax.f32 %v3243_v54, 0.0  ;;  %v3307_v28 = vmax.f32 %v3235_v63, 0.0 }
 0x2cf   : > { %v4136_v4 = vpack.c.bf16 %v3309_v9, %v3309_v9  ;;  %v4134_v30 = vpack.c.bf16 %v3307_v28, %v3307_v28 }
 0x2d1   : > { %3630 = vst.msk [vmem:[%s5692_s10 + $0xfc] sm:$0xf] %vm3566_vm1, %v4136_v4  ;;  %3628 = vst.msk [vmem:[%s5692_s10 + $0xf4] sm:$0xf] %vm3566_vm1, %v4134_v30 }
 0x2d2 PF: > { %s13_s12 = sadd.s32 1, %s4674_s12  }
 0x2d3   : > { %p10_p4 = scmp.ge.s32.totalorder %s13_s12, 6  }
 0x2d5   :  { %12 = sbr.rel (!%p10_p4) target bundleno = 1 (0x1), region = 62 }

// kernel: _lambda_.17
= control target key start
LH: loop header
LB: loop body
LE: loop exit
PB: predicated region body
PF: predicated region fallthrough
CT: control target
= control target key end

     0   :  { %vm1056_vm0 = vcmask 785408   ;;  %vm1819_vm1 = vcmask 519168   ;;  %s3416_s1 = inlined_call_operand.vmem [shape: bf16[864,64], index: 1, kind: input, shape index: {}]   ;;  %s3417_s0 = inlined_call_operand.vmem [shape: bf16[224,864], index: 0, kind: input, shape index: {}]   ;;  %s3418_s2 = inlined_call_operand.vmem [shape: f32[1,64], index: 2, kind: input, shape index: {}]   ;;  %s3419_s3 = inlined_call_operand.vmem [shape: bf16[224,64], index: 3, kind: output, shape index: {}]  }
   0x1   :  { %v2451_v0 = vld [vmem:[%s3416_s1 + $0x78] sm:$0xff]   ;;  %v2455_v4 = vld [vmem:[%s3416_s1 + $0x70] sm:$0xff]   ;;  %v2459_v8 = vld [vmem:[%s3416_s1 + $0x68] sm:$0xff]  }
   0x2   :  { %v2452_v1 = vld [vmem:[%s3416_s1 + $0xf8] sm:$0xff]   ;;  %2075 = vmatprep.subr.bf16.mxu0 %v2451_v0  ;;  %v2456_v5 = vld [vmem:[%s3416_s1 + $0xf0] sm:$0xff]   ;;  %v2460_v9 = vld [vmem:[%s3416_s1 + $0xe8] sm:$0xff]  }
   0x3   :  { %v2453_v2 = vld [vmem:[%s3416_s1 + $0x38] sm:$0xff]   ;;  %2175 = vmatprep.subr.bf16.mxu1 %v2452_v1  ;;  %v2457_v6 = vld [vmem:[%s3416_s1 + $0x30] sm:$0xff]   ;;  %v2461_v10 = vld [vmem:[%s3416_s1 + $0x28] sm:$0xff]  }
   0x4   :  { %v2454_v3 = vld [vmem:[%s3416_s1 + $0xb8] sm:$0xff]   ;;  %2076 = vmatpush3.bf16.msra.mxu0 %v2453_v2  ;;  %v2458_v7 = vld [vmem:[%s3416_s1 + $0xb0] sm:$0xff]   ;;  %v2462_v11 = vld [vmem:[%s3416_s1 + $0xa8] sm:$0xff]  }
   0x5   :  { %2176 = vmatpush3.bf16.msra.mxu1 %v2454_v3  ;;  %2077 = vmatprep.subr.bf16.mxu0 %v2455_v4  ;;  %v2463_v12 = vld [vmem:[%s3416_s1 + $0x60] sm:$0xff]   ;;  %v2467_v16 = vld [vmem:[%s3416_s1 + $0x58] sm:$0xff]   ;;  %v2471_v20 = vld [vmem:[%s3416_s1 + $0x50] sm:$0xff]  }
   0x6   :  { %2177 = vmatprep.subr.bf16.mxu1 %v2456_v5  ;;  %v2464_v13 = vld [vmem:[%s3416_s1 + $0xe0] sm:$0xff]   ;;  %v2468_v17 = vld [vmem:[%s3416_s1 + $0xd8] sm:$0xff]   ;;  %v2472_v21 = vld [vmem:[%s3416_s1 + $0xd0] sm:$0xff]  }
   0x7   :  { %v2465_v14 = vld [vmem:[%s3416_s1 + $0x20] sm:$0xff]   ;;  %v2469_v18 = vld [vmem:[%s3416_s1 + $0x18] sm:$0xff]   ;;  %v2473_v22 = vld [vmem:[%s3416_s1 + $0x10] sm:$0xff]  }
   0x8   :  { %2078 = vmatpush3.bf16.msra.mxu0 %v2457_v6  ;;  %v2466_v15 = vld [vmem:[%s3416_s1 + $0xa0] sm:$0xff]   ;;  %v2470_v19 = vld [vmem:[%s3416_s1 + $0x98] sm:$0xff]   ;;  %v2474_v23 = vld [vmem:[%s3416_s1 + $0x90] sm:$0xff]  }
   0x9   :  { %2178 = vmatpush3.bf16.msra.mxu1 %v2458_v7  ;;  %2079 = vmatprep.subr.bf16.mxu0 %v2459_v8  ;;  %v2475_v24 = vld [vmem:[%s3416_s1 + $0x48] sm:$0xff]   ;;  %v2479_v28 = vld [vmem:[%s3416_s1 + $0x40] sm:$0xff]   ;;  %v2489_v36 = vld [vmem:[%s3416_s1 + $0x178] sm:$0xff]  }
   0xa   :  { %2179 = vmatprep.subr.bf16.mxu1 %v2460_v9  ;;  %v2476_v25 = vld [vmem:[%s3416_s1 + $0xc8] sm:$0xff]   ;;  %v2480_v29 = vld [vmem:[%s3416_s1 + $0xc0] sm:$0xff]   ;;  %v2490_v37 = vld [vmem:[%s3416_s1 + $0x138] sm:$0xff]  }
   0xb   :  { %v2477_v26 = vld [vmem:[%s3416_s1 + $0x8] sm:$0xff]   ;;  %v2481_v30 = vld [vmem:[%s3416_s1] sm:$0xff]   ;;  %v2491_v38 = vld [vmem:[%s3417_s0 + $0x3c] ss:$28 sps:$4 sm:$0xff]  }
   0xc   :  { %2080 = vmatpush3.bf16.msra.mxu0 %v2461_v10  ;;  %v2478_v27 = vld [vmem:[%s3416_s1 + $0x88] sm:$0xff]   ;;  %v2482_v31 = vld [vmem:[%s3416_s1 + $0x80] sm:$0xff]   ;;  %v2495_v40 = vld [vmem:[%s3417_s0 + $0x38] ss:$28 sps:$4 sm:$0xff]  }
   0xd   :  { %2180 = vmatpush3.bf16.msra.mxu1 %v2462_v11  ;;  %2081 = vmatprep.subr.bf16.mxu0 %v2463_v12  ;;  %v2483_v32 = vld [vmem:[%s3417_s0] ss:$28 sps:$4 sm:$0xff]   ;;  %v2486_v34 = vld [vmem:[%s3417_s0 + $0x8] ss:$28 sps:$4 sm:$0xff]   ;;  %v2497_v42 = vld [vmem:[%s3416_s1 + $0x170] sm:$0xff]  }
   0xe   :  { %2181 = vmatprep.subr.bf16.mxu1 %v2464_v13  ;;  %v2485_v33 = vld [vmem:[%s3417_s0 + $0x4] ss:$28 sps:$4 sm:$0xff]   ;;  %v2488_v35 = vld [vmem:[%s3417_s0 + $0xc] ss:$28 sps:$4 sm:$0xff]   ;;  %v2498_v43 = vld [vmem:[%s3417_s0 + $0x74] ss:$28 sps:$4 sm:$0xff]  }
   0xf   :  { %1131 = vmatprep.mubr.bf16.mxu0 %v2485_v33  ;;  %1276 = vmatprep.mubr.bf16.mxu1 %v2488_v35  ;;  %v2493_v39 = vld [vmem:[%s3417_s0 + $0x44] ss:$28 sps:$4 sm:$0xff]   ;;  %v2500_v44 = vld [vmem:[%s3417_s0 + $0x7c] ss:$28 sps:$4 sm:$0xff]   ;;  %v2502_v45 = vld [vmem:[%s3416_s1 + $0x130] sm:$0xff]  }
  0x10   :  { %2082 = vmatpush3.bf16.msra.mxu0 %v2465_v14  ;;  %v2496_v41 = vld [vmem:[%s3417_s0 + $0x40] ss:$28 sps:$4 sm:$0xff]   ;;  %v2503_v46 = vld [vmem:[%s3417_s0 + $0x70] ss:$28 sps:$4 sm:$0xff]   ;;  %v2504_v47 = vld [vmem:[%s3417_s0 + $0x78] ss:$28 sps:$4 sm:$0xff]  }
  0x11   :  { %2182 = vmatpush3.bf16.msra.mxu1 %v2466_v15  ;;  %2083 = vmatprep.subr.bf16.mxu0 %v2467_v16  ;;  %v2511_v48 = vld [vmem:[%s3416_s1 + $0x168] sm:$0xff]   ;;  %v2507_v51 = vld [vmem:[%s3417_s0 + $0xb4] ss:$28 sps:$4 sm:$0xff]   ;;  %v2525_v53 = vld [vmem:[%s3416_s1 + $0x160] sm:$0xff]  }
  0x12   :  { %2183 = vmatprep.subr.bf16.mxu1 %v2468_v17  ;;  %v2512_v49 = vld [vmem:[%s3416_s1 + $0x128] sm:$0xff]   ;;  %v2526_v54 = vld [vmem:[%s3416_s1 + $0x120] sm:$0xff]   ;;  %v2539_v58 = vld [vmem:[%s3416_s1 + $0x158] sm:$0xff]  }
  0x13   :  { %v2505_v50 = vld [vmem:[%s3417_s0 + $0xac] ss:$28 sps:$4 sm:$0xff]   ;;  %v2513_v56 = vld [vmem:[%s3417_s0 + $0xe4] ss:$28 sps:$4 sm:$0xff]   ;;  %v2540_v59 = vld [vmem:[%s3416_s1 + $0x118] sm:$0xff]  }
  0x14   :  { %2084 = vmatpush3.bf16.msra.mxu0 %v2469_v18  ;;  %v2509_v52 = vld [vmem:[%s3417_s0 + $0xa8] ss:$28 sps:$4 sm:$0xff]   ;;  %v2510_v55 = vld [vmem:[%s3417_s0 + $0xb0] ss:$28 sps:$4 sm:$0xff]   ;;  %v2517_v60 = vld [vmem:[%s3417_s0 + $0xe0] ss:$28 sps:$4 sm:$0xff]  }
  0x15   :  { %2184 = vmatpush3.bf16.msra.mxu1 %v2470_v19  ;;  %2085 = vmatprep.subr.bf16.mxu0 %v2471_v20  ;;  %v2515_v57 = vld [vmem:[%s3417_s0 + $0xec] ss:$28 sps:$4 sm:$0xff]   ;;  %v2519_v62 = vld [vmem:[%s3417_s0 + $0x11c] ss:$28 sps:$4 sm:$0xff]   ;;  %v2521_v63 = vld [vmem:[%s3417_s0 + $0x124] ss:$28 sps:$4 sm:$0xff]  }
  0x16   :  { %2185 = vmatprep.subr.bf16.mxu1 %v2472_v21  ;;  %v2518_v61 = vld [vmem:[%s3417_s0 + $0xe8] ss:$28 sps:$4 sm:$0xff]   ;;  %v2547_v0 = vld [vmem:[%s3416_s1 + $0x150] sm:$0xff]   ;;  %v2524_v3 = vld [vmem:[%s3417_s0 + $0x120] ss:$28 sps:$4 sm:$0xff]  }
  0x17   :  { %v2552_v1 = vld [vmem:[%s3416_s1 + $0x110] sm:$0xff]   ;;  %v2529_v5 = vld [vmem:[%s3417_s0 + $0x15c] ss:$28 sps:$4 sm:$0xff]   ;;  %v2561_v6 = vld [vmem:[%s3416_s1 + $0x148] sm:$0xff]  }
  0x18   :  { %2086 = vmatpush3.bf16.msra.mxu0 %v2473_v22  ;;  %v2523_v2 = vld [vmem:[%s3417_s0 + $0x118] ss:$28 sps:$4 sm:$0xff]   ;;  %v2562_v7 = vld [vmem:[%s3416_s1 + $0x108] sm:$0xff]   ;;  %v2575_v12 = vld [vmem:[%s3416_s1 + $0x140] sm:$0xff]  }
  0x19   :  { %2186 = vmatpush3.bf16.msra.mxu1 %v2474_v23  ;;  %2087 = vmatprep.subr.bf16.mxu0 %v2475_v24  ;;  %v2527_v4 = vld [vmem:[%s3417_s0 + $0x154] ss:$28 sps:$4 sm:$0xff]   ;;  %v2533_v10 = vld [vmem:[%s3417_s0 + $0x18c] ss:$28 sps:$4 sm:$0xff]   ;;  %v2576_v13 = vld [vmem:[%s3416_s1 + $0x100] sm:$0xff]  }
  0x1a   :  { %2187 = vmatprep.subr.bf16.mxu1 %v2476_v25  ;;  %v2531_v8 = vld [vmem:[%s3417_s0 + $0x150] ss:$28 sps:$4 sm:$0xff]   ;;  %v2532_v9 = vld [vmem:[%s3417_s0 + $0x158] ss:$28 sps:$4 sm:$0xff]   ;;  %v2537_v14 = vld [vmem:[%s3417_s0 + $0x188] ss:$28 sps:$4 sm:$0xff]  }
  0x1b   :  { %v2535_v11 = vld [vmem:[%s3417_s0 + $0x194] ss:$28 sps:$4 sm:$0xff]   ;;  %v2908_v16 = vld [vmem:[%s3416_s1 + $0x1a8] sm:$0xff]   ;;  %v2541_v17 = vld [vmem:[%s3417_s0 + $0x1c4] ss:$28 sps:$4 sm:$0xff]  }
  0x1c   :  { %2088 = vmatpush3.bf16.msra.mxu0 %v2477_v26  ;;  %v2538_v15 = vld [vmem:[%s3417_s0 + $0x190] ss:$28 sps:$4 sm:$0xff]   ;;  %v2545_v19 = vld [vmem:[%s3417_s0 + $0x1c0] ss:$28 sps:$4 sm:$0xff]   ;;  %v2546_v20 = vld [vmem:[%s3417_s0 + $0x1c8] ss:$28 sps:$4 sm:$0xff]  }
  0x1d   :  { %2188 = vmatpush3.bf16.msra.mxu1 %v2478_v27  ;;  %2089 = vmatprep.subr.bf16.mxu0 %v2479_v28  ;;  %v2543_v18 = vld [vmem:[%s3417_s0 + $0x1cc] ss:$28 sps:$4 sm:$0xff]   ;;  %v2548_v21 = vld [vmem:[%s3417_s0 + $0x1fc] ss:$28 sps:$4 sm:$0xff]   ;;  %v2550_v22 = vld [vmem:[%s3417_s0 + $0x204] ss:$28 sps:$4 sm:$0xff]  }
  0x1e   :  { %2189 = vmatprep.subr.bf16.mxu1 %v2480_v29  ;;  %v2553_v23 = vld [vmem:[%s3417_s0 + $0x1f8] ss:$28 sps:$4 sm:$0xff]   ;;  %v2554_v24 = vld [vmem:[%s3417_s0 + $0x200] ss:$28 sps:$4 sm:$0xff]   ;;  %v2559_v27 = vld [vmem:[%s3417_s0 + $0x230] ss:$28 sps:$4 sm:$0xff]  }
  0x1f   :  { %v2555_v25 = vld [vmem:[%s3417_s0 + $0x234] ss:$28 sps:$4 sm:$0xff]   ;;  %v2557_v26 = vld [vmem:[%s3417_s0 + $0x23c] ss:$28 sps:$4 sm:$0xff]   ;;  %v2563_v29 = vld [vmem:[%s3417_s0 + $0x26c] ss:$28 sps:$4 sm:$0xff]  }
  0x20   :  { %2090 = vmatpush3.bf16.msra.mxu0 %v2481_v30  ;;  %v2560_v28 = vld [vmem:[%s3417_s0 + $0x238] ss:$28 sps:$4 sm:$0xff]   ;;  %v2569_v33 = vld [vmem:[%s3417_s0 + $0x2a4] ss:$28 sps:$4 sm:$0xff]  }
  0x21   :  { %2190 = vmatpush3.bf16.msra.mxu1 %v2482_v31  ;;  %2275 = vmatprep.subr.bf16.mxu0 %v2489_v36  ;;  %v2565_v30 = vld [vmem:[%s3417_s0 + $0x274] ss:$28 sps:$4 sm:$0xff]   ;;  %v2567_v31 = vld [vmem:[%s3417_s0 + $0x268] ss:$28 sps:$4 sm:$0xff]   ;;  %v2573_v35 = vld [vmem:[%s3417_s0 + $0x2a0] ss:$28 sps:$4 sm:$0xff]  }
  0x22   :  { %2435 = vmatprep.subr.bf16.mxu1 %v2489_v36  ;;  %v2574_v36 = vld [vmem:[%s3417_s0 + $0x2a8] ss:$28 sps:$4 sm:$0xff]  }
  0x23   :  { %1132 = vmatmul.mubr.bf16.vlgmr.msra.gmra.mxu0 %v2483_v32  ;;  %v2568_v32 = vld [vmem:[%s3417_s0 + $0x270] ss:$28 sps:$4 sm:$0xff]  }
  0x24   :  { %1277 = vmatmul.mubr.bf16.vlgmr.msra.gmra.mxu1 %v2486_v34  ;;  %2276 = vmatpush3.bf16.msra.mxu0 %v2490_v37  ;;  %v2571_v34 = vld [vmem:[%s3417_s0 + $0x2ac] ss:$28 sps:$4 sm:$0xff]  }
  0x25   :  { %1139 = vmatprep.mubr.bf16.mxu0 %v2491_v38  ;;  %2443 = vmatpush3.bf16.msra.mxu1 %v2490_v37  ;;  %v2577_v37 = vld [vmem:[%s3417_s0 + $0x2dc] ss:$28 sps:$4 sm:$0xff]   ;;  %v2579_v38 = vld [vmem:[%s3417_s0 + $0x2e4] ss:$28 sps:$4 sm:$0xff]  }
  0x26   :  { %1284 = vmatprep.mubr.bf16.mxu1 %v2493_v39  ;;  %2277 = vmatprep.subr.bf16.mxu0 %v2497_v42  ;;  %v2581_v39 = vld [vmem:[%s3417_s0 + $0x2d8] ss:$28 sps:$4 sm:$0xff]  }
  0x27   :  { %2436 = vmatprep.subr.bf16.mxu1 %v2497_v42  ;;  %v2588_v42 = vld [vmem:[%s3417_s0 + $0x27c] ss:$28 sps:$4 sm:$0xff]  }
  0x28   :  { %2278 = vmatpush3.bf16.msra.mxu0 %v2502_v45 }
  0x29   :  { %2444 = vmatpush3.bf16.msra.mxu1 %v2502_v45  ;;  %2279 = vmatprep.subr.bf16.mxu0 %v2511_v48  ;;  %v2591_v45 = vld [vmem:[%s3417_s0 + $0x4c] ss:$28 sps:$4 sm:$0xff]  }
  0x2a   :  { %2437 = vmatprep.subr.bf16.mxu1 %v2511_v48  ;;  %v2597_v48 = vld [vmem:[%s3416_s1 + $0x198] sm:$0xff]  }
  0x2b   :  { %1140 = vmatmul.mubr.bf16.gmra.mxu0 %v2495_v40  ;;  %v2582_v40 = vld [vmem:[%s3417_s0 + $0x2e0] ss:$28 sps:$4 sm:$0xff]  }
  0x2c   :  { %1285 = vmatmul.mubr.bf16.gmra.mxu1 %v2496_v41  ;;  %1147 = vmatprep.mubr.bf16.mxu0 %v2498_v43  ;;  %v2585_v41 = vld [vmem:[%s3417_s0 + $0x14] ss:$28 sps:$4 sm:$0xff]  }
  0x2d   :  { %1292 = vmatprep.mubr.bf16.mxu1 %v2500_v44  ;;  %2280 = vmatpush3.bf16.msra.mxu0 %v2512_v49  ;;  %v2583_v43 = vld [vmem:[%s3417_s0 + $0x10] ss:$28 sps:$4 sm:$0xff]   ;;  %v2586_v44 = vld [vmem:[%s3417_s0 + $0x278] ss:$28 sps:$4 sm:$0xff]  }
  0x2e   :  { %2445 = vmatpush3.bf16.msra.mxu1 %v2512_v49  ;;  %2281 = vmatprep.subr.bf16.mxu0 %v2525_v53  ;;  %v2595_v49 = vld [vmem:[%s3417_s0 + $0x48] ss:$28 sps:$4 sm:$0xff]  }
  0x2f   :  { %2438 = vmatprep.subr.bf16.mxu1 %v2525_v53  ;;  %v2598_v53 = vld [vmem:[%s3416_s1 + $0x190] sm:$0xff]  }
  0x31   :  { %2282 = vmatpush3.bf16.msra.mxu0 %v2526_v54 }
  0x32   :  { %2446 = vmatpush3.bf16.msra.mxu1 %v2526_v54  ;;  %2283 = vmatprep.subr.bf16.mxu0 %v2539_v58  ;;  %v2605_v54 = vld [vmem:[%s3416_s1 + $0x188] sm:$0xff]  }
  0x33   :  { %1148 = vmatmul.mubr.bf16.gmra.mxu0 %v2503_v46  ;;  %2439 = vmatprep.subr.bf16.mxu1 %v2539_v58  ;;  %v2593_v46 = vld [vmem:[%s3417_s0 + $0x2b4] ss:$28 sps:$4 sm:$0xff]  }
  0x34   :  { %1293 = vmatmul.mubr.bf16.gmra.mxu1 %v2504_v47  ;;  %1155 = vmatprep.mubr.bf16.mxu0 %v2505_v50  ;;  %v2590_v47 = vld [vmem:[%s3416_s1 + $0x1a0] sm:$0xff]   ;;  %v2596_v50 = vld [vmem:[%s3417_s0 + $0x2b0] ss:$28 sps:$4 sm:$0xff]   ;;  %v2609_v58 = vld [vmem:[%s3417_s0 + $0x18] ss:$28 sps:$4 sm:$0xff]  }
  0x35   :  { %1300 = vmatprep.mubr.bf16.mxu1 %v2507_v51  ;;  %2284 = vmatpush3.bf16.msra.mxu0 %v2540_v59  ;;  %v2599_v51 = vld [vmem:[%s3417_s0 + $0x84] ss:$28 sps:$4 sm:$0xff]  }
  0x36   :  { %2447 = vmatpush3.bf16.msra.mxu1 %v2540_v59  ;;  %2285 = vmatprep.subr.bf16.mxu0 %v2547_v0  ;;  %v2606_v59 = vld [vmem:[%s3416_s1 + $0x180] sm:$0xff]  }
  0x37   :  { %2440 = vmatprep.subr.bf16.mxu1 %v2547_v0  ;;  %v2615_v0 = vld [vmem:[%s3417_s0 + $0xf0] ss:$28 sps:$4 sm:$0xff]  }
  0x39   :  { %2286 = vmatpush3.bf16.msra.mxu0 %v2552_v1 }
  0x3a   :  { %2448 = vmatpush3.bf16.msra.mxu1 %v2552_v1  ;;  %2287 = vmatprep.subr.bf16.mxu0 %v2561_v6  ;;  %v2616_v1 = vld [vmem:[%s3417_s0 + $0xc0] ss:$28 sps:$4 sm:$0xff]  }
  0x3b   :  { %1156 = vmatmul.mubr.bf16.gmra.mxu0 %v2509_v52  ;;  %2441 = vmatprep.subr.bf16.mxu1 %v2561_v6  ;;  %v2601_v52 = vld [vmem:[%s3417_s0 + $0x2ec] ss:$28 sps:$4 sm:$0xff]   ;;  %v2622_v6 = vld [vmem:[%s3417_s0 + $0x164] ss:$28 sps:$4 sm:$0xff]  }
  0x3c   :  { %1301 = vmatmul.mubr.bf16.gmra.mxu1 %v2510_v55  ;;  %1163 = vmatprep.mubr.bf16.mxu0 %v2513_v56  ;;  %v2603_v55 = vld [vmem:[%s3417_s0 + $0x80] ss:$28 sps:$4 sm:$0xff]   ;;  %v2604_v56 = vld [vmem:[%s3417_s0 + $0x2e8] ss:$28 sps:$4 sm:$0xff]  }
  0x3d   :  { %1308 = vmatprep.mubr.bf16.mxu1 %v2515_v57  ;;  %2288 = vmatpush3.bf16.msra.mxu0 %v2562_v7  ;;  %v2607_v57 = vld [vmem:[%s3417_s0 + $0xbc] ss:$28 sps:$4 sm:$0xff]  }
  0x3e   :  { %2449 = vmatpush3.bf16.msra.mxu1 %v2562_v7  ;;  %2289 = vmatprep.subr.bf16.mxu0 %v2575_v12  ;;  %v2624_v7 = vld [vmem:[%s3417_s0 + $0x168] ss:$28 sps:$4 sm:$0xff]  }
  0x3f   :  { %2442 = vmatprep.subr.bf16.mxu1 %v2575_v12  ;;  %v2630_v12 = vld [vmem:[%s3417_s0 + $0x198] ss:$28 sps:$4 sm:$0xff]  }
  0x41   :  { %2290 = vmatpush3.bf16.msra.mxu0 %v2576_v13 }
  0x42   :  { %2450 = vmatpush3.bf16.msra.mxu1 %v2576_v13  ;;  %v2631_v13 = vld [vmem:[%s3417_s0 + $0x210] ss:$28 sps:$4 sm:$0xff]  }
  0x43   :  { %1164 = vmatmul.mubr.bf16.gmra.mxu0 %v2517_v60  ;;  %2395 = vmatprep.subr.bf16.mxu1 %v2908_v16  ;;  %v2610_v60 = vld [vmem:[%s3417_s0 + $0xb8] ss:$28 sps:$4 sm:$0xff]  }
  0x44   :  { %1309 = vmatmul.mubr.bf16.gmra.mxu1 %v2518_v61  ;;  %1171 = vmatprep.mubr.bf16.mxu0 %v2519_v62  ;;  %v2611_v61 = vld [vmem:[%s3417_s0 + $0x50] ss:$28 sps:$4 sm:$0xff]  }
  0x45   :  { %1316 = vmatprep.mubr.bf16.mxu1 %v2521_v63  ;;  %v2612_v62 = vld [vmem:[%s3417_s0 + $0xf4] ss:$28 sps:$4 sm:$0xff]   ;;  %v2614_v63 = vld [vmem:[%s3417_s0 + $0x88] ss:$28 sps:$4 sm:$0xff]  }
  0x4b   :  { %1172 = vmatmul.mubr.bf16.gmra.mxu0 %v2523_v2  ;;  %v2617_v2 = vld [vmem:[%s3417_s0 + $0x12c] ss:$28 sps:$4 sm:$0xff]  }
  0x4c   :  { %1317 = vmatmul.mubr.bf16.gmra.mxu1 %v2524_v3  ;;  %1179 = vmatprep.mubr.bf16.mxu0 %v2527_v4  ;;  %v2619_v3 = vld [vmem:[%s3417_s0 + $0xf8] ss:$28 sps:$4 sm:$0xff]   ;;  %v2620_v4 = vld [vmem:[%s3417_s0 + $0x128] ss:$28 sps:$4 sm:$0xff]  }
  0x4d   :  { %1324 = vmatprep.mubr.bf16.mxu1 %v2529_v5  ;;  %v2621_v5 = vld [vmem:[%s3417_s0 + $0x130] ss:$28 sps:$4 sm:$0xff]  }
  0x53   :  { %1180 = vmatmul.mubr.bf16.gmra.mxu0 %v2531_v8  ;;  %v2625_v8 = vld [vmem:[%s3417_s0 + $0x160] ss:$28 sps:$4 sm:$0xff]  }
  0x54   :  { %1325 = vmatmul.mubr.bf16.gmra.mxu1 %v2532_v9  ;;  %1187 = vmatprep.mubr.bf16.mxu0 %v2533_v10  ;;  %v2626_v9 = vld [vmem:[%s3417_s0 + $0x1a0] ss:$28 sps:$4 sm:$0xff]  }
  0x55   :  { %1332 = vmatprep.mubr.bf16.mxu1 %v2535_v11  ;;  %v2627_v10 = vld [vmem:[%s3417_s0 + $0x19c] ss:$28 sps:$4 sm:$0xff]  }
  0x56   :  { %v2629_v11 = vld [vmem:[%s3417_s0 + $0x1d8] ss:$28 sps:$4 sm:$0xff]  }
  0x5b   :  { %1188 = vmatmul.mubr.bf16.gmra.mxu0 %v2537_v14  ;;  %v2632_v14 = vld [vmem:[%s3417_s0 + $0x1d4] ss:$28 sps:$4 sm:$0xff]  }
  0x5c   :  { %1333 = vmatmul.mubr.bf16.gmra.mxu1 %v2538_v15  ;;  %1195 = vmatprep.mubr.bf16.mxu0 %v2541_v17  ;;  %v2634_v15 = vld [vmem:[%s3417_s0 + $0x248] ss:$28 sps:$4 sm:$0xff]   ;;  %v2636_v17 = vld [vmem:[%s3417_s0 + $0x280] ss:$28 sps:$4 sm:$0xff]  }
  0x5d   :  { %1340 = vmatprep.mubr.bf16.mxu1 %v2543_v18  ;;  %v2637_v18 = vld [vmem:[%s3417_s0 + $0x20c] ss:$28 sps:$4 sm:$0xff]  }
  0x63   :  { %1196 = vmatmul.mubr.bf16.gmra.mxu0 %v2545_v19  ;;  %v2639_v19 = vld [vmem:[%s3417_s0 + $0x2b8] ss:$28 sps:$4 sm:$0xff]  }
  0x64   :  { %1341 = vmatmul.mubr.bf16.gmra.mxu1 %v2546_v20  ;;  %1203 = vmatprep.mubr.bf16.mxu0 %v2548_v21  ;;  %v2640_v20 = vld [vmem:[%s3417_s0 + $0x208] ss:$28 sps:$4 sm:$0xff]   ;;  %v2641_v21 = vld [vmem:[%s3417_s0 + $0x2f0] ss:$28 sps:$4 sm:$0xff]  }
  0x65   :  { %1348 = vmatprep.mubr.bf16.mxu1 %v2550_v22  ;;  %v2642_v22 = vld [vmem:[%s3417_s0 + $0x244] ss:$28 sps:$4 sm:$0xff]  }
  0x6b   :  { %1204 = vmatmul.mubr.bf16.gmra.mxu0 %v2553_v23  ;;  %v2644_v23 = vld [vmem:[%s3417_s0 + $0x240] ss:$28 sps:$4 sm:$0xff]  }
  0x6c   :  { %1349 = vmatmul.mubr.bf16.gmra.mxu1 %v2554_v24  ;;  %1211 = vmatprep.mubr.bf16.mxu0 %v2555_v25 }
  0x6d   :  { %1356 = vmatprep.mubr.bf16.mxu1 %v2557_v26  ;;  %v3142_v26 = vld [vmem:[%s3418_s2] ss:$0 sm:$0xff] }
  0x73   :  { %1212 = vmatmul.mubr.bf16.gmra.mxu0 %v2559_v27 }
  0x74   :  { %1357 = vmatmul.mubr.bf16.gmra.mxu1 %v2560_v28  ;;  %1219 = vmatprep.mubr.bf16.mxu0 %v2563_v29 }
  0x75   :  { %1364 = vmatprep.mubr.bf16.mxu1 %v2565_v30 }
  0x7b   :  { %1220 = vmatmul.mubr.bf16.gmra.mxu0 %v2567_v31 }
  0x7c   :  { %1365 = vmatmul.mubr.bf16.gmra.mxu1 %v2568_v32  ;;  %1227 = vmatprep.mubr.bf16.mxu0 %v2569_v33 }
  0x7d   :  { %1372 = vmatprep.mubr.bf16.mxu1 %v2571_v34 }
  0x83   :  { %1228 = vmatmul.mubr.bf16.gmra.mxu0 %v2573_v35 }
  0x84   :  { %1373 = vmatmul.mubr.bf16.gmra.mxu1 %v2574_v36  ;;  %1235 = vmatprep.mubr.bf16.mxu0 %v2577_v37 }
  0x85   :  { %1380 = vmatprep.mubr.bf16.mxu1 %v2579_v38 }
  0x8b   :  { %1236 = vmatmul.mubr.bf16.gmra.mxu0 %v2581_v39 }
  0x8c   :  { %1381 = vmatmul.mubr.bf16.gmra.mxu1 %v2582_v40  ;;  %1421 = vmatprep.mubr.bf16.mxu0 %v2585_v41 }
  0x8d   :  { %1509 = vmatprep.mubr.bf16.mxu1 %v2588_v42 }
  0x93   :  { %1422 = vmatmul.mubr.bf16.vlgmr.msra.gmra.mxu0 %v2583_v43 }
  0x94   :  { %1510 = vmatmul.mubr.bf16.vlgmr.msra.gmra.mxu1 %v2586_v44  ;;  %1429 = vmatprep.mubr.bf16.mxu0 %v2591_v45 }
  0x95   :  { %2396 = vmatpush3.bf16.msra.mxu1 %v2908_v16  ;;  %1517 = vmatprep.mubr.bf16.mxu1 %v2593_v46  ;;  %v2635_v16 = vld [vmem:[%s3417_s0 + $0x1d0] ss:$28 sps:$4 sm:$0xff]  }
  0x96   :  { %2397 = vmatprep.subr.bf16.mxu1 %v2590_v47 }
  0x99   :  { %2398 = vmatpush3.bf16.msra.mxu1 %v2590_v47 }
  0x9a   :  { %2399 = vmatprep.subr.bf16.mxu1 %v2597_v48 }
  0x9b   :  { %1430 = vmatmul.mubr.bf16.gmra.mxu0 %v2595_v49 }
  0x9c   :  { %1518 = vmatmul.mubr.bf16.gmra.mxu1 %v2596_v50  ;;  %1437 = vmatprep.mubr.bf16.mxu0 %v2599_v51 }
  0x9d   :  { %2400 = vmatpush3.bf16.msra.mxu1 %v2597_v48  ;;  %1525 = vmatprep.mubr.bf16.mxu1 %v2601_v52 }
  0x9e   :  { %2401 = vmatprep.subr.bf16.mxu1 %v2598_v53 }
  0xa1   :  { %2402 = vmatpush3.bf16.msra.mxu1 %v2598_v53 }
  0xa2   :  { %2403 = vmatprep.subr.bf16.mxu1 %v2605_v54 }
  0xa3   :  { %1438 = vmatmul.mubr.bf16.gmra.mxu0 %v2603_v55 }
  0xa4   :  { %1526 = vmatmul.mubr.bf16.gmra.mxu1 %v2604_v56  ;;  %1445 = vmatprep.mubr.bf16.mxu0 %v2607_v57 }
  0xa5   :  { %2404 = vmatpush3.bf16.msra.mxu1 %v2605_v54  ;;  %2407 = vmatprep.mubr.msk.bf16.mxu1 %vm1056_vm0, %v2609_v58 }
  0xa6   :  { %2405 = vmatprep.subr.bf16.mxu1 %v2606_v59 }
  0xa9   :  { %2406 = vmatpush3.bf16.msra.mxu1 %v2606_v59 }
  0xab   :  { %1446 = vmatmul.mubr.bf16.gmra.mxu0 %v2610_v60 }
  0xac   :  { %2408 = vmatmul.mubr.msk.bf16.vlgmr.msra.gmra.mxu1 %vm1056_vm0, %v2611_v61  ;;  %1453 = vmatprep.mubr.bf16.mxu0 %v2612_v62 }
  0xad   :  { %2411 = vmatprep.mubr.msk.bf16.mxu1 %vm1056_vm0, %v2614_v63 }
  0xb3   :  { %1454 = vmatmul.mubr.bf16.gmra.mxu0 %v2615_v0 }
  0xb4   :  { %2412 = vmatmul.mubr.msk.bf16.gmra.mxu1 %vm1056_vm0, %v2616_v1  ;;  %1461 = vmatprep.mubr.bf16.mxu0 %v2617_v2 }
  0xb5   :  { %2415 = vmatprep.mubr.msk.bf16.mxu1 %vm1056_vm0, %v2619_v3 }
  0xbb   :  { %1462 = vmatmul.mubr.bf16.gmra.mxu0 %v2620_v4 }
  0xbc   :  { %2416 = vmatmul.mubr.msk.bf16.gmra.mxu1 %vm1056_vm0, %v2621_v5  ;;  %1469 = vmatprep.mubr.bf16.mxu0 %v2622_v6 }
  0xbd   :  { %2419 = vmatprep.mubr.msk.bf16.mxu1 %vm1056_vm0, %v2624_v7 }
  0xc3   :  { %1470 = vmatmul.mubr.bf16.gmra.mxu0 %v2625_v8 }
  0xc4   :  { %2420 = vmatmul.mubr.msk.bf16.gmra.mxu1 %vm1056_vm0, %v2626_v9  ;;  %1477 = vmatprep.mubr.bf16.mxu0 %v2627_v10 }
  0xc5   :  { %2423 = vmatprep.mubr.msk.bf16.mxu1 %vm1056_vm0, %v2629_v11 }
  0xcb   :  { %1478 = vmatmul.mubr.bf16.gmra.mxu0 %v2630_v12 }
  0xcc   :  { %2424 = vmatmul.mubr.msk.bf16.gmra.mxu1 %vm1056_vm0, %v2631_v13  ;;  %1485 = vmatprep.mubr.bf16.mxu0 %v2632_v14 }
  0xcd   :  { %2427 = vmatprep.mubr.msk.bf16.mxu1 %vm1056_vm0, %v2634_v15 }
  0xd3   :  { %1486 = vmatmul.mubr.bf16.gmra.mxu0 %v2635_v16 }
  0xd4   :  { %2428 = vmatmul.mubr.msk.bf16.gmra.mxu1 %vm1056_vm0, %v2636_v17  ;;  %1493 = vmatprep.mubr.bf16.mxu0 %v2637_v18 }
  0xd5   :  { %2431 = vmatprep.mubr.msk.bf16.mxu1 %vm1056_vm0, %v2639_v19 }
  0xdb   :  { %1494 = vmatmul.mubr.bf16.gmra.mxu0 %v2640_v20 }
  0xdc   :  { %2432 = vmatmul.mubr.msk.bf16.gmra.mxu1 %vm1056_vm0, %v2641_v21  ;;  %1501 = vmatprep.mubr.bf16.mxu0 %v2642_v22 }
  0xe3   :  { %v2091_v24 = vpop.f32.mrf.mxu0  ;;  %1502 = vmatmul.mubr.bf16.gmra.mxu0 %v2644_v23 }
  0xe4   :  { %v2191_v25 = vpop.f32.mrf.mxu1 }
  0xe5   :  { %v2092_v27 = vpop.f32.mrf.mxu0 }
  0xe6   :  { %v2093_v28 = vadd.f32 %v2092_v27, %v2091_v24  ;;  %v2192_v29 = vpop.f32.mrf.mxu1 }
  0xe7   :  { %v2193_v30 = vadd.f32 %v2192_v29, %v2191_v25  ;;  %v2094_v31 = vpop.f32.mrf.mxu0 }
  0xe8   :  { %v1134_v32 = vadd.f32 %v2093_v28, %v3142_v26  ;;  %v2194_v33 = vpop.f32.mrf.mxu1 }
  0xe9   :  { %v2095_v34 = vpop.f32.mrf.mxu0 }
  0xea   :  { %v3145_v35 = vadd.f32 %v2193_v30, %v1134_v32  ;;  %v2096_v36 = vadd.f32 %v2095_v34, %v2094_v31  ;;  %v2195_v37 = vpop.f32.mrf.mxu1 }
  0xeb   :  { %v2196_v38 = vadd.f32 %v2195_v37, %v2194_v33  ;;  %v2097_v39 = vpop.f32.mrf.mxu0 }
  0xec   :  { %v1137_v40 = vadd.f32 %v2096_v36, %v3142_v26  ;;  %v2197_v41 = vpop.f32.mrf.mxu1 }
  0xed   :  { %v2098_v42 = vpop.f32.mrf.mxu0 }
  0xee   :  { %v3148_v43 = vadd.f32 %v2196_v38, %v1137_v40  ;;  %v2099_v44 = vadd.f32 %v2098_v42, %v2097_v39  ;;  %v2198_v45 = vpop.f32.mrf.mxu1 }
  0xef   :  { %v2199_v46 = vadd.f32 %v2198_v45, %v2197_v41  ;;  %v2100_v47 = vpop.f32.mrf.mxu0 }
  0xf0   :  { %v1142_v48 = vadd.f32 %v2099_v44, %v3142_v26  ;;  %v2200_v49 = vpop.f32.mrf.mxu1 }
  0xf1   :  { %v2101_v50 = vpop.f32.mrf.mxu0 }
  0xf2   :  { %v3151_v51 = vadd.f32 %v2199_v46, %v1142_v48  ;;  %v2102_v52 = vadd.f32 %v2101_v50, %v2100_v47  ;;  %v2201_v53 = vpop.f32.mrf.mxu1 }
  0xf3   :  { %v2202_v54 = vadd.f32 %v2201_v53, %v2200_v49  ;;  %v2103_v55 = vpop.f32.mrf.mxu0 }
  0xf4   :  { %v1145_v56 = vadd.f32 %v2102_v52, %v3142_v26  ;;  %v2203_v57 = vpop.f32.mrf.mxu1 }
  0xf5   :  { %v2104_v58 = vpop.f32.mrf.mxu0 }
  0xf6   :  { %v3154_v59 = vadd.f32 %v2202_v54, %v1145_v56  ;;  %v2105_v60 = vadd.f32 %v2104_v58, %v2103_v55  ;;  %v2204_v61 = vpop.f32.mrf.mxu1 }
  0xf7   :  { %v2205_v62 = vadd.f32 %v2204_v61, %v2203_v57  ;;  %v2106_v63 = vpop.f32.mrf.mxu0 }
  0xf8   :  { %v1150_v0 = vadd.f32 %v2105_v60, %v3142_v26  ;;  %v2206_v1 = vpop.f32.mrf.mxu1 }
  0xf9   :  { %v2107_v2 = vpop.f32.mrf.mxu0 }
  0xfa   :  { %v3157_v3 = vadd.f32 %v2205_v62, %v1150_v0  ;;  %v2108_v4 = vadd.f32 %v2107_v2, %v2106_v63  ;;  %v2207_v5 = vpop.f32.mrf.mxu1 }
  0xfb   :  { %v2208_v6 = vadd.f32 %v2207_v5, %v2206_v1  ;;  %v2109_v7 = vpop.f32.mrf.mxu0 }
  0xfc   :  { %v1153_v8 = vadd.f32 %v2108_v4, %v3142_v26  ;;  %v2209_v9 = vpop.f32.mrf.mxu1 }
  0xfd   :  { %v2110_v10 = vpop.f32.mrf.mxu0 }
  0xfe   :  { %v3160_v11 = vadd.f32 %v2208_v6, %v1153_v8  ;;  %v2111_v12 = vadd.f32 %v2110_v10, %v2109_v7  ;;  %v2210_v13 = vpop.f32.mrf.mxu1 }
  0xff   :  { %v2211_v14 = vadd.f32 %v2210_v13, %v2209_v9  ;;  %v2112_v15 = vpop.f32.mrf.mxu0 }
 0x100   :  { %v1158_v16 = vadd.f32 %v2111_v12, %v3142_v26  ;;  %v2212_v17 = vpop.f32.mrf.mxu1 }
 0x101   :  { %v2113_v18 = vpop.f32.mrf.mxu0 }
 0x102   :  { %v3163_v19 = vadd.f32 %v2211_v14, %v1158_v16  ;;  %v2114_v20 = vadd.f32 %v2113_v18, %v2112_v15  ;;  %v2213_v21 = vpop.f32.mrf.mxu1 }
 0x103   :  { %v2214_v22 = vadd.f32 %v2213_v21, %v2212_v17  ;;  %v2115_v23 = vpop.f32.mrf.mxu0 }
 0x104   :  { %v1161_v24 = vadd.f32 %v2114_v20, %v3142_v26  ;;  %v2215_v25 = vpop.f32.mrf.mxu1 }
 0x105   :  { %v2116_v27 = vpop.f32.mrf.mxu0 }
 0x106   :  { %v3166_v28 = vadd.f32 %v2214_v22, %v1161_v24  ;;  %v2117_v29 = vadd.f32 %v2116_v27, %v2115_v23  ;;  %v2216_v30 = vpop.f32.mrf.mxu1 }
 0x107   :  { %v2217_v31 = vadd.f32 %v2216_v30, %v2215_v25  ;;  %v2118_v32 = vpop.f32.mrf.mxu0 }
 0x108   :  { %v1166_v33 = vadd.f32 %v2117_v29, %v3142_v26  ;;  %v2218_v34 = vpop.f32.mrf.mxu1 }
 0x109   :  { %v2119_v36 = vpop.f32.mrf.mxu0 }
 0x10a   :  { %v3169_v37 = vadd.f32 %v2217_v31, %v1166_v33  ;;  %v2120_v38 = vadd.f32 %v2119_v36, %v2118_v32  ;;  %v2219_v39 = vpop.f32.mrf.mxu1 }
 0x10b   :  { %v2220_v40 = vadd.f32 %v2219_v39, %v2218_v34  ;;  %v2121_v41 = vpop.f32.mrf.mxu0 }
 0x10c   :  { %v1169_v42 = vadd.f32 %v2120_v38, %v3142_v26  ;;  %v2221_v44 = vpop.f32.mrf.mxu1 }
 0x10d   :  { %v2122_v45 = vpop.f32.mrf.mxu0 }
 0x10e   :  { %v3172_v46 = vadd.f32 %v2220_v40, %v1169_v42  ;;  %v2123_v47 = vadd.f32 %v2122_v45, %v2121_v41  ;;  %v2222_v48 = vpop.f32.mrf.mxu1 }
 0x10f   :  { %v2223_v49 = vadd.f32 %v2222_v48, %v2221_v44  ;;  %v2124_v50 = vpop.f32.mrf.mxu0 }
 0x110   :  { %v1174_v52 = vadd.f32 %v2123_v47, %v3142_v26  ;;  %v2224_v53 = vpop.f32.mrf.mxu1 }
 0x111   :  { %v2125_v54 = vpop.f32.mrf.mxu0 }
 0x112   :  { %v3175_v55 = vadd.f32 %v2223_v49, %v1174_v52  ;;  %v2126_v56 = vadd.f32 %v2125_v54, %v2124_v50  ;;  %v2225_v57 = vpop.f32.mrf.mxu1 }
 0x113   :  { %v2226_v58 = vadd.f32 %v2225_v57, %v2224_v53  ;;  %v2127_v60 = vpop.f32.mrf.mxu0 }
 0x114   :  { %v1177_v61 = vadd.f32 %v2126_v56, %v3142_v26  ;;  %v2227_v62 = vpop.f32.mrf.mxu1 }
 0x115   :  { %v2128_v63 = vpop.f32.mrf.mxu0 }
 0x116   :  { %v3178_v0 = vadd.f32 %v2226_v58, %v1177_v61  ;;  %v2129_v1 = vadd.f32 %v2128_v63, %v2127_v60  ;;  %v2228_v2 = vpop.f32.mrf.mxu1 }
 0x117   :  { %v2229_v4 = vadd.f32 %v2228_v2, %v2227_v62  ;;  %v2130_v5 = vpop.f32.mrf.mxu0 }
 0x118   :  { %v1182_v6 = vadd.f32 %v2129_v1, %v3142_v26  ;;  %v2230_v7 = vpop.f32.mrf.mxu1 }
 0x119   :  { %v2131_v8 = vpop.f32.mrf.mxu0 }
 0x11a   :  { %v3181_v9 = vadd.f32 %v2229_v4, %v1182_v6  ;;  %v2132_v10 = vadd.f32 %v2131_v8, %v2130_v5  ;;  %v2231_v12 = vpop.f32.mrf.mxu1 }
 0x11b   :  { %v2232_v13 = vadd.f32 %v2231_v12, %v2230_v7  ;;  %v2133_v14 = vpop.f32.mrf.mxu0 }
 0x11c   :  { %v1185_v15 = vadd.f32 %v2132_v10, %v3142_v26  ;;  %v2233_v16 = vpop.f32.mrf.mxu1 }
 0x11d   :  { %v2134_v17 = vpop.f32.mrf.mxu0 }
 0x11e   :  { %v3184_v18 = vadd.f32 %v2232_v13, %v1185_v15  ;;  %v2135_v20 = vadd.f32 %v2134_v17, %v2133_v14  ;;  %v2234_v21 = vpop.f32.mrf.mxu1 }
 0x11f   :  { %v2235_v22 = vadd.f32 %v2234_v21, %v2233_v16  ;;  %v2136_v23 = vpop.f32.mrf.mxu0 }
 0x120   :  { %v1190_v24 = vadd.f32 %v2135_v20, %v3142_v26  ;;  %v2236_v25 = vpop.f32.mrf.mxu1 }
 0x121   :  { %v2137_v27 = vpop.f32.mrf.mxu0 }
 0x122   :  { %v3187_v29 = vadd.f32 %v2235_v22, %v1190_v24  ;;  %v2138_v30 = vadd.f32 %v2137_v27, %v2136_v23  ;;  %v2237_v31 = vpop.f32.mrf.mxu1 }
 0x123   :  { %v2238_v32 = vadd.f32 %v2237_v31, %v2236_v25  ;;  %v2139_v33 = vpop.f32.mrf.mxu0 }
 0x124   :  { %v1193_v34 = vadd.f32 %v2138_v30, %v3142_v26  ;;  %v2239_v36 = vpop.f32.mrf.mxu1 }
 0x125   :  { %v2140_v38 = vpop.f32.mrf.mxu0 }
 0x126   :  { %v3190_v39 = vadd.f32 %v2238_v32, %v1193_v34  ;;  %v2141_v40 = vadd.f32 %v2140_v38, %v2139_v33  ;;  %v2240_v41 = vpop.f32.mrf.mxu1 }
 0x127   :  { %v2241_v42 = vadd.f32 %v2240_v41, %v2239_v36  ;;  %v2142_v44 = vpop.f32.mrf.mxu0 }
 0x128   :  { %v1198_v45 = vadd.f32 %v2141_v40, %v3142_v26  ;;  %v2242_v47 = vpop.f32.mrf.mxu1 }
 0x129   :  { %v2143_v48 = vpop.f32.mrf.mxu0 }
 0x12a   :  { %v3193_v49 = vadd.f32 %v2241_v42, %v1198_v45  ;;  %v2144_v50 = vadd.f32 %v2143_v48, %v2142_v44  ;;  %v2243_v52 = vpop.f32.mrf.mxu1 }
 0x12b   :  { %v2244_v53 = vadd.f32 %v2243_v52, %v2242_v47  ;;  %v2145_v54 = vpop.f32.mrf.mxu0 }
 0x12c   :  { %v1201_v56 = vadd.f32 %v2144_v50, %v3142_v26  ;;  %v2245_v57 = vpop.f32.mrf.mxu1 }
 0x12d   :  { %v2146_v58 = vpop.f32.mrf.mxu0 }
 0x12e   :  { %v3196_v60 = vadd.f32 %v2244_v53, %v1201_v56  ;;  %v2147_v61 = vadd.f32 %v2146_v58, %v2145_v54  ;;  %v2246_v62 = vpop.f32.mrf.mxu1 }
 0x12f   :  { %v2247_v63 = vadd.f32 %v2246_v62, %v2245_v57  ;;  %v2148_v1 = vpop.f32.mrf.mxu0 }
 0x130   :  { %v1206_v2 = vadd.f32 %v2147_v61, %v3142_v26  ;;  %v2248_v4 = vpop.f32.mrf.mxu1 }
 0x131   :  { %v2149_v5 = vpop.f32.mrf.mxu0 }
 0x132   :  { %v3199_v6 = vadd.f32 %v2247_v63, %v1206_v2  ;;  %v2150_v7 = vadd.f32 %v2149_v5, %v2148_v1  ;;  %v2249_v8 = vpop.f32.mrf.mxu1 }
 0x133   :  { %v2250_v10 = vadd.f32 %v2249_v8, %v2248_v4  ;;  %v2151_v12 = vpop.f32.mrf.mxu0 }
 0x134   :  { %v1209_v13 = vadd.f32 %v2150_v7, %v3142_v26  ;;  %v2251_v14 = vpop.f32.mrf.mxu1 }
 0x135   :  { %v2152_v15 = vpop.f32.mrf.mxu0 }
 0x136   :  { %v3202_v16 = vadd.f32 %v2250_v10, %v1209_v13  ;;  %v2153_v17 = vadd.f32 %v2152_v15, %v2151_v12  ;;  %v2252_v20 = vpop.f32.mrf.mxu1 }
 0x137   :  { %v2253_v21 = vadd.f32 %v2252_v20, %v2251_v14  ;;  %v2154_v22 = vpop.f32.mrf.mxu0 }
 0x138   :  { %v1214_v23 = vadd.f32 %v2153_v17, %v3142_v26  ;;  %v2254_v24 = vpop.f32.mrf.mxu1 }
 0x139   :  { %v2155_v25 = vpop.f32.mrf.mxu0 }
 0x13a   :  { %v3205_v27 = vadd.f32 %v2253_v21, %v1214_v23  ;;  %v2156_v30 = vadd.f32 %v2155_v25, %v2154_v22  ;;  %v2255_v31 = vpop.f32.mrf.mxu1 }
 0x13b   :  { %v2256_v32 = vadd.f32 %v2255_v31, %v2254_v24  ;;  %v2157_v33 = vpop.f32.mrf.mxu0 }
 0x13c   :  { %3420 = vst [vmem:[#allocation2_spill] sm:$0xff] %v3205_v27  ;;  %v1217_v34 = vadd.f32 %v2156_v30, %v3142_v26  ;;  %v2257_v36 = vpop.f32.mrf.mxu1 }
 0x13d   :  { %v2158_v38 = vpop.f32.mrf.mxu0 }
 0x13e   :  { %v3208_v40 = vadd.f32 %v2256_v32, %v1217_v34  ;;  %v2159_v41 = vadd.f32 %v2158_v38, %v2157_v33  ;;  %v2258_v42 = vpop.f32.mrf.mxu1 }
 0x13f   :  { %v2259_v44 = vadd.f32 %v2258_v42, %v2257_v36  ;;  %v2160_v45 = vpop.f32.mrf.mxu0 }
 0x140   :  { %3421 = vst [vmem:[#allocation3_spill] sm:$0xff] %v3208_v40  ;;  %v1222_v47 = vadd.f32 %v2159_v41, %v3142_v26  ;;  %v2260_v48 = vpop.f32.mrf.mxu1 }
 0x141   :  { %v2161_v50 = vpop.f32.mrf.mxu0 }
 0x142   :  { %v3211_v52 = vadd.f32 %v2259_v44, %v1222_v47  ;;  %v2162_v53 = vadd.f32 %v2161_v50, %v2160_v45  ;;  %v2261_v54 = vpop.f32.mrf.mxu1 }
 0x143   :  { %v2262_v56 = vadd.f32 %v2261_v54, %v2260_v48  ;;  %v2163_v57 = vpop.f32.mrf.mxu0 }
 0x144   :  { %v1225_v58 = vadd.f32 %v2162_v53, %v3142_v26  ;;  %v2263_v61 = vpop.f32.mrf.mxu1 }
 0x145   :  { %v2164_v62 = vpop.f32.mrf.mxu0 }
 0x146   :  { %v3214_v63 = vadd.f32 %v2262_v56, %v1225_v58  ;;  %v2165_v1 = vadd.f32 %v2164_v62, %v2163_v57  ;;  %v2264_v2 = vpop.f32.mrf.mxu1 }
 0x147   :  { %v2265_v4 = vadd.f32 %v2264_v2, %v2263_v61  ;;  %v2166_v5 = vpop.f32.mrf.mxu0 }
 0x148   :  { %v1230_v7 = vadd.f32 %v2165_v1, %v3142_v26  ;;  %v2266_v8 = vpop.f32.mrf.mxu1 }
 0x149   :  { %v2167_v10 = vpop.f32.mrf.mxu0 }
 0x14a   :  { %v3217_v12 = vadd.f32 %v2265_v4, %v1230_v7  ;;  %v2168_v13 = vadd.f32 %v2167_v10, %v2166_v5  ;;  %v2267_v14 = vpop.f32.mrf.mxu1 }
 0x14b   :  { %v2268_v15 = vadd.f32 %v2267_v14, %v2266_v8  ;;  %v2169_v17 = vpop.f32.mrf.mxu0 }
 0x14c   :  { %v1233_v20 = vadd.f32 %v2168_v13, %v3142_v26  ;;  %v2269_v21 = vpop.f32.mrf.mxu1 }
 0x14d   :  { %v2170_v22 = vpop.f32.mrf.mxu0 }
 0x14e   :  { %v3220_v23 = vadd.f32 %v2268_v15, %v1233_v20  ;;  %v2171_v24 = vadd.f32 %v2170_v22, %v2169_v17  ;;  %v2270_v25 = vpop.f32.mrf.mxu1 }
 0x14f   :  { %v2271_v30 = vadd.f32 %v2270_v25, %v2269_v21  ;;  %v2172_v31 = vpop.f32.mrf.mxu0 }
 0x150   :  { %v1238_v32 = vadd.f32 %v2171_v24, %v3142_v26  ;;  %v2272_v33 = vpop.f32.mrf.mxu1 }
 0x151   :  { %v2173_v34 = vpop.f32.mrf.mxu0 }
 0x152   :  { %v3223_v36 = vadd.f32 %v2271_v30, %v1238_v32  ;;  %v2174_v38 = vadd.f32 %v2173_v34, %v2172_v31  ;;  %v2273_v41 = vpop.f32.mrf.mxu1 }
 0x153   :  { %v2274_v42 = vadd.f32 %v2273_v41, %v2272_v33  ;;  %v2291_v44 = vpop.f32.mrf.mxu0 }
 0x154   :  { %v1241_v45 = vadd.f32 %v2174_v38, %v3142_v26  ;;  %v3226_v47 = vpop.f32.mrf.mxu1 }
 0x155   :  { %v2292_v48 = vpop.f32.mrf.mxu0 }
 0x156   :  { %v3228_v50 = vadd.f32 %v2274_v42, %v1241_v45  ;;  %v3230_v53 = vpop.f32.mrf.mxu1  ;;  %v2293_v21 = vadd.f32 %v2292_v48, %v2291_v44 }
 0x157   :  { %v2294_v54 = vpop.f32.mrf.mxu0 }
 0x158   :  { %v3232_v56 = vpop.f32.mrf.mxu1  ;;  %v1424_v41 = vadd.f32 %v2293_v21, %v3145_v35 }
 0x159   :  { %v2295_v57 = vpop.f32.mrf.mxu0 }
 0x15a   :  { %v3234_v58 = vpop.f32.mrf.mxu1  ;;  %v2296_v32 = vadd.f32 %v2295_v57, %v2294_v54 }
 0x15b   :  { %v2297_v61 = vpop.f32.mrf.mxu0 }
 0x15c   :  { %v3236_v62 = vpop.f32.mrf.mxu1 }
 0x15d   :  { %v2298_v1 = vpop.f32.mrf.mxu0 }
 0x15e   :  { %v3238_v2 = vpop.f32.mrf.mxu1  ;;  %v2299_v15 = vadd.f32 %v2298_v1, %v2297_v61 }
 0x15f   :  { %v2300_v26 = vpop.f32.mrf.mxu0 }
 0x160   :  { %v3240_v4 = vpop.f32.mrf.mxu1  ;;  %v1432_v31 = vadd.f32 %v2299_v15, %v3151_v51 }
 0x161   :  { %v2301_v5 = vpop.f32.mrf.mxu0 }
 0x162   :  { %v3242_v7 = vpop.f32.mrf.mxu1  ;;  %v2302_v25 = vadd.f32 %v2301_v5, %v2300_v26  ;;  %v1427_v26 = vadd.f32 %v2296_v32, %v3148_v43 }
 0x163   :  { %v2303_v8 = vpop.f32.mrf.mxu0 }
 0x164   :  { %v3244_v10 = vpop.f32.mrf.mxu1  ;;  %v1435_v44 = vadd.f32 %v2302_v25, %v3154_v59 }
 0x165   :  { %v2304_v13 = vpop.f32.mrf.mxu0 }
 0x166   :  { %v3246_v14 = vpop.f32.mrf.mxu1  ;;  %v2305_v5 = vadd.f32 %v2304_v13, %v2303_v8 }
 0x167   :  { %v2306_v17 = vpop.f32.mrf.mxu0 }
 0x168   :  { %v3248_v20 = vpop.f32.mrf.mxu1 }
 0x169   :  { %v2307_v22 = vpop.f32.mrf.mxu0 }
 0x16a   :  { %v3250_v24 = vpop.f32.mrf.mxu1 }
 0x16b   :  { %v2309_v30 = vpop.f32.mrf.mxu0 }
 0x16c   :  { %v2409_v33 = vpop.f32.mrf.mxu1 }
 0x16d   :  { %v1577_v34 = vadd.f32 %v2409_v33, %v1432_v31  ;;  %v2310_v38 = vpop.f32.mrf.mxu0  ;;  %v2308_v33 = vadd.f32 %v2307_v22, %v2306_v17 }
 0x16e   :  { %v2311_v42 = vadd.f32 %v2310_v38, %v2309_v30  ;;  %v1568_v45 = vpop.f32.mrf.mxu1 }
 0x16f   :  { %v1681_v61 = vmax.f32 %v1577_v34, 0.0  ;;  %v1569_v1 = vadd.f32 %v1568_v45, %v1424_v41  ;;  %v2312_v40 = vpop.f32.mrf.mxu0  ;;  %v1440_v34 = vadd.f32 %v2305_v5, %v3157_v3  ;;  %v1443_v45 = vadd.f32 %v2308_v33, %v3160_v11 }
 0x170   :  { %v2410_v48 = vpop.f32.mrf.mxu1  ;;  %v1448_v31 = vadd.f32 %v2311_v42, %v3163_v19 }
 0x171   :  { %v2049_v27 = vpack.c.bf16 %v1681_v61, %v1681_v61  ;;  %v1679_v51 = vmax.f32 %v1569_v1, 0.0  ;;  %v1580_v54 = vadd.f32 %v2410_v48, %v1435_v44  ;;  %v2313_v57 = vpop.f32.mrf.mxu0 }
 0x172   :  { %v1571_v15 = vpop.f32.mrf.mxu1  ;;  %v2314_v59 = vadd.f32 %v2313_v57, %v2312_v40 }
 0x173   :  { %1822 = vst.msk [vmem:[%s3419_s3 + $0x8] sm:$0xf] %vm1819_vm1, %v2049_v27  ;;  %v2047_v35 = vpack.c.bf16 %v1679_v51, %v1679_v51  ;;  %v1682_v21 = vmax.f32 %v1580_v54, 0.0  ;;  %v1572_v25 = vadd.f32 %v1571_v15, %v1427_v26  ;;  %v2315_v30 = vpop.f32.mrf.mxu0 }
 0x174   :  { %v2413_v43 = vpop.f32.mrf.mxu1  ;;  %v1451_v41 = vadd.f32 %v2314_v59, %v3166_v28 }
 0x175   :  { %1820 = vst.msk [vmem:[%s3419_s3] sm:$0xf] %vm1819_vm1, %v2047_v35  ;;  %v2050_v8 = vpack.c.bf16 %v1682_v21, %v1682_v21  ;;  %v1680_v13 = vmax.f32 %v1572_v25, 0.0  ;;  %v1593_v19 = vadd.f32 %v2413_v43, %v1448_v31  ;;  %v2316_v32 = vpop.f32.mrf.mxu0 }
 0x176   :  { %v1584_v38 = vpop.f32.mrf.mxu1  ;;  %v2317_v61 = vadd.f32 %v2316_v32, %v2315_v30 }
 0x177   :  { %1823 = vst.msk [vmem:[%s3419_s3 + $0xc] sm:$0xf] %vm1819_vm1, %v2050_v8  ;;  %v2048_v27 = vpack.c.bf16 %v1680_v13, %v1680_v13  ;;  %v1685_v40 = vmax.f32 %v1593_v19, 0.0  ;;  %v1585_v17 = vadd.f32 %v1584_v38, %v1440_v34  ;;  %v2318_v22 = vpop.f32.mrf.mxu0 }
 0x178   :  { %v2414_v42 = vpop.f32.mrf.mxu1  ;;  %v1456_v21 = vadd.f32 %v2317_v61, %v3169_v37 }
 0x179   :  { %1821 = vst.msk [vmem:[%s3419_s3 + $0x4] sm:$0xf] %vm1819_vm1, %v2048_v27  ;;  %v2053_v3 = vpack.c.bf16 %v1685_v40, %v1685_v40  ;;  %v1683_v1 = vmax.f32 %v1585_v17, 0.0  ;;  %v1596_v44 = vadd.f32 %v2414_v42, %v1451_v41  ;;  %v2319_v48 = vpop.f32.mrf.mxu0 }
 0x17a   :  { %v1587_v26 = vpop.f32.mrf.mxu1  ;;  %v2320_v15 = vadd.f32 %v2319_v48, %v2318_v22 }
 0x17b   :  { %1826 = vst.msk [vmem:[%s3419_s3 + $0x18] sm:$0xf] %vm1819_vm1, %v2053_v3  ;;  %v2051_v28 = vpack.c.bf16 %v1683_v1, %v1683_v1  ;;  %v1686_v5 = vmax.f32 %v1596_v44, 0.0  ;;  %v1588_v51 = vadd.f32 %v1587_v26, %v1443_v45  ;;  %v2321_v11 = vpop.f32.mrf.mxu0 }
 0x17c   :  { %v2417_v54 = vpop.f32.mrf.mxu1  ;;  %v1459_v32 = vadd.f32 %v2320_v15, %v3172_v46 }
 0x17d   :  { %1824 = vst.msk [vmem:[%s3419_s3 + $0x10] sm:$0xf] %vm1819_vm1, %v2051_v28  ;;  %v2054_v57 = vpack.c.bf16 %v1686_v5, %v1686_v5  ;;  %v1684_v31 = vmax.f32 %v1588_v51, 0.0  ;;  %v2322_v35 = vpop.f32.mrf.mxu0 }
 0x17e   :  { %v2323_v59 = vadd.f32 %v2322_v35, %v2321_v11  ;;  %v1600_v25 = vpop.f32.mrf.mxu1 }
 0x17f   :  { %1827 = vst.msk [vmem:[%s3419_s3 + $0x1c] sm:$0xf] %vm1819_vm1, %v2054_v57  ;;  %v2052_v30 = vpack.c.bf16 %v1684_v31, %v1684_v31  ;;  %v1601_v33 = vadd.f32 %v1600_v25, %v1456_v21  ;;  %v2324_v43 = vpop.f32.mrf.mxu0 }
 0x180   :  { %v1464_v8 = vadd.f32 %v2323_v59, %v3175_v55  ;;  %v2418_v13 = vpop.f32.mrf.mxu1 }
 0x181   :  { %1825 = vst.msk [vmem:[%s3419_s3 + $0x14] sm:$0xf] %vm1819_vm1, %v2052_v30  ;;  %v1687_v19 = vmax.f32 %v1601_v33, 0.0  ;;  %v2325_v37 = vpop.f32.mrf.mxu0 }
 0x182   :  { %v1609_v34 = vadd.f32 %v2417_v54, %v1464_v8  ;;  %v2326_v38 = vadd.f32 %v2325_v37, %v2324_v43  ;;  %v1603_v27 = vpop.f32.mrf.mxu1  ;;  %v2359_v8 = vadd.f32 %v3230_v53, %v3226_v47 }
 0x183   :  { %v2055_v40 = vpack.c.bf16 %v1687_v19, %v1687_v19  ;;  %v1604_v17 = vadd.f32 %v1603_v27, %v1459_v32  ;;  %v2327_v22 = vpop.f32.mrf.mxu0 }
 0x184   :  { %v1689_v41 = vmax.f32 %v1609_v34, 0.0  ;;  %v1467_v42 = vadd.f32 %v2326_v38, %v3178_v0  ;;  %v2421_v55 = vpop.f32.mrf.mxu1  ;;  %v1512_v53 = vadd.f32 %v2359_v8, %v3211_v52 }
 0x185   :  { %1828 = vst.msk [vmem:[%s3419_s3 + $0x20] sm:$0xf] %vm1819_vm1, %v2055_v40  ;;  %v1688_v45 = vmax.f32 %v1604_v17, 0.0  ;;  %v2328_v3 = vpop.f32.mrf.mxu0  ;;  %v2362_v17 = vadd.f32 %v3234_v58, %v3232_v56  ;;  %v2371_v56 = vadd.f32 %v3246_v14, %v3244_v10 }
 0x186   :  { %v2057_v61 = vpack.c.bf16 %v1689_v41, %v1689_v41  ;;  %v1612_v1 = vadd.f32 %v2418_v13, %v1467_v42  ;;  %v2329_v46 = vadd.f32 %v2328_v3, %v2327_v22  ;;  %v1616_v44 = vpop.f32.mrf.mxu1 }
 0x187   :  { %v2056_v48 = vpack.c.bf16 %v1688_v45, %v1688_v45  ;;  %v2330_v26 = vpop.f32.mrf.mxu0 }
 0x188   :  { %1830 = vst.msk [vmem:[%s3419_s3 + $0x28] sm:$0xf] %vm1819_vm1, %v2057_v61  ;;  %v1690_v0 = vmax.f32 %v1612_v1, 0.0  ;;  %v1472_v28 = vadd.f32 %v2329_v46, %v3181_v9  ;;  %v2422_v5 = vpop.f32.mrf.mxu1  ;;  %v1515_v46 = vadd.f32 %v2362_v17, %v3214_v63  ;;  %v2374_v63 = vadd.f32 %v3250_v24, %v3248_v20 }
 0x189   :  { %1829 = vst.msk [vmem:[%s3419_s3 + $0x24] sm:$0xf] %vm1819_vm1, %v2056_v48  ;;  %v2331_v51 = vpop.f32.mrf.mxu0  ;;  %v2368_v20 = vadd.f32 %v3242_v7, %v3240_v4 }
 0x18a   :  { %v2058_v11 = vpack.c.bf16 %v1690_v0, %v1690_v0  ;;  %v1617_v54 = vadd.f32 %v1616_v44, %v1472_v28  ;;  %v2332_v57 = vadd.f32 %v2331_v51, %v2330_v26  ;;  %v1619_v15 = vpop.f32.mrf.mxu1  ;;  %v2365_v26 = vadd.f32 %v3238_v2, %v3236_v62 }
 0x18b   :  { %v2333_v31 = vpop.f32.mrf.mxu0  ;;  %v1528_v62 = vadd.f32 %v2371_v56, %v3223_v36  ;;  %v1531_v8 = vadd.f32 %v2374_v63, %v3228_v50  ;;  %v3422_v56 = vld [vmem:[#allocation2_spill] sm:$0xff] }
 0x18c   :  { %1831 = vst.msk [vmem:[%s3419_s3 + $0x2c] sm:$0xf] %vm1819_vm1, %v2058_v11  ;;  %v1691_v35 = vmax.f32 %v1617_v54, 0.0  ;;  %v1475_v9 = vadd.f32 %v2332_v57, %v3184_v18  ;;  %v3314_v21 = vpop.f32.mrf.mxu1 }
 0x18d   :  { %v2334_v59 = vpop.f32.mrf.mxu0 }
 0x18e   :  { %v2059_v25 = vpack.c.bf16 %v1691_v35, %v1691_v35  ;;  %v1620_v30 = vadd.f32 %v1619_v15, %v1475_v9  ;;  %v2335_v33 = vadd.f32 %v2334_v59, %v2333_v31  ;;  %v1632_v43 = vpop.f32.mrf.mxu1  ;;  %v1520_v9 = vadd.f32 %v2365_v26, %v3217_v12 }
 0x18f   :  { %v2336_v13 = vpop.f32.mrf.mxu0 }
 0x190   :  { %1832 = vst.msk [vmem:[%s3419_s3 + $0x30] sm:$0xf] %vm1819_vm1, %v2059_v25  ;;  %v1692_v19 = vmax.f32 %v1620_v30, 0.0  ;;  %v1480_v37 = vadd.f32 %v2335_v33, %v3187_v29  ;;  %v3323_v18 = vpop.f32.mrf.mxu1 }
 0x191   :  { %v2337_v32 = vpop.f32.mrf.mxu0 }
 0x192   :  { %v2060_v34 = vpack.c.bf16 %v1692_v19, %v1692_v19  ;;  %v1625_v38 = vadd.f32 %v2421_v55, %v1480_v37  ;;  %v2338_v27 = vadd.f32 %v2337_v32, %v2336_v13  ;;  %v1635_v40 = vpop.f32.mrf.mxu1 }
 0x193   :  { %v2339_v47 = vpop.f32.mrf.mxu0 }
 0x194   :  { %1833 = vst.msk [vmem:[%s3419_s3 + $0x34] sm:$0xf] %vm1819_vm1, %v2060_v34  ;;  %v1693_v22 = vmax.f32 %v1625_v38, 0.0  ;;  %v1483_v29 = vadd.f32 %v2338_v27, %v3190_v39  ;;  %v2429_v41 = vpop.f32.mrf.mxu1  ;;  %v1523_v34 = vadd.f32 %v2368_v20, %v3220_v23 }
 0x195   :  { %v1657_v42 = vadd.f32 %v2429_v41, %v1512_v53  ;;  %v2340_v45 = vpop.f32.mrf.mxu0 }
 0x196   :  { %v2061_v55 = vpack.c.bf16 %v1693_v22, %v1693_v22  ;;  %v1628_v3 = vadd.f32 %v2422_v5, %v1483_v29  ;;  %v2341_v61 = vadd.f32 %v2340_v45, %v2339_v47  ;;  %v3333_v1 = vpop.f32.mrf.mxu1 }
 0x197   :  { %v1701_v52 = vmax.f32 %v1657_v42, 0.0  ;;  %v2342_v58 = vpop.f32.mrf.mxu0 }
 0x198   :  { %1834 = vst.msk [vmem:[%s3419_s3 + $0x38] sm:$0xf] %vm1819_vm1, %v2061_v55  ;;  %v1694_v39 = vmax.f32 %v1628_v3, 0.0  ;;  %v1488_v44 = vadd.f32 %v2341_v61, %v3193_v49  ;;  %v2430_v48 = vpop.f32.mrf.mxu1 }
 0x199   :  { %v2069_v0 = vpack.c.bf16 %v1701_v52, %v1701_v52  ;;  %v1660_v28 = vadd.f32 %v2430_v48, %v1515_v46  ;;  %v2343_v5 = vpop.f32.mrf.mxu0  ;;  %v3423_v48 = vld [vmem:[#allocation3_spill] sm:$0xff] }
 0x19a   :  { %v2062_v10 = vpack.c.bf16 %v1694_v39, %v1694_v39  ;;  %v1633_v14 = vadd.f32 %v1632_v43, %v1488_v44  ;;  %v2344_v51 = vadd.f32 %v2343_v5, %v2342_v58  ;;  %v3345_v11 = vpop.f32.mrf.mxu1 }
 0x19b   :  { %1842 = vst.msk [vmem:[%s3419_s3 + $0x58] sm:$0xf] %vm1819_vm1, %v2069_v0  ;;  %v1702_v49 = vmax.f32 %v1660_v28, 0.0  ;;  %v2345_v54 = vpop.f32.mrf.mxu0 }
 0x19c   :  { %1835 = vst.msk [vmem:[%s3419_s3 + $0x3c] sm:$0xf] %vm1819_vm1, %v2062_v10  ;;  %v1695_v2 = vmax.f32 %v1633_v14, 0.0  ;;  %v1491_v57 = vadd.f32 %v2344_v51, %v3196_v60  ;;  %v2433_v15 = vpop.f32.mrf.mxu1 }
 0x19d   :  { %v2070_v24 = vpack.c.bf16 %v1702_v49, %v1702_v49  ;;  %v1673_v31 = vadd.f32 %v2433_v15, %v1528_v62  ;;  %v2346_v35 = vpop.f32.mrf.mxu0 }
 0x19e   :  { %v2063_v59 = vpack.c.bf16 %v1695_v2, %v1695_v2  ;;  %v1636_v25 = vadd.f32 %v1635_v40, %v1491_v57  ;;  %v2347_v36 = vadd.f32 %v2346_v35, %v2345_v54  ;;  %v1664_v30 = vpop.f32.mrf.mxu1 }
 0x19f   :  { %1843 = vst.msk [vmem:[%s3419_s3 + $0x5c] sm:$0xf] %vm1819_vm1, %v2070_v24  ;;  %v1705_v33 = vmax.f32 %v1673_v31, 0.0  ;;  %v1665_v60 = vadd.f32 %v1664_v30, %v1520_v9  ;;  %v2348_v43 = vpop.f32.mrf.mxu0 }
 0x1a0   :  { %1836 = vst.msk [vmem:[%s3419_s3 + $0x40] sm:$0xf] %vm1819_vm1, %v2063_v59  ;;  %v1696_v12 = vmax.f32 %v1636_v25, 0.0  ;;  %v1496_v4 = vadd.f32 %v2347_v36, %v3199_v6  ;;  %v2434_v7 = vpop.f32.mrf.mxu1 }
 0x1a1   :  { %v2073_v13 = vpack.c.bf16 %v1705_v33, %v1705_v33  ;;  %v1703_v19 = vmax.f32 %v1665_v60, 0.0  ;;  %v1676_v37 = vadd.f32 %v2434_v7, %v1531_v8  ;;  %v2349_v32 = vpop.f32.mrf.mxu0 }
 0x1a2   :  { %v2064_v38 = vpack.c.bf16 %v1696_v12, %v1696_v12  ;;  %v1641_v27 = vadd.f32 %v3314_v21, %v1496_v4  ;;  %v2350_v40 = vadd.f32 %v2349_v32, %v2348_v43  ;;  %v1667_v50 = vpop.f32.mrf.mxu1 }
 0x1a3   :  { %1846 = vst.msk [vmem:[%s3419_s3 + $0x68] sm:$0xf] %vm1819_vm1, %v2073_v13  ;;  %v2071_v17 = vpack.c.bf16 %v1703_v19, %v1703_v19  ;;  %v1706_v47 = vmax.f32 %v1676_v37, 0.0  ;;  %v1668_v6 = vadd.f32 %v1667_v50, %v1523_v34  ;;  %v2351_v53 = vpop.f32.mrf.mxu0 }
 0x1a4   :  { %1837 = vst.msk [vmem:[%s3419_s3 + $0x44] sm:$0xf] %vm1819_vm1, %v2064_v38  ;;  %v1697_v23 = vmax.f32 %v1641_v27, 0.0  ;;  %v1499_v22 = vadd.f32 %v2350_v40, %v3202_v16 }
 0x1a5   :  { %1844 = vst.msk [vmem:[%s3419_s3 + $0x60] sm:$0xf] %vm1819_vm1, %v2071_v17  ;;  %v2074_v21 = vpack.c.bf16 %v1706_v47, %v1706_v47  ;;  %v1704_v29 = vmax.f32 %v1668_v6, 0.0  ;;  %v2352_v41 = vpop.f32.mrf.mxu0 }
 0x1a6   :  { %v2065_v42 = vpack.c.bf16 %v1697_v23, %v1697_v23  ;;  %v1644_v45 = vadd.f32 %v3323_v18, %v1499_v22  ;;  %v2353_v55 = vadd.f32 %v2352_v41, %v2351_v53 }
 0x1a7   :  { %1847 = vst.msk [vmem:[%s3419_s3 + $0x6c] sm:$0xf] %vm1819_vm1, %v2074_v21  ;;  %v2072_v3 = vpack.c.bf16 %v1704_v29, %v1704_v29  ;;  %v2354_v61 = vpop.f32.mrf.mxu0 }
 0x1a8   :  { %1838 = vst.msk [vmem:[%s3419_s3 + $0x48] sm:$0xf] %vm1819_vm1, %v2065_v42  ;;  %v1698_v16 = vmax.f32 %v1644_v45, 0.0  ;;  %v1504_v52 = vadd.f32 %v2353_v55, %v3422_v56 }
 0x1a9   :  { %1845 = vst.msk [vmem:[%s3419_s3 + $0x64] sm:$0xf] %vm1819_vm1, %v2072_v3  ;;  %v2355_v18 = vpop.f32.mrf.mxu0 }
 0x1aa   :  { %v2066_v58 = vpack.c.bf16 %v1698_v16, %v1698_v16  ;;  %v1649_v46 = vadd.f32 %v3333_v1, %v1504_v52  ;;  %v2356_v39 = vadd.f32 %v2355_v18, %v2354_v61 }
 0x1ac   :  { %1839 = vst.msk [vmem:[%s3419_s3 + $0x4c] sm:$0xf] %vm1819_vm1, %v2066_v58  ;;  %v1699_v44 = vmax.f32 %v1649_v46, 0.0  ;;  %v1507_v26 = vadd.f32 %v2356_v39, %v3423_v48 }
 0x1ae   :  { %v2067_v0 = vpack.c.bf16 %v1699_v44, %v1699_v44  ;;  %v1652_v28 = vadd.f32 %v3345_v11, %v1507_v26 }
 0x1b0   :  { %1840 = vst.msk [vmem:[%s3419_s3 + $0x50] sm:$0xf] %vm1819_vm1, %v2067_v0  ;;  %v1700_v5 = vmax.f32 %v1652_v28, 0.0 }
 0x1b2   :  { %v2068_v10 = vpack.c.bf16 %v1700_v5, %v1700_v5 }
 0x1b4   :  { %1841 = vst.msk [vmem:[%s3419_s3 + $0x54] sm:$0xf] %vm1819_vm1, %v2068_v10 }

// kernel: _lambda_.18
= control target key start
LH: loop header
LB: loop body
LE: loop exit
PB: predicated region body
PF: predicated region fallthrough
CT: control target
= control target key end

     0   :  { %vm2048_vm0 = vcmask 523264   ;;  %vm3246_vm1 = vcmask 519168   ;;  %s6029_s1 = inlined_call_operand.vmem [shape: bf16[1728,64], index: 1, kind: input, shape index: {}]   ;;  %s6030_s0 = inlined_call_operand.vmem [shape: bf16[224,1728], index: 0, kind: input, shape index: {}]   ;;  %s6031_s2 = inlined_call_operand.vmem [shape: f32[1,64], index: 2, kind: input, shape index: {}]   ;;  %s6032_s3 = inlined_call_operand.vmem [shape: bf16[224,64], index: 3, kind: output, shape index: {}]  }
   0x1   :  { %v4271_v0 = vld [vmem:[%s6029_s1 + $0x78] sm:$0xff]   ;;  %v4273_v2 = vld [vmem:[%s6029_s1 + $0x70] sm:$0xff]   ;;  %v4275_v4 = vld [vmem:[%s6029_s1 + $0x68] sm:$0xff]  }
   0x2   :  { %v4272_v1 = vld [vmem:[%s6029_s1 + $0x38] sm:$0xff]   ;;  %4254 = vmatprep.subr.bf16.mxu1 %v4271_v0  ;;  %3654 = vmatprep.subr.bf16.mxu0 %v4271_v0  ;;  %v4274_v3 = vld [vmem:[%s6029_s1 + $0x30] sm:$0xff]   ;;  %v4276_v5 = vld [vmem:[%s6029_s1 + $0x28] sm:$0xff]  }
   0x3   :  { %4262 = vmatpush3.bf16.msra.mxu1 %v4272_v1  ;;  %3655 = vmatpush3.bf16.msra.mxu0 %v4272_v1  ;;  %v4277_v6 = vld [vmem:[%s6029_s1 + $0x60] sm:$0xff]   ;;  %v4279_v8 = vld [vmem:[%s6029_s1 + $0x58] sm:$0xff]   ;;  %v4281_v10 = vld [vmem:[%s6029_s1 + $0x50] sm:$0xff]  }
   0x4   :  { %4255 = vmatprep.subr.bf16.mxu1 %v4273_v2  ;;  %3656 = vmatprep.subr.bf16.mxu0 %v4273_v2  ;;  %v4278_v7 = vld [vmem:[%s6029_s1 + $0x20] sm:$0xff]   ;;  %v4280_v9 = vld [vmem:[%s6029_s1 + $0x18] sm:$0xff]   ;;  %v4289_v11 = vld [vmem:[%s6030_s0 + $0x314] ss:$56 sps:$4 sm:$0xff]  }
   0x5   :  { %v4292_v12 = vld [vmem:[%s6030_s0 + $0x4] ss:$56 sps:$4 sm:$0xff]   ;;  %v4282_v13 = vld [vmem:[%s6029_s1 + $0x10] sm:$0xff]   ;;  %v4283_v14 = vld [vmem:[%s6029_s1 + $0x48] sm:$0xff]   ;;  %2179 = vmatprep.mubr.bf16.mxu1 %v4289_v11 }
   0x6   :  { %2123 = vmatprep.mubr.bf16.mxu0 %v4292_v12  ;;  %v4284_v15 = vld [vmem:[%s6029_s1 + $0x8] sm:$0xff]   ;;  %v4285_v16 = vld [vmem:[%s6029_s1 + $0x40] sm:$0xff]   ;;  %v4293_v18 = vld [vmem:[%s6029_s1 + $0xf8] sm:$0xff]  }
   0x7   :  { %4263 = vmatpush3.bf16.msra.mxu1 %v4274_v3  ;;  %3657 = vmatpush3.bf16.msra.mxu0 %v4274_v3  ;;  %v4286_v17 = vld [vmem:[%s6029_s1] sm:$0xff]   ;;  %v4287_v19 = vld [vmem:[%s6030_s0 + $0x310] ss:$56 sps:$4 sm:$0xff]   ;;  %v4295_v21 = vld [vmem:[%s6029_s1 + $0x178] sm:$0xff]  }
   0x8   :  { %4256 = vmatprep.subr.bf16.mxu1 %v4275_v4  ;;  %3658 = vmatprep.subr.bf16.mxu0 %v4275_v4  ;;  %v4290_v20 = vld [vmem:[%s6030_s0] ss:$56 sps:$4 sm:$0xff]   ;;  %v4296_v23 = vld [vmem:[%s6030_s0 + $0x384] ss:$56 sps:$4 sm:$0xff]   ;;  %v4298_v24 = vld [vmem:[%s6029_s1 + $0xf0] sm:$0xff]  }
   0x9   :  { %v4294_v22 = vld [vmem:[%s6029_s1 + $0xb8] sm:$0xff]   ;;  %v4300_v26 = vld [vmem:[%s6030_s0 + $0x74] ss:$56 sps:$4 sm:$0xff]   ;;  %v4304_v31 = vld [vmem:[%s6030_s0 + $0x70] ss:$56 sps:$4 sm:$0xff]  }
   0xa   :  { %v4299_v25 = vld [vmem:[%s6029_s1 + $0x138] sm:$0xff]   ;;  %v4305_v27 = vld [vmem:[%s6029_s1 + $0x170] sm:$0xff]   ;;  %v4306_v29 = vld [vmem:[%s6029_s1 + $0xe8] sm:$0xff]  }
   0xb   :  { %4264 = vmatpush3.bf16.msra.mxu1 %v4276_v5  ;;  %3659 = vmatpush3.bf16.msra.mxu0 %v4276_v5  ;;  %v4303_v28 = vld [vmem:[%s6029_s1 + $0xb0] sm:$0xff]   ;;  %v4302_v30 = vld [vmem:[%s6030_s0 + $0x380] ss:$56 sps:$4 sm:$0xff]   ;;  %v4315_v33 = vld [vmem:[%s6029_s1 + $0x168] sm:$0xff]  }
   0xc   :  { %4257 = vmatprep.subr.bf16.mxu1 %v4277_v6  ;;  %3660 = vmatprep.subr.bf16.mxu0 %v4277_v6  ;;  %v4307_v32 = vld [vmem:[%s6029_s1 + $0x130] sm:$0xff]   ;;  %v4310_v35 = vld [vmem:[%s6029_s1 + $0xa8] sm:$0xff]   ;;  %v4311_v36 = vld [vmem:[%s6030_s0 + $0xe4] ss:$56 sps:$4 sm:$0xff]  }
   0xd   :  { %v4308_v34 = vld [vmem:[%s6030_s0 + $0x3f4] ss:$56 sps:$4 sm:$0xff]   ;;  %v4316_v37 = vld [vmem:[%s6029_s1 + $0xe0] sm:$0xff]   ;;  %v4313_v41 = vld [vmem:[%s6030_s0 + $0x3f0] ss:$56 sps:$4 sm:$0xff]  }
   0xe   :  { %v4317_v38 = vld [vmem:[%s6029_s1 + $0x128] sm:$0xff]   ;;  %v4325_v39 = vld [vmem:[%s6029_s1 + $0x160] sm:$0xff]   ;;  %v4326_v43 = vld [vmem:[%s6029_s1 + $0xd8] sm:$0xff]  }
   0xf   :  { %4265 = vmatpush3.bf16.msra.mxu1 %v4278_v7  ;;  %3661 = vmatpush3.bf16.msra.mxu0 %v4278_v7  ;;  %v4318_v40 = vld [vmem:[%s6029_s1 + $0xa0] sm:$0xff]   ;;  %v4321_v46 = vld [vmem:[%s6030_s0 + $0x154] ss:$56 sps:$4 sm:$0xff]   ;;  %v4328_v47 = vld [vmem:[%s6029_s1 + $0x98] sm:$0xff]  }
  0x10   :  { %4258 = vmatprep.subr.bf16.mxu1 %v4279_v8  ;;  %3662 = vmatprep.subr.bf16.mxu0 %v4279_v8  ;;  %v4314_v42 = vld [vmem:[%s6030_s0 + $0xe0] ss:$56 sps:$4 sm:$0xff]   ;;  %v4319_v45 = vld [vmem:[%s6030_s0 + $0x464] ss:$56 sps:$4 sm:$0xff]   ;;  %v4336_v49 = vld [vmem:[%s6029_s1 + $0xd0] sm:$0xff]  }
  0x11   :  { %v4327_v44 = vld [vmem:[%s6029_s1 + $0x120] sm:$0xff]   ;;  %v4335_v48 = vld [vmem:[%s6029_s1 + $0x158] sm:$0xff]   ;;  %v4338_v52 = vld [vmem:[%s6029_s1 + $0x90] sm:$0xff]  }
  0x12   :  { %v4337_v50 = vld [vmem:[%s6029_s1 + $0x118] sm:$0xff]   ;;  %v4324_v53 = vld [vmem:[%s6030_s0 + $0x150] ss:$56 sps:$4 sm:$0xff]   ;;  %v4329_v54 = vld [vmem:[%s6030_s0 + $0x4d4] ss:$56 sps:$4 sm:$0xff]  }
  0x13   :  { %4266 = vmatpush3.bf16.msra.mxu1 %v4280_v9  ;;  %3663 = vmatpush3.bf16.msra.mxu0 %v4280_v9  ;;  %v4323_v51 = vld [vmem:[%s6030_s0 + $0x460] ss:$56 sps:$4 sm:$0xff]   ;;  %v4331_v55 = vld [vmem:[%s6030_s0 + $0x1c4] ss:$56 sps:$4 sm:$0xff]   ;;  %v4345_v56 = vld [vmem:[%s6029_s1 + $0x150] sm:$0xff]  }
  0x14   :  { %4259 = vmatprep.subr.bf16.mxu1 %v4281_v10  ;;  %3664 = vmatprep.subr.bf16.mxu0 %v4281_v10  ;;  %v4346_v57 = vld [vmem:[%s6029_s1 + $0xc8] sm:$0xff]   ;;  %v4347_v58 = vld [vmem:[%s6029_s1 + $0x110] sm:$0xff]   ;;  %v4334_v61 = vld [vmem:[%s6030_s0 + $0x1c0] ss:$56 sps:$4 sm:$0xff]  }
  0x15   :  { %v4348_v59 = vld [vmem:[%s6029_s1 + $0x88] sm:$0xff]   ;;  %v4339_v62 = vld [vmem:[%s6030_s0 + $0x544] ss:$56 sps:$4 sm:$0xff]   ;;  %v4343_v6 = vld [vmem:[%s6030_s0 + $0x540] ss:$56 sps:$4 sm:$0xff]  }
  0x16   :  { %v4333_v60 = vld [vmem:[%s6030_s0 + $0x4d0] ss:$56 sps:$4 sm:$0xff]   ;;  %v4341_v63 = vld [vmem:[%s6030_s0 + $0x234] ss:$56 sps:$4 sm:$0xff]   ;;  %v4356_v1 = vld [vmem:[%s6029_s1 + $0xc0] sm:$0xff]  }
  0x17   :  { %4267 = vmatpush3.bf16.msra.mxu1 %v4282_v13  ;;  %3665 = vmatpush3.bf16.msra.mxu0 %v4282_v13  ;;  %v4354_v0 = vld [vmem:[%s6029_s1 + $0x148] sm:$0xff]   ;;  %v4358_v3 = vld [vmem:[%s6029_s1 + $0x80] sm:$0xff]   ;;  %v4367_v9 = vld [vmem:[%s6029_s1 + $0x1f8] sm:$0xff]  }
  0x18   :  { %4260 = vmatprep.subr.bf16.mxu1 %v4283_v14  ;;  %3666 = vmatprep.subr.bf16.mxu0 %v4283_v14  ;;  %v4357_v2 = vld [vmem:[%s6029_s1 + $0x108] sm:$0xff]   ;;  %v4359_v4 = vld [vmem:[%s6029_s1 + $0x140] sm:$0xff]   ;;  %v4369_v11 = vld [vmem:[%s6029_s1 + $0x278] sm:$0xff]  }
  0x19   :  { %v4360_v5 = vld [vmem:[%s6029_s1 + $0x100] sm:$0xff]   ;;  %v4344_v7 = vld [vmem:[%s6030_s0 + $0x230] ss:$56 sps:$4 sm:$0xff]   ;;  %v4349_v8 = vld [vmem:[%s6030_s0 + $0x5b4] ss:$56 sps:$4 sm:$0xff]  }
  0x1a   :  { %v4351_v10 = vld [vmem:[%s6030_s0 + $0x2a4] ss:$56 sps:$4 sm:$0xff]   ;;  %v4353_v12 = vld [vmem:[%s6030_s0 + $0x5b0] ss:$56 sps:$4 sm:$0xff]   ;;  %v4355_v13 = vld [vmem:[%s6030_s0 + $0x2a0] ss:$56 sps:$4 sm:$0xff]  }
  0x1b   :  { %4268 = vmatpush3.bf16.msra.mxu1 %v4284_v15  ;;  %3667 = vmatpush3.bf16.msra.mxu0 %v4284_v15  ;;  %v4363_v14 = vld [vmem:[%s6030_s0 + $0xc] ss:$56 sps:$4 sm:$0xff]  }
  0x1c   :  { %4261 = vmatprep.subr.bf16.mxu1 %v4285_v16  ;;  %3668 = vmatprep.subr.bf16.mxu0 %v4285_v16  ;;  %v4366_v15 = vld [vmem:[%s6030_s0 + $0x14] ss:$56 sps:$4 sm:$0xff]   ;;  %v4361_v16 = vld [vmem:[%s6030_s0 + $0x8] ss:$56 sps:$4 sm:$0xff]  }
  0x1f   :  { %4269 = vmatpush3.bf16.msra.mxu1 %v4286_v17  ;;  %3669 = vmatpush3.bf16.msra.mxu0 %v4286_v17  ;;  %v4364_v17 = vld [vmem:[%s6030_s0 + $0x10] ss:$56 sps:$4 sm:$0xff]  }
  0x20   :  { %3754 = vmatprep.subr.bf16.mxu1 %v4293_v18  ;;  %3854 = vmatprep.subr.bf16.mxu0 %v4295_v21  ;;  %v4368_v18 = vld [vmem:[%s6029_s1 + $0x1b8] sm:$0xff]  }
  0x21   :  { %v4374_v21 = vld [vmem:[%s6030_s0 + $0x84] ss:$56 sps:$4 sm:$0xff]  }
  0x22   :  { %2180 = vmatmul.mubr.bf16.vlgmr.msra.gmra.mxu1 %v4287_v19  ;;  %2124 = vmatmul.mubr.bf16.vlgmr.msra.gmra.mxu0 %v4290_v20  ;;  %v4370_v19 = vld [vmem:[%s6030_s0 + $0x7c] ss:$56 sps:$4 sm:$0xff]  }
  0x23   :  { %3755 = vmatpush3.bf16.msra.mxu1 %v4294_v22  ;;  %2187 = vmatprep.mubr.bf16.mxu1 %v4296_v23  ;;  %v4372_v20 = vld [vmem:[%s6029_s1 + $0x238] sm:$0xff]   ;;  %v4377_v22 = vld [vmem:[%s6029_s1 + $0x1f0] sm:$0xff]  }
  0x24   :  { %3756 = vmatprep.subr.bf16.mxu1 %v4298_v24  ;;  %3855 = vmatpush3.bf16.msra.mxu0 %v4299_v25  ;;  %v4385_v23 = vld [vmem:[%s6029_s1 + $0x270] sm:$0xff]  }
  0x25   :  { %2131 = vmatprep.mubr.bf16.mxu0 %v4300_v26  ;;  %3856 = vmatprep.subr.bf16.mxu0 %v4305_v27  ;;  %v4380_v24 = vld [vmem:[%s6029_s1 + $0x1b0] sm:$0xff]   ;;  %v4376_v27 = vld [vmem:[%s6030_s0 + $0x80] ss:$56 sps:$4 sm:$0xff]  }
  0x26   :  { %v4386_v25 = vld [vmem:[%s6029_s1 + $0x230] sm:$0xff]  }
  0x27   :  { %3757 = vmatpush3.bf16.msra.mxu1 %v4303_v28  ;;  %v4373_v26 = vld [vmem:[%s6030_s0 + $0x78] ss:$56 sps:$4 sm:$0xff]   ;;  %v4393_v28 = vld [vmem:[%s6029_s1 + $0x1e8] sm:$0xff]  }
  0x28   :  { %3758 = vmatprep.subr.bf16.mxu1 %v4306_v29  ;;  %3857 = vmatpush3.bf16.msra.mxu0 %v4307_v32  ;;  %v4401_v29 = vld [vmem:[%s6029_s1 + $0x268] sm:$0xff]  }
  0x29   :  { %3858 = vmatprep.subr.bf16.mxu0 %v4315_v33  ;;  %v4394_v32 = vld [vmem:[%s6029_s1 + $0x1a8] sm:$0xff]  }
  0x2a   :  { %2188 = vmatmul.mubr.bf16.gmra.mxu1 %v4302_v30  ;;  %2132 = vmatmul.mubr.bf16.gmra.mxu0 %v4304_v31  ;;  %v4378_v30 = vld [vmem:[%s6030_s0 + $0xec] ss:$56 sps:$4 sm:$0xff]  }
  0x2b   :  { %2195 = vmatprep.mubr.bf16.mxu1 %v4308_v34  ;;  %3759 = vmatpush3.bf16.msra.mxu1 %v4310_v35  ;;  %v4382_v31 = vld [vmem:[%s6030_s0 + $0xf4] ss:$56 sps:$4 sm:$0xff]   ;;  %v4409_v34 = vld [vmem:[%s6029_s1 + $0x1e0] sm:$0xff]  }
  0x2c   :  { %2139 = vmatprep.mubr.bf16.mxu0 %v4311_v36  ;;  %3760 = vmatprep.subr.bf16.mxu1 %v4316_v37  ;;  %v4402_v33 = vld [vmem:[%s6029_s1 + $0x228] sm:$0xff]   ;;  %v4416_v35 = vld [vmem:[%s6029_s1 + $0x260] sm:$0xff]  }
  0x2d   :  { %3859 = vmatpush3.bf16.msra.mxu0 %v4317_v38  ;;  %v4381_v36 = vld [vmem:[%s6030_s0 + $0xe8] ss:$56 sps:$4 sm:$0xff]  }
  0x2e   :  { %3860 = vmatprep.subr.bf16.mxu0 %v4325_v39  ;;  %v4410_v37 = vld [vmem:[%s6029_s1 + $0x1a0] sm:$0xff]   ;;  %v4384_v39 = vld [vmem:[%s6030_s0 + $0xf0] ss:$56 sps:$4 sm:$0xff]  }
  0x2f   :  { %3761 = vmatpush3.bf16.msra.mxu1 %v4318_v40  ;;  %v4418_v38 = vld [vmem:[%s6029_s1 + $0x220] sm:$0xff]   ;;  %v4387_v40 = vld [vmem:[%s6030_s0 + $0x15c] ss:$56 sps:$4 sm:$0xff]  }
  0x30   :  { %3762 = vmatprep.subr.bf16.mxu1 %v4326_v43  ;;  %v4426_v43 = vld [vmem:[%s6029_s1 + $0x198] sm:$0xff]  }
  0x31   :  { %3861 = vmatpush3.bf16.msra.mxu0 %v4327_v44  ;;  %v4427_v44 = vld [vmem:[%s6029_s1 + $0x258] sm:$0xff]  }
  0x32   :  { %2196 = vmatmul.mubr.bf16.gmra.mxu1 %v4313_v41  ;;  %2140 = vmatmul.mubr.bf16.gmra.mxu0 %v4314_v42  ;;  %v4390_v41 = vld [vmem:[%s6030_s0 + $0x164] ss:$56 sps:$4 sm:$0xff]  }
  0x33   :  { %2203 = vmatprep.mubr.bf16.mxu1 %v4319_v45  ;;  %2147 = vmatprep.mubr.bf16.mxu0 %v4321_v46  ;;  %v4424_v42 = vld [vmem:[%s6029_s1 + $0x1d8] sm:$0xff]  }
  0x34   :  { %3763 = vmatpush3.bf16.msra.mxu1 %v4328_v47  ;;  %3862 = vmatprep.subr.bf16.mxu0 %v4335_v48  ;;  %v4389_v45 = vld [vmem:[%s6030_s0 + $0x158] ss:$56 sps:$4 sm:$0xff]   ;;  %v4395_v48 = vld [vmem:[%s6030_s0 + $0x1cc] ss:$56 sps:$4 sm:$0xff]  }
  0x35   :  { %3764 = vmatprep.subr.bf16.mxu1 %v4336_v49  ;;  %3863 = vmatpush3.bf16.msra.mxu0 %v4337_v50  ;;  %v4430_v46 = vld [vmem:[%s6029_s1 + $0x218] sm:$0xff]   ;;  %v4398_v49 = vld [vmem:[%s6030_s0 + $0x1d4] ss:$56 sps:$4 sm:$0xff]  }
  0x36   :  { %3864 = vmatprep.subr.bf16.mxu0 %v4345_v56  ;;  %v4392_v47 = vld [vmem:[%s6030_s0 + $0x160] ss:$56 sps:$4 sm:$0xff]   ;;  %v4435_v50 = vld [vmem:[%s6029_s1 + $0x1d0] sm:$0xff]  }
  0x37   :  { %v4403_v56 = vld [vmem:[%s6030_s0 + $0x23c] ss:$56 sps:$4 sm:$0xff]  }
  0x38   :  { %3765 = vmatpush3.bf16.msra.mxu1 %v4338_v52  ;;  %v4443_v52 = vld [vmem:[%s6029_s1 + $0x250] sm:$0xff]  }
  0x39   :  { %3766 = vmatprep.subr.bf16.mxu1 %v4346_v57  ;;  %3865 = vmatpush3.bf16.msra.mxu0 %v4347_v58  ;;  %v4406_v57 = vld [vmem:[%s6030_s0 + $0x244] ss:$56 sps:$4 sm:$0xff]   ;;  %v4451_v58 = vld [vmem:[%s6029_s1 + $0x1c8] sm:$0xff]  }
  0x3a   :  { %2204 = vmatmul.mubr.bf16.gmra.mxu1 %v4323_v51  ;;  %2148 = vmatmul.mubr.bf16.gmra.mxu0 %v4324_v53  ;;  %v4438_v51 = vld [vmem:[%s6029_s1 + $0x190] sm:$0xff]  }
  0x3b   :  { %2211 = vmatprep.mubr.bf16.mxu1 %v4329_v54  ;;  %2155 = vmatprep.mubr.bf16.mxu0 %v4331_v55  ;;  %v4444_v53 = vld [vmem:[%s6029_s1 + $0x210] sm:$0xff]   ;;  %v4397_v54 = vld [vmem:[%s6030_s0 + $0x1c8] ss:$56 sps:$4 sm:$0xff]  }
  0x3c   :  { %3767 = vmatpush3.bf16.msra.mxu1 %v4348_v59  ;;  %3866 = vmatprep.subr.bf16.mxu0 %v4354_v0  ;;  %v4400_v55 = vld [vmem:[%s6030_s0 + $0x1d0] ss:$56 sps:$4 sm:$0xff]   ;;  %v4411_v0 = vld [vmem:[%s6030_s0 + $0x2ac] ss:$56 sps:$4 sm:$0xff]  }
  0x3d   :  { %3768 = vmatprep.subr.bf16.mxu1 %v4356_v1  ;;  %3867 = vmatpush3.bf16.msra.mxu0 %v4357_v2  ;;  %v4452_v59 = vld [vmem:[%s6029_s1 + $0x188] sm:$0xff]   ;;  %v4467_v2 = vld [vmem:[%s6029_s1 + $0x1c0] sm:$0xff]  }
  0x3e   :  { %3868 = vmatprep.subr.bf16.mxu0 %v4359_v4  ;;  %v4414_v1 = vld [vmem:[%s6030_s0 + $0x2b4] ss:$56 sps:$4 sm:$0xff]   ;;  %v4413_v4 = vld [vmem:[%s6030_s0 + $0x2a8] ss:$56 sps:$4 sm:$0xff]  }
  0x40   :  { %3769 = vmatpush3.bf16.msra.mxu1 %v4358_v3  ;;  %v4468_v3 = vld [vmem:[%s6029_s1 + $0x180] sm:$0xff]  }
  0x41   :  { %3869 = vmatpush3.bf16.msra.mxu0 %v4360_v5  ;;  %3954 = vmatprep.subr.bf16.mxu1 %v4367_v9  ;;  %v4417_v5 = vld [vmem:[%s6030_s0 + $0x2b0] ss:$56 sps:$4 sm:$0xff]   ;;  %v4476_v9 = vld [vmem:[%s6029_s1 + $0x200] sm:$0xff]  }
  0x42   :  { %2212 = vmatmul.mubr.bf16.gmra.mxu1 %v4333_v60  ;;  %2156 = vmatmul.mubr.bf16.gmra.mxu0 %v4334_v61  ;;  %v4405_v60 = vld [vmem:[%s6030_s0 + $0x238] ss:$56 sps:$4 sm:$0xff]  }
  0x43   :  { %2219 = vmatprep.mubr.bf16.mxu1 %v4339_v62  ;;  %2163 = vmatprep.mubr.bf16.mxu0 %v4341_v63  ;;  %v4408_v61 = vld [vmem:[%s6030_s0 + $0x240] ss:$56 sps:$4 sm:$0xff]   ;;  %v4459_v62 = vld [vmem:[%s6029_s1 + $0x248] sm:$0xff]  }
  0x44   :  { %4054 = vmatprep.subr.bf16.mxu0 %v4369_v11  ;;  %v4460_v63 = vld [vmem:[%s6029_s1 + $0x208] sm:$0xff]   ;;  %v4673_v11 = vmov 0  }
  0x4a   :  { %2220 = vmatmul.mubr.bf16.gmra.mxu1 %v4343_v6  ;;  %2164 = vmatmul.mubr.bf16.gmra.mxu0 %v4344_v7  ;;  %v4419_v6 = vld [vmem:[%s6030_s0 + $0x31c] ss:$56 sps:$4 sm:$0xff]  }
  0x4b   :  { %2227 = vmatprep.mubr.bf16.mxu1 %v4349_v8  ;;  %2171 = vmatprep.mubr.bf16.mxu0 %v4351_v10  ;;  %v4422_v7 = vld [vmem:[%s6030_s0 + $0x324] ss:$56 sps:$4 sm:$0xff]  }
  0x4c   :  { %v4474_v8 = vld [vmem:[%s6029_s1 + $0x240] sm:$0xff]   ;;  %v4483_v10 = vld [vmem:[%s6029_s1 + $0x2f8] sm:$0xff]  }
  0x52   :  { %2228 = vmatmul.mubr.bf16.gmra.mxu1 %v4353_v12  ;;  %2172 = vmatmul.mubr.bf16.gmra.mxu0 %v4355_v13  ;;  %v4421_v12 = vld [vmem:[%s6030_s0 + $0x318] ss:$56 sps:$4 sm:$0xff]  }
  0x53   :  { %2268 = vmatprep.mubr.bf16.mxu1 %v4363_v14  ;;  %2413 = vmatprep.mubr.bf16.mxu0 %v4366_v15  ;;  %v4425_v13 = vld [vmem:[%s6030_s0 + $0x320] ss:$56 sps:$4 sm:$0xff]   ;;  %v4428_v14 = vld [vmem:[%s6030_s0 + $0x38c] ss:$56 sps:$4 sm:$0xff]  }
  0x54   :  { %v4432_v15 = vld [vmem:[%s6030_s0 + $0x394] ss:$56 sps:$4 sm:$0xff]  }
  0x5a   :  { %2269 = vmatmul.mubr.bf16.vlgmr.msra.gmra.mxu1 %v4361_v16  ;;  %2414 = vmatmul.mubr.bf16.vlgmr.msra.gmra.mxu0 %v4364_v17  ;;  %v4431_v16 = vld [vmem:[%s6030_s0 + $0x388] ss:$56 sps:$4 sm:$0xff]  }
  0x5b   :  { %3955 = vmatpush3.bf16.msra.mxu1 %v4368_v18  ;;  %2276 = vmatprep.mubr.bf16.mxu1 %v4370_v19  ;;  %v4434_v17 = vld [vmem:[%s6030_s0 + $0x390] ss:$56 sps:$4 sm:$0xff]   ;;  %v4436_v18 = vld [vmem:[%s6030_s0 + $0x3fc] ss:$56 sps:$4 sm:$0xff]  }
  0x5c   :  { %4055 = vmatpush3.bf16.msra.mxu0 %v4372_v20  ;;  %2421 = vmatprep.mubr.bf16.mxu0 %v4374_v21  ;;  %v4440_v19 = vld [vmem:[%s6030_s0 + $0x404] ss:$56 sps:$4 sm:$0xff]   ;;  %v4439_v20 = vld [vmem:[%s6030_s0 + $0x3f8] ss:$56 sps:$4 sm:$0xff]  }
  0x5d   :  { %3956 = vmatprep.subr.bf16.mxu1 %v4377_v22  ;;  %4056 = vmatprep.subr.bf16.mxu0 %v4385_v23  ;;  %v4442_v21 = vld [vmem:[%s6030_s0 + $0x400] ss:$56 sps:$4 sm:$0xff]   ;;  %v4445_v22 = vld [vmem:[%s6030_s0 + $0x46c] ss:$56 sps:$4 sm:$0xff]  }
  0x5e   :  { %v4448_v23 = vld [vmem:[%s6030_s0 + $0x474] ss:$56 sps:$4 sm:$0xff]  }
  0x5f   :  { %3957 = vmatpush3.bf16.msra.mxu1 %v4380_v24  ;;  %v4447_v24 = vld [vmem:[%s6030_s0 + $0x468] ss:$56 sps:$4 sm:$0xff]  }
  0x60   :  { %4057 = vmatpush3.bf16.msra.mxu0 %v4386_v25  ;;  %3958 = vmatprep.subr.bf16.mxu1 %v4393_v28  ;;  %v4450_v25 = vld [vmem:[%s6030_s0 + $0x470] ss:$56 sps:$4 sm:$0xff]  }
  0x61   :  { %4058 = vmatprep.subr.bf16.mxu0 %v4401_v29  ;;  %v4455_v28 = vld [vmem:[%s6030_s0 + $0x4d8] ss:$56 sps:$4 sm:$0xff]  }
  0x62   :  { %2277 = vmatmul.mubr.bf16.gmra.mxu1 %v4373_v26  ;;  %2422 = vmatmul.mubr.bf16.gmra.mxu0 %v4376_v27  ;;  %v4453_v26 = vld [vmem:[%s6030_s0 + $0x4dc] ss:$56 sps:$4 sm:$0xff]   ;;  %v4458_v29 = vld [vmem:[%s6030_s0 + $0x4e0] ss:$56 sps:$4 sm:$0xff]  }
  0x63   :  { %2284 = vmatprep.mubr.bf16.mxu1 %v4378_v30  ;;  %2429 = vmatprep.mubr.bf16.mxu0 %v4382_v31  ;;  %v4456_v27 = vld [vmem:[%s6030_s0 + $0x4e4] ss:$56 sps:$4 sm:$0xff]   ;;  %v4464_v31 = vld [vmem:[%s6030_s0 + $0x554] ss:$56 sps:$4 sm:$0xff]  }
  0x64   :  { %3959 = vmatpush3.bf16.msra.mxu1 %v4394_v32  ;;  %4059 = vmatpush3.bf16.msra.mxu0 %v4402_v33  ;;  %v4461_v30 = vld [vmem:[%s6030_s0 + $0x54c] ss:$56 sps:$4 sm:$0xff]   ;;  %v4463_v32 = vld [vmem:[%s6030_s0 + $0x548] ss:$56 sps:$4 sm:$0xff]  }
  0x65   :  { %3960 = vmatprep.subr.bf16.mxu1 %v4409_v34  ;;  %4060 = vmatprep.subr.bf16.mxu0 %v4416_v35  ;;  %v4466_v33 = vld [vmem:[%s6030_s0 + $0x550] ss:$56 sps:$4 sm:$0xff]   ;;  %v4469_v34 = vld [vmem:[%s6030_s0 + $0x5bc] ss:$56 sps:$4 sm:$0xff]  }
  0x66   :  { %v4472_v35 = vld [vmem:[%s6030_s0 + $0x5c4] ss:$56 sps:$4 sm:$0xff]  }
  0x68   :  { %3961 = vmatpush3.bf16.msra.mxu1 %v4410_v37  ;;  %4061 = vmatpush3.bf16.msra.mxu0 %v4418_v38  ;;  %v4475_v37 = vld [vmem:[%s6030_s0 + $0x5c0] ss:$56 sps:$4 sm:$0xff]   ;;  %v4479_v38 = vld [vmem:[%s6030_s0 + $0x1c] ss:$56 sps:$4 sm:$0xff]  }
  0x69   :  { %3962 = vmatprep.subr.bf16.mxu1 %v4424_v42  ;;  %4062 = vmatprep.subr.bf16.mxu0 %v4427_v44  ;;  %v4484_v42 = vld [vmem:[%s6029_s1 + $0x2b8] sm:$0xff]  }
  0x6a   :  { %2285 = vmatmul.mubr.bf16.gmra.mxu1 %v4381_v36  ;;  %2430 = vmatmul.mubr.bf16.gmra.mxu0 %v4384_v39  ;;  %v4471_v36 = vld [vmem:[%s6030_s0 + $0x5b8] ss:$56 sps:$4 sm:$0xff]   ;;  %v4482_v39 = vld [vmem:[%s6030_s0 + $0x24] ss:$56 sps:$4 sm:$0xff]  }
  0x6b   :  { %2292 = vmatprep.mubr.bf16.mxu1 %v4387_v40  ;;  %2437 = vmatprep.mubr.bf16.mxu0 %v4390_v41  ;;  %v4477_v40 = vld [vmem:[%s6030_s0 + $0x18] ss:$56 sps:$4 sm:$0xff]  }
  0x6c   :  { %3963 = vmatpush3.bf16.msra.mxu1 %v4426_v43  ;;  %4063 = vmatpush3.bf16.msra.mxu0 %v4430_v46  ;;  %v4480_v41 = vld [vmem:[%s6030_s0 + $0x20] ss:$56 sps:$4 sm:$0xff]   ;;  %v4485_v43 = vld [vmem:[%s6030_s0 + $0x8c] ss:$56 sps:$4 sm:$0xff]   ;;  %v4492_v46 = vld [vmem:[%s6029_s1 + $0x2f0] sm:$0xff]  }
  0x6d   :  { %3964 = vmatprep.subr.bf16.mxu1 %v4435_v50  ;;  %4064 = vmatprep.subr.bf16.mxu0 %v4443_v52  ;;  %v4487_v44 = vld [vmem:[%s6029_s1 + $0x338] sm:$0xff]   ;;  %v4488_v50 = vld [vmem:[%s6030_s0 + $0x88] ss:$56 sps:$4 sm:$0xff]  }
  0x6e   :  { %v4493_v52 = vld [vmem:[%s6030_s0 + $0xfc] ss:$56 sps:$4 sm:$0xff]  }
  0x70   :  { %3965 = vmatpush3.bf16.msra.mxu1 %v4438_v51  ;;  %4065 = vmatpush3.bf16.msra.mxu0 %v4444_v53  ;;  %v4491_v51 = vld [vmem:[%s6030_s0 + $0x90] ss:$56 sps:$4 sm:$0xff]   ;;  %v4497_v53 = vld [vmem:[%s6030_s0 + $0x104] ss:$56 sps:$4 sm:$0xff]  }
  0x71   :  { %3966 = vmatprep.subr.bf16.mxu1 %v4451_v58  ;;  %4066 = vmatprep.subr.bf16.mxu0 %v4459_v62  ;;  %v4524_v58 = vld [vmem:[%s6029_s1 + $0x2a0] sm:$0xff]  }
  0x72   :  { %2293 = vmatmul.mubr.bf16.gmra.mxu1 %v4389_v45  ;;  %2438 = vmatmul.mubr.bf16.gmra.mxu0 %v4392_v47  ;;  %v4489_v45 = vld [vmem:[%s6030_s0 + $0x94] ss:$56 sps:$4 sm:$0xff]  }
  0x73   :  { %2300 = vmatprep.mubr.bf16.mxu1 %v4395_v48  ;;  %2445 = vmatprep.mubr.bf16.mxu0 %v4398_v49  ;;  %v4495_v47 = vld [vmem:[%s6029_s1 + $0x2b0] sm:$0xff]   ;;  %v4508_v49 = vld [vmem:[%s6029_s1 + $0x2e8] sm:$0xff]  }
  0x74   :  { %3967 = vmatpush3.bf16.msra.mxu1 %v4452_v59  ;;  %4067 = vmatpush3.bf16.msra.mxu0 %v4460_v63  ;;  %v4500_v48 = vld [vmem:[%s6029_s1 + $0x330] sm:$0xff]   ;;  %v4501_v62 = vld [vmem:[%s6030_s0 + $0x16c] ss:$56 sps:$4 sm:$0xff]  }
  0x75   :  { %3968 = vmatprep.subr.bf16.mxu1 %v4467_v2  ;;  %4068 = vmatprep.subr.bf16.mxu0 %v4474_v8  ;;  %v4496_v59 = vld [vmem:[%s6030_s0 + $0xf8] ss:$56 sps:$4 sm:$0xff]   ;;  %v4504_v63 = vld [vmem:[%s6030_s0 + $0x174] ss:$56 sps:$4 sm:$0xff]  }
  0x76   :  { %v4548_v2 = vld [vmem:[%s6029_s1 + $0x2d0] sm:$0xff]  }
  0x77   :  { %v4510_v8 = vld [vmem:[%s6030_s0 + $0x1dc] ss:$56 sps:$4 sm:$0xff]  }
  0x78   :  { %3969 = vmatpush3.bf16.msra.mxu1 %v4468_v3  ;;  %4069 = vmatpush3.bf16.msra.mxu0 %v4476_v9  ;;  %v4532_v3 = vld [vmem:[%s6029_s1 + $0x310] sm:$0xff]   ;;  %v4513_v9 = vld [vmem:[%s6030_s0 + $0x1e4] ss:$56 sps:$4 sm:$0xff]  }
  0x79   :  { %2961 = vmatprep.subr.bf16.mxu0 %v4673_v11  ;;  %4154 = vmatprep.subr.bf16.mxu1 %v4483_v10  ;;  %v4544_v10 = vld [vmem:[%s6029_s1 + $0x308] sm:$0xff]  }
  0x7a   :  { %2301 = vmatmul.mubr.bf16.gmra.mxu1 %v4397_v54  ;;  %2446 = vmatmul.mubr.bf16.gmra.mxu0 %v4400_v55  ;;  %v4507_v54 = vld [vmem:[%s6029_s1 + $0x328] sm:$0xff]  }
  0x7b   :  { %2308 = vmatprep.mubr.bf16.mxu1 %v4403_v56  ;;  %2453 = vmatprep.mubr.bf16.mxu0 %v4406_v57  ;;  %v4509_v55 = vld [vmem:[%s6029_s1 + $0x2a8] sm:$0xff]   ;;  %v4523_v56 = vld [vmem:[%s6029_s1 + $0x2e0] sm:$0xff]  }
  0x7c   :  { %v4516_v57 = vld [vmem:[%s6029_s1 + $0x320] sm:$0xff]  }
  0x82   :  { %2309 = vmatmul.mubr.bf16.gmra.mxu1 %v4405_v60  ;;  %2454 = vmatmul.mubr.bf16.gmra.mxu0 %v4408_v61  ;;  %v4499_v60 = vld [vmem:[%s6030_s0 + $0x100] ss:$56 sps:$4 sm:$0xff]  }
  0x83   :  { %2316 = vmatprep.mubr.bf16.mxu1 %v4411_v0  ;;  %2461 = vmatprep.mubr.bf16.mxu0 %v4414_v1  ;;  %v4539_v61 = vld [vmem:[%s6029_s1 + $0x2d8] sm:$0xff]  }
  0x84   :  { %v4525_v0 = vld [vmem:[%s6029_s1 + $0x318] sm:$0xff]  }
  0x85   :  { %v4540_v1 = vld [vmem:[%s6029_s1 + $0x298] sm:$0xff]  }
  0x8a   :  { %2317 = vmatmul.mubr.bf16.gmra.mxu1 %v4413_v4  ;;  %2462 = vmatmul.mubr.bf16.gmra.mxu0 %v4417_v5  ;;  %v4552_v4 = vld [vmem:[%s6029_s1 + $0x290] sm:$0xff]   ;;  %v4564_v5 = vld [vmem:[%s6029_s1 + $0x2c8] sm:$0xff]  }
  0x8b   :  { %2324 = vmatprep.mubr.bf16.mxu1 %v4419_v6  ;;  %2469 = vmatprep.mubr.bf16.mxu0 %v4422_v7  ;;  %v4503_v6 = vld [vmem:[%s6030_s0 + $0x168] ss:$56 sps:$4 sm:$0xff]  }
  0x8c   :  { %v4506_v7 = vld [vmem:[%s6030_s0 + $0x170] ss:$56 sps:$4 sm:$0xff]  }
  0x92   :  { %2325 = vmatmul.mubr.bf16.gmra.mxu1 %v4421_v12  ;;  %2470 = vmatmul.mubr.bf16.gmra.mxu0 %v4425_v13  ;;  %v4565_v12 = vld [vmem:[%s6029_s1 + $0x288] sm:$0xff]   ;;  %v4579_v13 = vld [vmem:[%s6029_s1 + $0x2c0] sm:$0xff]  }
  0x93   :  { %2332 = vmatprep.mubr.bf16.mxu1 %v4428_v14  ;;  %2477 = vmatprep.mubr.bf16.mxu0 %v4432_v15 }
  0x9a   :  { %2333 = vmatmul.mubr.bf16.gmra.mxu1 %v4431_v16  ;;  %2478 = vmatmul.mubr.bf16.gmra.mxu0 %v4434_v17 }
  0x9b   :  { %2340 = vmatprep.mubr.bf16.mxu1 %v4436_v18  ;;  %2485 = vmatprep.mubr.bf16.mxu0 %v4440_v19  ;;  %v4556_v18 = vld [vmem:[%s6029_s1 + $0x300] sm:$0xff]  }
  0x9c   :  { %v4580_v19 = vld [vmem:[%s6029_s1 + $0x280] sm:$0xff]  }
  0xa2   :  { %2341 = vmatmul.mubr.bf16.gmra.mxu1 %v4439_v20  ;;  %2486 = vmatmul.mubr.bf16.gmra.mxu0 %v4442_v21 }
  0xa3   :  { %2348 = vmatprep.mubr.bf16.mxu1 %v4445_v22  ;;  %2493 = vmatprep.mubr.bf16.mxu0 %v4448_v23 }
  0xaa   :  { %2349 = vmatmul.mubr.bf16.gmra.mxu1 %v4447_v24  ;;  %2494 = vmatmul.mubr.bf16.gmra.mxu0 %v4450_v25  ;;  %v4512_v24 = vld [vmem:[%s6030_s0 + $0x1d8] ss:$56 sps:$4 sm:$0xff]  }
  0xab   :  { %2356 = vmatprep.mubr.bf16.mxu1 %v4453_v26  ;;  %2501 = vmatprep.mubr.bf16.mxu0 %v4456_v27  ;;  %v4515_v25 = vld [vmem:[%s6030_s0 + $0x1e0] ss:$56 sps:$4 sm:$0xff]   ;;  %v4517_v26 = vld [vmem:[%s6030_s0 + $0x24c] ss:$56 sps:$4 sm:$0xff]  }
  0xac   :  { %v4520_v27 = vld [vmem:[%s6030_s0 + $0x254] ss:$56 sps:$4 sm:$0xff]  }
  0xb2   :  { %2357 = vmatmul.mubr.bf16.gmra.mxu1 %v4455_v28  ;;  %2502 = vmatmul.mubr.bf16.gmra.mxu0 %v4458_v29 }
  0xb3   :  { %2364 = vmatprep.mubr.bf16.mxu1 %v4461_v30  ;;  %2509 = vmatprep.mubr.bf16.mxu0 %v4464_v31  ;;  %v4563_v30 = vld [vmem:[%s6029_s1 + $0x358] sm:$0xff]  }
  0xba   :  { %2365 = vmatmul.mubr.bf16.gmra.mxu1 %v4463_v32  ;;  %2510 = vmatmul.mubr.bf16.gmra.mxu0 %v4466_v33 }
  0xbb   :  { %2372 = vmatprep.mubr.bf16.mxu1 %v4469_v34  ;;  %2517 = vmatprep.mubr.bf16.mxu0 %v4472_v35 }
  0xc2   :  { %2373 = vmatmul.mubr.bf16.gmra.mxu1 %v4471_v36  ;;  %2518 = vmatmul.mubr.bf16.gmra.mxu0 %v4475_v37  ;;  %v4572_v37 = vld [vmem:[%s6029_s1 + $0x350] sm:$0xff]  }
  0xc3   :  { %2558 = vmatprep.mubr.bf16.mxu1 %v4479_v38  ;;  %2703 = vmatprep.mubr.bf16.mxu0 %v4482_v39 }
  0xca   :  { %2559 = vmatmul.mubr.bf16.vlgmr.msra.gmra.mxu1 %v4477_v40  ;;  %2704 = vmatmul.mubr.bf16.vlgmr.msra.gmra.mxu0 %v4480_v41  ;;  %v5353_v40 = vld [vmem:[%s6031_s2] ss:$0 sm:$0xff] }
  0xcb   :  { %4155 = vmatpush3.bf16.msra.mxu1 %v4484_v42  ;;  %2566 = vmatprep.mubr.bf16.mxu1 %v4485_v43  ;;  %v4519_v43 = vld [vmem:[%s6030_s0 + $0x248] ss:$56 sps:$4 sm:$0xff]  }
  0xcc   :  { %2962 = vmatpush1.bf16.msra.mxu0 %v4487_v44  ;;  %2711 = vmatprep.mubr.bf16.mxu0 %v4489_v45  ;;  %v4522_v44 = vld [vmem:[%s6030_s0 + $0x250] ss:$56 sps:$4 sm:$0xff]  }
  0xcd   :  { %4156 = vmatprep.subr.bf16.mxu1 %v4492_v46  ;;  %2963 = vmatprep.subr.bf16.mxu0 %v4673_v11  ;;  %v4526_v46 = vld [vmem:[%s6030_s0 + $0x2bc] ss:$56 sps:$4 sm:$0xff]  }
  0xcf   :  { %4157 = vmatpush3.bf16.msra.mxu1 %v4495_v47  ;;  %v4529_v47 = vld [vmem:[%s6030_s0 + $0x2c4] ss:$56 sps:$4 sm:$0xff]  }
  0xd0   :  { %2964 = vmatpush1.bf16.msra.mxu0 %v4500_v48  ;;  %4158 = vmatprep.subr.bf16.mxu1 %v4508_v49 }
  0xd1   :  { %2965 = vmatprep.subr.bf16.mxu0 %v4673_v11 }
  0xd2   :  { %2567 = vmatmul.mubr.bf16.gmra.mxu1 %v4488_v50  ;;  %2712 = vmatmul.mubr.bf16.gmra.mxu0 %v4491_v51  ;;  %v4581_v50 = vld [vmem:[%s6029_s1 + $0x348] sm:$0xff]  }
  0xd3   :  { %2574 = vmatprep.mubr.bf16.mxu1 %v4493_v52  ;;  %2719 = vmatprep.mubr.bf16.mxu0 %v4497_v53 }
  0xd4   :  { %2966 = vmatpush1.bf16.msra.mxu0 %v4507_v54  ;;  %4159 = vmatpush3.bf16.msra.mxu1 %v4509_v55 }
  0xd5   :  { %2967 = vmatprep.subr.bf16.mxu0 %v4673_v11  ;;  %4160 = vmatprep.subr.bf16.mxu1 %v4523_v56 }
  0xd8   :  { %2968 = vmatpush1.bf16.msra.mxu0 %v4516_v57  ;;  %4161 = vmatpush3.bf16.msra.mxu1 %v4524_v58  ;;  %v4588_v58 = vld [vmem:[%s6029_s1 + $0x340] sm:$0xff]  }
  0xd9   :  { %2969 = vmatprep.subr.bf16.mxu0 %v4673_v11  ;;  %4162 = vmatprep.subr.bf16.mxu1 %v4539_v61 }
  0xda   :  { %2575 = vmatmul.mubr.bf16.gmra.mxu1 %v4496_v59  ;;  %2720 = vmatmul.mubr.bf16.gmra.mxu0 %v4499_v60 }
  0xdb   :  { %2582 = vmatprep.mubr.bf16.mxu1 %v4501_v62  ;;  %2727 = vmatprep.mubr.bf16.mxu0 %v4504_v63  ;;  %v4528_v63 = vld [vmem:[%s6030_s0 + $0x2b8] ss:$56 sps:$4 sm:$0xff]  }
  0xdc   :  { %2970 = vmatpush1.bf16.msra.mxu0 %v4525_v0  ;;  %4163 = vmatpush3.bf16.msra.mxu1 %v4540_v1  ;;  %v4531_v0 = vld [vmem:[%s6030_s0 + $0x2c0] ss:$56 sps:$4 sm:$0xff]  }
  0xdd   :  { %2971 = vmatprep.subr.bf16.mxu0 %v4673_v11  ;;  %4164 = vmatprep.subr.bf16.mxu1 %v4548_v2  ;;  %v4535_v2 = vld [vmem:[%s6030_s0 + $0x32c] ss:$56 sps:$4 sm:$0xff]  }
  0xe0   :  { %2972 = vmatpush1.bf16.msra.mxu0 %v4532_v3  ;;  %4165 = vmatpush3.bf16.msra.mxu1 %v4552_v4 }
  0xe1   :  { %2973 = vmatprep.subr.bf16.mxu0 %v4673_v11  ;;  %4166 = vmatprep.subr.bf16.mxu1 %v4564_v5 }
  0xe2   :  { %v3712_v14 = vpop.f32.mrf.mxu1  ;;  %2583 = vmatmul.mubr.bf16.gmra.mxu1 %v4503_v6  ;;  %v3670_v15 = vpop.f32.mrf.mxu0  ;;  %2728 = vmatmul.mubr.bf16.gmra.mxu0 %v4506_v7 }
  0xe3   :  { %2590 = vmatprep.mubr.bf16.mxu1 %v4510_v8  ;;  %2735 = vmatprep.mubr.bf16.mxu0 %v4513_v9 }
  0xe4   :  { %v3713_v16 = vpop.f32.mrf.mxu1  ;;  %v3671_v17 = vpop.f32.mrf.mxu0  ;;  %2974 = vmatpush1.bf16.msra.mxu0 %v4544_v10  ;;  %4167 = vmatpush3.bf16.msra.mxu1 %v4565_v12 }
  0xe5   :  { %v5319_v20 = vadd.f32 %v3713_v16, %v3712_v14  ;;  %v5321_v21 = vadd.f32 %v3671_v17, %v3670_v15  ;;  %2975 = vmatprep.subr.bf16.mxu0 %v4673_v11  ;;  %4168 = vmatprep.subr.bf16.mxu1 %v4579_v13  ;;  %v4533_v17 = vld [vmem:[%s6030_s0 + $0x328] ss:$56 sps:$4 sm:$0xff]  }
  0xe6   :  { %v3715_v22 = vpop.f32.mrf.mxu1  ;;  %v3673_v23 = vpop.f32.mrf.mxu0 }
  0xe8   :  { %v3716_v28 = vpop.f32.mrf.mxu1  ;;  %v3674_v29 = vpop.f32.mrf.mxu0  ;;  %2976 = vmatpush1.bf16.msra.mxu0 %v4556_v18  ;;  %4169 = vmatpush3.bf16.msra.mxu1 %v4580_v19  ;;  %v4536_v18 = vld [vmem:[%s6030_s0 + $0x330] ss:$56 sps:$4 sm:$0xff]  }
  0xe9   :  { %v5339_v31 = vadd.f32 %v3716_v28, %v3715_v22  ;;  %v5341_v32 = vadd.f32 %v3674_v29, %v3673_v23  ;;  %2985 = vmatprep.subr.bf16.mxu0 %v4673_v11  ;;  %v4543_v22 = vld [vmem:[%s6030_s0 + $0x39c] ss:$56 sps:$4 sm:$0xff]  }
  0xea   :  { %v3718_v33 = vpop.f32.mrf.mxu1  ;;  %2591 = vmatmul.mubr.bf16.gmra.mxu1 %v4512_v24  ;;  %v3676_v34 = vpop.f32.mrf.mxu0  ;;  %2736 = vmatmul.mubr.bf16.gmra.mxu0 %v4515_v25  ;;  %v4547_v23 = vld [vmem:[%s6030_s0 + $0x3a4] ss:$56 sps:$4 sm:$0xff]  }
  0xeb   :  { %2598 = vmatprep.mubr.bf16.mxu1 %v4517_v26  ;;  %2743 = vmatprep.mubr.bf16.mxu0 %v4520_v27 }
  0xec   :  { %v3719_v35 = vpop.f32.mrf.mxu1  ;;  %v3677_v36 = vpop.f32.mrf.mxu0  ;;  %2986 = vmatpush2.bf16.msra.mxu0 %v4563_v30 }
  0xed   :  { %v3720_v38 = vadd.f32 %v3719_v35, %v3718_v33  ;;  %v5347_v39 = vadd.f32 %v3677_v36, %v3676_v34  ;;  %2987 = vmatprep.subr.bf16.mxu0 %v4673_v11 }
  0xee   :  { %v3721_v41 = vpop.f32.mrf.mxu1  ;;  %v3679_v42 = vpop.f32.mrf.mxu0 }
  0xef   :  { %v5362_v45 = vadd.f32 %v3720_v38, %v5353_v40 }
  0xf0   :  { %v3722_v48 = vpop.f32.mrf.mxu1  ;;  %v3680_v49 = vpop.f32.mrf.mxu0  ;;  %2988 = vmatpush2.bf16.msra.mxu0 %v4572_v37 }
  0xf1   :  { %v3723_v51 = vadd.f32 %v3722_v48, %v3721_v41  ;;  %v5373_v52 = vadd.f32 %v3680_v49, %v3679_v42  ;;  %2989 = vmatprep.subr.bf16.mxu0 %v4673_v11  ;;  %v4541_v41 = vld [vmem:[%s6030_s0 + $0x398] ss:$56 sps:$4 sm:$0xff]  }
  0xf2   :  { %v3724_v53 = vpop.f32.mrf.mxu1  ;;  %2599 = vmatmul.mubr.bf16.gmra.mxu1 %v4519_v43  ;;  %v3682_v54 = vpop.f32.mrf.mxu0  ;;  %2744 = vmatmul.mubr.bf16.gmra.mxu0 %v4522_v44  ;;  %v4545_v42 = vld [vmem:[%s6030_s0 + $0x3a0] ss:$56 sps:$4 sm:$0xff]   ;;  %v4551_v44 = vld [vmem:[%s6030_s0 + $0x40c] ss:$56 sps:$4 sm:$0xff]  }
  0xf3   :  { %v5377_v55 = vadd.f32 %v3723_v51, %v5353_v40  ;;  %2606 = vmatprep.mubr.bf16.mxu1 %v4526_v46  ;;  %2751 = vmatprep.mubr.bf16.mxu0 %v4529_v47  ;;  %v4555_v46 = vld [vmem:[%s6030_s0 + $0x414] ss:$56 sps:$4 sm:$0xff]  }
  0xf4   :  { %v3725_v56 = vpop.f32.mrf.mxu1  ;;  %v3683_v57 = vpop.f32.mrf.mxu0  ;;  %2990 = vmatpush2.bf16.msra.mxu0 %v4581_v50 }
  0xf5   :  { %v3726_v59 = vadd.f32 %v3725_v56, %v3724_v53  ;;  %v5382_v60 = vadd.f32 %v3683_v57, %v3682_v54  ;;  %2991 = vmatprep.subr.bf16.mxu0 %v4673_v11  ;;  %v4538_v11 = vld [vmem:[%s6030_s0 + $0x334] ss:$56 sps:$4 sm:$0xff]  }
  0xf6   :  { %v3727_v61 = vpop.f32.mrf.mxu1  ;;  %v3685_v62 = vpop.f32.mrf.mxu0 }
  0xf7   :  { %v5392_v1 = vadd.f32 %v3726_v59, %v5353_v40 }
  0xf8   :  { %v3728_v3 = vpop.f32.mrf.mxu1  ;;  %v3686_v4 = vpop.f32.mrf.mxu0  ;;  %2992 = vmatpush2.bf16.msra.mxu0 %v4588_v58 }
  0xf9   :  { %v3729_v5 = vadd.f32 %v3728_v3, %v3727_v61  ;;  %v5400_v6 = vadd.f32 %v3686_v4, %v3685_v62  ;;  %v4562_v3 = vld [vmem:[%s6030_s0 + $0x484] ss:$56 sps:$4 sm:$0xff]  }
  0xfa   :  { %v3730_v7 = vpop.f32.mrf.mxu1  ;;  %2607 = vmatmul.mubr.bf16.gmra.mxu1 %v4528_v63  ;;  %v3688_v8 = vpop.f32.mrf.mxu0  ;;  %2752 = vmatmul.mubr.bf16.gmra.mxu0 %v4531_v0  ;;  %v4549_v63 = vld [vmem:[%s6030_s0 + $0x408] ss:$56 sps:$4 sm:$0xff]  }
  0xfb   :  { %v5403_v9 = vadd.f32 %v3729_v5, %v5353_v40  ;;  %2614 = vmatprep.mubr.bf16.mxu1 %v4535_v2  ;;  %2759 = vmatprep.mubr.bf16.mxu0 %v4538_v11  ;;  %v4553_v0 = vld [vmem:[%s6030_s0 + $0x410] ss:$56 sps:$4 sm:$0xff]   ;;  %v4559_v11 = vld [vmem:[%s6030_s0 + $0x47c] ss:$56 sps:$4 sm:$0xff]  }
  0xfc   :  { %v3731_v10 = vpop.f32.mrf.mxu1  ;;  %v3689_v12 = vpop.f32.mrf.mxu0 }
  0xfd   :  { %v3732_v13 = vadd.f32 %v3731_v10, %v3730_v7  ;;  %v5405_v14 = vadd.f32 %v3689_v12, %v3688_v8 }
  0xfe   :  { %v3733_v15 = vpop.f32.mrf.mxu1  ;;  %v3691_v16 = vpop.f32.mrf.mxu0 }
  0xff   :  { %v5414_v19 = vadd.f32 %v3732_v13, %v5353_v40 }
 0x100   :  { %v3734_v24 = vpop.f32.mrf.mxu1  ;;  %v3692_v25 = vpop.f32.mrf.mxu0 }
 0x101   :  { %v3735_v26 = vadd.f32 %v3734_v24, %v3733_v15  ;;  %v5422_v27 = vadd.f32 %v3692_v25, %v3691_v16  ;;  %v4557_v24 = vld [vmem:[%s6030_s0 + $0x478] ss:$56 sps:$4 sm:$0xff]  }
 0x102   :  { %v3736_v28 = vpop.f32.mrf.mxu1  ;;  %2615 = vmatmul.mubr.bf16.gmra.mxu1 %v4533_v17  ;;  %v3694_v29 = vpop.f32.mrf.mxu0  ;;  %2760 = vmatmul.mubr.bf16.gmra.mxu0 %v4536_v18  ;;  %v4560_v25 = vld [vmem:[%s6030_s0 + $0x480] ss:$56 sps:$4 sm:$0xff]  }
 0x103   :  { %v5425_v30 = vadd.f32 %v3735_v26, %v5353_v40  ;;  %2622 = vmatprep.mubr.bf16.mxu1 %v4543_v22  ;;  %2767 = vmatprep.mubr.bf16.mxu0 %v4547_v23 }
 0x104   :  { %v3737_v33 = vpop.f32.mrf.mxu1  ;;  %v3695_v34 = vpop.f32.mrf.mxu0 }
 0x105   :  { %v3738_v35 = vadd.f32 %v3737_v33, %v3736_v28  ;;  %v5427_v36 = vadd.f32 %v3695_v34, %v3694_v29  ;;  %v4568_v28 = vld [vmem:[%s6030_s0 + $0x4ec] ss:$56 sps:$4 sm:$0xff]  }
 0x106   :  { %v3739_v37 = vpop.f32.mrf.mxu1  ;;  %v3697_v38 = vpop.f32.mrf.mxu0  ;;  %v4571_v29 = vld [vmem:[%s6030_s0 + $0x4f4] ss:$56 sps:$4 sm:$0xff]  }
 0x107   :  { %v5436_v43 = vadd.f32 %v3738_v35, %v5353_v40 }
 0x108   :  { %v3740_v47 = vpop.f32.mrf.mxu1  ;;  %v3698_v48 = vpop.f32.mrf.mxu0 }
 0x109   :  { %v3741_v49 = vadd.f32 %v3740_v47, %v3739_v37  ;;  %v5444_v50 = vadd.f32 %v3698_v48, %v3697_v38  ;;  %v2126_v47 = vadd.f32 %v5321_v21, %v5353_v40  ;;  %v4578_v21 = vld [vmem:[%s6030_s0 + $0x564] ss:$56 sps:$4 sm:$0xff]  }
 0x10a   :  { %v3742_v51 = vpop.f32.mrf.mxu1  ;;  %2623 = vmatmul.mubr.bf16.gmra.mxu1 %v4541_v41  ;;  %v3700_v53 = vpop.f32.mrf.mxu0  ;;  %2768 = vmatmul.mubr.bf16.gmra.mxu0 %v4545_v42 }
 0x10b   :  { %v5447_v54 = vadd.f32 %v3741_v49, %v5353_v40  ;;  %2630 = vmatprep.mubr.bf16.mxu1 %v4551_v44  ;;  %2775 = vmatprep.mubr.bf16.mxu0 %v4555_v46 }
 0x10c   :  { %v3743_v56 = vpop.f32.mrf.mxu1  ;;  %v3701_v57 = vpop.f32.mrf.mxu0 }
 0x10d   :  { %v3744_v58 = vadd.f32 %v3743_v56, %v3742_v51  ;;  %v5449_v59 = vadd.f32 %v3701_v57, %v3700_v53  ;;  %v4566_v56 = vld [vmem:[%s6030_s0 + $0x4e8] ss:$56 sps:$4 sm:$0xff]  }
 0x10e   :  { %v3745_v61 = vpop.f32.mrf.mxu1  ;;  %v3703_v62 = vpop.f32.mrf.mxu0  ;;  %v4569_v57 = vld [vmem:[%s6030_s0 + $0x4f0] ss:$56 sps:$4 sm:$0xff]  }
 0x10f   :  { %v5458_v2 = vadd.f32 %v3744_v58, %v5353_v40 }
 0x110   :  { %v3746_v4 = vpop.f32.mrf.mxu1  ;;  %v3704_v5 = vpop.f32.mrf.mxu0 }
 0x111   :  { %v3747_v7 = vadd.f32 %v3746_v4, %v3745_v61  ;;  %v5466_v8 = vadd.f32 %v3704_v5, %v3703_v62  ;;  %v4575_v61 = vld [vmem:[%s6030_s0 + $0x55c] ss:$56 sps:$4 sm:$0xff]  }
 0x112   :  { %v3748_v10 = vpop.f32.mrf.mxu1  ;;  %2631 = vmatmul.mubr.bf16.gmra.mxu1 %v4549_v63  ;;  %v3706_v12 = vpop.f32.mrf.mxu0  ;;  %2776 = vmatmul.mubr.bf16.gmra.mxu0 %v4553_v0  ;;  %v2129_v0 = vadd.f32 %v5341_v32, %v5353_v40 }
 0x113   :  { %v5469_v13 = vadd.f32 %v3747_v7, %v5353_v40  ;;  %2638 = vmatprep.mubr.bf16.mxu1 %v4559_v11  ;;  %2783 = vmatprep.mubr.bf16.mxu0 %v4562_v3 }
 0x114   :  { %v3749_v15 = vpop.f32.mrf.mxu1  ;;  %v3707_v16 = vpop.f32.mrf.mxu0 }
 0x115   :  { %v3750_v17 = vadd.f32 %v3749_v15, %v3748_v10  ;;  %v5471_v18 = vadd.f32 %v3707_v16, %v3706_v12  ;;  %v2134_v16 = vadd.f32 %v5347_v39, %v5353_v40  ;;  %v4587_v39 = vld [vmem:[%s6030_s0 + $0x5d4] ss:$56 sps:$4 sm:$0xff]  }
 0x116   :  { %v3751_v22 = vpop.f32.mrf.mxu1  ;;  %v3709_v23 = vpop.f32.mrf.mxu0 }
 0x117   :  { %v5480_v26 = vadd.f32 %v3750_v17, %v5353_v40 }
 0x118   :  { %v3752_v33 = vpop.f32.mrf.mxu1  ;;  %v3710_v34 = vpop.f32.mrf.mxu0 }
 0x119   :  { %v3753_v35 = vadd.f32 %v3752_v33, %v3751_v22  ;;  %v5488_v37 = vadd.f32 %v3710_v34, %v3709_v23  ;;  %v4584_v33 = vld [vmem:[%s6030_s0 + $0x5cc] ss:$56 sps:$4 sm:$0xff]  }
 0x11a   :  { %v3770_v38 = vpop.f32.mrf.mxu1  ;;  %2639 = vmatmul.mubr.bf16.gmra.mxu1 %v4557_v24  ;;  %v3870_v41 = vpop.f32.mrf.mxu0  ;;  %2784 = vmatmul.mubr.bf16.gmra.mxu0 %v4560_v25  ;;  %v4573_v25 = vld [vmem:[%s6030_s0 + $0x558] ss:$56 sps:$4 sm:$0xff]  }
 0x11b   :  { %v5491_v42 = vadd.f32 %v3753_v35, %v5353_v40  ;;  %2646 = vmatprep.mubr.bf16.mxu1 %v4568_v28  ;;  %2791 = vmatprep.mubr.bf16.mxu0 %v4571_v29  ;;  %v4576_v28 = vld [vmem:[%s6030_s0 + $0x560] ss:$56 sps:$4 sm:$0xff]  }
 0x11c   :  { %v3771_v44 = vpop.f32.mrf.mxu1  ;;  %v3871_v46 = vpop.f32.mrf.mxu0 }
 0x11d   :  { %v3772_v48 = vadd.f32 %v3771_v44, %v3770_v38  ;;  %v3872_v49 = vadd.f32 %v3871_v46, %v3870_v41  ;;  %v2137_v38 = vadd.f32 %v5373_v52, %v5353_v40 }
 0x11e   :  { %v3773_v51 = vpop.f32.mrf.mxu1  ;;  %v3873_v53 = vpop.f32.mrf.mxu0 }
 0x11f   :  { %v2271_v58 = vadd.f32 %v3772_v48, %v2126_v47 }
 0x120   :  { %v3774_v62 = vpop.f32.mrf.mxu1  ;;  %v3874_v63 = vpop.f32.mrf.mxu0 }
 0x121   :  { %v5509_v11 = vadd.f32 %v3872_v49, %v2271_v58  ;;  %v3775_v3 = vadd.f32 %v3774_v62, %v3773_v51  ;;  %v3875_v4 = vadd.f32 %v3874_v63, %v3873_v53  ;;  %v4582_v62 = vld [vmem:[%s6030_s0 + $0x5c8] ss:$56 sps:$4 sm:$0xff]  }
 0x122   :  { %v3776_v5 = vpop.f32.mrf.mxu1  ;;  %2647 = vmatmul.mubr.bf16.gmra.mxu1 %v4566_v56  ;;  %v3876_v7 = vpop.f32.mrf.mxu0  ;;  %2792 = vmatmul.mubr.bf16.gmra.mxu0 %v4569_v57  ;;  %v2142_v56 = vadd.f32 %v5382_v60, %v5353_v40  ;;  %v4585_v63 = vld [vmem:[%s6030_s0 + $0x5d0] ss:$56 sps:$4 sm:$0xff]   ;;  %v4594_v60 = vld [vmem:[%s6030_s0 + $0x34] ss:$56 sps:$4 sm:$0xff]  }
 0x123   :  { %v2274_v10 = vadd.f32 %v3775_v3, %v2129_v0  ;;  %2654 = vmatprep.mubr.bf16.mxu1 %v4575_v61  ;;  %2799 = vmatprep.mubr.bf16.mxu0 %v4578_v21  ;;  %v4591_v3 = vld [vmem:[%s6030_s0 + $0x2c] ss:$56 sps:$4 sm:$0xff]  }
 0x124   :  { %v3777_v12 = vpop.f32.mrf.mxu1  ;;  %v3877_v15 = vpop.f32.mrf.mxu0 }
 0x125   :  { %v5513_v17 = vadd.f32 %v3875_v4, %v2274_v10  ;;  %v3778_v22 = vadd.f32 %v3777_v12, %v3776_v5  ;;  %v3878_v32 = vadd.f32 %v3877_v15, %v3876_v7  ;;  %v2145_v7 = vadd.f32 %v5400_v6, %v5353_v40 }
 0x126   :  { %v3779_v23 = vpop.f32.mrf.mxu1  ;;  %v3879_v24 = vpop.f32.mrf.mxu0 }
 0x127   :  { %v2279_v29 = vadd.f32 %v3778_v22, %v2134_v16 }
 0x128   :  { %v3780_v34 = vpop.f32.mrf.mxu1  ;;  %v3880_v35 = vpop.f32.mrf.mxu0 }
 0x129   :  { %v5529_v41 = vadd.f32 %v3878_v32, %v2279_v29  ;;  %v3781_v44 = vadd.f32 %v3780_v34, %v3779_v23  ;;  %v3881_v46 = vadd.f32 %v3880_v35, %v3879_v24  ;;  %v4589_v34 = vld [vmem:[%s6030_s0 + $0x28] ss:$56 sps:$4 sm:$0xff]  }
 0x12a   :  { %v3782_v47 = vpop.f32.mrf.mxu1  ;;  %2655 = vmatmul.mubr.bf16.gmra.mxu1 %v4573_v25  ;;  %v3882_v48 = vpop.f32.mrf.mxu0  ;;  %2800 = vmatmul.mubr.bf16.gmra.mxu0 %v4576_v28  ;;  %v2150_v25 = vadd.f32 %v5405_v14, %v5353_v40  ;;  %v4592_v35 = vld [vmem:[%s6030_s0 + $0x30] ss:$56 sps:$4 sm:$0xff]   ;;  %v4598_v14 = vld [vmem:[%s6030_s0 + $0xa4] ss:$56 sps:$4 sm:$0xff]  }
 0x12b   :  { %v2282_v49 = vadd.f32 %v3781_v44, %v2137_v38  ;;  %2662 = vmatprep.mubr.bf16.mxu1 %v4584_v33  ;;  %2807 = vmatprep.mubr.bf16.mxu0 %v4587_v39  ;;  %v4597_v44 = vld [vmem:[%s6030_s0 + $0x9c] ss:$56 sps:$4 sm:$0xff]  }
 0x12c   :  { %v3783_v51 = vpop.f32.mrf.mxu1  ;;  %v3883_v53 = vpop.f32.mrf.mxu0 }
 0x12d   :  { %v5533_v57 = vadd.f32 %v3881_v46, %v2282_v49  ;;  %v3784_v58 = vadd.f32 %v3783_v51, %v3782_v47  ;;  %v3884_v52 = vadd.f32 %v3883_v53, %v3882_v48  ;;  %v2153_v48 = vadd.f32 %v5422_v27, %v5353_v40 }
 0x12e   :  { %v3785_v61 = vpop.f32.mrf.mxu1  ;;  %v3885_v21 = vpop.f32.mrf.mxu0 }
 0x12f   :  { %v2287_v0 = vadd.f32 %v3784_v58, %v2142_v56 }
 0x130   :  { %v3786_v4 = vpop.f32.mrf.mxu1  ;;  %v3886_v5 = vpop.f32.mrf.mxu0 }
 0x131   :  { %v5549_v10 = vadd.f32 %v3884_v52, %v2287_v0  ;;  %v3787_v12 = vadd.f32 %v3786_v4, %v3785_v61  ;;  %v3887_v15 = vadd.f32 %v3886_v5, %v3885_v21  ;;  %v4595_v4 = vld [vmem:[%s6030_s0 + $0x98] ss:$56 sps:$4 sm:$0xff]  }
 0x132   :  { %v3788_v16 = vpop.f32.mrf.mxu1  ;;  %2663 = vmatmul.mubr.bf16.gmra.mxu1 %v4582_v62  ;;  %v3888_v22 = vpop.f32.mrf.mxu0  ;;  %2808 = vmatmul.mubr.bf16.gmra.mxu0 %v4585_v63  ;;  %v2158_v62 = vadd.f32 %v5427_v36, %v5353_v40  ;;  %v4600_v5 = vld [vmem:[%s6030_s0 + $0xa0] ss:$56 sps:$4 sm:$0xff]   ;;  %v4604_v36 = vld [vmem:[%s6030_s0 + $0x114] ss:$56 sps:$4 sm:$0xff]  }
 0x133   :  { %v2290_v32 = vadd.f32 %v3787_v12, %v2145_v7  ;;  %2848 = vmatprep.mubr.bf16.mxu1 %v4591_v3  ;;  %3584 = vmatprep.mubr.msk.bf16.mxu0 %vm2048_vm0, %v4594_v60  ;;  %v4603_v12 = vld [vmem:[%s6030_s0 + $0x10c] ss:$56 sps:$4 sm:$0xff]  }
 0x134   :  { %v3789_v23 = vpop.f32.mrf.mxu1  ;;  %v3889_v24 = vpop.f32.mrf.mxu0 }
 0x135   :  { %v5554_v28 = vadd.f32 %v3887_v15, %v2290_v32  ;;  %v3790_v6 = vadd.f32 %v3789_v23, %v3788_v16  ;;  %v3890_v29 = vadd.f32 %v3889_v24, %v3888_v22  ;;  %v2161_v22 = vadd.f32 %v5444_v50, %v5353_v40 }
 0x136   :  { %v3791_v33 = vpop.f32.mrf.mxu1  ;;  %v3891_v39 = vpop.f32.mrf.mxu0 }
 0x137   :  { %v2295_v38 = vadd.f32 %v3790_v6, %v2150_v25 }
 0x138   :  { %v3792_v46 = vpop.f32.mrf.mxu1  ;;  %v3892_v47 = vpop.f32.mrf.mxu0 }
 0x139   :  { %v5570_v49 = vadd.f32 %v3890_v29, %v2295_v38  ;;  %v3793_v51 = vadd.f32 %v3792_v46, %v3791_v33  ;;  %v3893_v53 = vadd.f32 %v3892_v47, %v3891_v39  ;;  %v4601_v46 = vld [vmem:[%s6030_s0 + $0x108] ss:$56 sps:$4 sm:$0xff]  }
 0x13a   :  { %v3794_v56 = vpop.f32.mrf.mxu1  ;;  %2849 = vmatmul.mubr.bf16.vlgmr.msra.gmra.mxu1 %v4589_v34  ;;  %v3894_v58 = vpop.f32.mrf.mxu0  ;;  %2994 = vmatmul.mubr.bf16.vlgmr.msra.gmra.mxu0 %v4592_v35  ;;  %v2166_v34 = vadd.f32 %v5449_v59, %v5353_v40  ;;  %v4606_v47 = vld [vmem:[%s6030_s0 + $0x110] ss:$56 sps:$4 sm:$0xff]   ;;  %v4610_v59 = vld [vmem:[%s6030_s0 + $0x184] ss:$56 sps:$4 sm:$0xff]  }
 0x13b   :  { %v2298_v52 = vadd.f32 %v3793_v51, %v2153_v48  ;;  %2856 = vmatprep.mubr.bf16.mxu1 %v4597_v44  ;;  %3585 = vmatprep.mubr.msk.bf16.mxu0 %vm2048_vm0, %v4598_v14  ;;  %v4609_v51 = vld [vmem:[%s6030_s0 + $0x17c] ss:$56 sps:$4 sm:$0xff]  }
 0x13c   :  { %v3795_v61 = vpop.f32.mrf.mxu1  ;;  %v3895_v21 = vpop.f32.mrf.mxu0 }
 0x13d   :  { %v5575_v63 = vadd.f32 %v3893_v53, %v2298_v52  ;;  %v3796_v27 = vadd.f32 %v3795_v61, %v3794_v56  ;;  %v3896_v0 = vadd.f32 %v3895_v21, %v3894_v58  ;;  %v2169_v58 = vadd.f32 %v5466_v8, %v5353_v40 }
 0x13e   :  { %v3797_v3 = vpop.f32.mrf.mxu1  ;;  %v3897_v60 = vpop.f32.mrf.mxu0 }
 0x13f   :  { %v2303_v7 = vadd.f32 %v3796_v27, %v2158_v62 }
 0x140   :  { %v3798_v15 = vpop.f32.mrf.mxu1  ;;  %v3898_v16 = vpop.f32.mrf.mxu0 }
 0x141   :  { %v5591_v32 = vadd.f32 %v3896_v0, %v2303_v7  ;;  %v3799_v23 = vadd.f32 %v3798_v15, %v3797_v3  ;;  %v3899_v24 = vadd.f32 %v3898_v16, %v3897_v60  ;;  %v4607_v15 = vld [vmem:[%s6030_s0 + $0x178] ss:$56 sps:$4 sm:$0xff]  }
 0x142   :  { %v3800_v25 = vpop.f32.mrf.mxu1  ;;  %2857 = vmatmul.mubr.bf16.gmra.mxu1 %v4595_v4  ;;  %v3900_v6 = vpop.f32.mrf.mxu0  ;;  %3002 = vmatmul.mubr.bf16.gmra.mxu0 %v4600_v5  ;;  %v2174_v4 = vadd.f32 %v5471_v18, %v5353_v40  ;;  %v4612_v16 = vld [vmem:[%s6030_s0 + $0x180] ss:$56 sps:$4 sm:$0xff]   ;;  %v4616_v18 = vld [vmem:[%s6030_s0 + $0x1f4] ss:$56 sps:$4 sm:$0xff]  }
 0x143   :  { %v2306_v29 = vadd.f32 %v3799_v23, %v2161_v22  ;;  %2864 = vmatprep.mubr.bf16.mxu1 %v4603_v12  ;;  %3586 = vmatprep.mubr.msk.bf16.mxu0 %vm2048_vm0, %v4604_v36  ;;  %v4615_v23 = vld [vmem:[%s6030_s0 + $0x1ec] ss:$56 sps:$4 sm:$0xff]  }
 0x144   :  { %v3801_v33 = vpop.f32.mrf.mxu1  ;;  %v3901_v39 = vpop.f32.mrf.mxu0 }
 0x145   :  { %v5596_v35 = vadd.f32 %v3899_v24, %v2306_v29  ;;  %v3802_v50 = vadd.f32 %v3801_v33, %v3800_v25  ;;  %v3902_v38 = vadd.f32 %v3901_v39, %v3900_v6  ;;  %v2177_v6 = vadd.f32 %v5488_v37, %v5353_v40 }
 0x146   :  { %v3803_v44 = vpop.f32.mrf.mxu1  ;;  %v3903_v14 = vpop.f32.mrf.mxu0 }
 0x147   :  { %v2311_v48 = vadd.f32 %v3802_v50, %v2166_v34 }
 0x148   :  { %v3804_v53 = vpop.f32.mrf.mxu1  ;;  %v3904_v56 = vpop.f32.mrf.mxu0 }
 0x149   :  { %v5612_v52 = vadd.f32 %v3902_v38, %v2311_v48  ;;  %v3805_v61 = vadd.f32 %v3804_v53, %v3803_v44  ;;  %v3905_v21 = vadd.f32 %v3904_v56, %v3903_v14  ;;  %v4613_v53 = vld [vmem:[%s6030_s0 + $0x1e8] ss:$56 sps:$4 sm:$0xff]  }
 0x14a   :  { %v3806_v62 = vpop.f32.mrf.mxu1  ;;  %2865 = vmatmul.mubr.bf16.gmra.mxu1 %v4601_v46  ;;  %v3906_v27 = vpop.f32.mrf.mxu0  ;;  %3010 = vmatmul.mubr.bf16.gmra.mxu0 %v4606_v47  ;;  %v2182_v46 = vadd.f32 %v5319_v20, %v5353_v40  ;;  %v4618_v56 = vld [vmem:[%s6030_s0 + $0x1f0] ss:$56 sps:$4 sm:$0xff]   ;;  %v4622_v20 = vld [vmem:[%s6030_s0 + $0x264] ss:$56 sps:$4 sm:$0xff]  }
 0x14b   :  { %v2314_v0 = vadd.f32 %v3805_v61, %v2169_v58  ;;  %2872 = vmatprep.mubr.bf16.mxu1 %v4609_v51  ;;  %3587 = vmatprep.mubr.msk.bf16.mxu0 %vm2048_vm0, %v4610_v59  ;;  %v4621_v61 = vld [vmem:[%s6030_s0 + $0x25c] ss:$56 sps:$4 sm:$0xff]  }
 0x14c   :  { %v3807_v3 = vpop.f32.mrf.mxu1  ;;  %v3907_v60 = vpop.f32.mrf.mxu0 }
 0x14d   :  { %v5617_v5 = vadd.f32 %v3905_v21, %v2314_v0  ;;  %v3808_v8 = vadd.f32 %v3807_v3, %v3806_v62  ;;  %v3908_v7 = vadd.f32 %v3907_v60, %v3906_v27  ;;  %v2185_v27 = vadd.f32 %v5339_v31, %v5353_v40  ;;  %v4619_v40 = vld [vmem:[%s6030_s0 + $0x258] ss:$56 sps:$4 sm:$0xff]  }
 0x14e   :  { %v3809_v12 = vpop.f32.mrf.mxu1  ;;  %v3909_v36 = vpop.f32.mrf.mxu0 }
 0x14f   :  { %v2319_v22 = vadd.f32 %v3808_v8, %v2174_v4 }
 0x150   :  { %v3810_v24 = vpop.f32.mrf.mxu1  ;;  %v3910_v25 = vpop.f32.mrf.mxu0 }
 0x151   :  { %v5633_v29 = vadd.f32 %v3908_v7, %v2319_v22  ;;  %v3811_v33 = vadd.f32 %v3810_v24, %v3809_v12  ;;  %v3911_v39 = vadd.f32 %v3910_v25, %v3909_v36  ;;  %v4627_v25 = vld [vmem:[%s6030_s0 + $0x2cc] ss:$56 sps:$4 sm:$0xff]  }
 0x152   :  { %v3812_v34 = vpop.f32.mrf.mxu1  ;;  %2873 = vmatmul.mubr.bf16.gmra.mxu1 %v4607_v15  ;;  %v3912_v50 = vpop.f32.mrf.mxu0  ;;  %3018 = vmatmul.mubr.bf16.gmra.mxu0 %v4612_v16 }
 0x153   :  { %v2322_v38 = vadd.f32 %v3811_v33, %v2177_v6  ;;  %2880 = vmatprep.mubr.bf16.mxu1 %v4615_v23  ;;  %3588 = vmatprep.mubr.msk.bf16.mxu0 %vm2048_vm0, %v4616_v18  ;;  %v4624_v18 = vld [vmem:[%s6030_s0 + $0x260] ss:$56 sps:$4 sm:$0xff]   ;;  %v4628_v6 = vld [vmem:[%s6030_s0 + $0x2d4] ss:$56 sps:$4 sm:$0xff]  }
 0x154   :  { %v3813_v44 = vpop.f32.mrf.mxu1  ;;  %v3913_v14 = vpop.f32.mrf.mxu0 }
 0x155   :  { %v5638_v47 = vadd.f32 %v3911_v39, %v2322_v38  ;;  %v3814_v37 = vadd.f32 %v3813_v44, %v3812_v34  ;;  %v3914_v48 = vadd.f32 %v3913_v14, %v3912_v50 }
 0x156   :  { %v3815_v51 = vpop.f32.mrf.mxu1  ;;  %v3915_v59 = vpop.f32.mrf.mxu0 }
 0x157   :  { %v2327_v58 = vadd.f32 %v3814_v37, %v2182_v46 }
 0x158   :  { %v3816_v21 = vpop.f32.mrf.mxu1  ;;  %v3916_v62 = vpop.f32.mrf.mxu0 }
 0x159   :  { %v5654_v0 = vadd.f32 %v3914_v48, %v2327_v58  ;;  %v3817_v3 = vadd.f32 %v3816_v21, %v3815_v51  ;;  %v3917_v60 = vadd.f32 %v3916_v62, %v3915_v59  ;;  %v4625_v58 = vld [vmem:[%s6030_s0 + $0x2c8] ss:$56 sps:$4 sm:$0xff]   ;;  %v4634_v21 = vld [vmem:[%s6030_s0 + $0x344] ss:$56 sps:$4 sm:$0xff]  }
 0x15a   :  { %v3818_v4 = vpop.f32.mrf.mxu1  ;;  %2881 = vmatmul.mubr.bf16.gmra.mxu1 %v4613_v53  ;;  %v3918_v8 = vpop.f32.mrf.mxu0  ;;  %3026 = vmatmul.mubr.bf16.gmra.mxu0 %v4618_v56 }
 0x15b   :  { %v2330_v7 = vadd.f32 %v3817_v3, %v2185_v27  ;;  %2888 = vmatprep.mubr.bf16.mxu1 %v4621_v61  ;;  %3589 = vmatprep.mubr.msk.bf16.mxu0 %vm2048_vm0, %v4622_v20  ;;  %v4630_v61 = vld [vmem:[%s6030_s0 + $0x2d0] ss:$56 sps:$4 sm:$0xff]   ;;  %v4633_v20 = vld [vmem:[%s6030_s0 + $0x33c] ss:$56 sps:$4 sm:$0xff]  }
 0x15c   :  { %v3819_v12 = vpop.f32.mrf.mxu1  ;;  %v3919_v36 = vpop.f32.mrf.mxu0 }
 0x15d   :  { %v5657_v15 = vadd.f32 %v3917_v60, %v2330_v7  ;;  %v3820_v16 = vadd.f32 %v3819_v12, %v3818_v4  ;;  %v3920_v22 = vadd.f32 %v3919_v36, %v3918_v8 }
 0x15e   :  { %v3821_v23 = vpop.f32.mrf.mxu1  ;;  %v3921_v31 = vpop.f32.mrf.mxu0 }
 0x15f   :  { %v2335_v24 = vadd.f32 %v3820_v16, %v5362_v45 }
 0x160   :  { %v3822_v33 = vpop.f32.mrf.mxu1  ;;  %v3922_v39 = vpop.f32.mrf.mxu0 }
 0x161   :  { %v5672_v34 = vadd.f32 %v3920_v22, %v2335_v24  ;;  %v3823_v50 = vadd.f32 %v3822_v33, %v3821_v23  ;;  %v3923_v38 = vadd.f32 %v3922_v39, %v3921_v31  ;;  %v4636_v24 = vld [vmem:[%s6030_s0 + $0x340] ss:$56 sps:$4 sm:$0xff]  }
 0x162   :  { %v3824_v44 = vpop.f32.mrf.mxu1  ;;  %2889 = vmatmul.mubr.bf16.gmra.mxu1 %v4619_v40  ;;  %v3924_v14 = vpop.f32.mrf.mxu0  ;;  %3034 = vmatmul.mubr.bf16.gmra.mxu0 %v4624_v18  ;;  %v4631_v18 = vld [vmem:[%s6030_s0 + $0x338] ss:$56 sps:$4 sm:$0xff]  }
 0x163   :  { %v2338_v45 = vadd.f32 %v3823_v50, %v5377_v55  ;;  %2896 = vmatprep.mubr.bf16.mxu1 %v4627_v25  ;;  %3590 = vmatprep.mubr.msk.bf16.mxu0 %vm2048_vm0, %v4628_v6  ;;  %v4639_v25 = vld [vmem:[%s6030_s0 + $0x3ac] ss:$56 sps:$4 sm:$0xff]  }
 0x164   :  { %v3825_v46 = vpop.f32.mrf.mxu1  ;;  %v3925_v37 = vpop.f32.mrf.mxu0  ;;  %v4640_v6 = vld [vmem:[%s6030_s0 + $0x3b4] ss:$56 sps:$4 sm:$0xff]  }
 0x165   :  { %v5676_v48 = vadd.f32 %v3923_v38, %v2338_v45  ;;  %v3826_v51 = vadd.f32 %v3825_v46, %v3824_v44  ;;  %v3926_v59 = vadd.f32 %v3925_v37, %v3924_v14 }
 0x166   :  { %v3827_v53 = vpop.f32.mrf.mxu1  ;;  %v3927_v56 = vpop.f32.mrf.mxu0 }
 0x167   :  { %v2343_v55 = vadd.f32 %v3826_v51, %v5392_v1 }
 0x168   :  { %v3828_v62 = vpop.f32.mrf.mxu1  ;;  %v3928_v27 = vpop.f32.mrf.mxu0 }
 0x169   :  { %v5691_v3 = vadd.f32 %v3926_v59, %v2343_v55  ;;  %v3829_v60 = vadd.f32 %v3828_v62, %v3827_v53  ;;  %v3929_v4 = vadd.f32 %v3928_v27, %v3927_v56  ;;  %v4642_v55 = vld [vmem:[%s6030_s0 + $0x3b0] ss:$56 sps:$4 sm:$0xff]  }
 0x16a   :  { %v3830_v8 = vpop.f32.mrf.mxu1  ;;  %2897 = vmatmul.mubr.bf16.gmra.mxu1 %v4625_v58  ;;  %v3930_v7 = vpop.f32.mrf.mxu0  ;;  %3042 = vmatmul.mubr.bf16.gmra.mxu0 %v4630_v61  ;;  %v4637_v61 = vld [vmem:[%s6030_s0 + $0x3a8] ss:$56 sps:$4 sm:$0xff]  }
 0x16b   :  { %v2346_v1 = vadd.f32 %v3829_v60, %v5403_v9  ;;  %2904 = vmatprep.mubr.bf16.mxu1 %v4633_v20  ;;  %3591 = vmatprep.mubr.msk.bf16.mxu0 %vm2048_vm0, %v4634_v21  ;;  %v4645_v20 = vld [vmem:[%s6030_s0 + $0x41c] ss:$56 sps:$4 sm:$0xff]  }
 0x16c   :  { %v3831_v12 = vpop.f32.mrf.mxu1  ;;  %v3931_v36 = vpop.f32.mrf.mxu0  ;;  %v4646_v21 = vld [vmem:[%s6030_s0 + $0x424] ss:$56 sps:$4 sm:$0xff]  }
 0x16d   :  { %v5695_v16 = vadd.f32 %v3929_v4, %v2346_v1  ;;  %v3832_v22 = vadd.f32 %v3831_v12, %v3830_v8  ;;  %v3932_v23 = vadd.f32 %v3931_v36, %v3930_v7 }
 0x16e   :  { %v3833_v31 = vpop.f32.mrf.mxu1  ;;  %v3933_v40 = vpop.f32.mrf.mxu0 }
 0x16f   :  { %v2351_v9 = vadd.f32 %v3832_v22, %v5414_v19 }
 0x170   :  { %v3834_v33 = vpop.f32.mrf.mxu1  ;;  %v3934_v39 = vpop.f32.mrf.mxu0 }
 0x171   :  { %v5710_v50 = vadd.f32 %v3932_v23, %v2351_v9  ;;  %v3835_v38 = vadd.f32 %v3834_v33, %v3833_v31  ;;  %v3935_v44 = vadd.f32 %v3934_v39, %v3933_v40  ;;  %v4648_v9 = vld [vmem:[%s6030_s0 + $0x420] ss:$56 sps:$4 sm:$0xff]  }
 0x172   :  { %v3836_v14 = vpop.f32.mrf.mxu1  ;;  %2905 = vmatmul.mubr.bf16.gmra.mxu1 %v4631_v18  ;;  %v3936_v45 = vpop.f32.mrf.mxu0  ;;  %3050 = vmatmul.mubr.bf16.gmra.mxu0 %v4636_v24  ;;  %v4643_v24 = vld [vmem:[%s6030_s0 + $0x418] ss:$56 sps:$4 sm:$0xff]  }
 0x173   :  { %v2354_v19 = vadd.f32 %v3835_v38, %v5425_v30  ;;  %2912 = vmatprep.mubr.bf16.mxu1 %v4639_v25  ;;  %3592 = vmatprep.mubr.msk.bf16.mxu0 %vm2048_vm0, %v4640_v6  ;;  %v4651_v25 = vld [vmem:[%s6030_s0 + $0x48c] ss:$56 sps:$4 sm:$0xff]  }
 0x174   :  { %v3837_v46 = vpop.f32.mrf.mxu1  ;;  %v3937_v37 = vpop.f32.mrf.mxu0  ;;  %v4652_v6 = vld [vmem:[%s6030_s0 + $0x494] ss:$56 sps:$4 sm:$0xff]  }
 0x175   :  { %v5714_v51 = vadd.f32 %v3935_v44, %v2354_v19  ;;  %v3838_v59 = vadd.f32 %v3837_v46, %v3836_v14  ;;  %v3938_v53 = vadd.f32 %v3937_v37, %v3936_v45 }
 0x176   :  { %v3839_v56 = vpop.f32.mrf.mxu1  ;;  %v3939_v58 = vpop.f32.mrf.mxu0 }
 0x177   :  { %v2359_v30 = vadd.f32 %v3838_v59, %v5436_v43 }
 0x178   :  { %v3840_v62 = vpop.f32.mrf.mxu1  ;;  %v3940_v27 = vpop.f32.mrf.mxu0 }
 0x179   :  { %v5729_v60 = vadd.f32 %v3938_v53, %v2359_v30  ;;  %v3841_v4 = vadd.f32 %v3840_v62, %v3839_v56  ;;  %v3941_v8 = vadd.f32 %v3940_v27, %v3939_v58  ;;  %v4654_v30 = vld [vmem:[%s6030_s0 + $0x490] ss:$56 sps:$4 sm:$0xff]  }
 0x17a   :  { %v3842_v7 = vpop.f32.mrf.mxu1  ;;  %2913 = vmatmul.mubr.bf16.gmra.mxu1 %v4637_v61  ;;  %v3942_v1 = vpop.f32.mrf.mxu0  ;;  %3058 = vmatmul.mubr.bf16.gmra.mxu0 %v4642_v55  ;;  %v4649_v55 = vld [vmem:[%s6030_s0 + $0x488] ss:$56 sps:$4 sm:$0xff]  }
 0x17b   :  { %v2362_v43 = vadd.f32 %v3841_v4, %v5447_v54  ;;  %2920 = vmatprep.mubr.bf16.mxu1 %v4645_v20  ;;  %3593 = vmatprep.mubr.msk.bf16.mxu0 %vm2048_vm0, %v4646_v21  ;;  %v4657_v20 = vld [vmem:[%s6030_s0 + $0x4fc] ss:$56 sps:$4 sm:$0xff]  }
 0x17c   :  { %v3843_v12 = vpop.f32.mrf.mxu1  ;;  %v3943_v36 = vpop.f32.mrf.mxu0  ;;  %v4658_v21 = vld [vmem:[%s6030_s0 + $0x504] ss:$56 sps:$4 sm:$0xff]  }
 0x17d   :  { %v5733_v22 = vadd.f32 %v3941_v8, %v2362_v43  ;;  %v3844_v23 = vadd.f32 %v3843_v12, %v3842_v7  ;;  %v3944_v31 = vadd.f32 %v3943_v36, %v3942_v1 }
 0x17e   :  { %v3845_v40 = vpop.f32.mrf.mxu1  ;;  %v3945_v18 = vpop.f32.mrf.mxu0 }
 0x17f   :  { %v2367_v54 = vadd.f32 %v3844_v23, %v5458_v2 }
 0x180   :  { %v3846_v33 = vpop.f32.mrf.mxu1  ;;  %v3946_v39 = vpop.f32.mrf.mxu0 }
 0x181   :  { %v5748_v38 = vadd.f32 %v3944_v31, %v2367_v54  ;;  %v3847_v44 = vadd.f32 %v3846_v33, %v3845_v40  ;;  %v3947_v14 = vadd.f32 %v3946_v39, %v3945_v18  ;;  %v4660_v54 = vld [vmem:[%s6030_s0 + $0x500] ss:$56 sps:$4 sm:$0xff]  }
 0x182   :  { %v3848_v45 = vpop.f32.mrf.mxu1  ;;  %2921 = vmatmul.mubr.bf16.gmra.mxu1 %v4643_v24  ;;  %v3948_v19 = vpop.f32.mrf.mxu0  ;;  %3066 = vmatmul.mubr.bf16.gmra.mxu0 %v4648_v9  ;;  %v4655_v9 = vld [vmem:[%s6030_s0 + $0x4f8] ss:$56 sps:$4 sm:$0xff]  }
 0x183   :  { %v2370_v2 = vadd.f32 %v3847_v44, %v5469_v13  ;;  %2928 = vmatprep.mubr.bf16.mxu1 %v4651_v25  ;;  %3594 = vmatprep.mubr.msk.bf16.mxu0 %vm2048_vm0, %v4652_v6  ;;  %v4663_v25 = vld [vmem:[%s6030_s0 + $0x56c] ss:$56 sps:$4 sm:$0xff]  }
 0x184   :  { %v3849_v46 = vpop.f32.mrf.mxu1  ;;  %v3949_v37 = vpop.f32.mrf.mxu0  ;;  %v4664_v6 = vld [vmem:[%s6030_s0 + $0x574] ss:$56 sps:$4 sm:$0xff]  }
 0x185   :  { %v5752_v59 = vadd.f32 %v3947_v14, %v2370_v2  ;;  %v3850_v53 = vadd.f32 %v3849_v46, %v3848_v45  ;;  %v3950_v56 = vadd.f32 %v3949_v37, %v3948_v19 }
 0x186   :  { %v3851_v58 = vpop.f32.mrf.mxu1  ;;  %v3951_v61 = vpop.f32.mrf.mxu0 }
 0x187   :  { %v2375_v13 = vadd.f32 %v3850_v53, %v5480_v26 }
 0x188   :  { %v3852_v62 = vpop.f32.mrf.mxu1  ;;  %v3952_v27 = vpop.f32.mrf.mxu0 }
 0x189   :  { %v5767_v4 = vadd.f32 %v3950_v56, %v2375_v13  ;;  %v3853_v8 = vadd.f32 %v3852_v62, %v3851_v58  ;;  %v3953_v7 = vadd.f32 %v3952_v27, %v3951_v61  ;;  %v4666_v13 = vld [vmem:[%s6030_s0 + $0x570] ss:$56 sps:$4 sm:$0xff]  }
 0x18a   :  { %v3970_v1 = vpop.f32.mrf.mxu1  ;;  %2929 = vmatmul.mubr.bf16.gmra.mxu1 %v4649_v55  ;;  %v4070_v43 = vpop.f32.mrf.mxu0  ;;  %3074 = vmatmul.mubr.bf16.gmra.mxu0 %v4654_v30  ;;  %v4661_v30 = vld [vmem:[%s6030_s0 + $0x568] ss:$56 sps:$4 sm:$0xff]  }
 0x18b   :  { %v2378_v26 = vadd.f32 %v3853_v8, %v5491_v42  ;;  %2936 = vmatprep.mubr.bf16.mxu1 %v4657_v20  ;;  %3595 = vmatprep.mubr.msk.bf16.mxu0 %vm2048_vm0, %v4658_v21  ;;  %v4669_v20 = vld [vmem:[%s6030_s0 + $0x5dc] ss:$56 sps:$4 sm:$0xff]  }
 0x18c   :  { %v3971_v12 = vpop.f32.mrf.mxu1  ;;  %v4071_v36 = vpop.f32.mrf.mxu0  ;;  %v4670_v21 = vld [vmem:[%s6030_s0 + $0x5e4] ss:$56 sps:$4 sm:$0xff]  }
 0x18d   :  { %v5771_v23 = vadd.f32 %v3953_v7, %v2378_v26  ;;  %v3972_v31 = vadd.f32 %v3971_v12, %v3970_v1  ;;  %v4072_v40 = vadd.f32 %v4071_v36, %v4070_v43 }
 0x18e   :  { %v3973_v18 = vpop.f32.mrf.mxu1  ;;  %v4073_v24 = vpop.f32.mrf.mxu0 }
 0x18f   :  { %v2561_v42 = vadd.f32 %v3972_v31, %v5509_v11 }
 0x190   :  { %v3974_v33 = vpop.f32.mrf.mxu1  ;;  %v4074_v39 = vpop.f32.mrf.mxu0 }
 0x191   :  { %v5786_v44 = vadd.f32 %v4072_v40, %v2561_v42  ;;  %v3975_v14 = vadd.f32 %v3974_v33, %v3973_v18  ;;  %v4075_v45 = vadd.f32 %v4074_v39, %v4073_v24  ;;  %v4672_v42 = vld [vmem:[%s6030_s0 + $0x5e0] ss:$56 sps:$4 sm:$0xff]  }
 0x192   :  { %v3976_v19 = vpop.f32.mrf.mxu1  ;;  %2937 = vmatmul.mubr.bf16.gmra.mxu1 %v4655_v9  ;;  %v4076_v2 = vpop.f32.mrf.mxu0  ;;  %3082 = vmatmul.mubr.bf16.gmra.mxu0 %v4660_v54  ;;  %v4667_v54 = vld [vmem:[%s6030_s0 + $0x5d8] ss:$56 sps:$4 sm:$0xff]  }
 0x193   :  { %v2564_v11 = vadd.f32 %v3975_v14, %v5513_v17  ;;  %2944 = vmatprep.mubr.bf16.mxu1 %v4663_v25  ;;  %3596 = vmatprep.mubr.msk.bf16.mxu0 %vm2048_vm0, %v4664_v6 }
 0x194   :  { %v3977_v46 = vpop.f32.mrf.mxu1  ;;  %v4077_v37 = vpop.f32.mrf.mxu0 }
 0x195   :  { %v5790_v53 = vadd.f32 %v4075_v45, %v2564_v11  ;;  %v3978_v56 = vadd.f32 %v3977_v46, %v3976_v19  ;;  %v4078_v58 = vadd.f32 %v4077_v37, %v4076_v2 }
 0x196   :  { %v3979_v61 = vpop.f32.mrf.mxu1  ;;  %v4079_v55 = vpop.f32.mrf.mxu0 }
 0x197   :  { %v2569_v17 = vadd.f32 %v3978_v56, %v5529_v41 }
 0x198   :  { %v3980_v62 = vpop.f32.mrf.mxu1  ;;  %v4080_v27 = vpop.f32.mrf.mxu0 }
 0x199   :  { %v5805_v8 = vadd.f32 %v4078_v58, %v2569_v17  ;;  %v3981_v7 = vadd.f32 %v3980_v62, %v3979_v61  ;;  %v4081_v1 = vadd.f32 %v4080_v27, %v4079_v55 }
 0x19a   :  { %v3982_v43 = vpop.f32.mrf.mxu1  ;;  %2945 = vmatmul.mubr.bf16.gmra.mxu1 %v4661_v30  ;;  %v4082_v26 = vpop.f32.mrf.mxu0  ;;  %3090 = vmatmul.mubr.bf16.gmra.mxu0 %v4666_v13 }
 0x19b   :  { %v2572_v41 = vadd.f32 %v3981_v7, %v5533_v57  ;;  %2952 = vmatprep.mubr.bf16.mxu1 %v4669_v20  ;;  %3597 = vmatprep.mubr.msk.bf16.mxu0 %vm2048_vm0, %v4670_v21 }
 0x19c   :  { %v3983_v12 = vpop.f32.mrf.mxu1  ;;  %v4083_v36 = vpop.f32.mrf.mxu0 }
 0x19d   :  { %v5809_v31 = vadd.f32 %v4081_v1, %v2572_v41  ;;  %v3984_v40 = vadd.f32 %v3983_v12, %v3982_v43  ;;  %v4084_v18 = vadd.f32 %v4083_v36, %v4082_v26 }
 0x19e   :  { %v3985_v24 = vpop.f32.mrf.mxu1  ;;  %v4085_v9 = vpop.f32.mrf.mxu0 }
 0x19f   :  { %v2577_v57 = vadd.f32 %v3984_v40, %v5549_v10 }
 0x1a0   :  { %v3986_v25 = vpop.f32.mrf.mxu1  ;;  %v4086_v6 = vpop.f32.mrf.mxu0 }
 0x1a1   :  { %v5818_v33 = vadd.f32 %v4084_v18, %v2577_v57  ;;  %v3987_v39 = vadd.f32 %v3986_v25, %v3985_v24  ;;  %v4087_v14 = vadd.f32 %v4086_v6, %v4085_v9 }
 0x1a2   :  { %v3988_v45 = vpop.f32.mrf.mxu1  ;;  %2953 = vmatmul.mubr.bf16.gmra.mxu1 %v4667_v54  ;;  %v4088_v19 = vpop.f32.mrf.mxu0  ;;  %3098 = vmatmul.mubr.bf16.gmra.mxu0 %v4672_v42 }
 0x1a3   :  { %v2580_v2 = vadd.f32 %v3987_v39, %v5554_v28 }
 0x1a4   :  { %v3989_v11 = vpop.f32.mrf.mxu1  ;;  %v4089_v46 = vpop.f32.mrf.mxu0 }
 0x1a5   :  { %v5821_v37 = vadd.f32 %v4087_v14, %v2580_v2  ;;  %v3990_v56 = vadd.f32 %v3989_v11, %v3988_v45  ;;  %v4090_v58 = vadd.f32 %v4089_v46, %v4088_v19 }
 0x1a6   :  { %v3991_v61 = vpop.f32.mrf.mxu1  ;;  %v4091_v10 = vpop.f32.mrf.mxu0 }
 0x1a7   :  { %v2585_v55 = vadd.f32 %v3990_v56, %v5570_v49 }
 0x1a8   :  { %v3992_v30 = vpop.f32.mrf.mxu1  ;;  %v4092_v13 = vpop.f32.mrf.mxu0 }
 0x1a9   :  { %v5824_v17 = vadd.f32 %v4090_v58, %v2585_v55  ;;  %v3993_v20 = vadd.f32 %v3992_v30, %v3991_v61  ;;  %v4093_v21 = vadd.f32 %v4092_v13, %v4091_v10 }
 0x1aa   :  { %v3994_v62 = vpop.f32.mrf.mxu1  ;;  %v4094_v27 = vpop.f32.mrf.mxu0 }
 0x1ab   :  { %v2588_v28 = vadd.f32 %v3993_v20, %v5575_v63 }
 0x1ac   :  { %v3995_v7 = vpop.f32.mrf.mxu1  ;;  %v4095_v1 = vpop.f32.mrf.mxu0 }
 0x1ad   :  { %v5827_v43 = vadd.f32 %v4093_v21, %v2588_v28  ;;  %v3996_v26 = vadd.f32 %v3995_v7, %v3994_v62  ;;  %v4096_v41 = vadd.f32 %v4095_v1, %v4094_v27 }
 0x1ae   :  { %v3997_v12 = vpop.f32.mrf.mxu1  ;;  %v4097_v36 = vpop.f32.mrf.mxu0 }
 0x1af   :  { %v2593_v49 = vadd.f32 %v3996_v26, %v5591_v32 }
 0x1b0   :  { %v3998_v40 = vpop.f32.mrf.mxu1  ;;  %v4098_v18 = vpop.f32.mrf.mxu0 }
 0x1b1   :  { %v5830_v24 = vadd.f32 %v4096_v41, %v2593_v49  ;;  %v3999_v9 = vadd.f32 %v3998_v40, %v3997_v12  ;;  %v4099_v54 = vadd.f32 %v4098_v18, %v4097_v36 }
 0x1b2   :  { %v4000_v42 = vpop.f32.mrf.mxu1  ;;  %v4100_v57 = vpop.f32.mrf.mxu0 }
 0x1b3   :  { %v2596_v63 = vadd.f32 %v3999_v9, %v5596_v35 }
 0x1b4   :  { %v4001_v25 = vpop.f32.mrf.mxu1  ;;  %v4101_v6 = vpop.f32.mrf.mxu0 }
 0x1b5   :  { %v5833_v39 = vadd.f32 %v4099_v54, %v2596_v63  ;;  %v4002_v14 = vadd.f32 %v4001_v25, %v4000_v42  ;;  %v4102_v45 = vadd.f32 %v4101_v6, %v4100_v57 }
 0x1b6   :  { %v4003_v19 = vpop.f32.mrf.mxu1  ;;  %v4103_v2 = vpop.f32.mrf.mxu0 }
 0x1b7   :  { %v2601_v32 = vadd.f32 %v4002_v14, %v5612_v52 }
 0x1b8   :  { %v4004_v11 = vpop.f32.mrf.mxu1  ;;  %v4104_v46 = vpop.f32.mrf.mxu0 }
 0x1b9   :  { %v5836_v56 = vadd.f32 %v4102_v45, %v2601_v32  ;;  %v4005_v58 = vadd.f32 %v4004_v11, %v4003_v19  ;;  %v4105_v61 = vadd.f32 %v4104_v46, %v4103_v2 }
 0x1ba   :  { %v4006_v10 = vpop.f32.mrf.mxu1  ;;  %v4106_v55 = vpop.f32.mrf.mxu0 }
 0x1bb   :  { %v2604_v35 = vadd.f32 %v4005_v58, %v5617_v5 }
 0x1bc   :  { %v4007_v30 = vpop.f32.mrf.mxu1  ;;  %v4107_v13 = vpop.f32.mrf.mxu0 }
 0x1bd   :  { %v5839_v20 = vadd.f32 %v4105_v61, %v2604_v35  ;;  %v4008_v21 = vadd.f32 %v4007_v30, %v4006_v10  ;;  %v4108_v62 = vadd.f32 %v4107_v13, %v4106_v55 }
 0x1be   :  { %v4009_v27 = vpop.f32.mrf.mxu1  ;;  %v4109_v28 = vpop.f32.mrf.mxu0 }
 0x1bf   :  { %v2609_v52 = vadd.f32 %v4008_v21, %v5633_v29 }
 0x1c0   :  { %v4010_v7 = vpop.f32.mrf.mxu1  ;;  %v4110_v1 = vpop.f32.mrf.mxu0 }
 0x1c1   :  { %v5842_v26 = vadd.f32 %v4108_v62, %v2609_v52  ;;  %v4011_v41 = vadd.f32 %v4010_v7, %v4009_v27  ;;  %v4111_v12 = vadd.f32 %v4110_v1, %v4109_v28 }
 0x1c2   :  { %v4012_v36 = vpop.f32.mrf.mxu1  ;;  %v4112_v49 = vpop.f32.mrf.mxu0 }
 0x1c3   :  { %v2612_v5 = vadd.f32 %v4011_v41, %v5638_v47 }
 0x1c4   :  { %v4013_v40 = vpop.f32.mrf.mxu1  ;;  %v4113_v18 = vpop.f32.mrf.mxu0 }
 0x1c5   :  { %v5845_v9 = vadd.f32 %v4111_v12, %v2612_v5  ;;  %v4014_v54 = vadd.f32 %v4013_v40, %v4012_v36  ;;  %v4114_v42 = vadd.f32 %v4113_v18, %v4112_v49 }
 0x1c6   :  { %v4015_v57 = vpop.f32.mrf.mxu1  ;;  %v4115_v63 = vpop.f32.mrf.mxu0 }
 0x1c7   :  { %v2617_v29 = vadd.f32 %v4014_v54, %v5654_v0 }
 0x1c8   :  { %v4016_v25 = vpop.f32.mrf.mxu1  ;;  %v4116_v6 = vpop.f32.mrf.mxu0 }
 0x1c9   :  { %v5848_v14 = vadd.f32 %v4114_v42, %v2617_v29  ;;  %v4017_v45 = vadd.f32 %v4016_v25, %v4015_v57  ;;  %v4117_v19 = vadd.f32 %v4116_v6, %v4115_v63 }
 0x1ca   :  { %v4018_v2 = vpop.f32.mrf.mxu1  ;;  %v4118_v32 = vpop.f32.mrf.mxu0 }
 0x1cb   :  { %v2620_v47 = vadd.f32 %v4017_v45, %v5657_v15 }
 0x1cc   :  { %v4019_v11 = vpop.f32.mrf.mxu1  ;;  %v4119_v46 = vpop.f32.mrf.mxu0 }
 0x1cd   :  { %v5851_v58 = vadd.f32 %v4117_v19, %v2620_v47  ;;  %v4020_v61 = vadd.f32 %v4019_v11, %v4018_v2  ;;  %v4120_v10 = vadd.f32 %v4119_v46, %v4118_v32 }
 0x1ce   :  { %v4021_v55 = vpop.f32.mrf.mxu1  ;;  %v4121_v35 = vpop.f32.mrf.mxu0 }
 0x1cf   :  { %v2625_v0 = vadd.f32 %v4020_v61, %v5672_v34 }
 0x1d0   :  { %v4022_v30 = vpop.f32.mrf.mxu1  ;;  %v4122_v13 = vpop.f32.mrf.mxu0 }
 0x1d1   :  { %v5854_v21 = vadd.f32 %v4120_v10, %v2625_v0  ;;  %v4023_v62 = vadd.f32 %v4022_v30, %v4021_v55  ;;  %v4123_v27 = vadd.f32 %v4122_v13, %v4121_v35 }
 0x1d2   :  { %v4024_v28 = vpop.f32.mrf.mxu1  ;;  %v4124_v52 = vpop.f32.mrf.mxu0 }
 0x1d3   :  { %v2628_v15 = vadd.f32 %v4023_v62, %v5676_v48 }
 0x1d4   :  { %v4025_v7 = vpop.f32.mrf.mxu1  ;;  %v4125_v1 = vpop.f32.mrf.mxu0 }
 0x1d5   :  { %v5857_v41 = vadd.f32 %v4123_v27, %v2628_v15  ;;  %v4026_v12 = vadd.f32 %v4025_v7, %v4024_v28  ;;  %v4126_v36 = vadd.f32 %v4125_v1, %v4124_v52 }
 0x1d6   :  { %v4027_v49 = vpop.f32.mrf.mxu1  ;;  %v4127_v5 = vpop.f32.mrf.mxu0 }
 0x1d7   :  { %v2633_v34 = vadd.f32 %v4026_v12, %v5691_v3 }
 0x1d8   :  { %v4028_v40 = vpop.f32.mrf.mxu1  ;;  %v4128_v18 = vpop.f32.mrf.mxu0 }
 0x1d9   :  { %v5860_v54 = vadd.f32 %v4126_v36, %v2633_v34  ;;  %v4029_v42 = vadd.f32 %v4028_v40, %v4027_v49  ;;  %v4129_v57 = vadd.f32 %v4128_v18, %v4127_v5 }
 0x1da   :  { %v4030_v63 = vpop.f32.mrf.mxu1  ;;  %v4130_v29 = vpop.f32.mrf.mxu0 }
 0x1db   :  { %v2636_v48 = vadd.f32 %v4029_v42, %v5695_v16 }
 0x1dc   :  { %v4031_v25 = vpop.f32.mrf.mxu1  ;;  %v4131_v6 = vpop.f32.mrf.mxu0 }
 0x1dd   :  { %v5863_v45 = vadd.f32 %v4129_v57, %v2636_v48  ;;  %v4032_v19 = vadd.f32 %v4031_v25, %v4030_v63  ;;  %v4132_v2 = vadd.f32 %v4131_v6, %v4130_v29 }
 0x1de   :  { %v4033_v32 = vpop.f32.mrf.mxu1  ;;  %v4133_v47 = vpop.f32.mrf.mxu0 }
 0x1df   :  { %v2641_v3 = vadd.f32 %v4032_v19, %v5710_v50 }
 0x1e0   :  { %v4034_v11 = vpop.f32.mrf.mxu1  ;;  %v4134_v46 = vpop.f32.mrf.mxu0 }
 0x1e1   :  { %v5866_v61 = vadd.f32 %v4132_v2, %v2641_v3  ;;  %v4035_v10 = vadd.f32 %v4034_v11, %v4033_v32  ;;  %v4135_v55 = vadd.f32 %v4134_v46, %v4133_v47 }
 0x1e2   :  { %v4036_v35 = vpop.f32.mrf.mxu1  ;;  %v4136_v0 = vpop.f32.mrf.mxu0 }
 0x1e3   :  { %v2644_v16 = vadd.f32 %v4035_v10, %v5714_v51 }
 0x1e4   :  { %v4037_v30 = vpop.f32.mrf.mxu1  ;;  %v4137_v13 = vpop.f32.mrf.mxu0 }
 0x1e5   :  { %v5869_v62 = vadd.f32 %v4135_v55, %v2644_v16  ;;  %v4038_v27 = vadd.f32 %v4037_v30, %v4036_v35  ;;  %v4138_v28 = vadd.f32 %v4137_v13, %v4136_v0 }
 0x1e6   :  { %v4039_v52 = vpop.f32.mrf.mxu1  ;;  %v4139_v15 = vpop.f32.mrf.mxu0 }
 0x1e7   :  { %v2649_v50 = vadd.f32 %v4038_v27, %v5729_v60 }
 0x1e8   :  { %v4040_v7 = vpop.f32.mrf.mxu1  ;;  %v4140_v1 = vpop.f32.mrf.mxu0 }
 0x1e9   :  { %v5872_v12 = vadd.f32 %v4138_v28, %v2649_v50  ;;  %v4041_v36 = vadd.f32 %v4040_v7, %v4039_v52  ;;  %v4141_v49 = vadd.f32 %v4140_v1, %v4139_v15 }
 0x1ea   :  { %v4042_v5 = vpop.f32.mrf.mxu1  ;;  %v4142_v34 = vpop.f32.mrf.mxu0 }
 0x1eb   :  { %v2652_v51 = vadd.f32 %v4041_v36, %v5733_v22 }
 0x1ec   :  { %v4043_v40 = vpop.f32.mrf.mxu1  ;;  %v4143_v18 = vpop.f32.mrf.mxu0 }
 0x1ed   :  { %v5875_v42 = vadd.f32 %v4141_v49, %v2652_v51  ;;  %v4044_v57 = vadd.f32 %v4043_v40, %v4042_v5  ;;  %v4144_v63 = vadd.f32 %v4143_v18, %v4142_v34 }
 0x1ee   :  { %v4045_v29 = vpop.f32.mrf.mxu1  ;;  %v4145_v48 = vpop.f32.mrf.mxu0 }
 0x1ef   :  { %v2657_v60 = vadd.f32 %v4044_v57, %v5748_v38 }
 0x1f0   :  { %v4046_v25 = vpop.f32.mrf.mxu1  ;;  %v4146_v6 = vpop.f32.mrf.mxu0 }
 0x1f1   :  { %v5878_v19 = vadd.f32 %v4144_v63, %v2657_v60  ;;  %v4047_v2 = vadd.f32 %v4046_v25, %v4045_v29  ;;  %v4147_v32 = vadd.f32 %v4146_v6, %v4145_v48 }
 0x1f2   :  { %v4048_v47 = vpop.f32.mrf.mxu1  ;;  %v4148_v3 = vpop.f32.mrf.mxu0 }
 0x1f3   :  { %v2660_v22 = vadd.f32 %v4047_v2, %v5752_v59 }
 0x1f4   :  { %v4049_v11 = vpop.f32.mrf.mxu1  ;;  %v4149_v46 = vpop.f32.mrf.mxu0 }
 0x1f5   :  { %v5881_v10 = vadd.f32 %v4147_v32, %v2660_v22  ;;  %v4050_v55 = vadd.f32 %v4049_v11, %v4048_v47  ;;  %v4150_v35 = vadd.f32 %v4149_v46, %v4148_v3 }
 0x1f6   :  { %v4051_v0 = vpop.f32.mrf.mxu1  ;;  %v4151_v16 = vpop.f32.mrf.mxu0 }
 0x1f7   :  { %v2665_v38 = vadd.f32 %v4050_v55, %v5767_v4 }
 0x1f8   :  { %v4052_v30 = vpop.f32.mrf.mxu1  ;;  %v4152_v13 = vpop.f32.mrf.mxu0 }
 0x1f9   :  { %v5884_v27 = vadd.f32 %v4150_v35, %v2665_v38  ;;  %v4053_v28 = vadd.f32 %v4052_v30, %v4051_v0  ;;  %v4153_v52 = vadd.f32 %v4152_v13, %v4151_v16 }
 0x1fa   :  { %v4170_v15 = vpop.f32.mrf.mxu1  ;;  %v2995_v50 = vpop.f32.mrf.mxu0 }
 0x1fb   :  { %v2668_v59 = vadd.f32 %v4053_v28, %v5771_v23 }
 0x1fc   :  { %v4171_v7 = vpop.f32.mrf.mxu1  ;;  %v2997_v1 = vpop.f32.mrf.mxu0 }
 0x1fd   :  { %v5887_v36 = vadd.f32 %v4153_v52, %v2668_v59  ;;  %v4172_v49 = vadd.f32 %v4171_v7, %v4170_v15 }
 0x1fe   :  { %v4173_v5 = vpop.f32.mrf.mxu1  ;;  %v2998_v34 = vpop.f32.mrf.mxu0 }
 0x1ff   :  { %v2851_v51 = vadd.f32 %v4172_v49, %v5786_v44 }
 0x200   :  { %v4174_v4 = vpop.f32.mrf.mxu1  ;;  %v3000_v40 = vpop.f32.mrf.mxu0 }
 0x201   :  { %v2996_v18 = vadd.f32 %v2995_v50, %v2851_v51  ;;  %v4175_v57 = vadd.f32 %v4174_v4, %v4173_v5 }
 0x202   :  { %v4176_v63 = vpop.f32.mrf.mxu1  ;;  %v3003_v29 = vpop.f32.mrf.mxu0 }
 0x203   :  { %v3106_v48 = vmax.f32 %v2996_v18, 0.0  ;;  %v2854_v60 = vadd.f32 %v4175_v57, %v5790_v53 }
 0x204   :  { %v4177_v23 = vpop.f32.mrf.mxu1  ;;  %v3005_v25 = vpop.f32.mrf.mxu0 }
 0x205   :  { %v3626_v6 = vpack.c.bf16 %v3106_v48, %v3106_v48  ;;  %v2999_v2 = vadd.f32 %v2998_v34, %v2854_v60  ;;  %v4178_v32 = vadd.f32 %v4177_v23, %v4176_v63 }
 0x206   :  { %v4179_v47 = vpop.f32.mrf.mxu1  ;;  %v3006_v3 = vpop.f32.mrf.mxu0 }
 0x207   :  { %3247 = vst.msk [vmem:[%s6032_s3] sm:$0xf] %vm3246_vm1, %v3626_v6  ;;  %v3107_v44 = vmax.f32 %v2999_v2, 0.0  ;;  %v2859_v22 = vadd.f32 %v4178_v32, %v5805_v8 }
 0x208   :  { %v4180_v11 = vpop.f32.mrf.mxu1  ;;  %v3008_v46 = vpop.f32.mrf.mxu0 }
 0x209   :  { %v3627_v55 = vpack.c.bf16 %v3107_v44, %v3107_v44  ;;  %v3004_v53 = vadd.f32 %v3003_v29, %v2859_v22  ;;  %v4181_v35 = vadd.f32 %v4180_v11, %v4179_v47 }
 0x20a   :  { %v4182_v0 = vpop.f32.mrf.mxu1  ;;  %v3011_v16 = vpop.f32.mrf.mxu0 }
 0x20b   :  { %3248 = vst.msk [vmem:[%s6032_s3 + $0x4] sm:$0xf] %vm3246_vm1, %v3627_v55  ;;  %v3108_v38 = vmax.f32 %v3004_v53, 0.0  ;;  %v2862_v30 = vadd.f32 %v4181_v35, %v5809_v31 }
 0x20c   :  { %v4183_v13 = vpop.f32.mrf.mxu1  ;;  %v3013_v28 = vpop.f32.mrf.mxu0 }
 0x20d   :  { %v3628_v52 = vpack.c.bf16 %v3108_v38, %v3108_v38  ;;  %v3007_v15 = vadd.f32 %v3006_v3, %v2862_v30  ;;  %v4184_v8 = vadd.f32 %v4183_v13, %v4182_v0 }
 0x20e   :  { %v4185_v50 = vpop.f32.mrf.mxu1  ;;  %v3014_v59 = vpop.f32.mrf.mxu0 }
 0x20f   :  { %3249 = vst.msk [vmem:[%s6032_s3 + $0x8] sm:$0xf] %vm3246_vm1, %v3628_v52  ;;  %v3109_v7 = vmax.f32 %v3007_v15, 0.0  ;;  %v2867_v1 = vadd.f32 %v4184_v8, %v5818_v33 }
 0x210   :  { %v4186_v49 = vpop.f32.mrf.mxu1  ;;  %v3016_v5 = vpop.f32.mrf.mxu0 }
 0x211   :  { %v3629_v34 = vpack.c.bf16 %v3109_v7, %v3109_v7  ;;  %v3012_v51 = vadd.f32 %v3011_v16, %v2867_v1  ;;  %v4187_v31 = vadd.f32 %v4186_v49, %v4185_v50 }
 0x212   :  { %v4188_v4 = vpop.f32.mrf.mxu1  ;;  %v3019_v40 = vpop.f32.mrf.mxu0 }
 0x213   :  { %3250 = vst.msk [vmem:[%s6032_s3 + $0xc] sm:$0xf] %vm3246_vm1, %v3629_v34  ;;  %v3110_v18 = vmax.f32 %v3012_v51, 0.0  ;;  %v2870_v57 = vadd.f32 %v4187_v31, %v5821_v37 }
 0x214   :  { %v4189_v63 = vpop.f32.mrf.mxu1  ;;  %v3021_v29 = vpop.f32.mrf.mxu0 }
 0x215   :  { %v3630_v48 = vpack.c.bf16 %v3110_v18, %v3110_v18  ;;  %v3015_v60 = vadd.f32 %v3014_v59, %v2870_v57  ;;  %v4190_v33 = vadd.f32 %v4189_v63, %v4188_v4 }
 0x216   :  { %v4191_v23 = vpop.f32.mrf.mxu1  ;;  %v3022_v25 = vpop.f32.mrf.mxu0 }
 0x217   :  { %3251 = vst.msk [vmem:[%s6032_s3 + $0x10] sm:$0xf] %vm3246_vm1, %v3630_v48  ;;  %v3111_v6 = vmax.f32 %v3015_v60, 0.0  ;;  %v2875_v2 = vadd.f32 %v4190_v33, %v5824_v17 }
 0x218   :  { %v4192_v32 = vpop.f32.mrf.mxu1  ;;  %v3024_v47 = vpop.f32.mrf.mxu0 }
 0x219   :  { %v3631_v3 = vpack.c.bf16 %v3111_v6, %v3111_v6  ;;  %v3020_v44 = vadd.f32 %v3019_v40, %v2875_v2  ;;  %v4193_v37 = vadd.f32 %v4192_v32, %v4191_v23 }
 0x21a   :  { %v4194_v22 = vpop.f32.mrf.mxu1  ;;  %v3027_v11 = vpop.f32.mrf.mxu0 }
 0x21b   :  { %3252 = vst.msk [vmem:[%s6032_s3 + $0x14] sm:$0xf] %vm3246_vm1, %v3631_v3  ;;  %v3112_v46 = vmax.f32 %v3020_v44, 0.0  ;;  %v2878_v55 = vadd.f32 %v4193_v37, %v5827_v43 }
 0x21c   :  { %v4195_v53 = vpop.f32.mrf.mxu1  ;;  %v3029_v35 = vpop.f32.mrf.mxu0 }
 0x21d   :  { %v3632_v0 = vpack.c.bf16 %v3112_v46, %v3112_v46  ;;  %v3023_v16 = vadd.f32 %v3022_v25, %v2878_v55  ;;  %v4196_v17 = vadd.f32 %v4195_v53, %v4194_v22 }
 0x21e   :  { %v4197_v38 = vpop.f32.mrf.mxu1  ;;  %v3030_v30 = vpop.f32.mrf.mxu0 }
 0x21f   :  { %3253 = vst.msk [vmem:[%s6032_s3 + $0x18] sm:$0xf] %vm3246_vm1, %v3632_v0  ;;  %v3113_v13 = vmax.f32 %v3023_v16, 0.0  ;;  %v2883_v28 = vadd.f32 %v4196_v17, %v5830_v24 }
 0x220   :  { %v4198_v52 = vpop.f32.mrf.mxu1  ;;  %v3032_v15 = vpop.f32.mrf.mxu0 }
 0x221   :  { %v3633_v8 = vpack.c.bf16 %v3113_v13, %v3113_v13  ;;  %v3028_v50 = vadd.f32 %v3027_v11, %v2883_v28  ;;  %v4199_v43 = vadd.f32 %v4198_v52, %v4197_v38 }
 0x222   :  { %v4200_v59 = vpop.f32.mrf.mxu1  ;;  %v3035_v7 = vpop.f32.mrf.mxu0 }
 0x223   :  { %3254 = vst.msk [vmem:[%s6032_s3 + $0x1c] sm:$0xf] %vm3246_vm1, %v3633_v8  ;;  %v3114_v1 = vmax.f32 %v3028_v50, 0.0  ;;  %v2886_v49 = vadd.f32 %v4199_v43, %v5833_v39 }
 0x224   :  { %v4201_v5 = vpop.f32.mrf.mxu1  ;;  %v3037_v34 = vpop.f32.mrf.mxu0 }
 0x225   :  { %v3634_v51 = vpack.c.bf16 %v3114_v1, %v3114_v1  ;;  %v3031_v31 = vadd.f32 %v3030_v30, %v2886_v49  ;;  %v4202_v24 = vadd.f32 %v4201_v5, %v4200_v59 }
 0x226   :  { %v4203_v4 = vpop.f32.mrf.mxu1  ;;  %v3038_v40 = vpop.f32.mrf.mxu0 }
 0x227   :  { %3255 = vst.msk [vmem:[%s6032_s3 + $0x20] sm:$0xf] %vm3246_vm1, %v3634_v51  ;;  %v3115_v18 = vmax.f32 %v3031_v31, 0.0  ;;  %v2891_v57 = vadd.f32 %v4202_v24, %v5836_v56 }
 0x228   :  { %v4204_v63 = vpop.f32.mrf.mxu1  ;;  %v3040_v29 = vpop.f32.mrf.mxu0 }
 0x229   :  { %v3635_v48 = vpack.c.bf16 %v3115_v18, %v3115_v18  ;;  %v3036_v60 = vadd.f32 %v3035_v7, %v2891_v57  ;;  %v4205_v39 = vadd.f32 %v4204_v63, %v4203_v4 }
 0x22a   :  { %v4206_v33 = vpop.f32.mrf.mxu1  ;;  %v3043_v23 = vpop.f32.mrf.mxu0 }
 0x22b   :  { %3256 = vst.msk [vmem:[%s6032_s3 + $0x24] sm:$0xf] %vm3246_vm1, %v3635_v48  ;;  %v3116_v25 = vmax.f32 %v3036_v60, 0.0  ;;  %v2894_v6 = vadd.f32 %v4205_v39, %v5839_v20 }
 0x22c   :  { %v4207_v2 = vpop.f32.mrf.mxu1  ;;  %v3045_v32 = vpop.f32.mrf.mxu0 }
 0x22d   :  { %v3636_v47 = vpack.c.bf16 %v3116_v25, %v3116_v25  ;;  %v3039_v3 = vadd.f32 %v3038_v40, %v2894_v6  ;;  %v4208_v56 = vadd.f32 %v4207_v2, %v4206_v33 }
 0x22e   :  { %v4209_v44 = vpop.f32.mrf.mxu1  ;;  %v3046_v37 = vpop.f32.mrf.mxu0 }
 0x22f   :  { %3257 = vst.msk [vmem:[%s6032_s3 + $0x28] sm:$0xf] %vm3246_vm1, %v3636_v47  ;;  %v3117_v22 = vmax.f32 %v3039_v3, 0.0  ;;  %v2899_v11 = vadd.f32 %v4208_v56, %v5842_v26 }
 0x230   :  { %v4210_v46 = vpop.f32.mrf.mxu1  ;;  %v3048_v55 = vpop.f32.mrf.mxu0 }
 0x231   :  { %v3637_v53 = vpack.c.bf16 %v3117_v22, %v3117_v22  ;;  %v3044_v35 = vadd.f32 %v3043_v23, %v2899_v11  ;;  %v4211_v20 = vadd.f32 %v4210_v46, %v4209_v44 }
 0x232   :  { %v4212_v0 = vpop.f32.mrf.mxu1  ;;  %v3051_v16 = vpop.f32.mrf.mxu0 }
 0x233   :  { %3258 = vst.msk [vmem:[%s6032_s3 + $0x2c] sm:$0xf] %vm3246_vm1, %v3637_v53  ;;  %v3118_v17 = vmax.f32 %v3044_v35, 0.0  ;;  %v2902_v38 = vadd.f32 %v4211_v20, %v5845_v9 }
 0x234   :  { %v4213_v30 = vpop.f32.mrf.mxu1  ;;  %v3053_v13 = vpop.f32.mrf.mxu0 }
 0x235   :  { %v3638_v28 = vpack.c.bf16 %v3118_v17, %v3118_v17  ;;  %v3047_v52 = vadd.f32 %v3046_v37, %v2902_v38  ;;  %v4214_v26 = vadd.f32 %v4213_v30, %v4212_v0 }
 0x236   :  { %v4215_v15 = vpop.f32.mrf.mxu1  ;;  %v3054_v8 = vpop.f32.mrf.mxu0 }
 0x237   :  { %3259 = vst.msk [vmem:[%s6032_s3 + $0x30] sm:$0xf] %vm3246_vm1, %v3638_v28  ;;  %v3119_v50 = vmax.f32 %v3047_v52, 0.0  ;;  %v2907_v43 = vadd.f32 %v4214_v26, %v5848_v14 }
 0x238   :  { %v4216_v59 = vpop.f32.mrf.mxu1  ;;  %v3056_v7 = vpop.f32.mrf.mxu0 }
 0x239   :  { %v3639_v1 = vpack.c.bf16 %v3119_v50, %v3119_v50  ;;  %v3052_v49 = vadd.f32 %v3051_v16, %v2907_v43  ;;  %v4217_v9 = vadd.f32 %v4216_v59, %v4215_v15 }
 0x23a   :  { %v4218_v5 = vpop.f32.mrf.mxu1  ;;  %v3059_v34 = vpop.f32.mrf.mxu0 }
 0x23b   :  { %3260 = vst.msk [vmem:[%s6032_s3 + $0x34] sm:$0xf] %vm3246_vm1, %v3639_v1  ;;  %v3120_v51 = vmax.f32 %v3052_v49, 0.0  ;;  %v2910_v31 = vadd.f32 %v4217_v9, %v5851_v58 }
 0x23c   :  { %v4219_v24 = vpop.f32.mrf.mxu1  ;;  %v3061_v4 = vpop.f32.mrf.mxu0 }
 0x23d   :  { %v3640_v40 = vpack.c.bf16 %v3120_v51, %v3120_v51  ;;  %v3055_v18 = vadd.f32 %v3054_v8, %v2910_v31  ;;  %v4220_v14 = vadd.f32 %v4219_v24, %v4218_v5 }
 0x23e   :  { %v4221_v57 = vpop.f32.mrf.mxu1  ;;  %v3062_v63 = vpop.f32.mrf.mxu0 }
 0x23f   :  { %3261 = vst.msk [vmem:[%s6032_s3 + $0x38] sm:$0xf] %vm3246_vm1, %v3640_v40  ;;  %v3121_v29 = vmax.f32 %v3055_v18, 0.0  ;;  %v2915_v48 = vadd.f32 %v4220_v14, %v5854_v21 }
 0x240   :  { %v4222_v60 = vpop.f32.mrf.mxu1  ;;  %v3064_v39 = vpop.f32.mrf.mxu0 }
 0x241   :  { %v3641_v33 = vpack.c.bf16 %v3121_v29, %v3121_v29  ;;  %v3060_v23 = vadd.f32 %v3059_v34, %v2915_v48  ;;  %v4223_v58 = vadd.f32 %v4222_v60, %v4221_v57 }
 0x242   :  { %v4224_v25 = vpop.f32.mrf.mxu1  ;;  %v3067_v6 = vpop.f32.mrf.mxu0 }
 0x243   :  { %3262 = vst.msk [vmem:[%s6032_s3 + $0x3c] sm:$0xf] %vm3246_vm1, %v3641_v33  ;;  %v3122_v2 = vmax.f32 %v3060_v23, 0.0  ;;  %v2918_v32 = vadd.f32 %v4223_v58, %v5857_v41 }
 0x244   :  { %v4225_v47 = vpop.f32.mrf.mxu1  ;;  %v3069_v3 = vpop.f32.mrf.mxu0 }
 0x245   :  { %v3642_v56 = vpack.c.bf16 %v3122_v2, %v3122_v2  ;;  %v3063_v44 = vadd.f32 %v3062_v63, %v2918_v32  ;;  %v4226_v21 = vadd.f32 %v4225_v47, %v4224_v25 }
 0x246   :  { %v4227_v37 = vpop.f32.mrf.mxu1  ;;  %v3070_v22 = vpop.f32.mrf.mxu0 }
 0x247   :  { %3263 = vst.msk [vmem:[%s6032_s3 + $0x40] sm:$0xf] %vm3246_vm1, %v3642_v56  ;;  %v3123_v11 = vmax.f32 %v3063_v44, 0.0  ;;  %v2923_v46 = vadd.f32 %v4226_v21, %v5860_v54 }
 0x248   :  { %v4228_v55 = vpop.f32.mrf.mxu1  ;;  %v3072_v53 = vpop.f32.mrf.mxu0 }
 0x249   :  { %v3643_v35 = vpack.c.bf16 %v3123_v11, %v3123_v11  ;;  %v3068_v20 = vadd.f32 %v3067_v6, %v2923_v46  ;;  %v4229_v41 = vadd.f32 %v4228_v55, %v4227_v37 }
 0x24a   :  { %v4230_v0 = vpop.f32.mrf.mxu1  ;;  %v3075_v16 = vpop.f32.mrf.mxu0 }
 0x24b   :  { %3264 = vst.msk [vmem:[%s6032_s3 + $0x44] sm:$0xf] %vm3246_vm1, %v3643_v35  ;;  %v3124_v17 = vmax.f32 %v3068_v20, 0.0  ;;  %v2926_v38 = vadd.f32 %v4229_v41, %v5863_v45 }
 0x24c   :  { %v4231_v30 = vpop.f32.mrf.mxu1  ;;  %v3077_v13 = vpop.f32.mrf.mxu0 }
 0x24d   :  { %v3644_v28 = vpack.c.bf16 %v3124_v17, %v3124_v17  ;;  %v3071_v52 = vadd.f32 %v3070_v22, %v2926_v38  ;;  %v4232_v54 = vadd.f32 %v4231_v30, %v4230_v0 }
 0x24e   :  { %v4233_v26 = vpop.f32.mrf.mxu1  ;;  %v3078_v15 = vpop.f32.mrf.mxu0 }
 0x24f   :  { %3265 = vst.msk [vmem:[%s6032_s3 + $0x48] sm:$0xf] %vm3246_vm1, %v3644_v28  ;;  %v3125_v8 = vmax.f32 %v3071_v52, 0.0  ;;  %v2931_v50 = vadd.f32 %v4232_v54, %v5866_v61 }
 0x250   :  { %v4234_v43 = vpop.f32.mrf.mxu1  ;;  %v3080_v59 = vpop.f32.mrf.mxu0 }
 0x251   :  { %v3645_v7 = vpack.c.bf16 %v3125_v8, %v3125_v8  ;;  %v3076_v1 = vadd.f32 %v3075_v16, %v2931_v50  ;;  %v4235_v45 = vadd.f32 %v4234_v43, %v4233_v26 }
 0x252   :  { %v4236_v49 = vpop.f32.mrf.mxu1  ;;  %v3083_v9 = vpop.f32.mrf.mxu0 }
 0x253   :  { %3266 = vst.msk [vmem:[%s6032_s3 + $0x4c] sm:$0xf] %vm3246_vm1, %v3645_v7  ;;  %v3126_v5 = vmax.f32 %v3076_v1, 0.0  ;;  %v2934_v34 = vadd.f32 %v4235_v45, %v5869_v62 }
 0x254   :  { %v4237_v51 = vpop.f32.mrf.mxu1  ;;  %v3085_v31 = vpop.f32.mrf.mxu0 }
 0x255   :  { %v3646_v24 = vpack.c.bf16 %v3126_v5, %v3126_v5  ;;  %v3079_v4 = vadd.f32 %v3078_v15, %v2934_v34  ;;  %v4238_v61 = vadd.f32 %v4237_v51, %v4236_v49 }
 0x256   :  { %v4239_v40 = vpop.f32.mrf.mxu1  ;;  %v3086_v18 = vpop.f32.mrf.mxu0 }
 0x257   :  { %3267 = vst.msk [vmem:[%s6032_s3 + $0x50] sm:$0xf] %vm3246_vm1, %v3646_v24  ;;  %v3127_v14 = vmax.f32 %v3079_v4, 0.0  ;;  %v2939_v57 = vadd.f32 %v4238_v61, %v5872_v12 }
 0x258   :  { %v4240_v63 = vpop.f32.mrf.mxu1  ;;  %v3088_v29 = vpop.f32.mrf.mxu0 }
 0x259   :  { %v3647_v48 = vpack.c.bf16 %v3127_v14, %v3127_v14  ;;  %v3084_v60 = vadd.f32 %v3083_v9, %v2939_v57  ;;  %v4241_v62 = vadd.f32 %v4240_v63, %v4239_v40 }
 0x25a   :  { %v4242_v39 = vpop.f32.mrf.mxu1  ;;  %v3091_v33 = vpop.f32.mrf.mxu0 }
 0x25b   :  { %3268 = vst.msk [vmem:[%s6032_s3 + $0x54] sm:$0xf] %vm3246_vm1, %v3647_v48  ;;  %v3128_v23 = vmax.f32 %v3084_v60, 0.0  ;;  %v2942_v58 = vadd.f32 %v4241_v62, %v5875_v42 }
 0x25c   :  { %v4243_v25 = vpop.f32.mrf.mxu1  ;;  %v3093_v6 = vpop.f32.mrf.mxu0 }
 0x25d   :  { %v3648_v2 = vpack.c.bf16 %v3128_v23, %v3128_v23  ;;  %v3087_v32 = vadd.f32 %v3086_v18, %v2942_v58  ;;  %v4244_v12 = vadd.f32 %v4243_v25, %v4242_v39 }
 0x25e   :  { %v4245_v47 = vpop.f32.mrf.mxu1  ;;  %v3094_v3 = vpop.f32.mrf.mxu0 }
 0x25f   :  { %3269 = vst.msk [vmem:[%s6032_s3 + $0x58] sm:$0xf] %vm3246_vm1, %v3648_v2  ;;  %v3129_v56 = vmax.f32 %v3087_v32, 0.0  ;;  %v2947_v44 = vadd.f32 %v4244_v12, %v5878_v19 }
 0x260   :  { %v4246_v21 = vpop.f32.mrf.mxu1  ;;  %v3096_v37 = vpop.f32.mrf.mxu0 }
 0x261   :  { %v3649_v22 = vpack.c.bf16 %v3129_v56, %v3129_v56  ;;  %v3092_v11 = vadd.f32 %v3091_v33, %v2947_v44  ;;  %v4247_v42 = vadd.f32 %v4246_v21, %v4245_v47 }
 0x262   :  { %v4248_v46 = vpop.f32.mrf.mxu1  ;;  %v3099_v55 = vpop.f32.mrf.mxu0 }
 0x263   :  { %3270 = vst.msk [vmem:[%s6032_s3 + $0x5c] sm:$0xf] %vm3246_vm1, %v3649_v22  ;;  %v3130_v53 = vmax.f32 %v3092_v11, 0.0  ;;  %v2950_v35 = vadd.f32 %v4247_v42, %v5881_v10 }
 0x264   :  { %v4249_v20 = vpop.f32.mrf.mxu1  ;;  %v3101_v41 = vpop.f32.mrf.mxu0 }
 0x265   :  { %v3650_v0 = vpack.c.bf16 %v3130_v53, %v3130_v53  ;;  %v3095_v16 = vadd.f32 %v3094_v3, %v2950_v35  ;;  %v4250_v19 = vadd.f32 %v4249_v20, %v4248_v46 }
 0x266   :  { %v4251_v17 = vpop.f32.mrf.mxu1  ;;  %v3102_v38 = vpop.f32.mrf.mxu0 }
 0x267   :  { %3271 = vst.msk [vmem:[%s6032_s3 + $0x60] sm:$0xf] %vm3246_vm1, %v3650_v0  ;;  %v3131_v30 = vmax.f32 %v3095_v16, 0.0  ;;  %v2955_v13 = vadd.f32 %v4250_v19, %v5884_v27 }
 0x268   :  { %v4252_v28 = vpop.f32.mrf.mxu1  ;;  %v3104_v52 = vpop.f32.mrf.mxu0 }
 0x269   :  { %v3651_v54 = vpack.c.bf16 %v3131_v30, %v3131_v30  ;;  %v3100_v26 = vadd.f32 %v3099_v55, %v2955_v13  ;;  %v4253_v10 = vadd.f32 %v4252_v28, %v4251_v17 }
 0x26b   :  { %3272 = vst.msk [vmem:[%s6032_s3 + $0x64] sm:$0xf] %vm3246_vm1, %v3651_v54  ;;  %v3132_v15 = vmax.f32 %v3100_v26, 0.0  ;;  %v2958_v8 = vadd.f32 %v4253_v10, %v5887_v36 }
 0x26d   :  { %v3652_v50 = vpack.c.bf16 %v3132_v15, %v3132_v15  ;;  %v3103_v43 = vadd.f32 %v3102_v38, %v2958_v8 }
 0x26f   :  { %3273 = vst.msk [vmem:[%s6032_s3 + $0x68] sm:$0xf] %vm3246_vm1, %v3652_v50  ;;  %v3133_v27 = vmax.f32 %v3103_v43, 0.0 }
 0x271   :  { %v3653_v59 = vpack.c.bf16 %v3133_v27, %v3133_v27 }
 0x273   :  { %3274 = vst.msk [vmem:[%s6032_s3 + $0x6c] sm:$0xf] %vm3246_vm1, %v3653_v59 }

// kernel: _lambda_.20
= control target key start
LH: loop header
LB: loop body
LE: loop exit
PB: predicated region body
PF: predicated region fallthrough
CT: control target
= control target key end

     0   :  { %vm1024_vm0 = vcmask 523264   ;;  %vm1383_vm1 = vcmask 519168   ;;  %s2285_s1 = inlined_call_operand.vmem [shape: bf16[1728,64], index: 1, kind: input, shape index: {}]   ;;  %s2286_s0 = inlined_call_operand.vmem [shape: bf16[24,1728], index: 0, kind: input, shape index: {}]   ;;  %s2287_s2 = inlined_call_operand.vmem [shape: f32[1,64], index: 2, kind: input, shape index: {}]   ;;  %s2288_s3 = inlined_call_operand.vmem [shape: bf16[24,64], index: 3, kind: output, shape index: {}]  }
   0x1   :  { %v1705_v0 = vld [vmem:[%s2285_s1 + $0x78] sm:$0xff]   ;;  %v1707_v2 = vld [vmem:[%s2285_s1 + $0x70] sm:$0xff]   ;;  %v1709_v4 = vld [vmem:[%s2285_s1 + $0x68] sm:$0xff]  }
   0x2   :  { %v1706_v1 = vld [vmem:[%s2285_s1 + $0x38] sm:$0xff]   ;;  %1536 = vmatprep.subr.bf16.mxu1 %v1705_v0  ;;  %v1708_v3 = vld [vmem:[%s2285_s1 + $0x30] sm:$0xff]   ;;  %v1710_v5 = vld [vmem:[%s2285_s1 + $0x28] sm:$0xff]  }
   0x3   :  { %1537 = vmatpush3.bf16.msra.mxu1 %v1706_v1  ;;  %v1711_v6 = vld [vmem:[%s2285_s1 + $0x60] sm:$0xff]   ;;  %v1714_v7 = vld [vmem:[%s2285_s1 + $0x178] sm:$0xff]   ;;  %v1718_v11 = vld [vmem:[%s2285_s1 + $0x170] sm:$0xff]  }
   0x4   :  { %1538 = vmatprep.subr.bf16.mxu1 %v1707_v2  ;;  %v1712_v8 = vld [vmem:[%s2285_s1 + $0x20] sm:$0xff]   ;;  %1592 = vmatprep.subr.bf16.mxu0 %v1714_v7  ;;  %v1716_v9 = vld [vmem:[%s2285_s1 + $0x138] sm:$0xff]   ;;  %v1720_v13 = vld [vmem:[%s2285_s1 + $0x130] sm:$0xff]  }
   0x5   :  { %v1713_v10 = vld [vmem:[%s2285_s1 + $0x58] sm:$0xff]   ;;  %1593 = vmatpush3.bf16.msra.mxu0 %v1716_v9  ;;  %v1717_v14 = vld [vmem:[%s2285_s1 + $0x50] sm:$0xff]   ;;  %v1722_v15 = vld [vmem:[%s2285_s1 + $0x168] sm:$0xff]  }
   0x6   :  { %v1715_v12 = vld [vmem:[%s2285_s1 + $0x18] sm:$0xff]   ;;  %1594 = vmatprep.subr.bf16.mxu0 %v1718_v11  ;;  %v1719_v16 = vld [vmem:[%s2285_s1 + $0x10] sm:$0xff]   ;;  %v1724_v17 = vld [vmem:[%s2285_s1 + $0x128] sm:$0xff]  }
   0x7   :  { %1539 = vmatpush3.bf16.msra.mxu1 %v1708_v3  ;;  %v1721_v18 = vld [vmem:[%s2285_s1 + $0x48] sm:$0xff]   ;;  %v1726_v19 = vld [vmem:[%s2285_s1 + $0x160] sm:$0xff]   ;;  %v1733_v25 = vld [vmem:[%s2285_s1 + $0x158] sm:$0xff]  }
   0x8   :  { %1540 = vmatprep.subr.bf16.mxu1 %v1709_v4  ;;  %v1723_v20 = vld [vmem:[%s2285_s1 + $0x8] sm:$0xff]   ;;  %v1728_v21 = vld [vmem:[%s2285_s1 + $0x120] sm:$0xff]   ;;  %v1732_v27 = vld [vmem:[%s2285_s1 + $0xf8] sm:$0xff]  }
   0x9   :  { %1595 = vmatpush3.bf16.msra.mxu0 %v1720_v13  ;;  %v1725_v22 = vld [vmem:[%s2285_s1 + $0x40] sm:$0xff]   ;;  %v1735_v28 = vld [vmem:[%s2285_s1 + $0x118] sm:$0xff]   ;;  %v1737_v30 = vld [vmem:[%s2285_s1 + $0x150] sm:$0xff]  }
   0xa   :  { %1596 = vmatprep.subr.bf16.mxu0 %v1722_v15  ;;  %v1731_v23 = vld [vmem:[%s2286_s0 + $0x4] ss:$56 sps:$4 sm:$0xff]   ;;  %v1729_v26 = vld [vmem:[%s2286_s0] ss:$56 sps:$4 sm:$0xff]   ;;  %v1736_v31 = vld [vmem:[%s2285_s1 + $0xf0] sm:$0xff]  }
   0xb   :  { %1541 = vmatpush3.bf16.msra.mxu1 %v1710_v5  ;;  %v1727_v24 = vld [vmem:[%s2285_s1] sm:$0xff]   ;;  %1063 = vmatprep.mubr.bf16.mxu1 %v1731_v23  ;;  %v1734_v29 = vld [vmem:[%s2285_s1 + $0xb8] sm:$0xff]   ;;  %v1739_v32 = vld [vmem:[%s2285_s1 + $0x110] sm:$0xff]  }
   0xc   :  { %1542 = vmatprep.subr.bf16.mxu1 %v1711_v6  ;;  %v1738_v33 = vld [vmem:[%s2285_s1 + $0xb0] sm:$0xff]   ;;  %v1741_v34 = vld [vmem:[%s2285_s1 + $0x148] sm:$0xff]   ;;  %v1745_v38 = vld [vmem:[%s2285_s1 + $0x140] sm:$0xff]  }
   0xd   :  { %1597 = vmatpush3.bf16.msra.mxu0 %v1724_v17  ;;  %v1740_v35 = vld [vmem:[%s2285_s1 + $0xe8] sm:$0xff]   ;;  %v1744_v39 = vld [vmem:[%s2285_s1 + $0xe0] sm:$0xff]   ;;  %v1748_v42 = vld [vmem:[%s2285_s1 + $0xd8] sm:$0xff]  }
   0xe   :  { %1598 = vmatprep.subr.bf16.mxu0 %v1726_v19  ;;  %v1743_v36 = vld [vmem:[%s2285_s1 + $0x108] sm:$0xff]   ;;  %v1746_v40 = vld [vmem:[%s2285_s1 + $0xa0] sm:$0xff]   ;;  %v1752_v45 = vld [vmem:[%s2285_s1 + $0x278] sm:$0xff]  }
   0xf   :  { %1543 = vmatpush3.bf16.msra.mxu1 %v1712_v8  ;;  %v1742_v37 = vld [vmem:[%s2285_s1 + $0xa8] sm:$0xff]   ;;  %v1747_v41 = vld [vmem:[%s2285_s1 + $0x100] sm:$0xff]   ;;  %v1753_v46 = vld [vmem:[%s2285_s1 + $0x98] sm:$0xff]  }
  0x10   :  { %1544 = vmatprep.subr.bf16.mxu1 %v1713_v10  ;;  %v1749_v43 = vld [vmem:[%s2286_s0 + $0x10] ss:$56 sps:$4 sm:$0xff]   ;;  %v1751_v44 = vld [vmem:[%s2286_s0 + $0x14] ss:$56 sps:$4 sm:$0xff]   ;;  %v1754_v47 = vld [vmem:[%s2285_s1 + $0x238] sm:$0xff]  }
  0x11   :  { %1599 = vmatpush3.bf16.msra.mxu0 %v1728_v21  ;;  %1159 = vmatprep.mubr.bf16.mxu0 %v1751_v44  ;;  %v29_v48 = vld [vmem:[%s2286_s0 + $0x70] sm:$0xff]  ;;  %v1761_v55 = vld [vmem:[%s2285_s1 + $0xc8] sm:$0xff]   ;;  %v1765_v59 = vld [vmem:[%s2285_s1 + $0xc0] sm:$0xff]  }
  0x12   :  { %1600 = vmatprep.subr.bf16.mxu0 %v1733_v25  ;;  %v1407_v49 = vcombine.high %v29_v48, %v29_v48  ;;  %v1406_v50 = vcombine.low %v29_v48, %v29_v48  ;;  %v1757_v51 = vld [vmem:[%s2285_s1 + $0xd0] sm:$0xff]   ;;  %v1762_v56 = vld [vmem:[%s2285_s1 + $0x268] sm:$0xff]   ;;  %v1766_v60 = vld [vmem:[%s2285_s1 + $0x260] sm:$0xff]  }
  0x13   :  { %1545 = vmatpush3.bf16.msra.mxu1 %v1715_v12  ;;  %v1758_v52 = vld [vmem:[%s2285_s1 + $0x270] sm:$0xff]   ;;  %v1763_v57 = vld [vmem:[%s2285_s1 + $0x88] sm:$0xff]   ;;  %v1768_v61 = vld [vmem:[%s2285_s1 + $0x220] sm:$0xff]  }
  0x14   :  { %1546 = vmatprep.subr.bf16.mxu1 %v1717_v14  ;;  %v1759_v53 = vld [vmem:[%s2285_s1 + $0x90] sm:$0xff]   ;;  %v1764_v58 = vld [vmem:[%s2285_s1 + $0x228] sm:$0xff]   ;;  %v1767_v62 = vld [vmem:[%s2285_s1 + $0x80] sm:$0xff]  }
  0x15   :  { %1601 = vmatpush3.bf16.msra.mxu0 %v1735_v28  ;;  %v1760_v54 = vld [vmem:[%s2285_s1 + $0x230] sm:$0xff]   ;;  %v1769_v63 = vld [vmem:[%s2286_s0 + $0x8] ss:$56 sps:$4 sm:$0xff]   ;;  %v1771_v0 = vld [vmem:[%s2286_s0 + $0xc] ss:$56 sps:$4 sm:$0xff]  }
  0x16   :  { %1602 = vmatprep.subr.bf16.mxu0 %v1737_v30  ;;  %v1772_v1 = vld [vmem:[%s2285_s1 + $0x1f8] sm:$0xff]   ;;  %v1776_v5 = vld [vmem:[%s2285_s1 + $0x1f0] sm:$0xff]   ;;  %v31_v10 = vld [vmem:[%s2286_s0 + $0x80] sm:$0xff] }
  0x17   :  { %1547 = vmatpush3.bf16.msra.mxu1 %v1719_v16  ;;  %v1773_v2 = vld [vmem:[%s2285_s1 + $0x258] sm:$0xff]   ;;  %v1777_v6 = vld [vmem:[%s2285_s1 + $0x250] sm:$0xff]   ;;  %v1411_v12 = vcombine.high %v31_v10, %v31_v10  ;;  %v1783_v13 = vld [vmem:[%s2285_s1 + $0x1e8] sm:$0xff]   ;;  %v1410_v14 = vcombine.low %v31_v10, %v31_v10 }
  0x18   :  { %1548 = vmatprep.subr.bf16.mxu1 %v1721_v18  ;;  %v1774_v3 = vld [vmem:[%s2285_s1 + $0x1b8] sm:$0xff]   ;;  %v1778_v7 = vld [vmem:[%s2285_s1 + $0x1b0] sm:$0xff]   ;;  %v1784_v16 = vld [vmem:[%s2285_s1 + $0x248] sm:$0xff]  }
  0x19   :  { %1603 = vmatpush3.bf16.msra.mxu0 %v1739_v32  ;;  %v1775_v4 = vld [vmem:[%s2285_s1 + $0x218] sm:$0xff]   ;;  %v1779_v8 = vld [vmem:[%s2285_s1 + $0x210] sm:$0xff]   ;;  %v1786_v17 = vld [vmem:[%s2285_s1 + $0x1a8] sm:$0xff]  }
  0x1a   :  { %1604 = vmatprep.subr.bf16.mxu0 %v1741_v34  ;;  %v30_v9 = vld [vmem:[%s2286_s0 + $0x78] sm:$0xff]  ;;  %v1787_v18 = vld [vmem:[%s2285_s1 + $0x208] sm:$0xff]   ;;  %v1788_v19 = vld [vmem:[%s2285_s1 + $0x1e0] sm:$0xff]  }
  0x1b   :  { %1549 = vmatpush3.bf16.msra.mxu1 %v1723_v20  ;;  %v1409_v11 = vcombine.high %v30_v9, %v30_v9  ;;  %v1408_v15 = vcombine.low %v30_v9, %v30_v9  ;;  %v1789_v20 = vld [vmem:[%s2285_s1 + $0x240] sm:$0xff]   ;;  %v1792_v23 = vld [vmem:[%s2285_s1 + $0x1d8] sm:$0xff]   ;;  %v1799_v30 = vld [vmem:[%s2285_s1 + $0x190] sm:$0xff]  }
  0x1c   :  { %1550 = vmatprep.subr.bf16.mxu1 %v1725_v22  ;;  %v1790_v21 = vld [vmem:[%s2285_s1 + $0x1a0] sm:$0xff]   ;;  %v1797_v28 = vld [vmem:[%s2285_s1 + $0x338] sm:$0xff]   ;;  %v1801_v32 = vld [vmem:[%s2285_s1 + $0x1c8] sm:$0xff]  }
  0x1d   :  { %1605 = vmatpush3.bf16.msra.mxu0 %v1743_v36  ;;  %v1791_v22 = vld [vmem:[%s2285_s1 + $0x200] sm:$0xff]   ;;  %v1803_v34 = vld [vmem:[%s2285_s1 + $0x328] sm:$0xff]   ;;  %v1814_v44 = vld [vmem:[%s2285_s1 + $0x2b0] sm:$0xff]  }
  0x1e   :  { %1606 = vmatprep.subr.bf16.mxu0 %v1745_v38  ;;  %v1795_v25 = vld [vmem:[%s2286_s0 + $0x24] ss:$56 sps:$4 sm:$0xff]   ;;  %v33_v48 = vld [vmem:[%s2286_s0 + $0x90] sm:$0xff]  ;;  %v1838_v10 = vld [vmem:[%s2286_s0 + $0x28] ss:$56 sps:$4 sm:$0xff]  }
  0x1f   :  { %1551 = vmatpush3.bf16.msra.mxu1 %v1727_v24  ;;  %v1793_v24 = vld [vmem:[%s2286_s0 + $0x20] ss:$56 sps:$4 sm:$0xff]   ;;  %v1809_v38 = vld [vmem:[%s2286_s0 + $0x1c] ss:$56 sps:$4 sm:$0xff]  }
  0x20   :  { %1564 = vmatprep.subr.bf16.mxu1 %v1732_v27  ;;  %v1796_v27 = vld [vmem:[%s2285_s1 + $0x198] sm:$0xff]   ;;  %v1805_v36 = vld [vmem:[%s2285_s1 + $0x180] sm:$0xff]  }
  0x21   :  { %1607 = vmatpush3.bf16.msra.mxu0 %v1747_v41  ;;  %v1811_v41 = vld [vmem:[%s2285_s1 + $0x2b8] sm:$0xff]   ;;  %v35_v9 = vld [vmem:[%s2286_s0 + $0xa0] sm:$0xff] }
  0x22   :  { %1064 = vmatmul.mubr.bf16.vlgmr.msra.gmra.mxu1 %v1729_v26  ;;  %1648 = vmatprep.subr.bf16.mxu0 %v1752_v45  ;;  %v1848_v26 = vmov 0   ;;  %v32_v45 = vld [vmem:[%s2286_s0 + $0x88] sm:$0xff] }
  0x23   :  { %1565 = vmatpush3.bf16.msra.mxu1 %v1734_v29  ;;  %1071 = vmatprep.mubr.bf16.mxu1 %v1407_v49  ;;  %v1798_v29 = vld [vmem:[%s2285_s1 + $0x1d0] sm:$0xff]   ;;  %v1818_v49 = vld [vmem:[%s2285_s1 + $0x2e8] sm:$0xff]  }
  0x24   :  { %1566 = vmatprep.subr.bf16.mxu1 %v1736_v31  ;;  %1160 = vmatmul.mubr.bf16.vlgmr.msra.gmra.mxu0 %v1749_v43  ;;  %v1800_v31 = vld [vmem:[%s2285_s1 + $0x330] sm:$0xff]  }
  0x25   :  { %1649 = vmatpush3.bf16.msra.mxu0 %v1754_v47  ;;  %1167 = vmatprep.mubr.bf16.mxu0 %v1411_v12  ;;  %v1813_v43 = vld [vmem:[%s2285_s1 + $0x2f0] sm:$0xff]   ;;  %v1413_v47 = vcombine.high %v32_v45, %v32_v45 }
  0x26   :  { %1650 = vmatprep.subr.bf16.mxu0 %v1758_v52  ;;  %v1412_v52 = vcombine.low %v32_v45, %v32_v45 }
  0x27   :  { %1567 = vmatpush3.bf16.msra.mxu1 %v1738_v33  ;;  %v1802_v33 = vld [vmem:[%s2285_s1 + $0x188] sm:$0xff]  }
  0x28   :  { %1568 = vmatprep.subr.bf16.mxu1 %v1740_v35  ;;  %v1804_v35 = vld [vmem:[%s2285_s1 + $0x1c0] sm:$0xff]  }
  0x29   :  { %1651 = vmatpush3.bf16.msra.mxu0 %v1760_v54  ;;  %v1821_v54 = vld [vmem:[%s2285_s1 + $0x308] sm:$0xff]  }
  0x2a   :  { %1072 = vmatmul.mubr.bf16.gmra.mxu1 %v1406_v50  ;;  %1652 = vmatprep.subr.bf16.mxu0 %v1762_v56  ;;  %v1415_v50 = vcombine.high %v33_v48, %v33_v48  ;;  %v1824_v56 = vld [vmem:[%s2285_s1 + $0x2a0] sm:$0xff]  }
  0x2b   :  { %1569 = vmatpush3.bf16.msra.mxu1 %v1742_v37  ;;  %1111 = vmatprep.mubr.bf16.mxu1 %v1771_v0  ;;  %v1806_v37 = vld [vmem:[%s2285_s1 + $0x320] sm:$0xff]   ;;  %v1832_v0 = vld [vmem:[%s2285_s1 + $0x2c8] sm:$0xff]  }
  0x2c   :  { %1570 = vmatprep.subr.bf16.mxu1 %v1744_v39  ;;  %1168 = vmatmul.mubr.bf16.gmra.mxu0 %v1410_v14  ;;  %v1810_v39 = vld [vmem:[%s2285_s1 + $0x2f8] sm:$0xff]  }
  0x2d   :  { %1653 = vmatpush3.bf16.msra.mxu0 %v1764_v58  ;;  %1255 = vmatprep.mubr.bf16.mxu0 %v1795_v25  ;;  %v1826_v58 = vld [vmem:[%s2285_s1 + $0x2d8] sm:$0xff]  }
  0x2e   :  { %1654 = vmatprep.subr.bf16.mxu0 %v1766_v60  ;;  %v1828_v60 = vld [vmem:[%s2285_s1 + $0x358] sm:$0xff]  }
  0x2f   :  { %1571 = vmatpush3.bf16.msra.mxu1 %v1746_v40  ;;  %v1807_v40 = vld [vmem:[%s2286_s0 + $0x18] ss:$56 sps:$4 sm:$0xff]  }
  0x30   :  { %1572 = vmatprep.subr.bf16.mxu1 %v1748_v42  ;;  %v1812_v42 = vld [vmem:[%s2285_s1 + $0x318] sm:$0xff]  }
  0x31   :  { %1655 = vmatpush3.bf16.msra.mxu0 %v1768_v61  ;;  %v1829_v61 = vld [vmem:[%s2285_s1 + $0x2d0] sm:$0xff]  }
  0x32   :  { %1656 = vmatprep.subr.bf16.mxu0 %v1773_v2  ;;  %v1843_v2 = vld [vmem:[%s2286_s0 + $0x34] ss:$56 sps:$4 sm:$0xff]  }
  0x33   :  { %1573 = vmatpush3.bf16.msra.mxu1 %v1753_v46  ;;  %v1815_v46 = vld [vmem:[%s2285_s1 + $0x310] sm:$0xff]  }
  0x34   :  { %1574 = vmatprep.subr.bf16.mxu1 %v1757_v51  ;;  %v1414_v51 = vcombine.low %v33_v48, %v33_v48 }
  0x35   :  { %1657 = vmatpush3.bf16.msra.mxu0 %v1775_v4  ;;  %v1834_v4 = vld [vmem:[%s2285_s1 + $0x348] sm:$0xff]  }
  0x36   :  { %1658 = vmatprep.subr.bf16.mxu0 %v1777_v6  ;;  %v1836_v6 = vld [vmem:[%s2285_s1 + $0x280] sm:$0xff]  }
  0x37   :  { %1575 = vmatpush3.bf16.msra.mxu1 %v1759_v53  ;;  %v1820_v53 = vld [vmem:[%s2285_s1 + $0x2a8] sm:$0xff]  }
  0x38   :  { %1576 = vmatprep.subr.bf16.mxu1 %v1761_v55  ;;  %v1823_v55 = vld [vmem:[%s2285_s1 + $0x2e0] sm:$0xff]  }
  0x39   :  { %1659 = vmatpush3.bf16.msra.mxu0 %v1779_v8  ;;  %v34_v8 = vld [vmem:[%s2286_s0 + $0x98] sm:$0xff] }
  0x3a   :  { %1660 = vmatprep.subr.bf16.mxu0 %v1784_v16  ;;  %v1417_v12 = vcombine.high %v34_v8, %v34_v8  ;;  %v1416_v14 = vcombine.low %v34_v8, %v34_v8 }
  0x3b   :  { %1577 = vmatpush3.bf16.msra.mxu1 %v1763_v57  ;;  %v1825_v57 = vld [vmem:[%s2285_s1 + $0x300] sm:$0xff]  }
  0x3c   :  { %1578 = vmatprep.subr.bf16.mxu1 %v1765_v59  ;;  %v1827_v59 = vld [vmem:[%s2285_s1 + $0x298] sm:$0xff]  }
  0x3d   :  { %1661 = vmatpush3.bf16.msra.mxu0 %v1787_v18 }
  0x3e   :  { %1662 = vmatprep.subr.bf16.mxu0 %v1789_v20 }
  0x3f   :  { %1579 = vmatpush3.bf16.msra.mxu1 %v1767_v62  ;;  %v1830_v62 = vld [vmem:[%s2285_s1 + $0x290] sm:$0xff]  }
  0x40   :  { %1620 = vmatprep.subr.bf16.mxu1 %v1772_v1  ;;  %v1840_v1 = vld [vmem:[%s2286_s0 + $0x2c] ss:$56 sps:$4 sm:$0xff]  }
  0x41   :  { %1663 = vmatpush3.bf16.msra.mxu0 %v1791_v22 }
  0x42   :  { %1112 = vmatmul.mubr.bf16.vlgmr.msra.gmra.mxu1 %v1769_v63  ;;  %1319 = vmatprep.subr.bf16.mxu0 %v1848_v26  ;;  %v1831_v63 = vld [vmem:[%s2285_s1 + $0x350] sm:$0xff]  }
  0x43   :  { %1621 = vmatpush3.bf16.msra.mxu1 %v1774_v3  ;;  %1119 = vmatprep.mubr.bf16.mxu1 %v1409_v11  ;;  %v1833_v3 = vld [vmem:[%s2285_s1 + $0x288] sm:$0xff]  }
  0x44   :  { %1622 = vmatprep.subr.bf16.mxu1 %v1776_v5  ;;  %1256 = vmatmul.mubr.bf16.vlgmr.msra.gmra.mxu0 %v1793_v24  ;;  %v1835_v5 = vld [vmem:[%s2285_s1 + $0x2c0] sm:$0xff]   ;;  %v1841_v11 = vld [vmem:[%s2286_s0 + $0x30] ss:$56 sps:$4 sm:$0xff]  }
  0x45   :  { %1320 = vmatpush1.bf16.msra.mxu0 %v1797_v28  ;;  %1263 = vmatprep.mubr.bf16.mxu0 %v1415_v50 }
  0x46   :  { %1321 = vmatprep.subr.bf16.mxu0 %v1848_v26 }
  0x47   :  { %1623 = vmatpush3.bf16.msra.mxu1 %v1778_v7  ;;  %v1837_v7 = vld [vmem:[%s2285_s1 + $0x340] sm:$0xff]  }
  0x48   :  { %1624 = vmatprep.subr.bf16.mxu1 %v1783_v13  ;;  %v1419_v13 = vcombine.high %v35_v9, %v35_v9 }
  0x49   :  { %1322 = vmatpush1.bf16.msra.mxu0 %v1800_v31 }
  0x4a   :  { %1120 = vmatmul.mubr.bf16.gmra.mxu1 %v1408_v15  ;;  %1323 = vmatprep.subr.bf16.mxu0 %v1848_v26  ;;  %v1418_v15 = vcombine.low %v35_v9, %v35_v9 }
  0x4b   :  { %1625 = vmatpush3.bf16.msra.mxu1 %v1786_v17  ;;  %1207 = vmatprep.mubr.bf16.mxu1 %v1809_v38 }
  0x4c   :  { %1626 = vmatprep.subr.bf16.mxu1 %v1788_v19  ;;  %1264 = vmatmul.mubr.bf16.gmra.mxu0 %v1414_v51 }
  0x4d   :  { %1324 = vmatpush1.bf16.msra.mxu0 %v1803_v34  ;;  %1528 = vmatprep.mubr.msk.bf16.mxu0 %vm1024_vm0, %v1843_v2 }
  0x4e   :  { %1325 = vmatprep.subr.bf16.mxu0 %v1848_v26 }
  0x4f   :  { %1627 = vmatpush3.bf16.msra.mxu1 %v1790_v21 }
  0x50   :  { %1628 = vmatprep.subr.bf16.mxu1 %v1792_v23 }
  0x51   :  { %1326 = vmatpush1.bf16.msra.mxu0 %v1806_v37 }
  0x52   :  { %1327 = vmatprep.subr.bf16.mxu0 %v1848_v26 }
  0x53   :  { %1629 = vmatpush3.bf16.msra.mxu1 %v1796_v27 }
  0x54   :  { %1630 = vmatprep.subr.bf16.mxu1 %v1798_v29 }
  0x55   :  { %1328 = vmatpush1.bf16.msra.mxu0 %v1812_v42 }
  0x56   :  { %1329 = vmatprep.subr.bf16.mxu0 %v1848_v26 }
  0x57   :  { %1631 = vmatpush3.bf16.msra.mxu1 %v1799_v30 }
  0x58   :  { %1632 = vmatprep.subr.bf16.mxu1 %v1801_v32 }
  0x59   :  { %1330 = vmatpush1.bf16.msra.mxu0 %v1815_v46 }
  0x5a   :  { %1331 = vmatprep.subr.bf16.mxu0 %v1848_v26 }
  0x5b   :  { %1633 = vmatpush3.bf16.msra.mxu1 %v1802_v33 }
  0x5c   :  { %1634 = vmatprep.subr.bf16.mxu1 %v1804_v35 }
  0x5d   :  { %1332 = vmatpush1.bf16.msra.mxu0 %v1821_v54 }
  0x5e   :  { %1333 = vmatprep.subr.bf16.mxu0 %v1848_v26 }
  0x5f   :  { %1635 = vmatpush3.bf16.msra.mxu1 %v1805_v36 }
  0x60   :  { %1676 = vmatprep.subr.bf16.mxu1 %v1810_v39 }
  0x61   :  { %1334 = vmatpush1.bf16.msra.mxu0 %v1825_v57 }
  0x62   :  { %1208 = vmatmul.mubr.bf16.vlgmr.msra.gmra.mxu1 %v1807_v40  ;;  %1343 = vmatprep.subr.bf16.mxu0 %v1848_v26 }
  0x63   :  { %1677 = vmatpush3.bf16.msra.mxu1 %v1811_v41  ;;  %1215 = vmatprep.mubr.bf16.mxu1 %v1413_v47 }
  0x64   :  { %1678 = vmatprep.subr.bf16.mxu1 %v1813_v43 }
  0x65   :  { %1344 = vmatpush2.bf16.msra.mxu0 %v1828_v60 }
  0x66   :  { %1345 = vmatprep.subr.bf16.mxu0 %v1848_v26 }
  0x67   :  { %1679 = vmatpush3.bf16.msra.mxu1 %v1814_v44 }
  0x68   :  { %1680 = vmatprep.subr.bf16.mxu1 %v1818_v49 }
  0x69   :  { %1346 = vmatpush2.bf16.msra.mxu0 %v1831_v63 }
  0x6a   :  { %1216 = vmatmul.mubr.bf16.gmra.mxu1 %v1412_v52  ;;  %1347 = vmatprep.subr.bf16.mxu0 %v1848_v26 }
  0x6b   :  { %1681 = vmatpush3.bf16.msra.mxu1 %v1820_v53  ;;  %1303 = vmatprep.mubr.bf16.mxu1 %v1840_v1 }
  0x6c   :  { %1682 = vmatprep.subr.bf16.mxu1 %v1823_v55 }
  0x6d   :  { %1348 = vmatpush2.bf16.msra.mxu0 %v1834_v4 }
  0x6e   :  { %1349 = vmatprep.subr.bf16.mxu0 %v1848_v26 }
  0x6f   :  { %1683 = vmatpush3.bf16.msra.mxu1 %v1824_v56 }
  0x70   :  { %1684 = vmatprep.subr.bf16.mxu1 %v1826_v58 }
  0x71   :  { %1350 = vmatpush2.bf16.msra.mxu0 %v1837_v7 }
  0x73   :  { %1685 = vmatpush3.bf16.msra.mxu1 %v1827_v59  ;;  %v1391_v59 = vld [vmem:[%s2287_s2] ss:$0 sm:$0xff] }
  0x74   :  { %1686 = vmatprep.subr.bf16.mxu1 %v1829_v61  ;;  %1352 = vmatmul.mubr.bf16.vlgmr.msra.gmra.mxu0 %v1841_v11 }
  0x75   :  { %1529 = vmatprep.mubr.msk.bf16.mxu0 %vm1024_vm0, %v1419_v13 }
  0x77   :  { %1687 = vmatpush3.bf16.msra.mxu1 %v1830_v62 }
  0x78   :  { %1688 = vmatprep.subr.bf16.mxu1 %v1832_v0 }
  0x7b   :  { %1689 = vmatpush3.bf16.msra.mxu1 %v1833_v3 }
  0x7c   :  { %1690 = vmatprep.subr.bf16.mxu1 %v1835_v5  ;;  %1360 = vmatmul.mubr.bf16.gmra.mxu0 %v1418_v15 }
  0x7f   :  { %1691 = vmatpush3.bf16.msra.mxu1 %v1836_v6 }
  0x82   :  { %1304 = vmatmul.mubr.bf16.vlgmr.msra.gmra.mxu1 %v1838_v10 }
  0x83   :  { %1311 = vmatprep.mubr.bf16.mxu1 %v1417_v12 }
  0x8a   :  { %1312 = vmatmul.mubr.bf16.gmra.mxu1 %v1416_v14 }
  0xe2   :  { %v1552_v16 = vpop.f32.mrf.mxu1 }
  0xe4   :  { %v1553_v17 = vpop.f32.mrf.mxu1  ;;  %v1608_v27 = vpop.f32.mrf.mxu0 }
  0xe5   :  { %v1554_v18 = vadd.f32 %v1553_v17, %v1552_v16 }
  0xe6   :  { %v1555_v19 = vpop.f32.mrf.mxu1  ;;  %v1609_v28 = vpop.f32.mrf.mxu0 }
  0xe7   :  { %v1066_v61 = vadd.f32 %v1554_v18, %v1391_v59  ;;  %v1610_v1 = vadd.f32 %v1609_v28, %v1608_v27 }
  0xe8   :  { %v1556_v20 = vpop.f32.mrf.mxu1  ;;  %v1611_v30 = vpop.f32.mrf.mxu0 }
  0xe9   :  { %v1557_v21 = vadd.f32 %v1556_v20, %v1555_v19 }
  0xea   :  { %v1558_v22 = vpop.f32.mrf.mxu1  ;;  %v1612_v33 = vpop.f32.mrf.mxu0 }
  0xeb   :  { %v1069_v0 = vadd.f32 %v1557_v21, %v1391_v59  ;;  %v1613_v7 = vadd.f32 %v1612_v33, %v1611_v30 }
  0xec   :  { %v1559_v23 = vpop.f32.mrf.mxu1  ;;  %v1614_v35 = vpop.f32.mrf.mxu0 }
  0xed   :  { %v1560_v24 = vadd.f32 %v1559_v23, %v1558_v22 }
  0xee   :  { %v1561_v25 = vpop.f32.mrf.mxu1  ;;  %v1615_v37 = vpop.f32.mrf.mxu0 }
  0xef   :  { %v1074_v6 = vadd.f32 %v1560_v24, %v1391_v59  ;;  %v1616_v13 = vadd.f32 %v1615_v37, %v1614_v35 }
  0xf0   :  { %v1562_v26 = vpop.f32.mrf.mxu1  ;;  %v1617_v39 = vpop.f32.mrf.mxu0 }
  0xf2   :  { %v1618_v41 = vpop.f32.mrf.mxu0 }
 0x102   :  { %v1580_v29 = vpop.f32.mrf.mxu1 }
 0x104   :  { %v1581_v31 = vpop.f32.mrf.mxu1  ;;  %v1664_v43 = vpop.f32.mrf.mxu0 }
 0x105   :  { %v1582_v60 = vadd.f32 %v1581_v31, %v1580_v29 }
 0x106   :  { %v1583_v32 = vpop.f32.mrf.mxu1  ;;  %v1665_v44 = vpop.f32.mrf.mxu0 }
 0x107   :  { %v1114_v62 = vadd.f32 %v1582_v60, %v1066_v61  ;;  %v1666_v14 = vadd.f32 %v1665_v44, %v1664_v43 }
 0x108   :  { %v1584_v34 = vpop.f32.mrf.mxu1  ;;  %v1667_v46 = vpop.f32.mrf.mxu0 }
 0x109   :  { %v1585_v63 = vadd.f32 %v1584_v34, %v1583_v32  ;;  %v1162_v5 = vadd.f32 %v1610_v1, %v1114_v62 }
 0x10a   :  { %v1586_v36 = vpop.f32.mrf.mxu1  ;;  %v1668_v49 = vpop.f32.mrf.mxu0 }
 0x10b   :  { %v1117_v3 = vadd.f32 %v1585_v63, %v1069_v0  ;;  %v1669_v26 = vadd.f32 %v1668_v49, %v1667_v46 }
 0x10c   :  { %v1587_v38 = vpop.f32.mrf.mxu1  ;;  %v1670_v51 = vpop.f32.mrf.mxu0 }
 0x10d   :  { %v1588_v4 = vadd.f32 %v1587_v38, %v1586_v36  ;;  %v1165_v15 = vadd.f32 %v1613_v7, %v1117_v3 }
 0x10e   :  { %v1589_v40 = vpop.f32.mrf.mxu1  ;;  %v1671_v53 = vpop.f32.mrf.mxu0 }
 0x10f   :  { %v1122_v12 = vadd.f32 %v1588_v4, %v1074_v6  ;;  %v1672_v27 = vadd.f32 %v1671_v53, %v1670_v51 }
 0x110   :  { %v1590_v42 = vpop.f32.mrf.mxu1  ;;  %v1673_v55 = vpop.f32.mrf.mxu0 }
 0x111   :  { %v1170_v25 = vadd.f32 %v1616_v13, %v1122_v12 }
 0x112   :  { %v1674_v57 = vpop.f32.mrf.mxu0 }
 0x122   :  { %v1636_v45 = vpop.f32.mrf.mxu1 }
 0x124   :  { %v1637_v47 = vpop.f32.mrf.mxu1 }
 0x125   :  { %v1638_v2 = vadd.f32 %v1637_v47, %v1636_v45 }
 0x126   :  { %v1639_v48 = vpop.f32.mrf.mxu1 }
 0x127   :  { %v1210_v8 = vadd.f32 %v1638_v2, %v1162_v5 }
 0x128   :  { %v1640_v50 = vpop.f32.mrf.mxu1 }
 0x129   :  { %v1641_v9 = vadd.f32 %v1640_v50, %v1639_v48  ;;  %v1258_v20 = vadd.f32 %v1666_v14, %v1210_v8 }
 0x12a   :  { %v1642_v52 = vpop.f32.mrf.mxu1 }
 0x12b   :  { %v1213_v18 = vadd.f32 %v1641_v9, %v1165_v15 }
 0x12c   :  { %v1643_v54 = vpop.f32.mrf.mxu1 }
 0x12d   :  { %v1644_v19 = vadd.f32 %v1643_v54, %v1642_v52  ;;  %v1261_v32 = vadd.f32 %v1669_v26, %v1213_v18 }
 0x12e   :  { %v1645_v56 = vpop.f32.mrf.mxu1 }
 0x12f   :  { %v1218_v30 = vadd.f32 %v1644_v19, %v1170_v25 }
 0x130   :  { %v1646_v58 = vpop.f32.mrf.mxu1 }
 0x131   :  { %v1266_v40 = vadd.f32 %v1672_v27, %v1218_v30 }
 0x134   :  { %v1353_v11 = vpop.f32.mrf.mxu0 }
 0x136   :  { %v1355_v17 = vpop.f32.mrf.mxu0 }
 0x138   :  { %v1356_v23 = vpop.f32.mrf.mxu0 }
 0x13a   :  { %v1358_v29 = vpop.f32.mrf.mxu0 }
 0x13c   :  { %v1361_v35 = vpop.f32.mrf.mxu0 }
 0x13e   :  { %v1363_v39 = vpop.f32.mrf.mxu0 }
 0x140   :  { %v1364_v45 = vpop.f32.mrf.mxu0 }
 0x142   :  { %v1692_v10 = vpop.f32.mrf.mxu1  ;;  %v1365_v49 = vpop.f32.mrf.mxu0 }
 0x144   :  { %v1693_v16 = vpop.f32.mrf.mxu1 }
 0x145   :  { %v1694_v21 = vadd.f32 %v1693_v16, %v1692_v10 }
 0x146   :  { %v1695_v22 = vpop.f32.mrf.mxu1 }
 0x147   :  { %v1306_v24 = vadd.f32 %v1694_v21, %v1258_v20 }
 0x148   :  { %v1696_v28 = vpop.f32.mrf.mxu1 }
 0x149   :  { %v1354_v31 = vadd.f32 %v1353_v11, %v1306_v24  ;;  %v1697_v33 = vadd.f32 %v1696_v28, %v1695_v22 }
 0x14a   :  { %v1698_v34 = vpop.f32.mrf.mxu1 }
 0x14b   :  { %v1367_v36 = vmax.f32 %v1354_v31, 0.0  ;;  %v1309_v37 = vadd.f32 %v1697_v33, %v1261_v32 }
 0x14c   :  { %v1699_v38 = vpop.f32.mrf.mxu1 }
 0x14d   :  { %v1533_v41 = vpack.c.bf16 %v1367_v36, %v1367_v36  ;;  %v1357_v42 = vadd.f32 %v1356_v23, %v1309_v37  ;;  %v1700_v43 = vadd.f32 %v1699_v38, %v1698_v34 }
 0x14e   :  { %v1701_v44 = vpop.f32.mrf.mxu1 }
 0x14f   :  { %1384 = vst.msk [vmem:[%s2288_s3] sm:$0xf] %vm1383_vm1, %v1533_v41  ;;  %v1368_v46 = vmax.f32 %v1357_v42, 0.0  ;;  %v1314_v47 = vadd.f32 %v1700_v43, %v1266_v40 }
 0x150   :  { %v1702_v48 = vpop.f32.mrf.mxu1 }
 0x151   :  { %v1534_v50 = vpack.c.bf16 %v1368_v46, %v1368_v46  ;;  %v1362_v51 = vadd.f32 %v1361_v35, %v1314_v47 }
 0x153   :  { %1385 = vst.msk [vmem:[%s2288_s3 + $0x4] sm:$0xf] %vm1383_vm1, %v1534_v50  ;;  %v1369_v52 = vmax.f32 %v1362_v51, 0.0 }
 0x155   :  { %v1535_v53 = vpack.c.bf16 %v1369_v52, %v1369_v52 }
 0x157   :  { %1386 = vst.msk [vmem:[%s2288_s3 + $0x8] sm:$0xf] %vm1383_vm1, %v1535_v53 }

// kernel: _lambda_.23
= control target key start
LH: loop header
LB: loop body
LE: loop exit
PB: predicated region body
PF: predicated region fallthrough
CT: control target
= control target key end

     0   :  { %v207_v0 = vmov 0   ;;  %vm125_vm0 = vcmask 523264   ;;  %s273_s1 = inlined_call_operand.vmem [shape: bf16[192,128], index: 1, kind: input, shape index: {}]   ;;  %s274_s0 = inlined_call_operand.vmem [shape: bf16[8,192], index: 0, kind: input, shape index: {}]   ;;  %s275_s2 = inlined_call_operand.vmem [shape: f32[1,128], index: 2, kind: input, shape index: {}]   ;;  %s276_s3 = inlined_call_operand.vmem [shape: bf16[8,128], index: 3, kind: output, shape index: {}]  }
   0x1   :  { %129 = vmatprep.subr.bf16.mxu0 %v207_v0  ;;  %v193_v1 = vld [vmem:[%s273_s1 + $0x38] sm:$0xff]   ;;  %v194_v2 = vld [vmem:[%s273_s1 + $0x30] sm:$0xff]   ;;  %v195_v3 = vld [vmem:[%s273_s1 + $0x28] sm:$0xff]  }
   0x2   :  { %130 = vmatpush1.bf16.msra.mxu0 %v193_v1  ;;  %v196_v4 = vld [vmem:[%s273_s1 + $0x20] sm:$0xff]   ;;  %v197_v7 = vld [vmem:[%s273_s1 + $0x18] sm:$0xff]   ;;  %v198_v8 = vld [vmem:[%s273_s1 + $0x10] sm:$0xff]  }
   0x3   :  { %131 = vmatprep.subr.bf16.mxu0 %v207_v0  ;;  %v15_v5 = vld [vmem:[%s274_s0] sm:$0xff]  ;;  %v199_v9 = vld [vmem:[%s273_s1 + $0x8] sm:$0xff]   ;;  %v201_v11 = vld [vmem:[%s273_s1 + $0x58] sm:$0xff]  }
   0x4   :  { %v178_v6 = vcombine.high %v15_v5, %v15_v5  ;;  %v200_v10 = vld [vmem:[%s273_s1] sm:$0xff]   ;;  %v202_v12 = vld [vmem:[%s273_s1 + $0x50] sm:$0xff]   ;;  %v203_v13 = vld [vmem:[%s273_s1 + $0x48] sm:$0xff]   ;;  %v177_v15 = vcombine.low %v15_v5, %v15_v5 }
   0x5   :  { %v204_v14 = vld [vmem:[%s273_s1 + $0x40] sm:$0xff]  }
   0x6   :  { %132 = vmatpush1.bf16.msra.mxu0 %v194_v2  ;;  %191 = vmatprep.mubr.msk.bf16.mxu0 %vm125_vm0, %v178_v6  ;;  %v176_v16 = vld [vmem:[%s275_s2] ss:$0 sm:$0xff] }
   0x7   :  { %133 = vmatprep.subr.bf16.mxu0 %v207_v0 }
   0xa   :  { %134 = vmatpush1.bf16.msra.mxu0 %v195_v3 }
   0xb   :  { %135 = vmatprep.subr.bf16.mxu0 %v207_v0 }
   0xe   :  { %136 = vmatpush1.bf16.msra.mxu0 %v196_v4 }
   0xf   :  { %137 = vmatprep.subr.bf16.mxu0 %v207_v0 }
  0x12   :  { %138 = vmatpush1.bf16.msra.mxu0 %v197_v7 }
  0x13   :  { %139 = vmatprep.subr.bf16.mxu0 %v207_v0 }
  0x16   :  { %140 = vmatpush1.bf16.msra.mxu0 %v198_v8 }
  0x17   :  { %141 = vmatprep.subr.bf16.mxu0 %v207_v0 }
  0x1a   :  { %142 = vmatpush1.bf16.msra.mxu0 %v199_v9 }
  0x1b   :  { %143 = vmatprep.subr.bf16.mxu0 %v207_v0 }
  0x1e   :  { %144 = vmatpush1.bf16.msra.mxu0 %v200_v10 }
  0x1f   :  { %153 = vmatprep.subr.bf16.mxu0 %v207_v0 }
  0x22   :  { %154 = vmatpush2.bf16.msra.mxu0 %v201_v11 }
  0x23   :  { %155 = vmatprep.subr.bf16.mxu0 %v207_v0 }
  0x26   :  { %156 = vmatpush2.bf16.msra.mxu0 %v202_v12 }
  0x27   :  { %157 = vmatprep.subr.bf16.mxu0 %v207_v0 }
  0x2a   :  { %158 = vmatpush2.bf16.msra.mxu0 %v203_v13 }
  0x2b   :  { %159 = vmatprep.subr.bf16.mxu0 %v207_v0 }
  0x2e   :  { %160 = vmatpush2.bf16.msra.mxu0 %v204_v14 }
  0x31   :  { %162 = vmatmul.mubr.bf16.vlgmr.msra.gmra.mxu0 %v177_v15 }
  0xf1   :  { %v163_v17 = vpop.f32.mrf.mxu0 }
  0xf2   :  { %v164_v18 = vadd.f32 %v176_v16, %v163_v17 }
  0xf3   :  { %v165_v19 = vpop.f32.mrf.mxu0 }
  0xf4   :  { %v169_v20 = vmax.f32 %v164_v18, 0.0 }
  0xf5   :  { %v166_v21 = vpop.f32.mrf.mxu0 }
  0xf6   :  { %v170_v22 = vpack.c.bf16 %v169_v20, %v169_v20 }
  0xf7   :  { %v167_v23 = vpop.f32.mrf.mxu0 }
  0xf8   :  { %171 = vst [vmem:[%s276_s3] sm:$0xf] %v170_v22 }

</bundles_post_ra>
